<compile_context>
chip_gen: v7x
topology: tpu7x:2x2x1
jax: 0.10.0
libtpu: 0.0.40
codegen_flags: <defaults>
</compile_context>

<pallas_src>
import numpy as np
import jax
import jax.numpy as jnp
from jax.experimental import pallas as pl
from jax.experimental.pallas import tpu as pltpu

# ---------------- config (small but consistent with the module) --------------
INPUT_SIZE = 64        # model input_size
HIDDEN = 128           # hidden_size (divisible by 8 MHA heads)
MAX_SUBTASKS = 16
NB_HIDDEN = 256        # NBEATSBlock hidden_size
THETA = 128            # NBEATSBlock theta_size
BASIS = 2 * HIDDEN     # NBEATSBlock basis_size
NUM_BLOCKS = 3
NUM_STACKS = 3
NUM_STRATEGIES = 4
NUM_TASK_TYPES = 8
NUM_HARMONICS = 8
BATCH = 4

MXU_DTYPE = jnp.bfloat16   # matmul-operand dtype; accumulation stays float32

# ---- packed N-BEATS weight slab: per block, 5 matrices, all 256 lanes wide --
# w0 (128,256) | w1 (256,256) | w2 (256,256) | w3 padded to (256,256) |
# wb padded to (256,256)  ->  1152 rows / block, 9 blocks -> (10368, 256) bf16
W0_OFF, W1_OFF, W2_OFF, W3_OFF, WB_OFF = 0, 128, 384, 640, 896
WROWS_PER_BLOCK = 1152
BROWS_PER_BLOCK = 5          # bias slab: (45, 256) f32, one 256-wide row each

# ---- packed "small" output lane layout (width 384 = 3 vregs) -----------------
DEP_OFF, DEP_END = 0, 256          # dependency matrix (16*16), sigmoid
CPL_OFF, CPL_END = 256, 272        # complexity scores (16), sigmoid
DUR_OFF, DUR_END = 272, 288        # duration estimates (16), relu
CNT_OFF, CNT_END = 288, 289        # subtask count (1), sigmoid
QUA_OFF, QUA_END = 289, 292        # quality estimates (3), sigmoid
STR_OFF, STR_END = 292, 296        # strategy probabilities (4), softmax
TTY_OFF, TTY_END = 296, 304        # task type probabilities (8), softmax
CNF_OFF, CNF_END = 304, 305        # confidence score (1), sigmoid
SMALL_W = 384
BIG_W = 6 * HIDDEN                 # encoded|trend_f|seas_f|gen_f|combined|adaptive
OUT_W = BIG_W + SMALL_W            # single packed (B, 1152) output

HEAD_IN_W = 1024                   # fused head hidden: 640 heads + 320 interp + 64 pad


def _vmem():
    return pl.BlockSpec(memory_space=pltpu.MemorySpace.VMEM)


# ---------------- the single fused forward kernel -----------------------------
def fused_forward_kernel(x_ref, nb_w, nb_b, misc_w, head_w1, head_w2, misc_b,
                         out_ref):
    B = x_ref.shape[0]
    H = HIDDEN

    def mm(act, w):
        # MXU matmul: bf16 operands, float32 accumulation.
        return jnp.dot(act.astype(MXU_DTYPE), w, preferred_element_type=jnp.float32)

    def sig(v):
        # sigmoid with the divide on the EUP (approx reciprocal).
        return pl.reciprocal(1.0 + jnp.exp(-v), approx=True)

    def enc_layer(h, w, b, g, z):
        y = mm(h, w) + b
        # one-pass LayerNorm stats: var = E[y^2] - mu^2
        mu = jnp.mean(y, axis=-1, keepdims=True)
        ms = jnp.mean(y * y, axis=-1, keepdims=True)
        yn = (y - mu) * jax.lax.rsqrt(ms - mu * mu + 1e-5)
        return jnp.maximum(yn * g + z, 0.0)

    # ---- input encoder (Linear + LayerNorm + ReLU, x2; dropout = identity) --
    encoded = enc_layer(x_ref[...], misc_w[0:INPUT_SIZE, :],
                        misc_b[0:1, 0:H], misc_b[0:1, H:2 * H],
                        misc_b[0:1, 2 * H:3 * H])
    encoded = enc_layer(encoded, misc_w[INPUT_SIZE:INPUT_SIZE + H, :],
                        misc_b[0:1, 3 * H:4 * H], misc_b[0:1, 4 * H:5 * H],
                        misc_b[0:1, 5 * H:6 * H])

    # ---- trend / seasonality / generic N-BEATS stacks, fully unrolled -------
    residual = encoded
    stack_forecasts = []
    for s in range(NUM_STACKS):
        fsum = jnp.zeros((B, H), jnp.float32)
        for blk in range(NUM_BLOCKS):
            i = s * NUM_BLOCKS + blk
            wr = i * WROWS_PER_BLOCK
            br = i * BROWS_PER_BLOCK
            h = jnp.maximum(mm(residual, nb_w[wr + W0_OFF:wr + W0_OFF + H, :])
                            + nb_b[br + 0:br + 1, :], 0.0)
            h = jnp.maximum(mm(h, nb_w[wr + W1_OFF:wr + W1_OFF + NB_HIDDEN, :])
                            + nb_b[br + 1:br + 2, :], 0.0)
            h = jnp.maximum(mm(h, nb_w[wr + W2_OFF:wr + W2_OFF + NB_HIDDEN, :])
                            + nb_b[br + 2:br + 3, :], 0.0)
            # theta padded to 256 lanes (upper 128 are exactly zero); the padded
            # rows of wb are zero so the basis result is unchanged.
            theta = mm(h, nb_w[wr + W3_OFF:wr + W3_OFF + NB_HIDDEN, :]) \
                + nb_b[br + 3:br + 4, :]
            basis = mm(theta, nb_w[wr + WB_OFF:wr + WB_OFF + NB_HIDDEN, :]) \
                + nb_b[br + 4:br + 5, :]
            fsum = fsum + basis[:, :H]              # forecast = first half
            residual = residual - basis[:, H:]      # backcast = second half
        stack_forecasts.append(fsum)
    trend_f, seas_f, gen_f = stack_forecasts
    combined = trend_f + seas_f + gen_f

    # adaptive components: generic_forecast @ adaptive_basis (no bias)
    adaptive = mm(gen_f, misc_w[INPUT_SIZE + H:INPUT_SIZE + 2 * H, :])

    # ---- all decomposition + interpretability heads in exactly two matmuls.
    # seq_len==1 attention -> softmax over one key == 1, so
    # attended = out_proj(V_proj(combined)); that linear chain plus the interp
    # first layers were folded into head_w1 columns 640:960 at init.
    hcat = jnp.maximum(mm(combined, head_w1[...]) + misc_b[1:2, :], 0.0)  # (B,1024)
    z = mm(hcat, head_w2[...]) + misc_b[2:3, 0:SMALL_W]                   # (B,384)

    # dependency matrix: two full vregs, plain sigmoid
    dep = sig(z[:, DEP_OFF:DEP_END])

    # everything else lives in the last 128-lane group
    zs = z[:, DEP_END:SMALL_W]                                            # (B,128)
    lane = jax.lax.broadcasted_iota(jnp.int32, zs.shape, 1)
    dur_m = (lane >= DUR_OFF - DEP_END) & (lane < DUR_END - DEP_END)
    str_m = (lane >= STR_OFF - DEP_END) & (lane < STR_END - DEP_END)
    tty_m = (lane >= TTY_OFF - DEP_END) & (lane < TTY_END - DEP_END)

    def msoftmax(logits, m):
        zm = jnp.where(m, logits, -1e30)
        mx = jnp.max(zm, axis=-1, keepdims=True)
        e = jnp.where(m, jnp.exp(zm - mx), 0.0)
        return e * pl.reciprocal(jnp.sum(e, axis=-1, keepdims=True), approx=True)

    base = jnp.where(dur_m, jnp.maximum(zs, 0.0), sig(zs))
    small = jnp.where(str_m, msoftmax(zs, str_m),
                      jnp.where(tty_m, msoftmax(zs, tty_m), base))

    # ---- one lane-dense packed output slab (all 128-aligned stores) ---------
    out_ref[:, 0 * H:1 * H] = encoded
    out_ref[:, 1 * H:2 * H] = trend_f
    out_ref[:, 2 * H:3 * H] = seas_f
    out_ref[:, 3 * H:4 * H] = gen_f
    out_ref[:, 4 * H:5 * H] = combined
    out_ref[:, 5 * H:6 * H] = adaptive
    out_ref[:, BIG_W:BIG_W + 256] = dep
    out_ref[:, BIG_W + 256:OUT_W] = small


PARAM_ORDER = ("nb_w", "nb_b", "misc_w", "head_w1", "head_w2", "misc_b")


def forward(params, x):
    B = x.shape[0]
    H = HIDDEN
    out = pl.pallas_call(
        fused_forward_kernel,
        out_shape=jax.ShapeDtypeStruct((B, OUT_W), jnp.float32),
        in_specs=[_vmem() for _ in range(1 + len(PARAM_ORDER))],
        out_specs=_vmem(),
        compiler_params=pltpu.CompilerParams(
            vmem_limit_bytes=16 * 1024 * 1024),
    )(x, *(params[k] for k in PARAM_ORDER))

    encoded = out[:, 0 * H:1 * H]
    trend_f = out[:, 1 * H:2 * H]
    seas_f = out[:, 2 * H:3 * H]
    gen_f = out[:, 3 * H:4 * H]
    combined = out[:, 4 * H:5 * H]
    adaptive = out[:, 5 * H:6 * H]
    sb = BIG_W

    # input-independent interpretable components (exact match to the PyTorch
    # module, which builds them from parameters only and broadcasts over batch)
    trend_components = jnp.broadcast_to(params["trend_comp"][None], (B, H, H))
    seasonal_components = jnp.broadcast_to(params["seas_comp"][None], (B, H, H))

    return {
        "complexity_scores": out[:, sb + CPL_OFF:sb + CPL_END],
        "duration_estimates": out[:, sb + DUR_OFF:sb + DUR_END],
        "dependency_matrix": out[:, sb + DEP_OFF:sb + DEP_END].reshape(
            B, MAX_SUBTASKS, MAX_SUBTASKS),
        "subtask_count": out[:, sb + CNT_OFF:sb + CNT_END],
        "quality_estimates": out[:, sb + QUA_OFF:sb + QUA_END],
        "trend_components": trend_components,
        "seasonal_components": seasonal_components,
        "adaptive_components": adaptive,
        "trend_forecast": trend_f,
        "seasonal_forecast": seas_f,
        "generic_forecast": gen_f,
        "strategy_probabilities": out[:, sb + STR_OFF:sb + STR_END],
        "task_type_probabilities": out[:, sb + TTY_OFF:sb + TTY_END],
        "confidence_score": out[:, sb + CNF_OFF:sb + CNF_END],
        # seq_len == 1 attention: weights are exactly 1 after softmax
        "feature_attention": jnp.ones((B, 1), jnp.float32),
        "feature_importance": jnp.ones((B,), jnp.float32),
        "combined_features": combined,
        "encoded_features": encoded,
    }


# ---------------- parameter initialization (deterministic, synthetic) --------
def init_params(key):
    keys = iter(jax.random.split(key, 256))
    H = HIDDEN

    def rnd(shape, scale=1.0):
        return np.asarray(jax.random.normal(next(keys), shape, jnp.float32)) * scale

    def dense(fan_in, fan_out):
        w = rnd((fan_in, fan_out), 1.0 / np.sqrt(fan_in))
        b = rnd((1, fan_out), 0.01)
        return w, b

    def bf(a):
        return jnp.asarray(a, dtype=MXU_DTYPE)

    def f32(a):
        return jnp.asarray(a, dtype=jnp.float32)

    p = {}

    # ---- encoder + adaptive basis -> misc_w (320,128) bf16; enc LN params ---
    e1w, e1b = dense(INPUT_SIZE, H)
    e2w, e2b = dense(H, H)
    adaptive_w = rnd((H, H))
    p["misc_w"] = bf(np.concatenate([e1w, e2w, adaptive_w], axis=0))

    misc_b = np.zeros((3, HEAD_IN_W), np.float32)
    misc_b[0, 0 * H:1 * H] = e1b[0]
    misc_b[0, 1 * H:2 * H] = 1.0     # enc1 LayerNorm gamma
    misc_b[0, 2 * H:3 * H] = 0.0     # enc1 LayerNorm beta
    misc_b[0, 3 * H:4 * H] = e2b[0]
    misc_b[0, 4 * H:5 * H] = 1.0     # enc2 LayerNorm gamma
    misc_b[0, 5 * H:6 * H] = 0.0     # enc2 LayerNorm beta

    # ---- N-BEATS blocks: 3 stacks x 3 blocks, packed 256-wide ---------------
    w_rows, b_rows = [], []
    for _ in range(NUM_STACKS * NUM_BLOCKS):
        w0, b0 = dense(H, NB_HIDDEN)
        w1, b1 = dense(NB_HIDDEN, NB_HIDDEN)
        w2, b2 = dense(NB_HIDDEN, NB_HIDDEN)
        w3, b3 = dense(NB_HIDDEN, THETA)
        wbx, bbx = dense(THETA, BASIS)
        w3p = np.zeros((NB_HIDDEN, NB_HIDDEN), np.float32); w3p[:, :THETA] = w3
        wbp = np.zeros((NB_HIDDEN, BASIS), np.float32);     wbp[:THETA, :] = wbx
        b3p = np.zeros((1, NB_HIDDEN), np.float32);         b3p[:, :THETA] = b3
        w_rows.append(np.concatenate([w0, w1, w2, w3p, wbp], axis=0))  # (1152,256)
        b_rows.append(np.concatenate([b0, b1, b2, b3p, bbx], axis=0))  # (5,256)
    p["nb_w"] = bf(np.concatenate(w_rows, axis=0))                     # (10368,256)
    p["nb_b"] = f32(np.concatenate(b_rows, axis=0))                    # (45,256)

    # ---- attention (seq_len==1: Q/K cancel exactly) + interp heads, fused ----
    wv, bv = dense(H, H)
    wo, bo = dense(H, H)
    wvo = wv @ wo                 # combined -> attended weight
    bvo = bv @ wo + bo            # combined -> attended bias

    sw1, sb1 = dense(H, 128); sw2, sb2 = dense(128, NUM_STRATEGIES)
    tw1, tb1 = dense(H, 128); tw2, tb2 = dense(128, NUM_TASK_TYPES)
    cw1, cb1 = dense(H, 64);  cw2, cb2 = dense(64, 1)
    iw1 = np.concatenate([sw1, tw1, cw1], axis=1)      # (H, 320)
    ib1 = np.concatenate([sb1, tb1, cb1], axis=1)      # (1, 320)
    iw1f = wvo @ iw1                                   # attended path folded in
    ib1f = bvo @ iw1 + ib1

    # decomposition heads (driven by combined_features directly)
    pw1, pb1 = dense(H, 256); pw2, pb2 = dense(256, MAX_SUBTASKS * MAX_SUBTASKS)
    xw1, xb1 = dense(H, 128); xw2, xb2 = dense(128, MAX_SUBTASKS)
    dw1, db1 = dense(H, 128); dw2, db2 = dense(128, MAX_SUBTASKS)
    kw1, kb1 = dense(H, 64);  kw2, kb2 = dense(64, 1)
    qw1, qb1 = dense(H, 64);  qw2, qb2 = dense(64, 3)

    w_a = np.zeros((H, HEAD_IN_W), np.float32)
    w_a[:, 0:640] = np.concatenate([pw1, xw1, dw1, kw1, qw1], axis=1)
    w_a[:, 640:960] = iw1f
    p["head_w1"] = bf(w_a)
    misc_b[1, 0:640] = np.concatenate([pb1, xb1, db1, kb1, qb1], axis=1)[0]
    misc_b[1, 640:960] = ib1f[0]

    w_b = np.zeros((HEAD_IN_W, SMALL_W), np.float32)
    w_b[0:256,   DEP_OFF:DEP_END] = pw2
    w_b[256:384, CPL_OFF:CPL_END] = xw2
    w_b[384:512, DUR_OFF:DUR_END] = dw2
    w_b[512:576, CNT_OFF:CNT_END] = kw2
    w_b[576:640, QUA_OFF:QUA_END] = qw2
    w_b[640:768, STR_OFF:STR_END] = sw2
    w_b[768:896, TTY_OFF:TTY_END] = tw2
    w_b[896:960, CNF_OFF:CNF_END] = cw2
    p["head_w2"] = bf(w_b)

    misc_b[2, DEP_OFF:DEP_END] = pb2[0]
    misc_b[2, CPL_OFF:CPL_END] = xb2[0]
    misc_b[2, DUR_OFF:DUR_END] = db2[0]
    misc_b[2, CNT_OFF:CNT_END] = kb2[0]
    misc_b[2, QUA_OFF:QUA_END] = qb2[0]
    misc_b[2, STR_OFF:STR_END] = sb2[0]
    misc_b[2, TTY_OFF:TTY_END] = tb2[0]
    misc_b[2, CNF_OFF:CNF_END] = cb2[0]
    p["misc_b"] = f32(misc_b)

    # ---- interpretable components: parameter-only, precomputed (hoisted) ----
    trend_coeff = rnd((H, 4))
    seas_coeff = rnd((H, 2 * NUM_HARMONICS))
    t1 = np.linspace(0.0, 1.0, H, dtype=np.float32)
    poly = np.stack([t1 ** i for i in range(4)], axis=0)              # (4, H)
    t2 = np.linspace(0.0, 2.0 * np.pi, H, dtype=np.float32)
    four = []
    for i in range(1, NUM_HARMONICS + 1):
        four.append(np.sin(i * t2))
        four.append(np.cos(i * t2))
    four = np.stack(four, axis=0)                                     # (16, H)
    p["trend_comp"] = f32(trend_coeff @ poly)                         # (H, H)
    p["seas_comp"] = f32(seas_coeff @ four)                           # (H, H)
    return p


if __name__ == "__main__":
    key = jax.random.PRNGKey(0)
    pkey, xkey = jax.random.split(key)
    params = init_params(pkey)
    x = jax.random.normal(xkey, (BATCH, INPUT_SIZE), jnp.float32)

    outputs = jax.jit(forward)(params, x)
    jax.block_until_ready(outputs)

    assert outputs["dependency_matrix"].shape == (BATCH, MAX_SUBTASKS, MAX_SUBTASKS)
    assert outputs["complexity_scores"].shape == (BATCH, MAX_SUBTASKS)
    assert outputs["duration_estimates"].shape == (BATCH, MAX_SUBTASKS)
    assert outputs["subtask_count"].shape == (BATCH, 1)
    assert outputs["quality_estimates"].shape == (BATCH, 3)
    assert outputs["strategy_probabilities"].shape == (BATCH, NUM_STRATEGIES)
    assert outputs["task_type_probabilities"].shape == (BATCH, NUM_TASK_TYPES)
    assert outputs["confidence_score"].shape == (BATCH, 1)
    assert outputs["trend_components"].shape == (BATCH, HIDDEN, HIDDEN)
    assert outputs["seasonal_components"].shape == (BATCH, HIDDEN, HIDDEN)
    assert outputs["adaptive_components"].shape == (BATCH, HIDDEN)
    assert outputs["encoded_features"].shape == (BATCH, HIDDEN)
    assert outputs["feature_attention"].shape == (BATCH, 1)
    assert outputs["feature_importance"].shape == (BATCH,)
    assert bool(jnp.all(jnp.isfinite(outputs["combined_features"])))
    # approx-reciprocal softmax: allow a slightly looser tolerance
    assert np.allclose(np.asarray(jnp.sum(outputs["strategy_probabilities"], -1)),
                       1.0, atol=1e-2)
    assert np.allclose(np.asarray(jnp.sum(outputs["task_type_probabilities"], -1)),
                       1.0, atol=1e-2)
    assert bool(jnp.all(outputs["duration_estimates"] >= 0.0))
    print("KERNEL_OK")
</pallas_src>

<mosaic_0001>
module attributes {stable_mosaic.version = 11 : i64} {
  func.func @fused_forward_kernel(%arg0: memref<4x64xf32, #tpu.memory_space<vmem>>, %arg1: memref<10368x256xbf16, #tpu.memory_space<vmem>>, %arg2: memref<45x256xf32, #tpu.memory_space<vmem>>, %arg3: memref<320x128xbf16, #tpu.memory_space<vmem>>, %arg4: memref<128x1024xbf16, #tpu.memory_space<vmem>>, %arg5: memref<1024x384xbf16, #tpu.memory_space<vmem>>, %arg6: memref<3x1024xf32, #tpu.memory_space<vmem>>, %arg7: memref<4x1152xf32, #tpu.memory_space<vmem>>) attributes {dimension_semantics = [], scalar_prefetch = 0 : i64, scratch_operands = 0 : i64, tpu.core_type = #tpu.core_type<tc>} {
    %c0 = arith.constant 0 : index
    %c0_0 = arith.constant 0 : index
    %0 = vector.load %arg0[%c0, %c0_0] : memref<4x64xf32, #tpu.memory_space<vmem>>, vector<4x64xf32>
    %c0_1 = arith.constant 0 : index
    %c0_2 = arith.constant 0 : index
    %1 = vector.load %arg3[%c0_1, %c0_2] : memref<320x128xbf16, #tpu.memory_space<vmem>>, vector<64x128xbf16>
    %c0_3 = arith.constant 0 : index
    %c0_4 = arith.constant 0 : index
    %2 = vector.load %arg6[%c0_3, %c0_4] : memref<3x1024xf32, #tpu.memory_space<vmem>>, vector<1x128xf32>
    %c0_5 = arith.constant 0 : index
    %c128 = arith.constant 128 : index
    %3 = vector.load %arg6[%c0_5, %c128] : memref<3x1024xf32, #tpu.memory_space<vmem>>, vector<1x128xf32>
    %c0_6 = arith.constant 0 : index
    %c256 = arith.constant 256 : index
    %4 = vector.load %arg6[%c0_6, %c256] : memref<3x1024xf32, #tpu.memory_space<vmem>>, vector<1x128xf32>
    %5 = arith.truncf %0 : vector<4x64xf32> to vector<4x64xbf16>
    %cst = arith.constant dense<0.000000e+00> : vector<4x128xf32>
    %6 = tpu.matmul %5, %1, %cst {dimension_numbers = #tpu.dot_dimension_numbers<[1], [0], [0], [1], [0, 0, 1, 1], [], []>} : vector<4x64xbf16>, vector<64x128xbf16>, vector<4x128xf32> -> vector<4x128xf32>
    %7 = vector.broadcast %2 : vector<1x128xf32> to vector<4x128xf32>
    %8 = arith.addf %6, %7 : vector<4x128xf32>
    %cst_7 = arith.constant dense<0.000000e+00> : vector<4xf32>
    %9 = vector.multi_reduction <add>, %8, %cst_7 [1] : vector<4x128xf32> to vector<4xf32>
    %10 = vector.shape_cast %9 : vector<4xf32> to vector<4x1xf32>
    %cst_8 = arith.constant 1.280000e+02 : f32
    %11 = vector.broadcast %cst_8 : f32 to vector<4x1xf32>
    %12 = arith.divf %10, %11 : vector<4x1xf32>
    %13 = arith.mulf %8, %8 : vector<4x128xf32>
    %cst_9 = arith.constant dense<0.000000e+00> : vector<4xf32>
    %14 = vector.multi_reduction <add>, %13, %cst_9 [1] : vector<4x128xf32> to vector<4xf32>
    %15 = vector.shape_cast %14 : vector<4xf32> to vector<4x1xf32>
    %cst_10 = arith.constant 1.280000e+02 : f32
    %16 = vector.broadcast %cst_10 : f32 to vector<4x1xf32>
    %17 = arith.divf %15, %16 : vector<4x1xf32>
    %18 = vector.broadcast %12 : vector<4x1xf32> to vector<4x128xf32>
    %19 = arith.subf %8, %18 : vector<4x128xf32>
    %20 = arith.mulf %12, %12 : vector<4x1xf32>
    %21 = arith.subf %17, %20 : vector<4x1xf32>
    %cst_11 = arith.constant 9.99999974E-6 : f32
    %22 = vector.broadcast %cst_11 : f32 to vector<4x1xf32>
    %23 = arith.addf %21, %22 : vector<4x1xf32>
    %24 = math.rsqrt %23 : vector<4x1xf32>
    %25 = vector.broadcast %24 : vector<4x1xf32> to vector<4x128xf32>
    %26 = arith.mulf %19, %25 : vector<4x128xf32>
    %27 = vector.broadcast %3 : vector<1x128xf32> to vector<4x128xf32>
    %28 = arith.mulf %26, %27 : vector<4x128xf32>
    %29 = vector.broadcast %4 : vector<1x128xf32> to vector<4x128xf32>
    %30 = arith.addf %28, %29 : vector<4x128xf32>
    %cst_12 = arith.constant 0.000000e+00 : f32
    %31 = vector.broadcast %cst_12 : f32 to vector<4x128xf32>
    %32 = arith.maximumf %30, %31 : vector<4x128xf32>
    %c64 = arith.constant 64 : index
    %c0_13 = arith.constant 0 : index
    %33 = vector.load %arg3[%c64, %c0_13] : memref<320x128xbf16, #tpu.memory_space<vmem>>, vector<128x128xbf16>
    %c0_14 = arith.constant 0 : index
    %c384 = arith.constant 384 : index
    %34 = vector.load %arg6[%c0_14, %c384] : memref<3x1024xf32, #tpu.memory_space<vmem>>, vector<1x128xf32>
    %c0_15 = arith.constant 0 : index
    %c512 = arith.constant 512 : index
    %35 = vector.load %arg6[%c0_15, %c512] : memref<3x1024xf32, #tpu.memory_space<vmem>>, vector<1x128xf32>
    %c0_16 = arith.constant 0 : index
    %c640 = arith.constant 640 : index
    %36 = vector.load %arg6[%c0_16, %c640] : memref<3x1024xf32, #tpu.memory_space<vmem>>, vector<1x128xf32>
    %37 = arith.truncf %32 : vector<4x128xf32> to vector<4x128xbf16>
    %cst_17 = arith.constant dense<0.000000e+00> : vector<4x128xf32>
    %38 = tpu.matmul %37, %33, %cst_17 {dimension_numbers = #tpu.dot_dimension_numbers<[1], [0], [0], [1], [0, 0, 1, 1], [], []>} : vector<4x128xbf16>, vector<128x128xbf16>, vector<4x128xf32> -> vector<4x128xf32>
    %39 = vector.broadcast %34 : vector<1x128xf32> to vector<4x128xf32>
    %40 = arith.addf %38, %39 : vector<4x128xf32>
    %cst_18 = arith.constant dense<0.000000e+00> : vector<4xf32>
    %41 = vector.multi_reduction <add>, %40, %cst_18 [1] : vector<4x128xf32> to vector<4xf32>
    %42 = vector.shape_cast %41 : vector<4xf32> to vector<4x1xf32>
    %cst_19 = arith.constant 1.280000e+02 : f32
    %43 = vector.broadcast %cst_19 : f32 to vector<4x1xf32>
    %44 = arith.divf %42, %43 : vector<4x1xf32>
    %45 = arith.mulf %40, %40 : vector<4x128xf32>
    %cst_20 = arith.constant dense<0.000000e+00> : vector<4xf32>
    %46 = vector.multi_reduction <add>, %45, %cst_20 [1] : vector<4x128xf32> to vector<4xf32>
    %47 = vector.shape_cast %46 : vector<4xf32> to vector<4x1xf32>
    %cst_21 = arith.constant 1.280000e+02 : f32
    %48 = vector.broadcast %cst_21 : f32 to vector<4x1xf32>
    %49 = arith.divf %47, %48 : vector<4x1xf32>
    %50 = vector.broadcast %44 : vector<4x1xf32> to vector<4x128xf32>
    %51 = arith.subf %40, %50 : vector<4x128xf32>
    %52 = arith.mulf %44, %44 : vector<4x1xf32>
    %53 = arith.subf %49, %52 : vector<4x1xf32>
    %cst_22 = arith.constant 9.99999974E-6 : f32
    %54 = vector.broadcast %cst_22 : f32 to vector<4x1xf32>
    %55 = arith.addf %53, %54 : vector<4x1xf32>
    %56 = math.rsqrt %55 : vector<4x1xf32>
    %57 = vector.broadcast %56 : vector<4x1xf32> to vector<4x128xf32>
    %58 = arith.mulf %51, %57 : vector<4x128xf32>
    %59 = vector.broadcast %35 : vector<1x128xf32> to vector<4x128xf32>
    %60 = arith.mulf %58, %59 : vector<4x128xf32>
    %61 = vector.broadcast %36 : vector<1x128xf32> to vector<4x128xf32>
    %62 = arith.addf %60, %61 : vector<4x128xf32>
    %cst_23 = arith.constant 0.000000e+00 : f32
    %63 = vector.broadcast %cst_23 : f32 to vector<4x128xf32>
    %64 = arith.maximumf %62, %63 : vector<4x128xf32>
    %cst_24 = arith.constant 0.000000e+00 : f32
    %65 = vector.broadcast %cst_24 : f32 to vector<4x128xf32>
    %c0_25 = arith.constant 0 : index
    %c0_26 = arith.constant 0 : index
    %66 = vector.load %arg1[%c0_25, %c0_26] : memref<10368x256xbf16, #tpu.memory_space<vmem>>, vector<128x256xbf16>
    %67 = arith.truncf %64 : vector<4x128xf32> to vector<4x128xbf16>
    %cst_27 = arith.constant dense<0.000000e+00> : vector<4x256xf32>
    %68 = tpu.matmul %67, %66, %cst_27 {dimension_numbers = #tpu.dot_dimension_numbers<[1], [0], [0], [1], [0, 0, 1, 1], [], []>} : vector<4x128xbf16>, vector<128x256xbf16>, vector<4x256xf32> -> vector<4x256xf32>
    %c0_28 = arith.constant 0 : index
    %c0_29 = arith.constant 0 : index
    %69 = vector.load %arg2[%c0_28, %c0_29] : memref<45x256xf32, #tpu.memory_space<vmem>>, vector<1x256xf32>
    %70 = vector.broadcast %69 : vector<1x256xf32> to vector<4x256xf32>
    %71 = arith.addf %68, %70 : vector<4x256xf32>
    %cst_30 = arith.constant 0.000000e+00 : f32
    %72 = vector.broadcast %cst_30 : f32 to vector<4x256xf32>
    %73 = arith.maximumf %71, %72 : vector<4x256xf32>
    %c128_31 = arith.constant 128 : index
    %c0_32 = arith.constant 0 : index
    %74 = vector.load %arg1[%c128_31, %c0_32] : memref<10368x256xbf16, #tpu.memory_space<vmem>>, vector<256x256xbf16>
    %75 = arith.truncf %73 : vector<4x256xf32> to vector<4x256xbf16>
    %cst_33 = arith.constant dense<0.000000e+00> : vector<4x256xf32>
    %76 = tpu.matmul %75, %74, %cst_33 {dimension_numbers = #tpu.dot_dimension_numbers<[1], [0], [0], [1], [0, 0, 1, 1], [], []>} : vector<4x256xbf16>, vector<256x256xbf16>, vector<4x256xf32> -> vector<4x256xf32>
    %c1 = arith.constant 1 : index
    %c0_34 = arith.constant 0 : index
    %77 = vector.load %arg2[%c1, %c0_34] : memref<45x256xf32, #tpu.memory_space<vmem>>, vector<1x256xf32>
    %78 = vector.broadcast %77 : vector<1x256xf32> to vector<4x256xf32>
    %79 = arith.addf %76, %78 : vector<4x256xf32>
    %cst_35 = arith.constant 0.000000e+00 : f32
    %80 = vector.broadcast %cst_35 : f32 to vector<4x256xf32>
    %81 = arith.maximumf %79, %80 : vector<4x256xf32>
    %c384_36 = arith.constant 384 : index
    %c0_37 = arith.constant 0 : index
    %82 = vector.load %arg1[%c384_36, %c0_37] : memref<10368x256xbf16, #tpu.memory_space<vmem>>, vector<256x256xbf16>
    %83 = arith.truncf %81 : vector<4x256xf32> to vector<4x256xbf16>
    %cst_38 = arith.constant dense<0.000000e+00> : vector<4x256xf32>
    %84 = tpu.matmul %83, %82, %cst_38 {dimension_numbers = #tpu.dot_dimension_numbers<[1], [0], [0], [1], [0, 0, 1, 1], [], []>} : vector<4x256xbf16>, vector<256x256xbf16>, vector<4x256xf32> -> vector<4x256xf32>
    %c2 = arith.constant 2 : index
    %c0_39 = arith.constant 0 : index
    %85 = vector.load %arg2[%c2, %c0_39] : memref<45x256xf32, #tpu.memory_space<vmem>>, vector<1x256xf32>
    %86 = vector.broadcast %85 : vector<1x256xf32> to vector<4x256xf32>
    %87 = arith.addf %84, %86 : vector<4x256xf32>
    %cst_40 = arith.constant 0.000000e+00 : f32
    %88 = vector.broadcast %cst_40 : f32 to vector<4x256xf32>
    %89 = arith.maximumf %87, %88 : vector<4x256xf32>
    %c640_41 = arith.constant 640 : index
    %c0_42 = arith.constant 0 : index
    %90 = vector.load %arg1[%c640_41, %c0_42] : memref<10368x256xbf16, #tpu.memory_space<vmem>>, vector<256x256xbf16>
    %91 = arith.truncf %89 : vector<4x256xf32> to vector<4x256xbf16>
    %cst_43 = arith.constant dense<0.000000e+00> : vector<4x256xf32>
    %92 = tpu.matmul %91, %90, %cst_43 {dimension_numbers = #tpu.dot_dimension_numbers<[1], [0], [0], [1], [0, 0, 1, 1], [], []>} : vector<4x256xbf16>, vector<256x256xbf16>, vector<4x256xf32> -> vector<4x256xf32>
    %c3 = arith.constant 3 : index
    %c0_44 = arith.constant 0 : index
    %93 = vector.load %arg2[%c3, %c0_44] : memref<45x256xf32, #tpu.memory_space<vmem>>, vector<1x256xf32>
    %94 = vector.broadcast %93 : vector<1x256xf32> to vector<4x256xf32>
    %95 = arith.addf %92, %94 : vector<4x256xf32>
    %c896 = arith.constant 896 : index
    %c0_45 = arith.constant 0 : index
    %96 = vector.load %arg1[%c896, %c0_45] : memref<10368x256xbf16, #tpu.memory_space<vmem>>, vector<256x256xbf16>
    %97 = arith.truncf %95 : vector<4x256xf32> to vector<4x256xbf16>
    %cst_46 = arith.constant dense<0.000000e+00> : vector<4x256xf32>
    %98 = tpu.matmul %97, %96, %cst_46 {dimension_numbers = #tpu.dot_dimension_numbers<[1], [0], [0], [1], [0, 0, 1, 1], [], []>} : vector<4x256xbf16>, vector<256x256xbf16>, vector<4x256xf32> -> vector<4x256xf32>
    %c4 = arith.constant 4 : index
    %c0_47 = arith.constant 0 : index
    %99 = vector.load %arg2[%c4, %c0_47] : memref<45x256xf32, #tpu.memory_space<vmem>>, vector<1x256xf32>
    %100 = vector.broadcast %99 : vector<1x256xf32> to vector<4x256xf32>
    %101 = arith.addf %98, %100 : vector<4x256xf32>
    %102 = vector.extract_strided_slice %101 {offsets = [0, 0], sizes = [4, 128], strides = [1, 1]} : vector<4x256xf32> to vector<4x128xf32>
    %103 = arith.addf %65, %102 : vector<4x128xf32>
    %104 = vector.extract_strided_slice %101 {offsets = [0, 128], sizes = [4, 128], strides = [1, 1]} : vector<4x256xf32> to vector<4x128xf32>
    %105 = arith.subf %64, %104 : vector<4x128xf32>
    %c1152 = arith.constant 1152 : index
    %c0_48 = arith.constant 0 : index
    %106 = vector.load %arg1[%c1152, %c0_48] : memref<10368x256xbf16, #tpu.memory_space<vmem>>, vector<128x256xbf16>
    %107 = arith.truncf %105 : vector<4x128xf32> to vector<4x128xbf16>
    %cst_49 = arith.constant dense<0.000000e+00> : vector<4x256xf32>
    %108 = tpu.matmul %107, %106, %cst_49 {dimension_numbers = #tpu.dot_dimension_numbers<[1], [0], [0], [1], [0, 0, 1, 1], [], []>} : vector<4x128xbf16>, vector<128x256xbf16>, vector<4x256xf32> -> vector<4x256xf32>
    %c5 = arith.constant 5 : index
    %c0_50 = arith.constant 0 : index
    %109 = vector.load %arg2[%c5, %c0_50] : memref<45x256xf32, #tpu.memory_space<vmem>>, vector<1x256xf32>
    %110 = vector.broadcast %109 : vector<1x256xf32> to vector<4x256xf32>
    %111 = arith.addf %108, %110 : vector<4x256xf32>
    %cst_51 = arith.constant 0.000000e+00 : f32
    %112 = vector.broadcast %cst_51 : f32 to vector<4x256xf32>
    %113 = arith.maximumf %111, %112 : vector<4x256xf32>
    %c1280 = arith.constant 1280 : index
    %c0_52 = arith.constant 0 : index
    %114 = vector.load %arg1[%c1280, %c0_52] : memref<10368x256xbf16, #tpu.memory_space<vmem>>, vector<256x256xbf16>
    %115 = arith.truncf %113 : vector<4x256xf32> to vector<4x256xbf16>
    %cst_53 = arith.constant dense<0.000000e+00> : vector<4x256xf32>
    %116 = tpu.matmul %115, %114, %cst_53 {dimension_numbers = #tpu.dot_dimension_numbers<[1], [0], [0], [1], [0, 0, 1, 1], [], []>} : vector<4x256xbf16>, vector<256x256xbf16>, vector<4x256xf32> -> vector<4x256xf32>
    %c6 = arith.constant 6 : index
    %c0_54 = arith.constant 0 : index
    %117 = vector.load %arg2[%c6, %c0_54] : memref<45x256xf32, #tpu.memory_space<vmem>>, vector<1x256xf32>
    %118 = vector.broadcast %117 : vector<1x256xf32> to vector<4x256xf32>
    %119 = arith.addf %116, %118 : vector<4x256xf32>
    %cst_55 = arith.constant 0.000000e+00 : f32
    %120 = vector.broadcast %cst_55 : f32 to vector<4x256xf32>
    %121 = arith.maximumf %119, %120 : vector<4x256xf32>
    %c1536 = arith.constant 1536 : index
    %c0_56 = arith.constant 0 : index
    %122 = vector.load %arg1[%c1536, %c0_56] : memref<10368x256xbf16, #tpu.memory_space<vmem>>, vector<256x256xbf16>
    %123 = arith.truncf %121 : vector<4x256xf32> to vector<4x256xbf16>
    %cst_57 = arith.constant dense<0.000000e+00> : vector<4x256xf32>
    %124 = tpu.matmul %123, %122, %cst_57 {dimension_numbers = #tpu.dot_dimension_numbers<[1], [0], [0], [1], [0, 0, 1, 1], [], []>} : vector<4x256xbf16>, vector<256x256xbf16>, vector<4x256xf32> -> vector<4x256xf32>
    %c7 = arith.constant 7 : index
    %c0_58 = arith.constant 0 : index
    %125 = vector.load %arg2[%c7, %c0_58] : memref<45x256xf32, #tpu.memory_space<vmem>>, vector<1x256xf32>
    %126 = vector.broadcast %125 : vector<1x256xf32> to vector<4x256xf32>
    %127 = arith.addf %124, %126 : vector<4x256xf32>
    %cst_59 = arith.constant 0.000000e+00 : f32
    %128 = vector.broadcast %cst_59 : f32 to vector<4x256xf32>
    %129 = arith.maximumf %127, %128 : vector<4x256xf32>
    %c1792 = arith.constant 1792 : index
    %c0_60 = arith.constant 0 : index
    %130 = vector.load %arg1[%c1792, %c0_60] : memref<10368x256xbf16, #tpu.memory_space<vmem>>, vector<256x256xbf16>
    %131 = arith.truncf %129 : vector<4x256xf32> to vector<4x256xbf16>
    %cst_61 = arith.constant dense<0.000000e+00> : vector<4x256xf32>
    %132 = tpu.matmul %131, %130, %cst_61 {dimension_numbers = #tpu.dot_dimension_numbers<[1], [0], [0], [1], [0, 0, 1, 1], [], []>} : vector<4x256xbf16>, vector<256x256xbf16>, vector<4x256xf32> -> vector<4x256xf32>
    %c8 = arith.constant 8 : index
    %c0_62 = arith.constant 0 : index
    %133 = vector.load %arg2[%c8, %c0_62] : memref<45x256xf32, #tpu.memory_space<vmem>>, vector<1x256xf32>
    %134 = vector.broadcast %133 : vector<1x256xf32> to vector<4x256xf32>
    %135 = arith.addf %132, %134 : vector<4x256xf32>
    %c2048 = arith.constant 2048 : index
    %c0_63 = arith.constant 0 : index
    %136 = vector.load %arg1[%c2048, %c0_63] : memref<10368x256xbf16, #tpu.memory_space<vmem>>, vector<256x256xbf16>
    %137 = arith.truncf %135 : vector<4x256xf32> to vector<4x256xbf16>
    %cst_64 = arith.constant dense<0.000000e+00> : vector<4x256xf32>
    %138 = tpu.matmul %137, %136, %cst_64 {dimension_numbers = #tpu.dot_dimension_numbers<[1], [0], [0], [1], [0, 0, 1, 1], [], []>} : vector<4x256xbf16>, vector<256x256xbf16>, vector<4x256xf32> -> vector<4x256xf32>
    %c9 = arith.constant 9 : index
    %c0_65 = arith.constant 0 : index
    %139 = vector.load %arg2[%c9, %c0_65] : memref<45x256xf32, #tpu.memory_space<vmem>>, vector<1x256xf32>
    %140 = vector.broadcast %139 : vector<1x256xf32> to vector<4x256xf32>
    %141 = arith.addf %138, %140 : vector<4x256xf32>
    %142 = vector.extract_strided_slice %141 {offsets = [0, 0], sizes = [4, 128], strides = [1, 1]} : vector<4x256xf32> to vector<4x128xf32>
    %143 = arith.addf %103, %142 : vector<4x128xf32>
    %144 = vector.extract_strided_slice %141 {offsets = [0, 128], sizes = [4, 128], strides = [1, 1]} : vector<4x256xf32> to vector<4x128xf32>
    %145 = arith.subf %105, %144 : vector<4x128xf32>
    %c2304 = arith.constant 2304 : index
    %c0_66 = arith.constant 0 : index
    %146 = vector.load %arg1[%c2304, %c0_66] : memref<10368x256xbf16, #tpu.memory_space<vmem>>, vector<128x256xbf16>
    %147 = arith.truncf %145 : vector<4x128xf32> to vector<4x128xbf16>
    %cst_67 = arith.constant dense<0.000000e+00> : vector<4x256xf32>
    %148 = tpu.matmul %147, %146, %cst_67 {dimension_numbers = #tpu.dot_dimension_numbers<[1], [0], [0], [1], [0, 0, 1, 1], [], []>} : vector<4x128xbf16>, vector<128x256xbf16>, vector<4x256xf32> -> vector<4x256xf32>
    %c10 = arith.constant 10 : index
    %c0_68 = arith.constant 0 : index
    %149 = vector.load %arg2[%c10, %c0_68] : memref<45x256xf32, #tpu.memory_space<vmem>>, vector<1x256xf32>
    %150 = vector.broadcast %149 : vector<1x256xf32> to vector<4x256xf32>
    %151 = arith.addf %148, %150 : vector<4x256xf32>
    %cst_69 = arith.constant 0.000000e+00 : f32
    %152 = vector.broadcast %cst_69 : f32 to vector<4x256xf32>
    %153 = arith.maximumf %151, %152 : vector<4x256xf32>
    %c2432 = arith.constant 2432 : index
    %c0_70 = arith.constant 0 : index
    %154 = vector.load %arg1[%c2432, %c0_70] : memref<10368x256xbf16, #tpu.memory_space<vmem>>, vector<256x256xbf16>
    %155 = arith.truncf %153 : vector<4x256xf32> to vector<4x256xbf16>
    %cst_71 = arith.constant dense<0.000000e+00> : vector<4x256xf32>
    %156 = tpu.matmul %155, %154, %cst_71 {dimension_numbers = #tpu.dot_dimension_numbers<[1], [0], [0], [1], [0, 0, 1, 1], [], []>} : vector<4x256xbf16>, vector<256x256xbf16>, vector<4x256xf32> -> vector<4x256xf32>
    %c11 = arith.constant 11 : index
    %c0_72 = arith.constant 0 : index
    %157 = vector.load %arg2[%c11, %c0_72] : memref<45x256xf32, #tpu.memory_space<vmem>>, vector<1x256xf32>
    %158 = vector.broadcast %157 : vector<1x256xf32> to vector<4x256xf32>
    %159 = arith.addf %156, %158 : vector<4x256xf32>
    %cst_73 = arith.constant 0.000000e+00 : f32
    %160 = vector.broadcast %cst_73 : f32 to vector<4x256xf32>
    %161 = arith.maximumf %159, %160 : vector<4x256xf32>
    %c2688 = arith.constant 2688 : index
    %c0_74 = arith.constant 0 : index
    %162 = vector.load %arg1[%c2688, %c0_74] : memref<10368x256xbf16, #tpu.memory_space<vmem>>, vector<256x256xbf16>
    %163 = arith.truncf %161 : vector<4x256xf32> to vector<4x256xbf16>
    %cst_75 = arith.constant dense<0.000000e+00> : vector<4x256xf32>
    %164 = tpu.matmul %163, %162, %cst_75 {dimension_numbers = #tpu.dot_dimension_numbers<[1], [0], [0], [1], [0, 0, 1, 1], [], []>} : vector<4x256xbf16>, vector<256x256xbf16>, vector<4x256xf32> -> vector<4x256xf32>
    %c12 = arith.constant 12 : index
    %c0_76 = arith.constant 0 : index
    %165 = vector.load %arg2[%c12, %c0_76] : memref<45x256xf32, #tpu.memory_space<vmem>>, vector<1x256xf32>
    %166 = vector.broadcast %165 : vector<1x256xf32> to vector<4x256xf32>
    %167 = arith.addf %164, %166 : vector<4x256xf32>
    %cst_77 = arith.constant 0.000000e+00 : f32
    %168 = vector.broadcast %cst_77 : f32 to vector<4x256xf32>
    %169 = arith.maximumf %167, %168 : vector<4x256xf32>
    %c2944 = arith.constant 2944 : index
    %c0_78 = arith.constant 0 : index
    %170 = vector.load %arg1[%c2944, %c0_78] : memref<10368x256xbf16, #tpu.memory_space<vmem>>, vector<256x256xbf16>
    %171 = arith.truncf %169 : vector<4x256xf32> to vector<4x256xbf16>
    %cst_79 = arith.constant dense<0.000000e+00> : vector<4x256xf32>
    %172 = tpu.matmul %171, %170, %cst_79 {dimension_numbers = #tpu.dot_dimension_numbers<[1], [0], [0], [1], [0, 0, 1, 1], [], []>} : vector<4x256xbf16>, vector<256x256xbf16>, vector<4x256xf32> -> vector<4x256xf32>
    %c13 = arith.constant 13 : index
    %c0_80 = arith.constant 0 : index
    %173 = vector.load %arg2[%c13, %c0_80] : memref<45x256xf32, #tpu.memory_space<vmem>>, vector<1x256xf32>
    %174 = vector.broadcast %173 : vector<1x256xf32> to vector<4x256xf32>
    %175 = arith.addf %172, %174 : vector<4x256xf32>
    %c3200 = arith.constant 3200 : index
    %c0_81 = arith.constant 0 : index
    %176 = vector.load %arg1[%c3200, %c0_81] : memref<10368x256xbf16, #tpu.memory_space<vmem>>, vector<256x256xbf16>
    %177 = arith.truncf %175 : vector<4x256xf32> to vector<4x256xbf16>
    %cst_82 = arith.constant dense<0.000000e+00> : vector<4x256xf32>
    %178 = tpu.matmul %177, %176, %cst_82 {dimension_numbers = #tpu.dot_dimension_numbers<[1], [0], [0], [1], [0, 0, 1, 1], [], []>} : vector<4x256xbf16>, vector<256x256xbf16>, vector<4x256xf32> -> vector<4x256xf32>
    %c14 = arith.constant 14 : index
    %c0_83 = arith.constant 0 : index
    %179 = vector.load %arg2[%c14, %c0_83] : memref<45x256xf32, #tpu.memory_space<vmem>>, vector<1x256xf32>
    %180 = vector.broadcast %179 : vector<1x256xf32> to vector<4x256xf32>
    %181 = arith.addf %178, %180 : vector<4x256xf32>
    %182 = vector.extract_strided_slice %181 {offsets = [0, 0], sizes = [4, 128], strides = [1, 1]} : vector<4x256xf32> to vector<4x128xf32>
    %183 = arith.addf %143, %182 : vector<4x128xf32>
    %184 = vector.extract_strided_slice %181 {offsets = [0, 128], sizes = [4, 128], strides = [1, 1]} : vector<4x256xf32> to vector<4x128xf32>
    %185 = arith.subf %145, %184 : vector<4x128xf32>
    %cst_84 = arith.constant 0.000000e+00 : f32
    %186 = vector.broadcast %cst_84 : f32 to vector<4x128xf32>
    %c3456 = arith.constant 3456 : index
    %c0_85 = arith.constant 0 : index
    %187 = vector.load %arg1[%c3456, %c0_85] : memref<10368x256xbf16, #tpu.memory_space<vmem>>, vector<128x256xbf16>
    %188 = arith.truncf %185 : vector<4x128xf32> to vector<4x128xbf16>
    %cst_86 = arith.constant dense<0.000000e+00> : vector<4x256xf32>
    %189 = tpu.matmul %188, %187, %cst_86 {dimension_numbers = #tpu.dot_dimension_numbers<[1], [0], [0], [1], [0, 0, 1, 1], [], []>} : vector<4x128xbf16>, vector<128x256xbf16>, vector<4x256xf32> -> vector<4x256xf32>
    %c15 = arith.constant 15 : index
    %c0_87 = arith.constant 0 : index
    %190 = vector.load %arg2[%c15, %c0_87] : memref<45x256xf32, #tpu.memory_space<vmem>>, vector<1x256xf32>
    %191 = vector.broadcast %190 : vector<1x256xf32> to vector<4x256xf32>
    %192 = arith.addf %189, %191 : vector<4x256xf32>
    %cst_88 = arith.constant 0.000000e+00 : f32
    %193 = vector.broadcast %cst_88 : f32 to vector<4x256xf32>
    %194 = arith.maximumf %192, %193 : vector<4x256xf32>
    %c3584 = arith.constant 3584 : index
    %c0_89 = arith.constant 0 : index
    %195 = vector.load %arg1[%c3584, %c0_89] : memref<10368x256xbf16, #tpu.memory_space<vmem>>, vector<256x256xbf16>
    %196 = arith.truncf %194 : vector<4x256xf32> to vector<4x256xbf16>
    %cst_90 = arith.constant dense<0.000000e+00> : vector<4x256xf32>
    %197 = tpu.matmul %196, %195, %cst_90 {dimension_numbers = #tpu.dot_dimension_numbers<[1], [0], [0], [1], [0, 0, 1, 1], [], []>} : vector<4x256xbf16>, vector<256x256xbf16>, vector<4x256xf32> -> vector<4x256xf32>
    %c16 = arith.constant 16 : index
    %c0_91 = arith.constant 0 : index
    %198 = vector.load %arg2[%c16, %c0_91] : memref<45x256xf32, #tpu.memory_space<vmem>>, vector<1x256xf32>
    %199 = vector.broadcast %198 : vector<1x256xf32> to vector<4x256xf32>
    %200 = arith.addf %197, %199 : vector<4x256xf32>
    %cst_92 = arith.constant 0.000000e+00 : f32
    %201 = vector.broadcast %cst_92 : f32 to vector<4x256xf32>
    %202 = arith.maximumf %200, %201 : vector<4x256xf32>
    %c3840 = arith.constant 3840 : index
    %c0_93 = arith.constant 0 : index
    %203 = vector.load %arg1[%c3840, %c0_93] : memref<10368x256xbf16, #tpu.memory_space<vmem>>, vector<256x256xbf16>
    %204 = arith.truncf %202 : vector<4x256xf32> to vector<4x256xbf16>
    %cst_94 = arith.constant dense<0.000000e+00> : vector<4x256xf32>
    %205 = tpu.matmul %204, %203, %cst_94 {dimension_numbers = #tpu.dot_dimension_numbers<[1], [0], [0], [1], [0, 0, 1, 1], [], []>} : vector<4x256xbf16>, vector<256x256xbf16>, vector<4x256xf32> -> vector<4x256xf32>
    %c17 = arith.constant 17 : index
    %c0_95 = arith.constant 0 : index
    %206 = vector.load %arg2[%c17, %c0_95] : memref<45x256xf32, #tpu.memory_space<vmem>>, vector<1x256xf32>
    %207 = vector.broadcast %206 : vector<1x256xf32> to vector<4x256xf32>
    %208 = arith.addf %205, %207 : vector<4x256xf32>
    %cst_96 = arith.constant 0.000000e+00 : f32
    %209 = vector.broadcast %cst_96 : f32 to vector<4x256xf32>
    %210 = arith.maximumf %208, %209 : vector<4x256xf32>
    %c4096 = arith.constant 4096 : index
    %c0_97 = arith.constant 0 : index
    %211 = vector.load %arg1[%c4096, %c0_97] : memref<10368x256xbf16, #tpu.memory_space<vmem>>, vector<256x256xbf16>
    %212 = arith.truncf %210 : vector<4x256xf32> to vector<4x256xbf16>
    %cst_98 = arith.constant dense<0.000000e+00> : vector<4x256xf32>
    %213 = tpu.matmul %212, %211, %cst_98 {dimension_numbers = #tpu.dot_dimension_numbers<[1], [0], [0], [1], [0, 0, 1, 1], [], []>} : vector<4x256xbf16>, vector<256x256xbf16>, vector<4x256xf32> -> vector<4x256xf32>
    %c18 = arith.constant 18 : index
    %c0_99 = arith.constant 0 : index
    %214 = vector.load %arg2[%c18, %c0_99] : memref<45x256xf32, #tpu.memory_space<vmem>>, vector<1x256xf32>
    %215 = vector.broadcast %214 : vector<1x256xf32> to vector<4x256xf32>
    %216 = arith.addf %213, %215 : vector<4x256xf32>
    %c4352 = arith.constant 4352 : index
    %c0_100 = arith.constant 0 : index
    %217 = vector.load %arg1[%c4352, %c0_100] : memref<10368x256xbf16, #tpu.memory_space<vmem>>, vector<256x256xbf16>
    %218 = arith.truncf %216 : vector<4x256xf32> to vector<4x256xbf16>
    %cst_101 = arith.constant dense<0.000000e+00> : vector<4x256xf32>
    %219 = tpu.matmul %218, %217, %cst_101 {dimension_numbers = #tpu.dot_dimension_numbers<[1], [0], [0], [1], [0, 0, 1, 1], [], []>} : vector<4x256xbf16>, vector<256x256xbf16>, vector<4x256xf32> -> vector<4x256xf32>
    %c19 = arith.constant 19 : index
    %c0_102 = arith.constant 0 : index
    %220 = vector.load %arg2[%c19, %c0_102] : memref<45x256xf32, #tpu.memory_space<vmem>>, vector<1x256xf32>
    %221 = vector.broadcast %220 : vector<1x256xf32> to vector<4x256xf32>
    %222 = arith.addf %219, %221 : vector<4x256xf32>
    %223 = vector.extract_strided_slice %222 {offsets = [0, 0], sizes = [4, 128], strides = [1, 1]} : vector<4x256xf32> to vector<4x128xf32>
    %224 = arith.addf %186, %223 : vector<4x128xf32>
    %225 = vector.extract_strided_slice %222 {offsets = [0, 128], sizes = [4, 128], strides = [1, 1]} : vector<4x256xf32> to vector<4x128xf32>
    %226 = arith.subf %185, %225 : vector<4x128xf32>
    %c4608 = arith.constant 4608 : index
    %c0_103 = arith.constant 0 : index
    %227 = vector.load %arg1[%c4608, %c0_103] : memref<10368x256xbf16, #tpu.memory_space<vmem>>, vector<128x256xbf16>
    %228 = arith.truncf %226 : vector<4x128xf32> to vector<4x128xbf16>
    %cst_104 = arith.constant dense<0.000000e+00> : vector<4x256xf32>
    %229 = tpu.matmul %228, %227, %cst_104 {dimension_numbers = #tpu.dot_dimension_numbers<[1], [0], [0], [1], [0, 0, 1, 1], [], []>} : vector<4x128xbf16>, vector<128x256xbf16>, vector<4x256xf32> -> vector<4x256xf32>
    %c20 = arith.constant 20 : index
    %c0_105 = arith.constant 0 : index
    %230 = vector.load %arg2[%c20, %c0_105] : memref<45x256xf32, #tpu.memory_space<vmem>>, vector<1x256xf32>
    %231 = vector.broadcast %230 : vector<1x256xf32> to vector<4x256xf32>
    %232 = arith.addf %229, %231 : vector<4x256xf32>
    %cst_106 = arith.constant 0.000000e+00 : f32
    %233 = vector.broadcast %cst_106 : f32 to vector<4x256xf32>
    %234 = arith.maximumf %232, %233 : vector<4x256xf32>
    %c4736 = arith.constant 4736 : index
    %c0_107 = arith.constant 0 : index
    %235 = vector.load %arg1[%c4736, %c0_107] : memref<10368x256xbf16, #tpu.memory_space<vmem>>, vector<256x256xbf16>
    %236 = arith.truncf %234 : vector<4x256xf32> to vector<4x256xbf16>
    %cst_108 = arith.constant dense<0.000000e+00> : vector<4x256xf32>
    %237 = tpu.matmul %236, %235, %cst_108 {dimension_numbers = #tpu.dot_dimension_numbers<[1], [0], [0], [1], [0, 0, 1, 1], [], []>} : vector<4x256xbf16>, vector<256x256xbf16>, vector<4x256xf32> -> vector<4x256xf32>
    %c21 = arith.constant 21 : index
    %c0_109 = arith.constant 0 : index
    %238 = vector.load %arg2[%c21, %c0_109] : memref<45x256xf32, #tpu.memory_space<vmem>>, vector<1x256xf32>
    %239 = vector.broadcast %238 : vector<1x256xf32> to vector<4x256xf32>
    %240 = arith.addf %237, %239 : vector<4x256xf32>
    %cst_110 = arith.constant 0.000000e+00 : f32
    %241 = vector.broadcast %cst_110 : f32 to vector<4x256xf32>
    %242 = arith.maximumf %240, %241 : vector<4x256xf32>
    %c4992 = arith.constant 4992 : index
    %c0_111 = arith.constant 0 : index
    %243 = vector.load %arg1[%c4992, %c0_111] : memref<10368x256xbf16, #tpu.memory_space<vmem>>, vector<256x256xbf16>
    %244 = arith.truncf %242 : vector<4x256xf32> to vector<4x256xbf16>
    %cst_112 = arith.constant dense<0.000000e+00> : vector<4x256xf32>
    %245 = tpu.matmul %244, %243, %cst_112 {dimension_numbers = #tpu.dot_dimension_numbers<[1], [0], [0], [1], [0, 0, 1, 1], [], []>} : vector<4x256xbf16>, vector<256x256xbf16>, vector<4x256xf32> -> vector<4x256xf32>
    %c22 = arith.constant 22 : index
    %c0_113 = arith.constant 0 : index
    %246 = vector.load %arg2[%c22, %c0_113] : memref<45x256xf32, #tpu.memory_space<vmem>>, vector<1x256xf32>
    %247 = vector.broadcast %246 : vector<1x256xf32> to vector<4x256xf32>
    %248 = arith.addf %245, %247 : vector<4x256xf32>
    %cst_114 = arith.constant 0.000000e+00 : f32
    %249 = vector.broadcast %cst_114 : f32 to vector<4x256xf32>
    %250 = arith.maximumf %248, %249 : vector<4x256xf32>
    %c5248 = arith.constant 5248 : index
    %c0_115 = arith.constant 0 : index
    %251 = vector.load %arg1[%c5248, %c0_115] : memref<10368x256xbf16, #tpu.memory_space<vmem>>, vector<256x256xbf16>
    %252 = arith.truncf %250 : vector<4x256xf32> to vector<4x256xbf16>
    %cst_116 = arith.constant dense<0.000000e+00> : vector<4x256xf32>
    %253 = tpu.matmul %252, %251, %cst_116 {dimension_numbers = #tpu.dot_dimension_numbers<[1], [0], [0], [1], [0, 0, 1, 1], [], []>} : vector<4x256xbf16>, vector<256x256xbf16>, vector<4x256xf32> -> vector<4x256xf32>
    %c23 = arith.constant 23 : index
    %c0_117 = arith.constant 0 : index
    %254 = vector.load %arg2[%c23, %c0_117] : memref<45x256xf32, #tpu.memory_space<vmem>>, vector<1x256xf32>
    %255 = vector.broadcast %254 : vector<1x256xf32> to vector<4x256xf32>
    %256 = arith.addf %253, %255 : vector<4x256xf32>
    %c5504 = arith.constant 5504 : index
    %c0_118 = arith.constant 0 : index
    %257 = vector.load %arg1[%c5504, %c0_118] : memref<10368x256xbf16, #tpu.memory_space<vmem>>, vector<256x256xbf16>
    %258 = arith.truncf %256 : vector<4x256xf32> to vector<4x256xbf16>
    %cst_119 = arith.constant dense<0.000000e+00> : vector<4x256xf32>
    %259 = tpu.matmul %258, %257, %cst_119 {dimension_numbers = #tpu.dot_dimension_numbers<[1], [0], [0], [1], [0, 0, 1, 1], [], []>} : vector<4x256xbf16>, vector<256x256xbf16>, vector<4x256xf32> -> vector<4x256xf32>
    %c24 = arith.constant 24 : index
    %c0_120 = arith.constant 0 : index
    %260 = vector.load %arg2[%c24, %c0_120] : memref<45x256xf32, #tpu.memory_space<vmem>>, vector<1x256xf32>
    %261 = vector.broadcast %260 : vector<1x256xf32> to vector<4x256xf32>
    %262 = arith.addf %259, %261 : vector<4x256xf32>
    %263 = vector.extract_strided_slice %262 {offsets = [0, 0], sizes = [4, 128], strides = [1, 1]} : vector<4x256xf32> to vector<4x128xf32>
    %264 = arith.addf %224, %263 : vector<4x128xf32>
    %265 = vector.extract_strided_slice %262 {offsets = [0, 128], sizes = [4, 128], strides = [1, 1]} : vector<4x256xf32> to vector<4x128xf32>
    %266 = arith.subf %226, %265 : vector<4x128xf32>
    %c5760 = arith.constant 5760 : index
    %c0_121 = arith.constant 0 : index
    %267 = vector.load %arg1[%c5760, %c0_121] : memref<10368x256xbf16, #tpu.memory_space<vmem>>, vector<128x256xbf16>
    %268 = arith.truncf %266 : vector<4x128xf32> to vector<4x128xbf16>
    %cst_122 = arith.constant dense<0.000000e+00> : vector<4x256xf32>
    %269 = tpu.matmul %268, %267, %cst_122 {dimension_numbers = #tpu.dot_dimension_numbers<[1], [0], [0], [1], [0, 0, 1, 1], [], []>} : vector<4x128xbf16>, vector<128x256xbf16>, vector<4x256xf32> -> vector<4x256xf32>
    %c25 = arith.constant 25 : index
    %c0_123 = arith.constant 0 : index
    %270 = vector.load %arg2[%c25, %c0_123] : memref<45x256xf32, #tpu.memory_space<vmem>>, vector<1x256xf32>
    %271 = vector.broadcast %270 : vector<1x256xf32> to vector<4x256xf32>
    %272 = arith.addf %269, %271 : vector<4x256xf32>
    %cst_124 = arith.constant 0.000000e+00 : f32
    %273 = vector.broadcast %cst_124 : f32 to vector<4x256xf32>
    %274 = arith.maximumf %272, %273 : vector<4x256xf32>
    %c5888 = arith.constant 5888 : index
    %c0_125 = arith.constant 0 : index
    %275 = vector.load %arg1[%c5888, %c0_125] : memref<10368x256xbf16, #tpu.memory_space<vmem>>, vector<256x256xbf16>
    %276 = arith.truncf %274 : vector<4x256xf32> to vector<4x256xbf16>
    %cst_126 = arith.constant dense<0.000000e+00> : vector<4x256xf32>
    %277 = tpu.matmul %276, %275, %cst_126 {dimension_numbers = #tpu.dot_dimension_numbers<[1], [0], [0], [1], [0, 0, 1, 1], [], []>} : vector<4x256xbf16>, vector<256x256xbf16>, vector<4x256xf32> -> vector<4x256xf32>
    %c26 = arith.constant 26 : index
    %c0_127 = arith.constant 0 : index
    %278 = vector.load %arg2[%c26, %c0_127] : memref<45x256xf32, #tpu.memory_space<vmem>>, vector<1x256xf32>
    %279 = vector.broadcast %278 : vector<1x256xf32> to vector<4x256xf32>
    %280 = arith.addf %277, %279 : vector<4x256xf32>
    %cst_128 = arith.constant 0.000000e+00 : f32
    %281 = vector.broadcast %cst_128 : f32 to vector<4x256xf32>
    %282 = arith.maximumf %280, %281 : vector<4x256xf32>
    %c6144 = arith.constant 6144 : index
    %c0_129 = arith.constant 0 : index
    %283 = vector.load %arg1[%c6144, %c0_129] : memref<10368x256xbf16, #tpu.memory_space<vmem>>, vector<256x256xbf16>
    %284 = arith.truncf %282 : vector<4x256xf32> to vector<4x256xbf16>
    %cst_130 = arith.constant dense<0.000000e+00> : vector<4x256xf32>
    %285 = tpu.matmul %284, %283, %cst_130 {dimension_numbers = #tpu.dot_dimension_numbers<[1], [0], [0], [1], [0, 0, 1, 1], [], []>} : vector<4x256xbf16>, vector<256x256xbf16>, vector<4x256xf32> -> vector<4x256xf32>
    %c27 = arith.constant 27 : index
    %c0_131 = arith.constant 0 : index
    %286 = vector.load %arg2[%c27, %c0_131] : memref<45x256xf32, #tpu.memory_space<vmem>>, vector<1x256xf32>
    %287 = vector.broadcast %286 : vector<1x256xf32> to vector<4x256xf32>
    %288 = arith.addf %285, %287 : vector<4x256xf32>
    %cst_132 = arith.constant 0.000000e+00 : f32
    %289 = vector.broadcast %cst_132 : f32 to vector<4x256xf32>
    %290 = arith.maximumf %288, %289 : vector<4x256xf32>
    %c6400 = arith.constant 6400 : index
    %c0_133 = arith.constant 0 : index
    %291 = vector.load %arg1[%c6400, %c0_133] : memref<10368x256xbf16, #tpu.memory_space<vmem>>, vector<256x256xbf16>
    %292 = arith.truncf %290 : vector<4x256xf32> to vector<4x256xbf16>
    %cst_134 = arith.constant dense<0.000000e+00> : vector<4x256xf32>
    %293 = tpu.matmul %292, %291, %cst_134 {dimension_numbers = #tpu.dot_dimension_numbers<[1], [0], [0], [1], [0, 0, 1, 1], [], []>} : vector<4x256xbf16>, vector<256x256xbf16>, vector<4x256xf32> -> vector<4x256xf32>
    %c28 = arith.constant 28 : index
    %c0_135 = arith.constant 0 : index
    %294 = vector.load %arg2[%c28, %c0_135] : memref<45x256xf32, #tpu.memory_space<vmem>>, vector<1x256xf32>
    %295 = vector.broadcast %294 : vector<1x256xf32> to vector<4x256xf32>
    %296 = arith.addf %293, %295 : vector<4x256xf32>
    %c6656 = arith.constant 6656 : index
    %c0_136 = arith.constant 0 : index
    %297 = vector.load %arg1[%c6656, %c0_136] : memref<10368x256xbf16, #tpu.memory_space<vmem>>, vector<256x256xbf16>
    %298 = arith.truncf %296 : vector<4x256xf32> to vector<4x256xbf16>
    %cst_137 = arith.constant dense<0.000000e+00> : vector<4x256xf32>
    %299 = tpu.matmul %298, %297, %cst_137 {dimension_numbers = #tpu.dot_dimension_numbers<[1], [0], [0], [1], [0, 0, 1, 1], [], []>} : vector<4x256xbf16>, vector<256x256xbf16>, vector<4x256xf32> -> vector<4x256xf32>
    %c29 = arith.constant 29 : index
    %c0_138 = arith.constant 0 : index
    %300 = vector.load %arg2[%c29, %c0_138] : memref<45x256xf32, #tpu.memory_space<vmem>>, vector<1x256xf32>
    %301 = vector.broadcast %300 : vector<1x256xf32> to vector<4x256xf32>
    %302 = arith.addf %299, %301 : vector<4x256xf32>
    %303 = vector.extract_strided_slice %302 {offsets = [0, 0], sizes = [4, 128], strides = [1, 1]} : vector<4x256xf32> to vector<4x128xf32>
    %304 = arith.addf %264, %303 : vector<4x128xf32>
    %305 = vector.extract_strided_slice %302 {offsets = [0, 128], sizes = [4, 128], strides = [1, 1]} : vector<4x256xf32> to vector<4x128xf32>
    %306 = arith.subf %266, %305 : vector<4x128xf32>
    %cst_139 = arith.constant 0.000000e+00 : f32
    %307 = vector.broadcast %cst_139 : f32 to vector<4x128xf32>
    %c6912 = arith.constant 6912 : index
    %c0_140 = arith.constant 0 : index
    %308 = vector.load %arg1[%c6912, %c0_140] : memref<10368x256xbf16, #tpu.memory_space<vmem>>, vector<128x256xbf16>
    %309 = arith.truncf %306 : vector<4x128xf32> to vector<4x128xbf16>
    %cst_141 = arith.constant dense<0.000000e+00> : vector<4x256xf32>
    %310 = tpu.matmul %309, %308, %cst_141 {dimension_numbers = #tpu.dot_dimension_numbers<[1], [0], [0], [1], [0, 0, 1, 1], [], []>} : vector<4x128xbf16>, vector<128x256xbf16>, vector<4x256xf32> -> vector<4x256xf32>
    %c30 = arith.constant 30 : index
    %c0_142 = arith.constant 0 : index
    %311 = vector.load %arg2[%c30, %c0_142] : memref<45x256xf32, #tpu.memory_space<vmem>>, vector<1x256xf32>
    %312 = vector.broadcast %311 : vector<1x256xf32> to vector<4x256xf32>
    %313 = arith.addf %310, %312 : vector<4x256xf32>
    %cst_143 = arith.constant 0.000000e+00 : f32
    %314 = vector.broadcast %cst_143 : f32 to vector<4x256xf32>
    %315 = arith.maximumf %313, %314 : vector<4x256xf32>
    %c7040 = arith.constant 7040 : index
    %c0_144 = arith.constant 0 : index
    %316 = vector.load %arg1[%c7040, %c0_144] : memref<10368x256xbf16, #tpu.memory_space<vmem>>, vector<256x256xbf16>
    %317 = arith.truncf %315 : vector<4x256xf32> to vector<4x256xbf16>
    %cst_145 = arith.constant dense<0.000000e+00> : vector<4x256xf32>
    %318 = tpu.matmul %317, %316, %cst_145 {dimension_numbers = #tpu.dot_dimension_numbers<[1], [0], [0], [1], [0, 0, 1, 1], [], []>} : vector<4x256xbf16>, vector<256x256xbf16>, vector<4x256xf32> -> vector<4x256xf32>
    %c31 = arith.constant 31 : index
    %c0_146 = arith.constant 0 : index
    %319 = vector.load %arg2[%c31, %c0_146] : memref<45x256xf32, #tpu.memory_space<vmem>>, vector<1x256xf32>
    %320 = vector.broadcast %319 : vector<1x256xf32> to vector<4x256xf32>
    %321 = arith.addf %318, %320 : vector<4x256xf32>
    %cst_147 = arith.constant 0.000000e+00 : f32
    %322 = vector.broadcast %cst_147 : f32 to vector<4x256xf32>
    %323 = arith.maximumf %321, %322 : vector<4x256xf32>
    %c7296 = arith.constant 7296 : index
    %c0_148 = arith.constant 0 : index
    %324 = vector.load %arg1[%c7296, %c0_148] : memref<10368x256xbf16, #tpu.memory_space<vmem>>, vector<256x256xbf16>
    %325 = arith.truncf %323 : vector<4x256xf32> to vector<4x256xbf16>
    %cst_149 = arith.constant dense<0.000000e+00> : vector<4x256xf32>
    %326 = tpu.matmul %325, %324, %cst_149 {dimension_numbers = #tpu.dot_dimension_numbers<[1], [0], [0], [1], [0, 0, 1, 1], [], []>} : vector<4x256xbf16>, vector<256x256xbf16>, vector<4x256xf32> -> vector<4x256xf32>
    %c32 = arith.constant 32 : index
    %c0_150 = arith.constant 0 : index
    %327 = vector.load %arg2[%c32, %c0_150] : memref<45x256xf32, #tpu.memory_space<vmem>>, vector<1x256xf32>
    %328 = vector.broadcast %327 : vector<1x256xf32> to vector<4x256xf32>
    %329 = arith.addf %326, %328 : vector<4x256xf32>
    %cst_151 = arith.constant 0.000000e+00 : f32
    %330 = vector.broadcast %cst_151 : f32 to vector<4x256xf32>
    %331 = arith.maximumf %329, %330 : vector<4x256xf32>
    %c7552 = arith.constant 7552 : index
    %c0_152 = arith.constant 0 : index
    %332 = vector.load %arg1[%c7552, %c0_152] : memref<10368x256xbf16, #tpu.memory_space<vmem>>, vector<256x256xbf16>
    %333 = arith.truncf %331 : vector<4x256xf32> to vector<4x256xbf16>
    %cst_153 = arith.constant dense<0.000000e+00> : vector<4x256xf32>
    %334 = tpu.matmul %333, %332, %cst_153 {dimension_numbers = #tpu.dot_dimension_numbers<[1], [0], [0], [1], [0, 0, 1, 1], [], []>} : vector<4x256xbf16>, vector<256x256xbf16>, vector<4x256xf32> -> vector<4x256xf32>
    %c33 = arith.constant 33 : index
    %c0_154 = arith.constant 0 : index
    %335 = vector.load %arg2[%c33, %c0_154] : memref<45x256xf32, #tpu.memory_space<vmem>>, vector<1x256xf32>
    %336 = vector.broadcast %335 : vector<1x256xf32> to vector<4x256xf32>
    %337 = arith.addf %334, %336 : vector<4x256xf32>
    %c7808 = arith.constant 7808 : index
    %c0_155 = arith.constant 0 : index
    %338 = vector.load %arg1[%c7808, %c0_155] : memref<10368x256xbf16, #tpu.memory_space<vmem>>, vector<256x256xbf16>
    %339 = arith.truncf %337 : vector<4x256xf32> to vector<4x256xbf16>
    %cst_156 = arith.constant dense<0.000000e+00> : vector<4x256xf32>
    %340 = tpu.matmul %339, %338, %cst_156 {dimension_numbers = #tpu.dot_dimension_numbers<[1], [0], [0], [1], [0, 0, 1, 1], [], []>} : vector<4x256xbf16>, vector<256x256xbf16>, vector<4x256xf32> -> vector<4x256xf32>
    %c34 = arith.constant 34 : index
    %c0_157 = arith.constant 0 : index
    %341 = vector.load %arg2[%c34, %c0_157] : memref<45x256xf32, #tpu.memory_space<vmem>>, vector<1x256xf32>
    %342 = vector.broadcast %341 : vector<1x256xf32> to vector<4x256xf32>
    %343 = arith.addf %340, %342 : vector<4x256xf32>
    %344 = vector.extract_strided_slice %343 {offsets = [0, 0], sizes = [4, 128], strides = [1, 1]} : vector<4x256xf32> to vector<4x128xf32>
    %345 = arith.addf %307, %344 : vector<4x128xf32>
    %346 = vector.extract_strided_slice %343 {offsets = [0, 128], sizes = [4, 128], strides = [1, 1]} : vector<4x256xf32> to vector<4x128xf32>
    %347 = arith.subf %306, %346 : vector<4x128xf32>
    %c8064 = arith.constant 8064 : index
    %c0_158 = arith.constant 0 : index
    %348 = vector.load %arg1[%c8064, %c0_158] : memref<10368x256xbf16, #tpu.memory_space<vmem>>, vector<128x256xbf16>
    %349 = arith.truncf %347 : vector<4x128xf32> to vector<4x128xbf16>
    %cst_159 = arith.constant dense<0.000000e+00> : vector<4x256xf32>
    %350 = tpu.matmul %349, %348, %cst_159 {dimension_numbers = #tpu.dot_dimension_numbers<[1], [0], [0], [1], [0, 0, 1, 1], [], []>} : vector<4x128xbf16>, vector<128x256xbf16>, vector<4x256xf32> -> vector<4x256xf32>
    %c35 = arith.constant 35 : index
    %c0_160 = arith.constant 0 : index
    %351 = vector.load %arg2[%c35, %c0_160] : memref<45x256xf32, #tpu.memory_space<vmem>>, vector<1x256xf32>
    %352 = vector.broadcast %351 : vector<1x256xf32> to vector<4x256xf32>
    %353 = arith.addf %350, %352 : vector<4x256xf32>
    %cst_161 = arith.constant 0.000000e+00 : f32
    %354 = vector.broadcast %cst_161 : f32 to vector<4x256xf32>
    %355 = arith.maximumf %353, %354 : vector<4x256xf32>
    %c8192 = arith.constant 8192 : index
    %c0_162 = arith.constant 0 : index
    %356 = vector.load %arg1[%c8192, %c0_162] : memref<10368x256xbf16, #tpu.memory_space<vmem>>, vector<256x256xbf16>
    %357 = arith.truncf %355 : vector<4x256xf32> to vector<4x256xbf16>
    %cst_163 = arith.constant dense<0.000000e+00> : vector<4x256xf32>
    %358 = tpu.matmul %357, %356, %cst_163 {dimension_numbers = #tpu.dot_dimension_numbers<[1], [0], [0], [1], [0, 0, 1, 1], [], []>} : vector<4x256xbf16>, vector<256x256xbf16>, vector<4x256xf32> -> vector<4x256xf32>
    %c36 = arith.constant 36 : index
    %c0_164 = arith.constant 0 : index
    %359 = vector.load %arg2[%c36, %c0_164] : memref<45x256xf32, #tpu.memory_space<vmem>>, vector<1x256xf32>
    %360 = vector.broadcast %359 : vector<1x256xf32> to vector<4x256xf32>
    %361 = arith.addf %358, %360 : vector<4x256xf32>
    %cst_165 = arith.constant 0.000000e+00 : f32
    %362 = vector.broadcast %cst_165 : f32 to vector<4x256xf32>
    %363 = arith.maximumf %361, %362 : vector<4x256xf32>
    %c8448 = arith.constant 8448 : index
    %c0_166 = arith.constant 0 : index
    %364 = vector.load %arg1[%c8448, %c0_166] : memref<10368x256xbf16, #tpu.memory_space<vmem>>, vector<256x256xbf16>
    %365 = arith.truncf %363 : vector<4x256xf32> to vector<4x256xbf16>
    %cst_167 = arith.constant dense<0.000000e+00> : vector<4x256xf32>
    %366 = tpu.matmul %365, %364, %cst_167 {dimension_numbers = #tpu.dot_dimension_numbers<[1], [0], [0], [1], [0, 0, 1, 1], [], []>} : vector<4x256xbf16>, vector<256x256xbf16>, vector<4x256xf32> -> vector<4x256xf32>
    %c37 = arith.constant 37 : index
    %c0_168 = arith.constant 0 : index
    %367 = vector.load %arg2[%c37, %c0_168] : memref<45x256xf32, #tpu.memory_space<vmem>>, vector<1x256xf32>
    %368 = vector.broadcast %367 : vector<1x256xf32> to vector<4x256xf32>
    %369 = arith.addf %366, %368 : vector<4x256xf32>
    %cst_169 = arith.constant 0.000000e+00 : f32
    %370 = vector.broadcast %cst_169 : f32 to vector<4x256xf32>
    %371 = arith.maximumf %369, %370 : vector<4x256xf32>
    %c8704 = arith.constant 8704 : index
    %c0_170 = arith.constant 0 : index
    %372 = vector.load %arg1[%c8704, %c0_170] : memref<10368x256xbf16, #tpu.memory_space<vmem>>, vector<256x256xbf16>
    %373 = arith.truncf %371 : vector<4x256xf32> to vector<4x256xbf16>
    %cst_171 = arith.constant dense<0.000000e+00> : vector<4x256xf32>
    %374 = tpu.matmul %373, %372, %cst_171 {dimension_numbers = #tpu.dot_dimension_numbers<[1], [0], [0], [1], [0, 0, 1, 1], [], []>} : vector<4x256xbf16>, vector<256x256xbf16>, vector<4x256xf32> -> vector<4x256xf32>
    %c38 = arith.constant 38 : index
    %c0_172 = arith.constant 0 : index
    %375 = vector.load %arg2[%c38, %c0_172] : memref<45x256xf32, #tpu.memory_space<vmem>>, vector<1x256xf32>
    %376 = vector.broadcast %375 : vector<1x256xf32> to vector<4x256xf32>
    %377 = arith.addf %374, %376 : vector<4x256xf32>
    %c8960 = arith.constant 8960 : index
    %c0_173 = arith.constant 0 : index
    %378 = vector.load %arg1[%c8960, %c0_173] : memref<10368x256xbf16, #tpu.memory_space<vmem>>, vector<256x256xbf16>
    %379 = arith.truncf %377 : vector<4x256xf32> to vector<4x256xbf16>
    %cst_174 = arith.constant dense<0.000000e+00> : vector<4x256xf32>
    %380 = tpu.matmul %379, %378, %cst_174 {dimension_numbers = #tpu.dot_dimension_numbers<[1], [0], [0], [1], [0, 0, 1, 1], [], []>} : vector<4x256xbf16>, vector<256x256xbf16>, vector<4x256xf32> -> vector<4x256xf32>
    %c39 = arith.constant 39 : index
    %c0_175 = arith.constant 0 : index
    %381 = vector.load %arg2[%c39, %c0_175] : memref<45x256xf32, #tpu.memory_space<vmem>>, vector<1x256xf32>
    %382 = vector.broadcast %381 : vector<1x256xf32> to vector<4x256xf32>
    %383 = arith.addf %380, %382 : vector<4x256xf32>
    %384 = vector.extract_strided_slice %383 {offsets = [0, 0], sizes = [4, 128], strides = [1, 1]} : vector<4x256xf32> to vector<4x128xf32>
    %385 = arith.addf %345, %384 : vector<4x128xf32>
    %386 = vector.extract_strided_slice %383 {offsets = [0, 128], sizes = [4, 128], strides = [1, 1]} : vector<4x256xf32> to vector<4x128xf32>
    %387 = arith.subf %347, %386 : vector<4x128xf32>
    %c9216 = arith.constant 9216 : index
    %c0_176 = arith.constant 0 : index
    %388 = vector.load %arg1[%c9216, %c0_176] : memref<10368x256xbf16, #tpu.memory_space<vmem>>, vector<128x256xbf16>
    %389 = arith.truncf %387 : vector<4x128xf32> to vector<4x128xbf16>
    %cst_177 = arith.constant dense<0.000000e+00> : vector<4x256xf32>
    %390 = tpu.matmul %389, %388, %cst_177 {dimension_numbers = #tpu.dot_dimension_numbers<[1], [0], [0], [1], [0, 0, 1, 1], [], []>} : vector<4x128xbf16>, vector<128x256xbf16>, vector<4x256xf32> -> vector<4x256xf32>
    %c40 = arith.constant 40 : index
    %c0_178 = arith.constant 0 : index
    %391 = vector.load %arg2[%c40, %c0_178] : memref<45x256xf32, #tpu.memory_space<vmem>>, vector<1x256xf32>
    %392 = vector.broadcast %391 : vector<1x256xf32> to vector<4x256xf32>
    %393 = arith.addf %390, %392 : vector<4x256xf32>
    %cst_179 = arith.constant 0.000000e+00 : f32
    %394 = vector.broadcast %cst_179 : f32 to vector<4x256xf32>
    %395 = arith.maximumf %393, %394 : vector<4x256xf32>
    %c9344 = arith.constant 9344 : index
    %c0_180 = arith.constant 0 : index
    %396 = vector.load %arg1[%c9344, %c0_180] : memref<10368x256xbf16, #tpu.memory_space<vmem>>, vector<256x256xbf16>
    %397 = arith.truncf %395 : vector<4x256xf32> to vector<4x256xbf16>
    %cst_181 = arith.constant dense<0.000000e+00> : vector<4x256xf32>
    %398 = tpu.matmul %397, %396, %cst_181 {dimension_numbers = #tpu.dot_dimension_numbers<[1], [0], [0], [1], [0, 0, 1, 1], [], []>} : vector<4x256xbf16>, vector<256x256xbf16>, vector<4x256xf32> -> vector<4x256xf32>
    %c41 = arith.constant 41 : index
    %c0_182 = arith.constant 0 : index
    %399 = vector.load %arg2[%c41, %c0_182] : memref<45x256xf32, #tpu.memory_space<vmem>>, vector<1x256xf32>
    %400 = vector.broadcast %399 : vector<1x256xf32> to vector<4x256xf32>
    %401 = arith.addf %398, %400 : vector<4x256xf32>
    %cst_183 = arith.constant 0.000000e+00 : f32
    %402 = vector.broadcast %cst_183 : f32 to vector<4x256xf32>
    %403 = arith.maximumf %401, %402 : vector<4x256xf32>
    %c9600 = arith.constant 9600 : index
    %c0_184 = arith.constant 0 : index
    %404 = vector.load %arg1[%c9600, %c0_184] : memref<10368x256xbf16, #tpu.memory_space<vmem>>, vector<256x256xbf16>
    %405 = arith.truncf %403 : vector<4x256xf32> to vector<4x256xbf16>
    %cst_185 = arith.constant dense<0.000000e+00> : vector<4x256xf32>
    %406 = tpu.matmul %405, %404, %cst_185 {dimension_numbers = #tpu.dot_dimension_numbers<[1], [0], [0], [1], [0, 0, 1, 1], [], []>} : vector<4x256xbf16>, vector<256x256xbf16>, vector<4x256xf32> -> vector<4x256xf32>
    %c42 = arith.constant 42 : index
    %c0_186 = arith.constant 0 : index
    %407 = vector.load %arg2[%c42, %c0_186] : memref<45x256xf32, #tpu.memory_space<vmem>>, vector<1x256xf32>
    %408 = vector.broadcast %407 : vector<1x256xf32> to vector<4x256xf32>
    %409 = arith.addf %406, %408 : vector<4x256xf32>
    %cst_187 = arith.constant 0.000000e+00 : f32
    %410 = vector.broadcast %cst_187 : f32 to vector<4x256xf32>
    %411 = arith.maximumf %409, %410 : vector<4x256xf32>
    %c9856 = arith.constant 9856 : index
    %c0_188 = arith.constant 0 : index
    %412 = vector.load %arg1[%c9856, %c0_188] : memref<10368x256xbf16, #tpu.memory_space<vmem>>, vector<256x256xbf16>
    %413 = arith.truncf %411 : vector<4x256xf32> to vector<4x256xbf16>
    %cst_189 = arith.constant dense<0.000000e+00> : vector<4x256xf32>
    %414 = tpu.matmul %413, %412, %cst_189 {dimension_numbers = #tpu.dot_dimension_numbers<[1], [0], [0], [1], [0, 0, 1, 1], [], []>} : vector<4x256xbf16>, vector<256x256xbf16>, vector<4x256xf32> -> vector<4x256xf32>
    %c43 = arith.constant 43 : index
    %c0_190 = arith.constant 0 : index
    %415 = vector.load %arg2[%c43, %c0_190] : memref<45x256xf32, #tpu.memory_space<vmem>>, vector<1x256xf32>
    %416 = vector.broadcast %415 : vector<1x256xf32> to vector<4x256xf32>
    %417 = arith.addf %414, %416 : vector<4x256xf32>
    %c10112 = arith.constant 10112 : index
    %c0_191 = arith.constant 0 : index
    %418 = vector.load %arg1[%c10112, %c0_191] : memref<10368x256xbf16, #tpu.memory_space<vmem>>, vector<256x256xbf16>
    %419 = arith.truncf %417 : vector<4x256xf32> to vector<4x256xbf16>
    %cst_192 = arith.constant dense<0.000000e+00> : vector<4x256xf32>
    %420 = tpu.matmul %419, %418, %cst_192 {dimension_numbers = #tpu.dot_dimension_numbers<[1], [0], [0], [1], [0, 0, 1, 1], [], []>} : vector<4x256xbf16>, vector<256x256xbf16>, vector<4x256xf32> -> vector<4x256xf32>
    %c44 = arith.constant 44 : index
    %c0_193 = arith.constant 0 : index
    %421 = vector.load %arg2[%c44, %c0_193] : memref<45x256xf32, #tpu.memory_space<vmem>>, vector<1x256xf32>
    %422 = vector.broadcast %421 : vector<1x256xf32> to vector<4x256xf32>
    %423 = arith.addf %420, %422 : vector<4x256xf32>
    %424 = vector.extract_strided_slice %423 {offsets = [0, 0], sizes = [4, 128], strides = [1, 1]} : vector<4x256xf32> to vector<4x128xf32>
    %425 = arith.addf %385, %424 : vector<4x128xf32>
    %426 = arith.addf %183, %304 : vector<4x128xf32>
    %427 = arith.addf %426, %425 : vector<4x128xf32>
    %c192 = arith.constant 192 : index
    %c0_194 = arith.constant 0 : index
    %428 = vector.load %arg3[%c192, %c0_194] : memref<320x128xbf16, #tpu.memory_space<vmem>>, vector<128x128xbf16>
    %429 = arith.truncf %425 : vector<4x128xf32> to vector<4x128xbf16>
    %cst_195 = arith.constant dense<0.000000e+00> : vector<4x128xf32>
    %430 = tpu.matmul %429, %428, %cst_195 {dimension_numbers = #tpu.dot_dimension_numbers<[1], [0], [0], [1], [0, 0, 1, 1], [], []>} : vector<4x128xbf16>, vector<128x128xbf16>, vector<4x128xf32> -> vector<4x128xf32>
    %c0_196 = arith.constant 0 : index
    %c0_197 = arith.constant 0 : index
    %431 = vector.load %arg4[%c0_196, %c0_197] : memref<128x1024xbf16, #tpu.memory_space<vmem>>, vector<128x1024xbf16>
    %432 = arith.truncf %427 : vector<4x128xf32> to vector<4x128xbf16>
    %cst_198 = arith.constant dense<0.000000e+00> : vector<4x1024xf32>
    %433 = tpu.matmul %432, %431, %cst_198 {dimension_numbers = #tpu.dot_dimension_numbers<[1], [0], [0], [1], [0, 0, 1, 1], [], []>} : vector<4x128xbf16>, vector<128x1024xbf16>, vector<4x1024xf32> -> vector<4x1024xf32>
    %c1_199 = arith.constant 1 : index
    %c0_200 = arith.constant 0 : index
    %434 = vector.load %arg6[%c1_199, %c0_200] : memref<3x1024xf32, #tpu.memory_space<vmem>>, vector<1x1024xf32>
    %435 = vector.broadcast %434 : vector<1x1024xf32> to vector<4x1024xf32>
    %436 = arith.addf %433, %435 : vector<4x1024xf32>
    %cst_201 = arith.constant 0.000000e+00 : f32
    %437 = vector.broadcast %cst_201 : f32 to vector<4x1024xf32>
    %438 = arith.maximumf %436, %437 : vector<4x1024xf32>
    %c0_202 = arith.constant 0 : index
    %c0_203 = arith.constant 0 : index
    %439 = vector.load %arg5[%c0_202, %c0_203] : memref<1024x384xbf16, #tpu.memory_space<vmem>>, vector<1024x384xbf16>
    %440 = arith.truncf %438 : vector<4x1024xf32> to vector<4x1024xbf16>
    %cst_204 = arith.constant dense<0.000000e+00> : vector<4x384xf32>
    %441 = tpu.matmul %440, %439, %cst_204 {dimension_numbers = #tpu.dot_dimension_numbers<[1], [0], [0], [1], [0, 0, 1, 1], [], []>} : vector<4x1024xbf16>, vector<1024x384xbf16>, vector<4x384xf32> -> vector<4x384xf32>
    %c2_205 = arith.constant 2 : index
    %c0_206 = arith.constant 0 : index
    %442 = vector.load %arg6[%c2_205, %c0_206] : memref<3x1024xf32, #tpu.memory_space<vmem>>, vector<1x384xf32>
    %443 = vector.broadcast %442 : vector<1x384xf32> to vector<4x384xf32>
    %444 = arith.addf %441, %443 : vector<4x384xf32>
    %445 = vector.extract_strided_slice %444 {offsets = [0, 0], sizes = [4, 256], strides = [1, 1]} : vector<4x384xf32> to vector<4x256xf32>
    %cst_207 = arith.constant 0.000000e+00 : f32
    %446 = vector.broadcast %cst_207 : f32 to vector<4x256xf32>
    %447 = arith.subf %446, %445 : vector<4x256xf32>
    %448 = math.exp %447 : vector<4x256xf32>
    %cst_208 = arith.constant 1.000000e+00 : f32
    %449 = vector.broadcast %cst_208 : f32 to vector<4x256xf32>
    %450 = arith.addf %449, %448 : vector<4x256xf32>
    %451 = tpu.reciprocal %450 {approx = true} : vector<4x256xf32> -> vector<4x256xf32>
    %452 = vector.extract_strided_slice %444 {offsets = [0, 256], sizes = [4, 128], strides = [1, 1]} : vector<4x384xf32> to vector<4x128xf32>
    %453 = tpu.iota {dimensions = array<i32: 1>} : vector<4x128xi32>
    %c16_i32 = arith.constant 16 : i32
    %454 = vector.broadcast %c16_i32 : i32 to vector<4x128xi32>
    %455 = arith.cmpi sge, %453, %454 : vector<4x128xi32>
    %c32_i32 = arith.constant 32 : i32
    %456 = vector.broadcast %c32_i32 : i32 to vector<4x128xi32>
    %457 = arith.cmpi slt, %453, %456 : vector<4x128xi32>
    %458 = arith.andi %455, %457 : vector<4x128xi1>
    %c36_i32 = arith.constant 36 : i32
    %459 = vector.broadcast %c36_i32 : i32 to vector<4x128xi32>
    %460 = arith.cmpi sge, %453, %459 : vector<4x128xi32>
    %c40_i32 = arith.constant 40 : i32
    %461 = vector.broadcast %c40_i32 : i32 to vector<4x128xi32>
    %462 = arith.cmpi slt, %453, %461 : vector<4x128xi32>
    %463 = arith.andi %460, %462 : vector<4x128xi1>
    %c40_i32_209 = arith.constant 40 : i32
    %464 = vector.broadcast %c40_i32_209 : i32 to vector<4x128xi32>
    %465 = arith.cmpi sge, %453, %464 : vector<4x128xi32>
    %c48_i32 = arith.constant 48 : i32
    %466 = vector.broadcast %c48_i32 : i32 to vector<4x128xi32>
    %467 = arith.cmpi slt, %453, %466 : vector<4x128xi32>
    %468 = arith.andi %465, %467 : vector<4x128xi1>
    %cst_210 = arith.constant 0.000000e+00 : f32
    %469 = vector.broadcast %cst_210 : f32 to vector<4x128xf32>
    %470 = arith.maximumf %452, %469 : vector<4x128xf32>
    %cst_211 = arith.constant 0.000000e+00 : f32
    %471 = vector.broadcast %cst_211 : f32 to vector<4x128xf32>
    %472 = arith.subf %471, %452 : vector<4x128xf32>
    %473 = math.exp %472 : vector<4x128xf32>
    %cst_212 = arith.constant 1.000000e+00 : f32
    %474 = vector.broadcast %cst_212 : f32 to vector<4x128xf32>
    %475 = arith.addf %474, %473 : vector<4x128xf32>
    %476 = tpu.reciprocal %475 {approx = true} : vector<4x128xf32> -> vector<4x128xf32>
    %477 = arith.select %458, %470, %476 : vector<4x128xi1>, vector<4x128xf32>
    %cst_213 = arith.constant -1.000000e+30 : f32
    %478 = vector.broadcast %cst_213 : f32 to vector<4x128xf32>
    %479 = arith.select %463, %452, %478 : vector<4x128xi1>, vector<4x128xf32>
    %cst_214 = arith.constant dense<0xFF800000> : vector<4xf32>
    %480 = vector.multi_reduction <maximumf>, %479, %cst_214 [1] : vector<4x128xf32> to vector<4xf32>
    %481 = vector.shape_cast %480 : vector<4xf32> to vector<4x1xf32>
    %482 = vector.broadcast %481 : vector<4x1xf32> to vector<4x128xf32>
    %483 = arith.subf %479, %482 : vector<4x128xf32>
    %484 = math.exp %483 : vector<4x128xf32>
    %cst_215 = arith.constant 0.000000e+00 : f32
    %485 = vector.broadcast %cst_215 : f32 to vector<4x128xf32>
    %486 = arith.select %463, %484, %485 : vector<4x128xi1>, vector<4x128xf32>
    %cst_216 = arith.constant dense<0.000000e+00> : vector<4xf32>
    %487 = vector.multi_reduction <add>, %486, %cst_216 [1] : vector<4x128xf32> to vector<4xf32>
    %488 = vector.shape_cast %487 : vector<4xf32> to vector<4x1xf32>
    %489 = tpu.reciprocal %488 {approx = true} : vector<4x1xf32> -> vector<4x1xf32>
    %490 = vector.broadcast %489 : vector<4x1xf32> to vector<4x128xf32>
    %491 = arith.mulf %486, %490 : vector<4x128xf32>
    %cst_217 = arith.constant -1.000000e+30 : f32
    %492 = vector.broadcast %cst_217 : f32 to vector<4x128xf32>
    %493 = arith.select %468, %452, %492 : vector<4x128xi1>, vector<4x128xf32>
    %cst_218 = arith.constant dense<0xFF800000> : vector<4xf32>
    %494 = vector.multi_reduction <maximumf>, %493, %cst_218 [1] : vector<4x128xf32> to vector<4xf32>
    %495 = vector.shape_cast %494 : vector<4xf32> to vector<4x1xf32>
    %496 = vector.broadcast %495 : vector<4x1xf32> to vector<4x128xf32>
    %497 = arith.subf %493, %496 : vector<4x128xf32>
    %498 = math.exp %497 : vector<4x128xf32>
    %cst_219 = arith.constant 0.000000e+00 : f32
    %499 = vector.broadcast %cst_219 : f32 to vector<4x128xf32>
    %500 = arith.select %468, %498, %499 : vector<4x128xi1>, vector<4x128xf32>
    %cst_220 = arith.constant dense<0.000000e+00> : vector<4xf32>
    %501 = vector.multi_reduction <add>, %500, %cst_220 [1] : vector<4x128xf32> to vector<4xf32>
    %502 = vector.shape_cast %501 : vector<4xf32> to vector<4x1xf32>
    %503 = tpu.reciprocal %502 {approx = true} : vector<4x1xf32> -> vector<4x1xf32>
    %504 = vector.broadcast %503 : vector<4x1xf32> to vector<4x128xf32>
    %505 = arith.mulf %500, %504 : vector<4x128xf32>
    %506 = arith.select %468, %505, %477 : vector<4x128xi1>, vector<4x128xf32>
    %507 = arith.select %463, %491, %506 : vector<4x128xi1>, vector<4x128xf32>
    %c0_221 = arith.constant 0 : index
    %c0_222 = arith.constant 0 : index
    %508 = vector.load %arg7[%c0_221, %c0_222] : memref<4x1152xf32, #tpu.memory_space<vmem>>, vector<4x128xf32>
    tpu.vector_store %arg7[%c0_221, %c0_222], %64 {strides = array<i32>} : memref<4x1152xf32, #tpu.memory_space<vmem>>, vector<4x128xf32>,
    %c0_223 = arith.constant 0 : index
    %c128_224 = arith.constant 128 : index
    %509 = vector.load %arg7[%c0_223, %c128_224] : memref<4x1152xf32, #tpu.memory_space<vmem>>, vector<4x128xf32>
    tpu.vector_store %arg7[%c0_223, %c128_224], %183 {strides = array<i32>} : memref<4x1152xf32, #tpu.memory_space<vmem>>, vector<4x128xf32>,
    %c0_225 = arith.constant 0 : index
    %c256_226 = arith.constant 256 : index
    %510 = vector.load %arg7[%c0_225, %c256_226] : memref<4x1152xf32, #tpu.memory_space<vmem>>, vector<4x128xf32>
    tpu.vector_store %arg7[%c0_225, %c256_226], %304 {strides = array<i32>} : memref<4x1152xf32, #tpu.memory_space<vmem>>, vector<4x128xf32>,
    %c0_227 = arith.constant 0 : index
    %c384_228 = arith.constant 384 : index
    %511 = vector.load %arg7[%c0_227, %c384_228] : memref<4x1152xf32, #tpu.memory_space<vmem>>, vector<4x128xf32>
    tpu.vector_store %arg7[%c0_227, %c384_228], %425 {strides = array<i32>} : memref<4x1152xf32, #tpu.memory_space<vmem>>, vector<4x128xf32>,
    %c0_229 = arith.constant 0 : index
    %c512_230 = arith.constant 512 : index
    %512 = vector.load %arg7[%c0_229, %c512_230] : memref<4x1152xf32, #tpu.memory_space<vmem>>, vector<4x128xf32>
    tpu.vector_store %arg7[%c0_229, %c512_230], %427 {strides = array<i32>} : memref<4x1152xf32, #tpu.memory_space<vmem>>, vector<4x128xf32>,
    %c0_231 = arith.constant 0 : index
    %c640_232 = arith.constant 640 : index
    %513 = vector.load %arg7[%c0_231, %c640_232] : memref<4x1152xf32, #tpu.memory_space<vmem>>, vector<4x128xf32>
    tpu.vector_store %arg7[%c0_231, %c640_232], %430 {strides = array<i32>} : memref<4x1152xf32, #tpu.memory_space<vmem>>, vector<4x128xf32>,
    %c0_233 = arith.constant 0 : index
    %c768 = arith.constant 768 : index
    %514 = vector.load %arg7[%c0_233, %c768] : memref<4x1152xf32, #tpu.memory_space<vmem>>, vector<4x256xf32>
    tpu.vector_store %arg7[%c0_233, %c768], %451 {strides = array<i32>} : memref<4x1152xf32, #tpu.memory_space<vmem>>, vector<4x256xf32>,
    %c0_234 = arith.constant 0 : index
    %c1024 = arith.constant 1024 : index
    %515 = vector.load %arg7[%c0_234, %c1024] : memref<4x1152xf32, #tpu.memory_space<vmem>>, vector<4x128xf32>
    tpu.vector_store %arg7[%c0_234, %c1024], %507 {strides = array<i32>} : memref<4x1152xf32, #tpu.memory_space<vmem>>, vector<4x128xf32>,
    return
  }
}

</mosaic_0001>

<bundles_post_ra>
// kernel: forward.1
= control target key start
LH: loop header
LB: loop body
LE: loop exit
PB: predicated region body
PF: predicated region fallthrough
CT: control target
= control target key end

     0   :  { %12 = vsyncpa [#allocation3], 0  ;;  %s17790_s0 = inlined_call_operand.hbm [shape: f32[4,64], index: 0, kind: input, shape index: {}]   ;;  %s17791_s1 = inlined_call_operand.hbm [shape: bf16[10368,256], index: 1, kind: input, shape index: {}]   ;;  %s17792_s2 = inlined_call_operand.hbm [shape: f32[45,256], index: 2, kind: input, shape index: {}]   ;;  %s17793_s3 = inlined_call_operand.hbm [shape: bf16[320,128], index: 3, kind: input, shape index: {}]   ;;  %s17794_s4 = inlined_call_operand.hbm [shape: bf16[128,1024], index: 4, kind: input, shape index: {}]   ;;  %s17795_s5 = inlined_call_operand.hbm [shape: bf16[1024,384], index: 5, kind: input, shape index: {}]   ;;  %s17796_s6 = inlined_call_operand.hbm [shape: f32[3,1024], index: 6, kind: input, shape index: {}]   ;;  %s17797_s7 = inlined_call_operand.vmem [shape: f32[4,1152], index: 7, kind: output, shape index: {}]  }
   0x1   :  { %13 = vsyncpa [#allocation5], 0 }
   0x2   :  { %14 = vsyncpa [#allocation8], 0 }
   0x3   :  { %15 = vsyncpa [#allocation11], 0  ;;  %s17315_s24 = smov [#allocation4]   ;;  %s17153_s28 = scalar_lea.hbm %s17791_s1, 165888 }
   0x4   :  { %s31_s25 = sshll.u32 %s17315_s24, 4  ;;  %p17154_p0 = scmp.ne.s32.totalorder %s17791_s1, %s17153_s28  ;;  %s32_s25 = int_to_ptr.vmem [resolvable:$true] %s31_s25 }
   0x5   :  { %p17157_p1 = scmp.lt.u32.totalorder %s17153_s28, %s17791_s1 }
   0x7   :  { %p17159_p2 = pnand %p17157_p1, %p17154_p0 }
   0x9   :  { %17162 = shalt.err (!%p17159_p2)
}
   0xa   :  { %s17163_s10 = scalar_lea.vmem %s32_s25, 165888  ;;  %p17168_p4 = scmp.lt.s32.totalorder %s32_s25, %s32_s25 }
   0xb   :  { %p17164_p3 = scmp.ne.s32.totalorder %s32_s25, %s17163_s10  ;;  %p17169_p5 = scmp.lt.s32.totalorder %s17163_s10, %s17163_s10 }
   0xd   :  { %p17170_p6 = por %p17169_p5, %p17168_p4 }
   0xf   :  { %p17171_p7 = pnand %p17170_p6, %p17164_p3 }
  0x11   :  { %17174 = shalt.err (!%p17171_p7)
}
  0x12   :  { %s17316_s11 = smov 128   ;;  %s17317_s12 = smov 8  }
  0x13   :  { %37 = dma.hbm_to_vmem [thread:$0]  %s17791_s1, 165888, %s32_s25, [#allocation5], %s17316_s11, %s17316_s11, %s17317_s12  }
  0x14   :  { %s17318_s15 = smov [#allocation7]   ;;  %s17175_s19 = scalar_lea.hbm %s17793_s3, 2560 }
  0x15   :  { %s55_s16 = sshll.u32 %s17318_s15, 4  ;;  %p17176_p8 = scmp.ne.s32.totalorder %s17793_s3, %s17175_s19  ;;  %s56_s16 = int_to_ptr.vmem [resolvable:$true] %s55_s16 }
  0x16   :  { %p17179_p9 = scmp.lt.u32.totalorder %s17175_s19, %s17793_s3 }
  0x18   :  { %p17181_p10 = pnand %p17179_p9, %p17176_p8 }
  0x1a   :  { %17184 = shalt.err (!%p17181_p10)
}
  0x1b   :  { %s17185_s24 = scalar_lea.vmem %s56_s16, 2560  ;;  %p17190_p12 = scmp.lt.s32.totalorder %s56_s16, %s56_s16 }
  0x1c   :  { %p17186_p11 = scmp.ne.s32.totalorder %s56_s16, %s17185_s24  ;;  %p17191_p13 = scmp.lt.s32.totalorder %s17185_s24, %s17185_s24 }
  0x1e   :  { %p17192_p0 = por %p17191_p13, %p17190_p12 }
  0x20   :  { %p17193_p1 = pnand %p17192_p0, %p17186_p11 }
  0x22   :  { %17196 = shalt.err (!%p17193_p1)
}
  0x23   :  { %s17319_s1 = smov 64   ;;  %s17320_s25 = smov 4  }
  0x24   :  { %61 = dma.hbm_to_vmem [thread:$0]  %s17793_s3, 2560, %s56_s16, [#allocation8], %s17319_s1, %s17319_s1, %s17320_s25  }
  0x25   :  { %s17321_s28 = smov [#allocation10]   ;;  %s17197_s9 = scalar_lea.hbm %s17795_s5, 24576 }
  0x26   :  { %s79_s29 = sshll.u32 %s17321_s28, 4  ;;  %p17198_p2 = scmp.ne.s32.totalorder %s17795_s5, %s17197_s9  ;;  %s80_s29 = int_to_ptr.vmem [resolvable:$true] %s79_s29 }
  0x27   :  { %p17201_p3 = scmp.lt.u32.totalorder %s17197_s9, %s17795_s5 }
  0x29   :  { %p17203_p4 = pnand %p17201_p3, %p17198_p2 }
  0x2b   :  { %17206 = shalt.err (!%p17203_p4)
}
  0x2c   :  { %s17207_s14 = scalar_lea.vmem %s80_s29, 24576  ;;  %p17212_p6 = scmp.lt.s32.totalorder %s80_s29, %s80_s29 }
  0x2d   :  { %p17208_p5 = scmp.ne.s32.totalorder %s80_s29, %s17207_s14  ;;  %p17213_p7 = scmp.lt.s32.totalorder %s17207_s14, %s17207_s14 }
  0x2f   :  { %p17214_p8 = por %p17213_p7, %p17212_p6 }
  0x31   :  { %p17215_p9 = pnand %p17214_p8, %p17208_p5 }
  0x33   :  { %17218 = shalt.err (!%p17215_p9)
}
  0x34   :  { %s17322_s3 = smov 192   ;;  %s17323_s15 = smov 12  }
  0x35   :  { %85 = dma.hbm_to_vmem [thread:$0]  %s17795_s5, 24576, %s80_s29, [#allocation11], %s17322_s3, %s17322_s3, %s17323_s15  }
  0x36   :  { %s17324_s18 = smov [#allocation2]   ;;  %s17325_s20 = smov [#allocation6]  }
  0x37   :  { %s22_s19 = sshll.u32 %s17324_s18, 4  ;;  %s43_s21 = sshll.u32 %s17325_s20, 4  ;;  %s23_s19 = int_to_ptr.vmem [resolvable:$true] %s22_s19  ;;  %s44_s21 = int_to_ptr.vmem [resolvable:$true] %s43_s21 }
  0x38   :  { %s17219_s24 = scalar_lea.hbm %s17790_s0, 64 }
  0x39   :  { %p17220_p10 = scmp.ne.s32.totalorder %s17790_s0, %s17219_s24  ;;  %p17223_p11 = scmp.lt.u32.totalorder %s17219_s24, %s17790_s0 }
  0x3b   :  { %p17225_p12 = pnand %p17223_p11, %p17220_p10 }
  0x3d   :  { %17228 = shalt.err (!%p17225_p12)
}
  0x3e   :  { %s17229_s5 = scalar_lea.vmem %s23_s19, 64  ;;  %p17234_p0 = scmp.lt.s32.totalorder %s23_s19, %s23_s19 }
  0x3f   :  { %p17230_p13 = scmp.ne.s32.totalorder %s23_s19, %s17229_s5  ;;  %p17235_p1 = scmp.lt.s32.totalorder %s17229_s5, %s17229_s5 }
  0x41   :  { %p17236_p2 = por %p17235_p1, %p17234_p0 }
  0x43   :  { %p17237_p3 = pnand %p17236_p2, %p17230_p13 }
  0x45   :  { %17240 = shalt.err (!%p17237_p3)
}
  0x46   :  { %25 = dma.hbm_to_vmem [thread:$0]  %s17790_s0, 64, %s23_s19, [#allocation3]  }
  0x47   :  { %s17241_s9 = scalar_lea.hbm %s17792_s2, 1536 }
  0x48   :  { %p17242_p4 = scmp.ne.s32.totalorder %s17792_s2, %s17241_s9  ;;  %p17245_p5 = scmp.lt.u32.totalorder %s17241_s9, %s17792_s2 }
  0x4a   :  { %p17247_p6 = pnand %p17245_p5, %p17242_p4 }
  0x4c   :  { %17250 = shalt.err (!%p17247_p6)
}
  0x4d   :  { %s17251_s14 = scalar_lea.vmem %s44_s21, 1536  ;;  %p17256_p8 = scmp.lt.s32.totalorder %s44_s21, %s44_s21 }
  0x4e   :  { %p17252_p7 = scmp.ne.s32.totalorder %s44_s21, %s17251_s14  ;;  %p17257_p9 = scmp.lt.s32.totalorder %s17251_s14, %s17251_s14 }
  0x50   :  { %p17258_p10 = por %p17257_p9, %p17256_p8 }
  0x52   :  { %p17259_p11 = pnand %p17258_p10, %p17252_p7 }
  0x54   :  { %17262 = shalt.err (!%p17259_p11)
}
  0x55   :  { %s17326_s0 = smov 256   ;;  %s17327_s3 = smov 16  }
  0x56   :  { %49 = dma.hbm_to_vmem [thread:$0]  %s17792_s2, 1536, %s44_s21, [#allocation5], %s17326_s0, %s17326_s0, %s17327_s3  }
  0x57   :  { %s17328_s17 = smov [#allocation9]   ;;  %s17263_s22 = scalar_lea.hbm %s17794_s4, 8192 }
  0x58   :  { %s67_s18 = sshll.u32 %s17328_s17, 4  ;;  %p17264_p12 = scmp.ne.s32.totalorder %s17794_s4, %s17263_s22  ;;  %s68_s18 = int_to_ptr.vmem [resolvable:$true] %s67_s18 }
  0x59   :  { %p17267_p13 = scmp.lt.u32.totalorder %s17263_s22, %s17794_s4 }
  0x5b   :  { %p17269_p0 = pnand %p17267_p13, %p17264_p12 }
  0x5d   :  { %17272 = shalt.err (!%p17269_p0)
}
  0x5e   :  { %s17273_s26 = scalar_lea.vmem %s68_s18, 8192  ;;  %p17278_p2 = scmp.lt.s32.totalorder %s68_s18, %s68_s18 }
  0x5f   :  { %p17274_p1 = scmp.ne.s32.totalorder %s68_s18, %s17273_s26  ;;  %p17279_p3 = scmp.lt.s32.totalorder %s17273_s26, %s17273_s26 }
  0x61   :  { %p17280_p4 = por %p17279_p3, %p17278_p2 }
  0x63   :  { %p17281_p5 = pnand %p17280_p4, %p17274_p1 }
  0x65   :  { %17284 = shalt.err (!%p17281_p5)
}
  0x66   :  { %s17329_s2 = smov 512   ;;  %s17330_s21 = smov 32  }
  0x67   :  { %73 = dma.hbm_to_vmem [thread:$0]  %s17794_s4, 8192, %s68_s18, [#allocation8], %s17329_s2, %s17329_s2, %s17330_s21  }
  0x68   :  { %s17331_s28 = smov [#allocation12]   ;;  %s17285_s9 = scalar_lea.hbm %s17796_s6, 512 }
  0x69   :  { %s92_s29 = sshll.u32 %s17331_s28, 4  ;;  %p17286_p6 = scmp.ne.s32.totalorder %s17796_s6, %s17285_s9  ;;  %s93_s29 = int_to_ptr.vmem [resolvable:$true] %s92_s29 }
  0x6a   :  { %p17289_p7 = scmp.lt.u32.totalorder %s17285_s9, %s17796_s6 }
  0x6c   :  { %p17291_p8 = pnand %p17289_p7, %p17286_p6 }
  0x6e   :  { %17294 = shalt.err (!%p17291_p8)
}
  0x6f   :  { %s17295_s14 = scalar_lea.vmem %s93_s29, 512  ;;  %p17300_p10 = scmp.lt.s32.totalorder %s93_s29, %s93_s29 }
  0x70   :  { %p17296_p9 = scmp.ne.s32.totalorder %s93_s29, %s17295_s14  ;;  %p17301_p11 = scmp.lt.s32.totalorder %s17295_s14, %s17295_s14 }
  0x72   :  { %p17302_p12 = por %p17301_p11, %p17300_p10 }
  0x74   :  { %p17303_p13 = pnand %p17302_p12, %p17296_p9 }
  0x76   :  { %17306 = shalt.err (!%p17303_p13)
}
  0x77   :  { %95 = dma.hbm_to_vmem [thread:$0]  %s17796_s6, 512, %s93_s29, [#allocation11]  }
  0x78   :  { %17307 = dma.done.wait [#allocation3], 64  }
  0x79   :  { %17308 = vsyncadd [#allocation3], 4294967232 }
  0x7a   :  { %17309 = dma.done.wait [#allocation5], 167424  }
  0x7b   :  { %17310 = vsyncadd [#allocation5], 4294799872 }
  0x7c   :  { %17311 = dma.done.wait [#allocation8], 10752  }
  0x7d   :  { %17312 = vsyncadd [#allocation8], 4294956544 }
  0x7e   :  { %17313 = dma.done.wait [#allocation11], 25088  }
  0x7f   :  { %17314 = vsyncadd [#allocation11], 4294942208  ;;  %v17332_v0 = vmov 0.0   ;;  %vm17333_vm0 = vmmov 0   ;;  %v14909_v1 = vld [vmem:[#allocation7] sm:$0xff]   ;;  %v14910_v2 = vld [vmem:[#allocation7 + $0x8] sm:$0xff]  }
  0x80   :  { %14823 = vmatprep.subr.bf16.mxu0 %v17332_v0  ;;  %14831 = vmatprep.mubr.msk.bf16.mxu0 %vm17333_vm0, %v17332_v0  ;;  %v14911_v3 = vld [vmem:[#allocation7 + $0x10] sm:$0xff]   ;;  %v14912_v4 = vld [vmem:[#allocation7 + $0x18] sm:$0xff]   ;;  %vm159_vm1 = vcmask 523264   ;;  %v13133_v7 = vld [vmem:[#allocation12] ss:$0 sm:$0xff]  ;;  %vm203_vm2 = vcmask 1043456  }
  0x81   :  { %14835 = vmatprep.subr.bf16.mxu1 %v17332_v0  ;;  %14851 = vmatprep.mubr.msk.bf16.mxu1 %vm17333_vm0, %v17332_v0  ;;  %v118_v5 = vld [vmem:[#allocation2] sm:$0xf]  ;;  %v14913_v16 = vld [vmem:[#allocation7 + $0x20] sm:$0xff]   ;;  %v14914_v17 = vld [vmem:[#allocation7 + $0x28] sm:$0xff]  }
  0x82   :  { %14824 = vmatpush3.bf16.msra.mxu0 %v14909_v1  ;;  %v130_v6 = vpack.c.bf16 %v118_v5, %v118_v5  ;;  %14836 = vmatpush3.bf16.msra.mxu1 %v14913_v16  ;;  %v14915_v18 = vld [vmem:[#allocation7 + $0x30] sm:$0xff]   ;;  %v14916_v19 = vld [vmem:[#allocation7 + $0x38] sm:$0xff]   ;;  %v14917_v20 = vld [vmem:[#allocation7 + $0x40] sm:$0xff]   ;;  %v17334_v1 = vmov 0  }
  0x83   :  { %14825 = vmatprep.subr.bf16.mxu0 %v17332_v0  ;;  %14837 = vmatprep.subr.bf16.mxu1 %v17332_v0  ;;  %v14918_v21 = vld [vmem:[#allocation7 + $0x48] sm:$0xff]   ;;  %v14919_v22 = vld [vmem:[#allocation7 + $0x50] sm:$0xff]   ;;  %v14920_v23 = vld [vmem:[#allocation7 + $0x58] sm:$0xff]  }
  0x84   :  { %v13139_v31 = vld [vmem:[#allocation12 + $0x4] ss:$0 sm:$0xff]  ;;  %v13140_v34 = vld [vmem:[#allocation12 + $0x8] ss:$0 sm:$0xff]  ;;  %v13141_v42 = vld [vmem:[#allocation12 + $0xc] ss:$0 sm:$0xff] }
  0x85   :  { %v14921_v40 = vld [vmem:[#allocation4] ss:$8 sps:$4 sm:$0xff]   ;;  %v14923_v41 = vld [vmem:[#allocation4 + $0x4] ss:$8 sps:$4 sm:$0xff]   ;;  %v14926_v51 = vld [vmem:[#allocation4 + $0x14] ss:$8 sps:$4 sm:$0xff]  }
  0x86   :  { %14826 = vmatpush3.bf16.msra.mxu0 %v14910_v2  ;;  %14838 = vmatpush3.bf16.msra.mxu1 %v14914_v17  ;;  %v14924_v52 = vld [vmem:[#allocation4 + $0x10] ss:$8 sps:$4 sm:$0xff]   ;;  %v14929_v53 = vld [vmem:[#allocation4 + $0x24] ss:$8 sps:$4 sm:$0xff]   ;;  %v14927_v54 = vld [vmem:[#allocation4 + $0x20] ss:$8 sps:$4 sm:$0xff]  }
  0x87   :  { %14827 = vmatprep.subr.bf16.mxu0 %v17332_v0  ;;  %14839 = vmatprep.subr.bf16.mxu1 %v17332_v0  ;;  %v14932_v55 = vld [vmem:[#allocation4 + $0x34] ss:$8 sps:$4 sm:$0xff]   ;;  %v14930_v56 = vld [vmem:[#allocation4 + $0x30] ss:$8 sps:$4 sm:$0xff]   ;;  %v14935_v57 = vld [vmem:[#allocation4 + $0x44] ss:$8 sps:$4 sm:$0xff]  }
  0x88   :  { %v14933_v58 = vld [vmem:[#allocation4 + $0x40] ss:$8 sps:$4 sm:$0xff]   ;;  %v14938_v59 = vld [vmem:[#allocation4 + $0x54] ss:$8 sps:$4 sm:$0xff]   ;;  %v14936_v60 = vld [vmem:[#allocation4 + $0x50] ss:$8 sps:$4 sm:$0xff]  }
  0x89   :  { %v14939_v61 = vld [vmem:[#allocation4 + $0x60] ss:$8 sps:$4 sm:$0xff]   ;;  %v14941_v62 = vld [vmem:[#allocation4 + $0x64] ss:$8 sps:$4 sm:$0xff]   ;;  %v14944_v63 = vld [vmem:[#allocation4 + $0x74] ss:$8 sps:$4 sm:$0xff]  }
  0x8a   :  { %14828 = vmatpush3.bf16.msra.mxu0 %v14911_v3  ;;  %14840 = vmatpush3.bf16.msra.mxu1 %v14915_v18  ;;  %v14942_v2 = vld [vmem:[#allocation4 + $0x70] ss:$8 sps:$4 sm:$0xff]   ;;  %v14945_v3 = vld [vmem:[#allocation4 + $0x80] ss:$8 sps:$4 sm:$0xff]   ;;  %v14950_v5 = vld [vmem:[#allocation4 + $0x94] ss:$8 sps:$4 sm:$0xff]  }
  0x8b   :  { %14829 = vmatprep.subr.bf16.mxu0 %v17332_v0  ;;  %14841 = vmatprep.subr.bf16.mxu1 %v17332_v0  ;;  %v14963_v16 = vld [vmem:[#allocation4 + $0xe0] ss:$8 sps:$4 sm:$0xff]   ;;  %v14968_v17 = vld [vmem:[#allocation4 + $0xf4] ss:$8 sps:$4 sm:$0xff]   ;;  %v14966_v18 = vld [vmem:[#allocation4 + $0xf0] ss:$8 sps:$4 sm:$0xff]  }
  0x8e   :  { %14830 = vmatpush3.bf16.msra.mxu0 %v14912_v4  ;;  %14842 = vmatpush3.bf16.msra.mxu1 %v14916_v19  ;;  %v14947_v4 = vld [vmem:[#allocation4 + $0x84] ss:$8 sps:$4 sm:$0xff]  }
  0x8f   :  { %14843 = vmatprep.subr.bf16.mxu1 %v17332_v0  ;;  %478 = vmatprep.subr.bf16.mxu0 %v14923_v41  ;;  %v14971_v19 = vld [vmem:[#allocation4 + $0x104] ss:$8 sps:$4 sm:$0xff]  }
  0x91   :  { %14832 = vmatmul.mubr.msk.bf16.vlgmr.msra.gmra.mrb[0].mxu0 %vm159_vm1, %v130_v6  ;;  %v14948_v6 = vld [vmem:[#allocation4 + $0x90] ss:$8 sps:$4 sm:$0xff]  }
  0x92   :  { %14844 = vmatpush3.bf16.msra.mxu1 %v14917_v20  ;;  %479 = vmatpush1.bf16.msra.mxu0 %v14921_v40  ;;  %v14969_v20 = vld [vmem:[#allocation4 + $0x100] ss:$8 sps:$4 sm:$0xff]   ;;  %v13150_v40 = vld [vmem:[#allocation12 + $0x10] ss:$0 sm:$0xff] }
  0x93   :  { %14845 = vmatprep.subr.bf16.mxu1 %v17332_v0  ;;  %480 = vmatprep.subr.bf16.mxu0 %v14926_v51  ;;  %v14995_v51 = vld [vmem:[#allocation4 + $0x184] ss:$8 sps:$4 sm:$0xff]  }
  0x94   :  { %510 = vmatprep.mubr.bf16.mxu0 %v17334_v1 }
  0x96   :  { %14846 = vmatpush3.bf16.msra.mxu1 %v14918_v21  ;;  %481 = vmatpush1.bf16.msra.mxu0 %v14924_v52  ;;  %v14974_v21 = vld [vmem:[#allocation4 + $0x114] ss:$8 sps:$4 sm:$0xff]   ;;  %v388_v52 = vlaneseq }
  0x97   :  { %14847 = vmatprep.subr.bf16.mxu1 %v17332_v0  ;;  %482 = vmatprep.subr.bf16.mxu0 %v14929_v53 }
  0x98   :  { %v17495_v53 = vshrl.u32 %v388_v52, 7 }
  0x9a   :  { %14848 = vmatpush3.bf16.msra.mxu1 %v14919_v22  ;;  %483 = vmatpush1.bf16.msra.mxu0 %v14927_v54  ;;  %v14972_v22 = vld [vmem:[#allocation4 + $0x110] ss:$8 sps:$4 sm:$0xff]   ;;  %v17498_v54 = vsub.s32 0, %v17495_v53 }
  0x9b   :  { %14849 = vmatprep.subr.bf16.mxu1 %v17332_v0  ;;  %484 = vmatprep.subr.bf16.mxu0 %v14932_v55  ;;  %v386_v55 = vld [vmem:[#allocation6] ss:$8 sm:$0x3] }
  0x9e   :  { %14850 = vmatpush3.bf16.msra.mxu1 %v14920_v23  ;;  %485 = vmatpush1.bf16.msra.mxu0 %v14930_v56  ;;  %v14977_v23 = vld [vmem:[#allocation4 + $0x124] ss:$8 sps:$4 sm:$0xff]   ;;  %v17501_v56 = vsub.s32 1, %v17495_v53 }
  0x9f   :  { %486 = vmatprep.subr.bf16.mxu0 %v14935_v57  ;;  %728 = vmatprep.subr.bf16.mxu1 %v14947_v4  ;;  %v391_v57 = vrot.slane %v386_v55, %v17498_v54 }
  0xa2   :  { %487 = vmatpush1.bf16.msra.mxu0 %v14933_v58  ;;  %v395_v58 = vrot.slane %v386_v55, %v17501_v56  ;;  %v15041_v55 = vld [vmem:[#allocation4 + $0x280] ss:$8 sps:$4 sm:$0xff]  }
  0xa3   :  { %488 = vmatprep.subr.bf16.mxu0 %v14938_v59 }
  0xa6   :  { %489 = vmatpush1.bf16.msra.mxu0 %v14936_v60 }
  0xa7   :  { %490 = vmatprep.subr.bf16.mxu0 %v14941_v62 }
  0xaa   :  { %491 = vmatpush1.bf16.msra.mxu0 %v14939_v61 }
  0xab   :  { %492 = vmatprep.subr.bf16.mxu0 %v14944_v63 }
  0xae   :  { %493 = vmatpush1.bf16.msra.mxu0 %v14942_v2 }
 0x164   :  { %v197_v8 = vpop.f32.mrb[0].mxu0 }
 0x165   :  { %v198_v9 = vadd.f32 %v13133_v7, %v197_v8  ;;  %v14833_v10 = vpop.f32.mrb[1].mxu0  ;;  %v14953_v7 = vld [vmem:[#allocation4 + $0xa4] ss:$8 sps:$4 sm:$0xff]   ;;  %v14951_v8 = vld [vmem:[#allocation4 + $0xa0] ss:$8 sps:$4 sm:$0xff]  }
 0x166   :  { %v200_v11 = vpop.f32.mrb[2].mxu0  ;;  %v14954_v10 = vld [vmem:[#allocation4 + $0xb0] ss:$8 sps:$4 sm:$0xff]  }
 0x167   :  { %v14834_v12 = vpop.f32.mrb[3].mxu0  ;;  %v204_v13 = vsel %vm203_vm2, %v198_v9, 0.0  ;;  %v209_v14 = vmul.f32 %v198_v9, %v198_v9  ;;  %v14959_v11 = vld [vmem:[#allocation4 + $0xc4] ss:$8 sps:$4 sm:$0xff]  }
 0x168   :  { %205 = vadd.xlane.f32.xlu0 %v204_v13  ;;  %v14957_v12 = vld [vmem:[#allocation4 + $0xc0] ss:$8 sps:$4 sm:$0xff]   ;;  %v14962_v13 = vld [vmem:[#allocation4 + $0xd4] ss:$8 sps:$4 sm:$0xff]  }
 0x169   :  { %v210_v15 = vsel %vm203_vm2, %v209_v14, 0.0  ;;  %v14960_v14 = vld [vmem:[#allocation4 + $0xd0] ss:$8 sps:$4 sm:$0xff]  }
 0x16c   :  { %211 = vadd.xlane.f32.xlu0 %v210_v15  ;;  %v14965_v15 = vld [vmem:[#allocation4 + $0xe4] ss:$8 sps:$4 sm:$0xff]  }
 0x1f5   :  { %v206_v24 = vpop.xlane.xlu0 %205 }
 0x1f6   :  { %v208_v25 = vmul.f32 0.0078125, %v206_v24  ;;  %v14975_v24 = vld [vmem:[#allocation4 + $0x120] ss:$8 sps:$4 sm:$0xff]  }
 0x1f8   :  { %v215_v27 = vmul.f32 %v208_v25, %v208_v25  ;;  %v214_v32 = vsub.f32 %v198_v9, %v208_v25  ;;  %v14956_v9 = vld [vmem:[#allocation4 + $0xb4] ss:$8 sps:$4 sm:$0xff]  }
 0x1f9   :  { %v212_v26 = vpop.xlane.xlu0 %211  ;;  %v14980_v25 = vld [vmem:[#allocation4 + $0x134] ss:$8 sps:$4 sm:$0xff]  }
 0x1fa   :  { %v213_v28 = vmul.f32 0.0078125, %v212_v26  ;;  %v14978_v26 = vld [vmem:[#allocation4 + $0x130] ss:$8 sps:$4 sm:$0xff]  }
 0x1fc   :  { %v216_v29 = vsub.f32 %v213_v28, %v215_v27  ;;  %v14983_v27 = vld [vmem:[#allocation4 + $0x144] ss:$8 sps:$4 sm:$0xff]   ;;  %v14981_v28 = vld [vmem:[#allocation4 + $0x140] ss:$8 sps:$4 sm:$0xff]  }
 0x1fe   :  { %v217_v30 = vadd.f32 1e-05, %v216_v29  ;;  %v14986_v29 = vld [vmem:[#allocation4 + $0x154] ss:$8 sps:$4 sm:$0xff]  }
 0x200   :  { %17129 = vrsqrt.f32 %v217_v30  ;;  %v14984_v30 = vld [vmem:[#allocation4 + $0x150] ss:$8 sps:$4 sm:$0xff]  }
 0x20a   :  { %v17130_v33 = vpop.eup %17129 }
 0x20b   :  { %v219_v35 = vmul.f32 %v17130_v33, %v214_v32 }
 0x20d   :  { %v224_v36 = vmul.f32 %v13139_v31, %v219_v35 }
 0x20f   :  { %v229_v37 = vadd.f32 %v13140_v34, %v224_v36 }
 0x211   :  { %v230_v38 = vmax.f32 %v229_v37, 0.0 }
 0x213   :  { %v250_v39 = vpack.c.bf16 %v230_v38, %v230_v38 }
 0x215   :  { %14852 = vmatmul.mubr.bf16.vlgmr.msra.gmra.mrb[0].mxu1 %v250_v39 }
 0x216   :  { %729 = vmatpush1.bf16.msra.mxu1 %v14945_v3 }
 0x217   :  { %730 = vmatprep.subr.bf16.mxu1 %v14950_v5 }
 0x21a   :  { %731 = vmatpush1.bf16.msra.mxu1 %v14948_v6  ;;  %v14993_v6 = vld [vmem:[#allocation4 + $0x180] ss:$8 sps:$4 sm:$0xff]  }
 0x21b   :  { %732 = vmatprep.subr.bf16.mxu1 %v14953_v7 }
 0x21e   :  { %733 = vmatpush1.bf16.msra.mxu1 %v14951_v8  ;;  %v14998_v8 = vld [vmem:[#allocation4 + $0x194] ss:$8 sps:$4 sm:$0xff]  }
 0x21f   :  { %734 = vmatprep.subr.bf16.mxu1 %v14956_v9  ;;  %v14996_v9 = vld [vmem:[#allocation4 + $0x190] ss:$8 sps:$4 sm:$0xff]  }
 0x222   :  { %735 = vmatpush1.bf16.msra.mxu1 %v14954_v10  ;;  %v15001_v10 = vld [vmem:[#allocation4 + $0x1a4] ss:$8 sps:$4 sm:$0xff]  }
 0x223   :  { %736 = vmatprep.subr.bf16.mxu1 %v14959_v11  ;;  %v14999_v11 = vld [vmem:[#allocation4 + $0x1a0] ss:$8 sps:$4 sm:$0xff]  }
 0x226   :  { %737 = vmatpush1.bf16.msra.mxu1 %v14957_v12  ;;  %v15004_v12 = vld [vmem:[#allocation4 + $0x1b4] ss:$8 sps:$4 sm:$0xff]  }
 0x227   :  { %738 = vmatprep.subr.bf16.mxu1 %v14962_v13  ;;  %v15002_v13 = vld [vmem:[#allocation4 + $0x1b0] ss:$8 sps:$4 sm:$0xff]  }
 0x22a   :  { %739 = vmatpush1.bf16.msra.mxu1 %v14960_v14  ;;  %v15007_v14 = vld [vmem:[#allocation4 + $0x1c4] ss:$8 sps:$4 sm:$0xff]  }
 0x22b   :  { %740 = vmatprep.subr.bf16.mxu1 %v14965_v15  ;;  %v15005_v15 = vld [vmem:[#allocation4 + $0x1c0] ss:$8 sps:$4 sm:$0xff]  }
 0x22e   :  { %741 = vmatpush1.bf16.msra.mxu1 %v14963_v16  ;;  %v15010_v16 = vld [vmem:[#allocation4 + $0x1d4] ss:$8 sps:$4 sm:$0xff]  }
 0x22f   :  { %742 = vmatprep.subr.bf16.mxu1 %v14968_v17  ;;  %v15008_v17 = vld [vmem:[#allocation4 + $0x1d0] ss:$8 sps:$4 sm:$0xff]  }
 0x232   :  { %743 = vmatpush1.bf16.msra.mxu1 %v14966_v18  ;;  %v15013_v18 = vld [vmem:[#allocation4 + $0x1e4] ss:$8 sps:$4 sm:$0xff]  }
 0x233   :  { %744 = vmatprep.subr.bf16.mxu1 %v14971_v19  ;;  %v15011_v19 = vld [vmem:[#allocation4 + $0x1e0] ss:$8 sps:$4 sm:$0xff]  }
 0x236   :  { %745 = vmatpush1.bf16.msra.mxu1 %v14969_v20  ;;  %v15016_v20 = vld [vmem:[#allocation4 + $0x1f4] ss:$8 sps:$4 sm:$0xff]  }
 0x237   :  { %746 = vmatprep.subr.bf16.mxu1 %v14974_v21  ;;  %v15014_v21 = vld [vmem:[#allocation4 + $0x1f0] ss:$8 sps:$4 sm:$0xff]  }
 0x23a   :  { %747 = vmatpush1.bf16.msra.mxu1 %v14972_v22  ;;  %v15019_v22 = vld [vmem:[#allocation4 + $0x204] ss:$8 sps:$4 sm:$0xff]  }
 0x23b   :  { %748 = vmatprep.subr.bf16.mxu1 %v14977_v23  ;;  %v15017_v23 = vld [vmem:[#allocation4 + $0x200] ss:$8 sps:$4 sm:$0xff]  }
 0x23e   :  { %749 = vmatpush1.bf16.msra.mxu1 %v14975_v24  ;;  %v15022_v24 = vld [vmem:[#allocation4 + $0x214] ss:$8 sps:$4 sm:$0xff]  }
 0x23f   :  { %750 = vmatprep.subr.bf16.mxu1 %v14980_v25  ;;  %v15020_v25 = vld [vmem:[#allocation4 + $0x210] ss:$8 sps:$4 sm:$0xff]  }
 0x242   :  { %751 = vmatpush1.bf16.msra.mxu1 %v14978_v26  ;;  %v15025_v26 = vld [vmem:[#allocation4 + $0x224] ss:$8 sps:$4 sm:$0xff]  }
 0x243   :  { %752 = vmatprep.subr.bf16.mxu1 %v14983_v27  ;;  %v15023_v27 = vld [vmem:[#allocation4 + $0x220] ss:$8 sps:$4 sm:$0xff]  }
 0x246   :  { %753 = vmatpush1.bf16.msra.mxu1 %v14981_v28  ;;  %v15028_v28 = vld [vmem:[#allocation4 + $0x234] ss:$8 sps:$4 sm:$0xff]  }
 0x247   :  { %754 = vmatprep.subr.bf16.mxu1 %v14986_v29  ;;  %v15026_v29 = vld [vmem:[#allocation4 + $0x230] ss:$8 sps:$4 sm:$0xff]  }
 0x24a   :  { %755 = vmatpush1.bf16.msra.mxu1 %v14984_v30  ;;  %v15031_v30 = vld [vmem:[#allocation4 + $0x244] ss:$8 sps:$4 sm:$0xff]  }
 0x2e8   :  { %v337_v43 = vpop.f32.mrb[0].mxu1 }
 0x2e9   :  { %v17477_v44 = vadd.f32 %v13141_v42, %v337_v43  ;;  %v14853_v45 = vpop.f32.mrb[1].mxu1  ;;  %v13151_v42 = vld [vmem:[#allocation12 + $0x14] ss:$0 sm:$0xff] }
 0x2ea   :  { %v340_v46 = vpop.f32.mrb[2].mxu1 }
 0x2eb   :  { %v14854_v47 = vpop.f32.mrb[3].mxu1  ;;  %v343_v48 = vsel %vm203_vm2, %v17477_v44, 0.0  ;;  %v347_v49 = vmul.f32 %v17477_v44, %v17477_v44 }
 0x2ec   :  { %344 = vadd.xlane.f32.xlu1 %v343_v48  ;;  %v14989_v48 = vld [vmem:[#allocation4 + $0x164] ss:$8 sps:$4 sm:$0xff]  }
 0x2ed   :  { %v348_v50 = vsel %vm203_vm2, %v347_v49, 0.0  ;;  %v14987_v49 = vld [vmem:[#allocation4 + $0x160] ss:$8 sps:$4 sm:$0xff]   ;;  %756 = vmatprep.subr.bf16.mxu1 %v14989_v48 }
 0x2ee   :  { %757 = vmatpush1.bf16.msra.mxu1 %v14987_v49 }
 0x2f0   :  { %349 = vadd.xlane.f32.xlu1 %v348_v50  ;;  %v14990_v50 = vld [vmem:[#allocation4 + $0x170] ss:$8 sps:$4 sm:$0xff]  }
 0x379   :  { %v345_v31 = vpop.xlane.xlu1 %344 }
 0x37a   :  { %v346_v32 = vmul.f32 0.0078125, %v345_v31  ;;  %v15029_v31 = vld [vmem:[#allocation4 + $0x240] ss:$8 sps:$4 sm:$0xff]  }
 0x37c   :  { %v353_v34 = vmul.f32 %v346_v32, %v346_v32  ;;  %v352_v38 = vsub.f32 %v17477_v44, %v346_v32  ;;  %v14992_v44 = vld [vmem:[#allocation4 + $0x174] ss:$8 sps:$4 sm:$0xff]  }
 0x37d   :  { %v350_v33 = vpop.xlane.xlu1 %349  ;;  %758 = vmatprep.subr.bf16.mxu1 %v14992_v44  ;;  %v15034_v32 = vld [vmem:[#allocation4 + $0x254] ss:$8 sps:$4 sm:$0xff]  }
 0x37e   :  { %v351_v35 = vmul.f32 0.0078125, %v350_v33  ;;  %759 = vmatpush1.bf16.msra.mxu1 %v14990_v50  ;;  %v15032_v33 = vld [vmem:[#allocation4 + $0x250] ss:$8 sps:$4 sm:$0xff]  }
 0x37f   :  { %978 = vmatprep.subr.bf16.mxu1 %v14995_v51 }
 0x380   :  { %v354_v36 = vsub.f32 %v351_v35, %v353_v34  ;;  %v15037_v34 = vld [vmem:[#allocation4 + $0x264] ss:$8 sps:$4 sm:$0xff]   ;;  %v15035_v35 = vld [vmem:[#allocation4 + $0x260] ss:$8 sps:$4 sm:$0xff]  }
 0x382   :  { %v355_v37 = vadd.f32 1e-05, %v354_v36  ;;  %v15040_v36 = vld [vmem:[#allocation4 + $0x274] ss:$8 sps:$4 sm:$0xff]  }
 0x384   :  { %17131 = vrsqrt.f32 %v355_v37  ;;  %v15038_v37 = vld [vmem:[#allocation4 + $0x270] ss:$8 sps:$4 sm:$0xff]  }
 0x38e   :  { %v17132_v39 = vpop.eup %17131 }
 0x38f   :  { %v357_v41 = vmul.f32 %v17132_v39, %v352_v38  ;;  %v15043_v38 = vld [vmem:[#allocation4 + $0x284] ss:$8 sps:$4 sm:$0xff]   ;;  %v556_v39 = vld [vmem:[#allocation6 + $0x1] ss:$8 sm:$0x3] }
 0x391   :  { %v362_v43 = vmul.f32 %v13150_v40, %v357_v41  ;;  %v561_v40 = vrot.slane %v556_v39, %v17498_v54  ;;  %v565_v41 = vrot.slane %v556_v39, %v17501_v56  ;;  %v15107_v39 = vld [vmem:[#allocation4 + $0x3e0] ss:$8 sps:$4 sm:$0xff]  }
 0x393   :  { %v367_v45 = vadd.f32 %v13151_v42, %v362_v43 }
 0x395   :  { %v17486_v46 = vmax.f32 %v367_v45, 0.0 }
 0x397   :  { %v385_v47 = vpack.c.bf16 %v17486_v46, %v17486_v46  ;;  %13113 = vst [vmem:[%s17797_s7] sm:$0xf] %v17486_v46 }
 0x399   :  { %511 = vmatmul.mubr.bf16.vlgmr.msra.gmra.mrb[4].mxu0 %v385_v47 }
 0x46c   :  { %v512_v59 = vpop.f32.mrb[4].mxu0 }
 0x46d   :  { %v513_v60 = vadd.f32 %v512_v59, %v391_v57  ;;  %v514_v61 = vpop.f32.mrb[5].mxu0  ;;  %v15044_v59 = vld [vmem:[#allocation4 + $0x290] ss:$8 sps:$4 sm:$0xff]  }
 0x46e   :  { %v515_v62 = vadd.f32 %v514_v61, %v395_v58  ;;  %v516_v63 = vpop.f32.mrb[6].mxu0  ;;  %v15046_v58 = vld [vmem:[#allocation4 + $0x294] ss:$8 sps:$4 sm:$0xff]   ;;  %v15047_v61 = vld [vmem:[#allocation4 + $0x2a0] ss:$8 sps:$4 sm:$0xff]  }
 0x46f   :  { %v519_v2 = vmax.f32 %v513_v60, 0.0  ;;  %v517_v3 = vpop.f32.mrb[7].mxu0  ;;  %v15049_v60 = vld [vmem:[#allocation4 + $0x2a4] ss:$8 sps:$4 sm:$0xff]   ;;  %v15050_v63 = vld [vmem:[#allocation4 + $0x2b0] ss:$8 sps:$4 sm:$0xff]  }
 0x470   :  { %v520_v4 = vmax.f32 %v515_v62, 0.0  ;;  %v15052_v62 = vld [vmem:[#allocation4 + $0x2b4] ss:$8 sps:$4 sm:$0xff]   ;;  %v15053_v3 = vld [vmem:[#allocation4 + $0x2c0] ss:$8 sps:$4 sm:$0xff]  }
 0x471   :  { %v553_v7 = vpack.c.bf16 %v519_v2, %v519_v2  ;;  %v15055_v2 = vld [vmem:[#allocation4 + $0x2c4] ss:$8 sps:$4 sm:$0xff]  }
 0x472   :  { %v554_v5 = vpack.c.bf16 %v520_v4, %v520_v4  ;;  %v15058_v4 = vld [vmem:[#allocation4 + $0x2d4] ss:$8 sps:$4 sm:$0xff]  }
 0x474   :  { %760 = vmatprep.mubr.bf16.mxu1 %v554_v5  ;;  %v15056_v5 = vld [vmem:[#allocation4 + $0x2d0] ss:$8 sps:$4 sm:$0xff]  }
 0x475   :  { %761 = vmatmul.mubr.bf16.vlgmr.msra.gmra.mrb[4].mxu1 %v553_v7  ;;  %v15059_v7 = vld [vmem:[#allocation4 + $0x2e0] ss:$8 sps:$4 sm:$0xff]  }
 0x476   :  { %979 = vmatpush1.bf16.msra.mxu1 %v14993_v6  ;;  %v15061_v6 = vld [vmem:[#allocation4 + $0x2e4] ss:$8 sps:$4 sm:$0xff]  }
 0x477   :  { %980 = vmatprep.subr.bf16.mxu1 %v14998_v8  ;;  %v15064_v8 = vld [vmem:[#allocation4 + $0x2f4] ss:$8 sps:$4 sm:$0xff]  }
 0x47a   :  { %981 = vmatpush1.bf16.msra.mxu1 %v14996_v9  ;;  %v15062_v9 = vld [vmem:[#allocation4 + $0x2f0] ss:$8 sps:$4 sm:$0xff]  }
 0x47b   :  { %982 = vmatprep.subr.bf16.mxu1 %v15001_v10  ;;  %v15067_v10 = vld [vmem:[#allocation4 + $0x304] ss:$8 sps:$4 sm:$0xff]  }
 0x47e   :  { %983 = vmatpush1.bf16.msra.mxu1 %v14999_v11  ;;  %v15065_v11 = vld [vmem:[#allocation4 + $0x300] ss:$8 sps:$4 sm:$0xff]  }
 0x47f   :  { %984 = vmatprep.subr.bf16.mxu1 %v15004_v12  ;;  %v15070_v12 = vld [vmem:[#allocation4 + $0x314] ss:$8 sps:$4 sm:$0xff]  }
 0x482   :  { %985 = vmatpush1.bf16.msra.mxu1 %v15002_v13  ;;  %v15068_v13 = vld [vmem:[#allocation4 + $0x310] ss:$8 sps:$4 sm:$0xff]  }
 0x483   :  { %986 = vmatprep.subr.bf16.mxu1 %v15007_v14  ;;  %v15073_v14 = vld [vmem:[#allocation4 + $0x324] ss:$8 sps:$4 sm:$0xff]  }
 0x486   :  { %987 = vmatpush1.bf16.msra.mxu1 %v15005_v15  ;;  %v15071_v15 = vld [vmem:[#allocation4 + $0x320] ss:$8 sps:$4 sm:$0xff]  }
 0x487   :  { %988 = vmatprep.subr.bf16.mxu1 %v15010_v16  ;;  %v15076_v16 = vld [vmem:[#allocation4 + $0x334] ss:$8 sps:$4 sm:$0xff]  }
 0x48a   :  { %989 = vmatpush1.bf16.msra.mxu1 %v15008_v17  ;;  %v15074_v17 = vld [vmem:[#allocation4 + $0x330] ss:$8 sps:$4 sm:$0xff]  }
 0x48b   :  { %990 = vmatprep.subr.bf16.mxu1 %v15013_v18  ;;  %v15079_v18 = vld [vmem:[#allocation4 + $0x344] ss:$8 sps:$4 sm:$0xff]  }
 0x48e   :  { %991 = vmatpush1.bf16.msra.mxu1 %v15011_v19  ;;  %v15077_v19 = vld [vmem:[#allocation4 + $0x340] ss:$8 sps:$4 sm:$0xff]  }
 0x48f   :  { %992 = vmatprep.subr.bf16.mxu1 %v15016_v20  ;;  %v15082_v20 = vld [vmem:[#allocation4 + $0x354] ss:$8 sps:$4 sm:$0xff]  }
 0x492   :  { %993 = vmatpush1.bf16.msra.mxu1 %v15014_v21  ;;  %v15080_v21 = vld [vmem:[#allocation4 + $0x350] ss:$8 sps:$4 sm:$0xff]  }
 0x493   :  { %994 = vmatprep.subr.bf16.mxu1 %v15019_v22  ;;  %v15085_v22 = vld [vmem:[#allocation4 + $0x364] ss:$8 sps:$4 sm:$0xff]  }
 0x496   :  { %995 = vmatpush1.bf16.msra.mxu1 %v15017_v23  ;;  %v15083_v23 = vld [vmem:[#allocation4 + $0x360] ss:$8 sps:$4 sm:$0xff]  }
 0x497   :  { %996 = vmatprep.subr.bf16.mxu1 %v15022_v24  ;;  %v15088_v24 = vld [vmem:[#allocation4 + $0x374] ss:$8 sps:$4 sm:$0xff]  }
 0x49a   :  { %997 = vmatpush1.bf16.msra.mxu1 %v15020_v25  ;;  %v15086_v25 = vld [vmem:[#allocation4 + $0x370] ss:$8 sps:$4 sm:$0xff]  }
 0x49b   :  { %998 = vmatprep.subr.bf16.mxu1 %v15025_v26  ;;  %v15089_v26 = vld [vmem:[#allocation4 + $0x380] ss:$8 sps:$4 sm:$0xff]  }
 0x49e   :  { %999 = vmatpush1.bf16.msra.mxu1 %v15023_v27  ;;  %v15091_v27 = vld [vmem:[#allocation4 + $0x384] ss:$8 sps:$4 sm:$0xff]  }
 0x49f   :  { %1000 = vmatprep.subr.bf16.mxu1 %v15028_v28  ;;  %v15094_v28 = vld [vmem:[#allocation4 + $0x394] ss:$8 sps:$4 sm:$0xff]   ;;  %1476 = vmatprep.subr.bf16.mxu0 %v15091_v27 }
 0x4a0   :  { %1477 = vmatpush1.bf16.msra.mxu0 %v15089_v26  ;;  %v1056_v26 = vld [vmem:[#allocation6 + $0x3] ss:$8 sm:$0x3] }
 0x4a1   :  { %1478 = vmatprep.subr.bf16.mxu0 %v15094_v28  ;;  %v1061_v27 = vrot.slane %v1056_v26, %v17498_v54  ;;  %v1065_v28 = vrot.slane %v1056_v26, %v17501_v56  ;;  %v15211_v26 = vld [vmem:[#allocation4 + $0x604] ss:$8 sps:$4 sm:$0xff]  }
 0x4a2   :  { %1001 = vmatpush1.bf16.msra.mxu1 %v15026_v29  ;;  %v15092_v29 = vld [vmem:[#allocation4 + $0x390] ss:$8 sps:$4 sm:$0xff]  }
 0x4a3   :  { %1002 = vmatprep.subr.bf16.mxu1 %v15031_v30  ;;  %v15097_v30 = vld [vmem:[#allocation4 + $0x3a4] ss:$8 sps:$4 sm:$0xff]  }
 0x4a4   :  { %1479 = vmatpush1.bf16.msra.mxu0 %v15092_v29 }
 0x4a5   :  { %1480 = vmatprep.subr.bf16.mxu0 %v15097_v30 }
 0x4a6   :  { %1003 = vmatpush1.bf16.msra.mxu1 %v15029_v31  ;;  %v15095_v31 = vld [vmem:[#allocation4 + $0x3a0] ss:$8 sps:$4 sm:$0xff]  }
 0x4a7   :  { %1004 = vmatprep.subr.bf16.mxu1 %v15034_v32  ;;  %v15100_v32 = vld [vmem:[#allocation4 + $0x3b4] ss:$8 sps:$4 sm:$0xff]  }
 0x4a8   :  { %1481 = vmatpush1.bf16.msra.mxu0 %v15095_v31 }
 0x4a9   :  { %1482 = vmatprep.subr.bf16.mxu0 %v15100_v32 }
 0x4aa   :  { %1005 = vmatpush1.bf16.msra.mxu1 %v15032_v33  ;;  %v15098_v33 = vld [vmem:[#allocation4 + $0x3b0] ss:$8 sps:$4 sm:$0xff]  }
 0x4ab   :  { %1006 = vmatprep.subr.bf16.mxu1 %v15037_v34  ;;  %v15103_v34 = vld [vmem:[#allocation4 + $0x3c4] ss:$8 sps:$4 sm:$0xff]  }
 0x4ac   :  { %1483 = vmatpush1.bf16.msra.mxu0 %v15098_v33 }
 0x4ad   :  { %1484 = vmatprep.subr.bf16.mxu0 %v15103_v34 }
 0x4ae   :  { %1007 = vmatpush1.bf16.msra.mxu1 %v15035_v35  ;;  %v15101_v35 = vld [vmem:[#allocation4 + $0x3c0] ss:$8 sps:$4 sm:$0xff]  }
 0x4af   :  { %1008 = vmatprep.subr.bf16.mxu1 %v15040_v36  ;;  %v15106_v36 = vld [vmem:[#allocation4 + $0x3d4] ss:$8 sps:$4 sm:$0xff]  }
 0x4b0   :  { %1485 = vmatpush1.bf16.msra.mxu0 %v15101_v35 }
 0x4b1   :  { %1486 = vmatprep.subr.bf16.mxu0 %v15106_v36 }
 0x4b2   :  { %1009 = vmatpush1.bf16.msra.mxu1 %v15038_v37  ;;  %v15104_v37 = vld [vmem:[#allocation4 + $0x3d0] ss:$8 sps:$4 sm:$0xff]  }
 0x4b3   :  { %1228 = vmatprep.subr.bf16.mxu1 %v15043_v38  ;;  %v15109_v38 = vld [vmem:[#allocation4 + $0x3e4] ss:$8 sps:$4 sm:$0xff]  }
 0x4b4   :  { %1487 = vmatpush1.bf16.msra.mxu0 %v15104_v37  ;;  %v15157_v37 = vld [vmem:[#allocation4 + $0x4e4] ss:$8 sps:$4 sm:$0xff]  }
 0x4b5   :  { %1488 = vmatprep.subr.bf16.mxu0 %v15109_v38  ;;  %v15155_v38 = vld [vmem:[#allocation4 + $0x4e0] ss:$8 sps:$4 sm:$0xff]  }
 0x4b8   :  { %1489 = vmatpush1.bf16.msra.mxu0 %v15107_v39  ;;  %v15160_v39 = vld [vmem:[#allocation4 + $0x4f4] ss:$8 sps:$4 sm:$0xff]  }
 0x548   :  { %v762_v42 = vpop.f32.mrb[4].mxu1 }
 0x549   :  { %v763_v43 = vadd.f32 %v762_v42, %v561_v40  ;;  %v764_v45 = vpop.f32.mrb[5].mxu1  ;;  %v15112_v40 = vld [vmem:[#allocation4 + $0x3f4] ss:$8 sps:$4 sm:$0xff]   ;;  %v15115_v42 = vld [vmem:[#allocation4 + $0x404] ss:$8 sps:$4 sm:$0xff]  }
 0x54a   :  { %v765_v47 = vadd.f32 %v764_v45, %v565_v41  ;;  %v766_v48 = vpop.f32.mrb[6].mxu1  ;;  %v15110_v41 = vld [vmem:[#allocation4 + $0x3f0] ss:$8 sps:$4 sm:$0xff]   ;;  %1490 = vmatprep.subr.bf16.mxu0 %v15112_v40  ;;  %v15118_v45 = vld [vmem:[#allocation4 + $0x414] ss:$8 sps:$4 sm:$0xff]  }
 0x54b   :  { %v769_v49 = vmax.f32 %v763_v43, 0.0  ;;  %v767_v44 = vpop.f32.mrb[7].mxu1  ;;  %1491 = vmatpush1.bf16.msra.mxu0 %v15110_v41  ;;  %v15113_v43 = vld [vmem:[#allocation4 + $0x400] ss:$8 sps:$4 sm:$0xff]   ;;  %v15121_v48 = vld [vmem:[#allocation4 + $0x424] ss:$8 sps:$4 sm:$0xff]  }
 0x54c   :  { %v770_v50 = vmax.f32 %v765_v47, 0.0  ;;  %1492 = vmatprep.subr.bf16.mxu0 %v15115_v42  ;;  %v15116_v47 = vld [vmem:[#allocation4 + $0x410] ss:$8 sps:$4 sm:$0xff]   ;;  %v15124_v44 = vld [vmem:[#allocation4 + $0x434] ss:$8 sps:$4 sm:$0xff]  }
 0x54d   :  { %v803_v57 = vpack.c.bf16 %v769_v49, %v769_v49  ;;  %v15119_v49 = vld [vmem:[#allocation4 + $0x420] ss:$8 sps:$4 sm:$0xff]   ;;  %v15158_v40 = vld [vmem:[#allocation4 + $0x4f0] ss:$8 sps:$4 sm:$0xff]   ;;  %v15163_v42 = vld [vmem:[#allocation4 + $0x504] ss:$8 sps:$4 sm:$0xff]  }
 0x54e   :  { %v804_v51 = vpack.c.bf16 %v770_v50, %v770_v50  ;;  %v15122_v50 = vld [vmem:[#allocation4 + $0x430] ss:$8 sps:$4 sm:$0xff]   ;;  %v15161_v41 = vld [vmem:[#allocation4 + $0x500] ss:$8 sps:$4 sm:$0xff]  }
 0x54f   :  { %1493 = vmatpush1.bf16.msra.mxu0 %v15113_v43  ;;  %v15166_v43 = vld [vmem:[#allocation4 + $0x514] ss:$8 sps:$4 sm:$0xff]  }
 0x550   :  { %1010 = vmatprep.mubr.bf16.mxu1 %v804_v51  ;;  %1494 = vmatprep.subr.bf16.mxu0 %v15118_v45  ;;  %v15127_v51 = vld [vmem:[#allocation4 + $0x444] ss:$8 sps:$4 sm:$0xff]   ;;  %v15164_v45 = vld [vmem:[#allocation4 + $0x510] ss:$8 sps:$4 sm:$0xff]  }
 0x551   :  { %1011 = vmatmul.mubr.bf16.vlgmr.msra.gmra.mrb[8].mxu1 %v803_v57  ;;  %v15130_v57 = vld [vmem:[#allocation4 + $0x454] ss:$8 sps:$4 sm:$0xff]  }
 0x552   :  { %1229 = vmatpush1.bf16.msra.mxu1 %v15041_v55  ;;  %v15125_v55 = vld [vmem:[#allocation4 + $0x440] ss:$8 sps:$4 sm:$0xff]  }
 0x553   :  { %1230 = vmatprep.subr.bf16.mxu1 %v15046_v58  ;;  %1495 = vmatpush1.bf16.msra.mxu0 %v15116_v47  ;;  %v15128_v58 = vld [vmem:[#allocation4 + $0x450] ss:$8 sps:$4 sm:$0xff]   ;;  %v15169_v47 = vld [vmem:[#allocation4 + $0x524] ss:$8 sps:$4 sm:$0xff]  }
 0x554   :  { %1496 = vmatprep.subr.bf16.mxu0 %v15121_v48  ;;  %v15167_v48 = vld [vmem:[#allocation4 + $0x520] ss:$8 sps:$4 sm:$0xff]  }
 0x556   :  { %1231 = vmatpush1.bf16.msra.mxu1 %v15044_v59  ;;  %v15133_v59 = vld [vmem:[#allocation4 + $0x464] ss:$8 sps:$4 sm:$0xff]  }
 0x557   :  { %1232 = vmatprep.subr.bf16.mxu1 %v15049_v60  ;;  %1497 = vmatpush1.bf16.msra.mxu0 %v15119_v49  ;;  %v15131_v60 = vld [vmem:[#allocation4 + $0x460] ss:$8 sps:$4 sm:$0xff]   ;;  %v15172_v49 = vld [vmem:[#allocation4 + $0x534] ss:$8 sps:$4 sm:$0xff]  }
 0x558   :  { %1498 = vmatprep.subr.bf16.mxu0 %v15124_v44  ;;  %v15170_v44 = vld [vmem:[#allocation4 + $0x530] ss:$8 sps:$4 sm:$0xff]  }
 0x55a   :  { %1233 = vmatpush1.bf16.msra.mxu1 %v15047_v61  ;;  %v806_v61 = vld [vmem:[#allocation6 + $0x2] ss:$8 sm:$0x3] }
 0x55b   :  { %1234 = vmatprep.subr.bf16.mxu1 %v15052_v62  ;;  %1499 = vmatpush1.bf16.msra.mxu0 %v15122_v50  ;;  %v811_v62 = vrot.slane %v806_v61, %v17498_v54  ;;  %v15175_v50 = vld [vmem:[#allocation4 + $0x544] ss:$8 sps:$4 sm:$0xff]  }
 0x55c   :  { %1500 = vmatprep.subr.bf16.mxu0 %v15127_v51  ;;  %v15173_v51 = vld [vmem:[#allocation4 + $0x540] ss:$8 sps:$4 sm:$0xff]  }
 0x55e   :  { %1235 = vmatpush1.bf16.msra.mxu1 %v15050_v63  ;;  %v815_v63 = vrot.slane %v806_v61, %v17501_v56  ;;  %v15182_v61 = vld [vmem:[#allocation4 + $0x570] ss:$8 sps:$4 sm:$0xff]  }
 0x55f   :  { %1236 = vmatprep.subr.bf16.mxu1 %v15055_v2  ;;  %1501 = vmatpush1.bf16.msra.mxu0 %v15125_v55  ;;  %v15178_v55 = vld [vmem:[#allocation4 + $0x554] ss:$8 sps:$4 sm:$0xff]  }
 0x560   :  { %1502 = vmatprep.subr.bf16.mxu0 %v15130_v57  ;;  %v15176_v57 = vld [vmem:[#allocation4 + $0x550] ss:$8 sps:$4 sm:$0xff]  }
 0x562   :  { %1237 = vmatpush1.bf16.msra.mxu1 %v15053_v3 }
 0x563   :  { %1238 = vmatprep.subr.bf16.mxu1 %v15058_v4  ;;  %1503 = vmatpush1.bf16.msra.mxu0 %v15128_v58  ;;  %v15181_v58 = vld [vmem:[#allocation4 + $0x564] ss:$8 sps:$4 sm:$0xff]  }
 0x564   :  { %1504 = vmatprep.subr.bf16.mxu0 %v15133_v59  ;;  %v15179_v59 = vld [vmem:[#allocation4 + $0x560] ss:$8 sps:$4 sm:$0xff]  }
 0x566   :  { %1239 = vmatpush1.bf16.msra.mxu1 %v15056_v5 }
 0x567   :  { %1240 = vmatprep.subr.bf16.mxu1 %v15061_v6  ;;  %1505 = vmatpush1.bf16.msra.mxu0 %v15131_v60  ;;  %v15184_v60 = vld [vmem:[#allocation4 + $0x574] ss:$8 sps:$4 sm:$0xff]  }
 0x56a   :  { %1241 = vmatpush1.bf16.msra.mxu1 %v15059_v7 }
 0x56b   :  { %1242 = vmatprep.subr.bf16.mxu1 %v15064_v8 }
 0x56e   :  { %1243 = vmatpush1.bf16.msra.mxu1 %v15062_v9 }
 0x56f   :  { %1244 = vmatprep.subr.bf16.mxu1 %v15067_v10 }
 0x572   :  { %1245 = vmatpush1.bf16.msra.mxu1 %v15065_v11 }
 0x573   :  { %1246 = vmatprep.subr.bf16.mxu1 %v15070_v12  ;;  %v15136_v12 = vld [vmem:[#allocation4 + $0x474] ss:$8 sps:$4 sm:$0xff]  }
 0x574   :  { %1506 = vmatprep.subr.bf16.mxu0 %v15136_v12  ;;  %v17512_v12 = vld [vmem:[#allocation6 + $0x4] ss:$8 sm:$0x3] }
 0x576   :  { %1247 = vmatpush1.bf16.msra.mxu1 %v15068_v13  ;;  %v15134_v13 = vld [vmem:[#allocation4 + $0x470] ss:$8 sps:$4 sm:$0xff]  }
 0x577   :  { %1248 = vmatprep.subr.bf16.mxu1 %v15073_v14  ;;  %1507 = vmatpush1.bf16.msra.mxu0 %v15134_v13  ;;  %v15137_v14 = vld [vmem:[#allocation4 + $0x480] ss:$8 sps:$4 sm:$0xff]   ;;  %v1313_v13 = vrot.slane %v17512_v12, %v17501_v56 }
 0x578   :  { %1879 = vmatprep.subr.bf16.mxu0 %v15163_v42  ;;  %v15238_v42 = vld [vmem:[#allocation4 + $0x694] ss:$8 sps:$4 sm:$0xff]  }
 0x57a   :  { %1249 = vmatpush1.bf16.msra.mxu1 %v15071_v15  ;;  %v15139_v15 = vld [vmem:[#allocation4 + $0x484] ss:$8 sps:$4 sm:$0xff]  }
 0x57b   :  { %1250 = vmatprep.subr.bf16.mxu1 %v15076_v16  ;;  %v15142_v16 = vld [vmem:[#allocation4 + $0x494] ss:$8 sps:$4 sm:$0xff]  }
 0x57e   :  { %1251 = vmatpush1.bf16.msra.mxu1 %v15074_v17  ;;  %v15140_v17 = vld [vmem:[#allocation4 + $0x490] ss:$8 sps:$4 sm:$0xff]  }
 0x57f   :  { %1252 = vmatprep.subr.bf16.mxu1 %v15079_v18  ;;  %v15145_v18 = vld [vmem:[#allocation4 + $0x4a4] ss:$8 sps:$4 sm:$0xff]  }
 0x582   :  { %1253 = vmatpush1.bf16.msra.mxu1 %v15077_v19  ;;  %v15143_v19 = vld [vmem:[#allocation4 + $0x4a0] ss:$8 sps:$4 sm:$0xff]  }
 0x583   :  { %1254 = vmatprep.subr.bf16.mxu1 %v15082_v20  ;;  %v15148_v20 = vld [vmem:[#allocation4 + $0x4b4] ss:$8 sps:$4 sm:$0xff]  }
 0x586   :  { %1255 = vmatpush1.bf16.msra.mxu1 %v15080_v21  ;;  %v15146_v21 = vld [vmem:[#allocation4 + $0x4b0] ss:$8 sps:$4 sm:$0xff]  }
 0x587   :  { %1256 = vmatprep.subr.bf16.mxu1 %v15085_v22  ;;  %v15151_v22 = vld [vmem:[#allocation4 + $0x4c4] ss:$8 sps:$4 sm:$0xff]  }
 0x58a   :  { %1257 = vmatpush1.bf16.msra.mxu1 %v15083_v23  ;;  %v15149_v23 = vld [vmem:[#allocation4 + $0x4c0] ss:$8 sps:$4 sm:$0xff]  }
 0x58b   :  { %1258 = vmatprep.subr.bf16.mxu1 %v15088_v24  ;;  %v15154_v24 = vld [vmem:[#allocation4 + $0x4d4] ss:$8 sps:$4 sm:$0xff]  }
 0x58e   :  { %1259 = vmatpush1.bf16.msra.mxu1 %v15086_v25  ;;  %v15152_v25 = vld [vmem:[#allocation4 + $0x4d0] ss:$8 sps:$4 sm:$0xff]  }
 0x58f   :  { %1629 = vmatprep.subr.bf16.mxu1 %v15139_v15 }
 0x624   :  { %v1012_v2 = vpop.f32.mrb[8].mxu1 }
 0x625   :  { %v1013_v3 = vadd.f32 %v1012_v2, %v811_v62  ;;  %v1014_v4 = vpop.f32.mrb[9].mxu1  ;;  %v15187_v62 = vld [vmem:[#allocation4 + $0x584] ss:$8 sps:$4 sm:$0xff]   ;;  %v15190_v2 = vld [vmem:[#allocation4 + $0x594] ss:$8 sps:$4 sm:$0xff]  }
 0x626   :  { %v1015_v5 = vadd.f32 %v1014_v4, %v815_v63  ;;  %v1016_v6 = vpop.f32.mrb[10].mxu1  ;;  %v15185_v63 = vld [vmem:[#allocation4 + $0x580] ss:$8 sps:$4 sm:$0xff]   ;;  %v15193_v4 = vld [vmem:[#allocation4 + $0x5a4] ss:$8 sps:$4 sm:$0xff]  }
 0x627   :  { %v1019_v7 = vmax.f32 %v1013_v3, 0.0  ;;  %v1017_v8 = vpop.f32.mrb[11].mxu1  ;;  %v15188_v3 = vld [vmem:[#allocation4 + $0x590] ss:$8 sps:$4 sm:$0xff]   ;;  %v15196_v6 = vld [vmem:[#allocation4 + $0x5b4] ss:$8 sps:$4 sm:$0xff]  }
 0x628   :  { %v1020_v9 = vmax.f32 %v1015_v5, 0.0  ;;  %v15191_v5 = vld [vmem:[#allocation4 + $0x5a0] ss:$8 sps:$4 sm:$0xff]   ;;  %v15199_v8 = vld [vmem:[#allocation4 + $0x5c4] ss:$8 sps:$4 sm:$0xff]  }
 0x629   :  { %v1053_v11 = vpack.c.bf16 %v1019_v7, %v1019_v7  ;;  %v15194_v7 = vld [vmem:[#allocation4 + $0x5b0] ss:$8 sps:$4 sm:$0xff]  }
 0x62a   :  { %v1054_v10 = vpack.c.bf16 %v1020_v9, %v1020_v9  ;;  %v15197_v9 = vld [vmem:[#allocation4 + $0x5c0] ss:$8 sps:$4 sm:$0xff]  }
 0x62c   :  { %1260 = vmatprep.mubr.bf16.mxu1 %v1054_v10  ;;  %v15202_v10 = vld [vmem:[#allocation4 + $0x5d4] ss:$8 sps:$4 sm:$0xff]  }
 0x62d   :  { %1261 = vmatmul.mubr.bf16.vlgmr.msra.gmra.mrb[12].mxu1 %v1053_v11  ;;  %v15200_v11 = vld [vmem:[#allocation4 + $0x5d0] ss:$8 sps:$4 sm:$0xff]  }
 0x62e   :  { %1661 = vmatprep.mubr.bf16.mxu1 %v17334_v1  ;;  %1630 = vmatpush1.bf16.msra.mxu1 %v15137_v14 }
 0x62f   :  { %1631 = vmatprep.subr.bf16.mxu1 %v15142_v16 }
 0x632   :  { %1632 = vmatpush1.bf16.msra.mxu1 %v15140_v17 }
 0x633   :  { %1633 = vmatprep.subr.bf16.mxu1 %v15145_v18 }
 0x636   :  { %1634 = vmatpush1.bf16.msra.mxu1 %v15143_v19 }
 0x637   :  { %1635 = vmatprep.subr.bf16.mxu1 %v15148_v20 }
 0x63a   :  { %1636 = vmatpush1.bf16.msra.mxu1 %v15146_v21  ;;  %v15205_v21 = vld [vmem:[#allocation4 + $0x5e4] ss:$8 sps:$4 sm:$0xff]  }
 0x63b   :  { %1637 = vmatprep.subr.bf16.mxu1 %v15151_v22  ;;  %v15203_v22 = vld [vmem:[#allocation4 + $0x5e0] ss:$8 sps:$4 sm:$0xff]  }
 0x63e   :  { %1638 = vmatpush1.bf16.msra.mxu1 %v15149_v23  ;;  %v15208_v23 = vld [vmem:[#allocation4 + $0x5f4] ss:$8 sps:$4 sm:$0xff]  }
 0x63f   :  { %1639 = vmatprep.subr.bf16.mxu1 %v15154_v24  ;;  %v15206_v24 = vld [vmem:[#allocation4 + $0x5f0] ss:$8 sps:$4 sm:$0xff]  }
 0x642   :  { %1640 = vmatpush1.bf16.msra.mxu1 %v15152_v25  ;;  %v15209_v25 = vld [vmem:[#allocation4 + $0x600] ss:$8 sps:$4 sm:$0xff]  }
 0x643   :  { %1641 = vmatprep.subr.bf16.mxu1 %v15157_v37  ;;  %v15227_v37 = vld [vmem:[#allocation4 + $0x660] ss:$8 sps:$4 sm:$0xff]  }
 0x646   :  { %1642 = vmatpush1.bf16.msra.mxu1 %v15155_v38  ;;  %v15232_v38 = vld [vmem:[#allocation4 + $0x674] ss:$8 sps:$4 sm:$0xff]  }
 0x647   :  { %1643 = vmatprep.subr.bf16.mxu1 %v15160_v39  ;;  %v15230_v39 = vld [vmem:[#allocation4 + $0x670] ss:$8 sps:$4 sm:$0xff]  }
 0x64a   :  { %1644 = vmatpush1.bf16.msra.mxu1 %v15158_v40  ;;  %v15235_v40 = vld [vmem:[#allocation4 + $0x684] ss:$8 sps:$4 sm:$0xff]  }
 0x64b   :  { %2129 = vmatprep.subr.bf16.mxu1 %v15211_v26  ;;  %v15272_v26 = vld [vmem:[#allocation4 + $0x750] ss:$8 sps:$4 sm:$0xff]  }
 0x700   :  { %v1262_v29 = vpop.f32.mrb[12].mxu1 }
 0x701   :  { %v1263_v30 = vadd.f32 %v1262_v29, %v1061_v27  ;;  %v1264_v31 = vpop.f32.mrb[13].mxu1  ;;  %v15214_v27 = vld [vmem:[#allocation4 + $0x614] ss:$8 sps:$4 sm:$0xff]   ;;  %v15215_v29 = vld [vmem:[#allocation4 + $0x620] ss:$8 sps:$4 sm:$0xff]  }
 0x702   :  { %v1265_v32 = vadd.f32 %v1264_v31, %v1065_v28  ;;  %v1266_v33 = vpop.f32.mrb[14].mxu1  ;;  %v15212_v28 = vld [vmem:[#allocation4 + $0x610] ss:$8 sps:$4 sm:$0xff]  }
 0x703   :  { %v1267_v34 = vpop.f32.mrb[15].mxu1  ;;  %v1301_v36 = vpack.c.bf16 %v1263_v30, %v1263_v30  ;;  %v15220_v30 = vld [vmem:[#allocation4 + $0x634] ss:$8 sps:$4 sm:$0xff]   ;;  %v15218_v31 = vld [vmem:[#allocation4 + $0x630] ss:$8 sps:$4 sm:$0xff]  }
 0x704   :  { %v1302_v35 = vpack.c.bf16 %v1265_v32, %v1265_v32  ;;  %v15223_v32 = vld [vmem:[#allocation4 + $0x644] ss:$8 sps:$4 sm:$0xff]   ;;  %v15221_v33 = vld [vmem:[#allocation4 + $0x640] ss:$8 sps:$4 sm:$0xff]   ;;  %v15226_v34 = vld [vmem:[#allocation4 + $0x654] ss:$8 sps:$4 sm:$0xff]  }
 0x706   :  { %1508 = vmatprep.mubr.bf16.mxu0 %v1302_v35  ;;  %v15224_v35 = vld [vmem:[#allocation4 + $0x650] ss:$8 sps:$4 sm:$0xff]  }
 0x707   :  { %1509 = vmatmul.mubr.bf16.vlgmr.msra.gmra.mrb[8].mxu0 %v1301_v36  ;;  %v15229_v36 = vld [vmem:[#allocation4 + $0x664] ss:$8 sps:$4 sm:$0xff]  }
 0x708   :  { %1880 = vmatpush1.bf16.msra.mxu0 %v15161_v41  ;;  %v15233_v41 = vld [vmem:[#allocation4 + $0x680] ss:$8 sps:$4 sm:$0xff]  }
 0x709   :  { %1881 = vmatprep.subr.bf16.mxu0 %v15166_v43  ;;  %v15236_v43 = vld [vmem:[#allocation4 + $0x690] ss:$8 sps:$4 sm:$0xff]  }
 0x70c   :  { %1882 = vmatpush1.bf16.msra.mxu0 %v15164_v45  ;;  %v15241_v45 = vld [vmem:[#allocation4 + $0x6a4] ss:$8 sps:$4 sm:$0xff]  }
 0x70d   :  { %1883 = vmatprep.subr.bf16.mxu0 %v15169_v47  ;;  %v15239_v47 = vld [vmem:[#allocation4 + $0x6a0] ss:$8 sps:$4 sm:$0xff]  }
 0x710   :  { %1884 = vmatpush1.bf16.msra.mxu0 %v15167_v48  ;;  %v15244_v48 = vld [vmem:[#allocation4 + $0x6b4] ss:$8 sps:$4 sm:$0xff]  }
 0x711   :  { %1885 = vmatprep.subr.bf16.mxu0 %v15172_v49  ;;  %v15242_v49 = vld [vmem:[#allocation4 + $0x6b0] ss:$8 sps:$4 sm:$0xff]  }
 0x714   :  { %1886 = vmatpush1.bf16.msra.mxu0 %v15170_v44  ;;  %v15247_v44 = vld [vmem:[#allocation4 + $0x6c4] ss:$8 sps:$4 sm:$0xff]  }
 0x715   :  { %1887 = vmatprep.subr.bf16.mxu0 %v15175_v50  ;;  %v15245_v50 = vld [vmem:[#allocation4 + $0x6c0] ss:$8 sps:$4 sm:$0xff]  }
 0x718   :  { %1888 = vmatpush1.bf16.msra.mxu0 %v15173_v51  ;;  %v15250_v51 = vld [vmem:[#allocation4 + $0x6d4] ss:$8 sps:$4 sm:$0xff]  }
 0x719   :  { %1889 = vmatprep.subr.bf16.mxu0 %v15178_v55  ;;  %v15248_v55 = vld [vmem:[#allocation4 + $0x6d0] ss:$8 sps:$4 sm:$0xff]  }
 0x71c   :  { %1890 = vmatpush1.bf16.msra.mxu0 %v15176_v57  ;;  %v1537_v57 = vld [vmem:[#allocation6 + $0x5] ss:$8 sm:$0x3] }
 0x71d   :  { %1891 = vmatprep.subr.bf16.mxu0 %v15181_v58  ;;  %v1542_v58 = vrot.slane %v1537_v57, %v17498_v54 }
 0x720   :  { %1892 = vmatpush1.bf16.msra.mxu0 %v15179_v59  ;;  %v1546_v59 = vrot.slane %v1537_v57, %v17501_v56 }
 0x721   :  { %1893 = vmatprep.subr.bf16.mxu0 %v15184_v60 }
 0x724   :  { %1894 = vmatpush1.bf16.msra.mxu0 %v15182_v61 }
 0x725   :  { %1895 = vmatprep.subr.bf16.mxu0 %v15187_v62 }
 0x728   :  { %1896 = vmatpush1.bf16.msra.mxu0 %v15185_v63 }
 0x729   :  { %1897 = vmatprep.subr.bf16.mxu0 %v15190_v2 }
 0x72c   :  { %1898 = vmatpush1.bf16.msra.mxu0 %v15188_v3 }
 0x72d   :  { %1899 = vmatprep.subr.bf16.mxu0 %v15193_v4 }
 0x730   :  { %1900 = vmatpush1.bf16.msra.mxu0 %v15191_v5 }
 0x731   :  { %1901 = vmatprep.subr.bf16.mxu0 %v15196_v6 }
 0x734   :  { %1902 = vmatpush1.bf16.msra.mxu0 %v15194_v7 }
 0x735   :  { %1903 = vmatprep.subr.bf16.mxu0 %v15199_v8  ;;  %v15253_v8 = vld [vmem:[#allocation4 + $0x6e4] ss:$8 sps:$4 sm:$0xff]  }
 0x738   :  { %1904 = vmatpush1.bf16.msra.mxu0 %v15197_v9  ;;  %v15251_v9 = vld [vmem:[#allocation4 + $0x6e0] ss:$8 sps:$4 sm:$0xff]  }
 0x739   :  { %1905 = vmatprep.subr.bf16.mxu0 %v15202_v10  ;;  %v15256_v10 = vld [vmem:[#allocation4 + $0x6f4] ss:$8 sps:$4 sm:$0xff]  }
 0x73c   :  { %1906 = vmatpush1.bf16.msra.mxu0 %v15200_v11  ;;  %v15254_v11 = vld [vmem:[#allocation4 + $0x6f0] ss:$8 sps:$4 sm:$0xff]  }
 0x73d   :  { %1907 = vmatprep.subr.bf16.mxu0 %v15205_v21  ;;  %v15268_v21 = vld [vmem:[#allocation4 + $0x734] ss:$8 sps:$4 sm:$0xff]  }
 0x740   :  { %1908 = vmatpush1.bf16.msra.mxu0 %v15203_v22  ;;  %v15266_v22 = vld [vmem:[#allocation4 + $0x730] ss:$8 sps:$4 sm:$0xff]  }
 0x741   :  { %1909 = vmatprep.subr.bf16.mxu0 %v15208_v23  ;;  %v15271_v23 = vld [vmem:[#allocation4 + $0x744] ss:$8 sps:$4 sm:$0xff]  }
 0x744   :  { %1910 = vmatpush1.bf16.msra.mxu0 %v15206_v24  ;;  %v15269_v24 = vld [vmem:[#allocation4 + $0x740] ss:$8 sps:$4 sm:$0xff]  }
 0x7da   :  { %v17516_v14 = vpop.f32.mrb[8].mxu0 }
 0x7db   :  { %v1512_v15 = vpop.f32.mrb[9].mxu0 }
 0x7dc   :  { %v1513_v16 = vadd.f32 %v1512_v15, %v1313_v13  ;;  %v1514_v17 = vpop.f32.mrb[10].mxu0  ;;  %v15257_v13 = vld [vmem:[#allocation4 + $0x700] ss:$8 sps:$4 sm:$0xff]   ;;  %v15259_v15 = vld [vmem:[#allocation4 + $0x704] ss:$8 sps:$4 sm:$0xff]  }
 0x7dd   :  { %v1515_v18 = vpop.f32.mrb[11].mxu0  ;;  %2379 = vmatprep.subr.bf16.mxu0 %v15259_v15  ;;  %v15260_v17 = vld [vmem:[#allocation4 + $0x710] ss:$8 sps:$4 sm:$0xff]  }
 0x7de   :  { %v17519_v19 = vsub.f32 %v17486_v46, %v1513_v16  ;;  %v15217_v46 = vld [vmem:[#allocation4 + $0x624] ss:$8 sps:$4 sm:$0xff]   ;;  %v15262_v16 = vld [vmem:[#allocation4 + $0x714] ss:$8 sps:$4 sm:$0xff]   ;;  %v15320_v15 = vld [vmem:[#allocation4 + $0x850] ss:$8 sps:$4 sm:$0xff]  }
 0x7df   :  { %v15265_v18 = vld [vmem:[#allocation4 + $0x724] ss:$8 sps:$4 sm:$0xff]  }
 0x7e0   :  { %v1535_v20 = vpack.c.bf16 %v17519_v19, %v17519_v19 }
 0x7e2   :  { %1662 = vmatmul.mubr.bf16.vlgmr.msra.gmra.mrb[16].mxu1 %v1535_v20  ;;  %v15263_v20 = vld [vmem:[#allocation4 + $0x720] ss:$8 sps:$4 sm:$0xff]  }
 0x7e3   :  { %2130 = vmatpush1.bf16.msra.mxu1 %v15209_v25  ;;  %v15274_v25 = vld [vmem:[#allocation4 + $0x754] ss:$8 sps:$4 sm:$0xff]  }
 0x7e4   :  { %2131 = vmatprep.subr.bf16.mxu1 %v15214_v27  ;;  %v15277_v27 = vld [vmem:[#allocation4 + $0x764] ss:$8 sps:$4 sm:$0xff]  }
 0x7e7   :  { %2132 = vmatpush1.bf16.msra.mxu1 %v15212_v28  ;;  %v15275_v28 = vld [vmem:[#allocation4 + $0x760] ss:$8 sps:$4 sm:$0xff]  }
 0x7e8   :  { %2133 = vmatprep.subr.bf16.mxu1 %v15217_v46  ;;  %v15280_v46 = vld [vmem:[#allocation4 + $0x774] ss:$8 sps:$4 sm:$0xff]  }
 0x7eb   :  { %2134 = vmatpush1.bf16.msra.mxu1 %v15215_v29  ;;  %v15278_v29 = vld [vmem:[#allocation4 + $0x770] ss:$8 sps:$4 sm:$0xff]  }
 0x7ec   :  { %2135 = vmatprep.subr.bf16.mxu1 %v15220_v30  ;;  %v15283_v30 = vld [vmem:[#allocation4 + $0x784] ss:$8 sps:$4 sm:$0xff]  }
 0x7ef   :  { %2136 = vmatpush1.bf16.msra.mxu1 %v15218_v31  ;;  %v15281_v31 = vld [vmem:[#allocation4 + $0x780] ss:$8 sps:$4 sm:$0xff]  }
 0x7f0   :  { %2137 = vmatprep.subr.bf16.mxu1 %v15223_v32  ;;  %v15286_v32 = vld [vmem:[#allocation4 + $0x794] ss:$8 sps:$4 sm:$0xff]  }
 0x7f3   :  { %2138 = vmatpush1.bf16.msra.mxu1 %v15221_v33  ;;  %v15284_v33 = vld [vmem:[#allocation4 + $0x790] ss:$8 sps:$4 sm:$0xff]  }
 0x7f4   :  { %2139 = vmatprep.subr.bf16.mxu1 %v15226_v34  ;;  %v15289_v34 = vld [vmem:[#allocation4 + $0x7a4] ss:$8 sps:$4 sm:$0xff]  }
 0x7f7   :  { %2140 = vmatpush1.bf16.msra.mxu1 %v15224_v35  ;;  %v15287_v35 = vld [vmem:[#allocation4 + $0x7a0] ss:$8 sps:$4 sm:$0xff]  }
 0x7f8   :  { %2141 = vmatprep.subr.bf16.mxu1 %v15229_v36  ;;  %v15292_v36 = vld [vmem:[#allocation4 + $0x7b4] ss:$8 sps:$4 sm:$0xff]  }
 0x7fb   :  { %2142 = vmatpush1.bf16.msra.mxu1 %v15227_v37  ;;  %v15290_v37 = vld [vmem:[#allocation4 + $0x7b0] ss:$8 sps:$4 sm:$0xff]  }
 0x7fc   :  { %2143 = vmatprep.subr.bf16.mxu1 %v15232_v38  ;;  %v15295_v38 = vld [vmem:[#allocation4 + $0x7c4] ss:$8 sps:$4 sm:$0xff]  }
 0x7ff   :  { %2144 = vmatpush1.bf16.msra.mxu1 %v15230_v39  ;;  %v15293_v39 = vld [vmem:[#allocation4 + $0x7c0] ss:$8 sps:$4 sm:$0xff]  }
 0x800   :  { %2145 = vmatprep.subr.bf16.mxu1 %v15235_v40  ;;  %v15298_v40 = vld [vmem:[#allocation4 + $0x7d4] ss:$8 sps:$4 sm:$0xff]  }
 0x803   :  { %2146 = vmatpush1.bf16.msra.mxu1 %v15233_v41  ;;  %v15296_v41 = vld [vmem:[#allocation4 + $0x7d0] ss:$8 sps:$4 sm:$0xff]  }
 0x804   :  { %2147 = vmatprep.subr.bf16.mxu1 %v15238_v42  ;;  %v1707_v42 = vld [vmem:[#allocation6 + $0x6] ss:$8 sm:$0x3] }
 0x807   :  { %2148 = vmatpush1.bf16.msra.mxu1 %v15236_v43  ;;  %v1712_v43 = vrot.slane %v1707_v42, %v17498_v54 }
 0x808   :  { %2149 = vmatprep.subr.bf16.mxu1 %v15241_v45  ;;  %v1716_v45 = vrot.slane %v1707_v42, %v17501_v56 }
 0x80b   :  { %2150 = vmatpush1.bf16.msra.mxu1 %v15239_v47 }
 0x80c   :  { %2151 = vmatprep.subr.bf16.mxu1 %v15244_v48 }
 0x80f   :  { %2152 = vmatpush1.bf16.msra.mxu1 %v15242_v49 }
 0x810   :  { %2153 = vmatprep.subr.bf16.mxu1 %v15247_v44 }
 0x813   :  { %2154 = vmatpush1.bf16.msra.mxu1 %v15245_v50 }
 0x814   :  { %2155 = vmatprep.subr.bf16.mxu1 %v15250_v51 }
 0x817   :  { %2156 = vmatpush1.bf16.msra.mxu1 %v15248_v55 }
 0x818   :  { %2157 = vmatprep.subr.bf16.mxu1 %v15253_v8  ;;  %v15316_v8 = vld [vmem:[#allocation4 + $0x834] ss:$8 sps:$4 sm:$0xff]  }
 0x81b   :  { %2158 = vmatpush1.bf16.msra.mxu1 %v15251_v9  ;;  %v15314_v9 = vld [vmem:[#allocation4 + $0x830] ss:$8 sps:$4 sm:$0xff]  }
 0x81c   :  { %2159 = vmatprep.subr.bf16.mxu1 %v15256_v10  ;;  %v15319_v10 = vld [vmem:[#allocation4 + $0x844] ss:$8 sps:$4 sm:$0xff]  }
 0x81f   :  { %2160 = vmatpush1.bf16.msra.mxu1 %v15254_v11  ;;  %v15317_v11 = vld [vmem:[#allocation4 + $0x840] ss:$8 sps:$4 sm:$0xff]  }
 0x8b5   :  { %v1663_v60 = vpop.f32.mrb[16].mxu1 }
 0x8b6   :  { %v1664_v61 = vadd.f32 %v1663_v60, %v1542_v58  ;;  %v1665_v62 = vpop.f32.mrb[17].mxu1  ;;  %v15301_v60 = vld [vmem:[#allocation4 + $0x7e4] ss:$8 sps:$4 sm:$0xff]  }
 0x8b7   :  { %v1666_v63 = vadd.f32 %v1665_v62, %v1546_v59  ;;  %v1667_v2 = vpop.f32.mrb[18].mxu1  ;;  %v15304_v62 = vld [vmem:[#allocation4 + $0x7f4] ss:$8 sps:$4 sm:$0xff]  }
 0x8b8   :  { %v1670_v3 = vmax.f32 %v1664_v61, 0.0  ;;  %v1668_v4 = vpop.f32.mrb[19].mxu1  ;;  %v15299_v61 = vld [vmem:[#allocation4 + $0x7e0] ss:$8 sps:$4 sm:$0xff]  }
 0x8b9   :  { %v1671_v5 = vmax.f32 %v1666_v63, 0.0  ;;  %v15302_v63 = vld [vmem:[#allocation4 + $0x7f0] ss:$8 sps:$4 sm:$0xff]   ;;  %v15305_v2 = vld [vmem:[#allocation4 + $0x800] ss:$8 sps:$4 sm:$0xff]  }
 0x8ba   :  { %v1704_v7 = vpack.c.bf16 %v1670_v3, %v1670_v3  ;;  %v15307_v3 = vld [vmem:[#allocation4 + $0x804] ss:$8 sps:$4 sm:$0xff]   ;;  %v15310_v4 = vld [vmem:[#allocation4 + $0x814] ss:$8 sps:$4 sm:$0xff]  }
 0x8bb   :  { %v1705_v6 = vpack.c.bf16 %v1671_v5, %v1671_v5  ;;  %2627 = vmatprep.subr.bf16.mxu1 %v15307_v3  ;;  %v15308_v5 = vld [vmem:[#allocation4 + $0x810] ss:$8 sps:$4 sm:$0xff]  }
 0x8bc   :  { %v15368_v3 = vld [vmem:[#allocation4 + $0x950] ss:$8 sps:$4 sm:$0xff]  }
 0x8bd   :  { %1911 = vmatprep.mubr.bf16.mxu0 %v1705_v6  ;;  %v15313_v6 = vld [vmem:[#allocation4 + $0x824] ss:$8 sps:$4 sm:$0xff]  }
 0x8be   :  { %1912 = vmatmul.mubr.bf16.vlgmr.msra.gmra.mrb[12].mxu0 %v1704_v7  ;;  %v15311_v7 = vld [vmem:[#allocation4 + $0x820] ss:$8 sps:$4 sm:$0xff]  }
 0x8bf   :  { %2380 = vmatpush1.bf16.msra.mxu0 %v15257_v13  ;;  %v15322_v13 = vld [vmem:[#allocation4 + $0x854] ss:$8 sps:$4 sm:$0xff]  }
 0x8c0   :  { %2381 = vmatprep.subr.bf16.mxu0 %v15262_v16  ;;  %v15325_v16 = vld [vmem:[#allocation4 + $0x864] ss:$8 sps:$4 sm:$0xff]  }
 0x8c3   :  { %2382 = vmatpush1.bf16.msra.mxu0 %v15260_v17  ;;  %v15323_v17 = vld [vmem:[#allocation4 + $0x860] ss:$8 sps:$4 sm:$0xff]  }
 0x8c4   :  { %2383 = vmatprep.subr.bf16.mxu0 %v15265_v18  ;;  %v15328_v18 = vld [vmem:[#allocation4 + $0x874] ss:$8 sps:$4 sm:$0xff]  }
 0x8c7   :  { %2384 = vmatpush1.bf16.msra.mxu0 %v15263_v20  ;;  %v15326_v20 = vld [vmem:[#allocation4 + $0x870] ss:$8 sps:$4 sm:$0xff]  }
 0x8c8   :  { %2385 = vmatprep.subr.bf16.mxu0 %v15268_v21  ;;  %v15331_v21 = vld [vmem:[#allocation4 + $0x884] ss:$8 sps:$4 sm:$0xff]  }
 0x8cb   :  { %2386 = vmatpush1.bf16.msra.mxu0 %v15266_v22  ;;  %v15329_v22 = vld [vmem:[#allocation4 + $0x880] ss:$8 sps:$4 sm:$0xff]  }
 0x8cc   :  { %2387 = vmatprep.subr.bf16.mxu0 %v15271_v23  ;;  %v15334_v23 = vld [vmem:[#allocation4 + $0x894] ss:$8 sps:$4 sm:$0xff]  }
 0x8cf   :  { %2388 = vmatpush1.bf16.msra.mxu0 %v15269_v24  ;;  %v15332_v24 = vld [vmem:[#allocation4 + $0x890] ss:$8 sps:$4 sm:$0xff]  }
 0x8d0   :  { %2389 = vmatprep.subr.bf16.mxu0 %v15274_v25  ;;  %v15337_v25 = vld [vmem:[#allocation4 + $0x8a4] ss:$8 sps:$4 sm:$0xff]  }
 0x8d3   :  { %2390 = vmatpush1.bf16.msra.mxu0 %v15272_v26  ;;  %v15335_v26 = vld [vmem:[#allocation4 + $0x8a0] ss:$8 sps:$4 sm:$0xff]  }
 0x8d4   :  { %2391 = vmatprep.subr.bf16.mxu0 %v15277_v27  ;;  %v15340_v27 = vld [vmem:[#allocation4 + $0x8b4] ss:$8 sps:$4 sm:$0xff]  }
 0x8d7   :  { %2392 = vmatpush1.bf16.msra.mxu0 %v15275_v28  ;;  %v15338_v28 = vld [vmem:[#allocation4 + $0x8b0] ss:$8 sps:$4 sm:$0xff]  }
 0x8d8   :  { %2393 = vmatprep.subr.bf16.mxu0 %v15280_v46  ;;  %v15343_v46 = vld [vmem:[#allocation4 + $0x8c4] ss:$8 sps:$4 sm:$0xff]  }
 0x8db   :  { %2394 = vmatpush1.bf16.msra.mxu0 %v15278_v29  ;;  %v15341_v29 = vld [vmem:[#allocation4 + $0x8c0] ss:$8 sps:$4 sm:$0xff]  }
 0x8dc   :  { %2395 = vmatprep.subr.bf16.mxu0 %v15283_v30  ;;  %v15346_v30 = vld [vmem:[#allocation4 + $0x8d4] ss:$8 sps:$4 sm:$0xff]  }
 0x8df   :  { %2396 = vmatpush1.bf16.msra.mxu0 %v15281_v31  ;;  %v15344_v31 = vld [vmem:[#allocation4 + $0x8d0] ss:$8 sps:$4 sm:$0xff]  }
 0x8e0   :  { %2397 = vmatprep.subr.bf16.mxu0 %v15286_v32  ;;  %v15349_v32 = vld [vmem:[#allocation4 + $0x8e4] ss:$8 sps:$4 sm:$0xff]  }
 0x8e3   :  { %2398 = vmatpush1.bf16.msra.mxu0 %v15284_v33  ;;  %v15347_v33 = vld [vmem:[#allocation4 + $0x8e0] ss:$8 sps:$4 sm:$0xff]  }
 0x8e4   :  { %2399 = vmatprep.subr.bf16.mxu0 %v15289_v34  ;;  %v1957_v34 = vld [vmem:[#allocation6 + $0x7] ss:$8 sm:$0x3] }
 0x8e7   :  { %2400 = vmatpush1.bf16.msra.mxu0 %v15287_v35  ;;  %v1962_v35 = vrot.slane %v1957_v34, %v17498_v54 }
 0x8e8   :  { %2401 = vmatprep.subr.bf16.mxu0 %v15292_v36  ;;  %v1966_v36 = vrot.slane %v1957_v34, %v17501_v56  ;;  %v15395_v34 = vld [vmem:[#allocation4 + $0x9e0] ss:$8 sps:$4 sm:$0xff]  }
 0x8eb   :  { %2402 = vmatpush1.bf16.msra.mxu0 %v15290_v37 }
 0x8ec   :  { %2403 = vmatprep.subr.bf16.mxu0 %v15295_v38 }
 0x8ef   :  { %2404 = vmatpush1.bf16.msra.mxu0 %v15293_v39 }
 0x8f0   :  { %2405 = vmatprep.subr.bf16.mxu0 %v15298_v40 }
 0x8f3   :  { %2406 = vmatpush1.bf16.msra.mxu0 %v15296_v41 }
 0x8f4   :  { %2407 = vmatprep.subr.bf16.mxu0 %v15301_v60  ;;  %v15364_v60 = vld [vmem:[#allocation4 + $0x934] ss:$8 sps:$4 sm:$0xff]  }
 0x8f7   :  { %2408 = vmatpush1.bf16.msra.mxu0 %v15299_v61  ;;  %v15362_v61 = vld [vmem:[#allocation4 + $0x930] ss:$8 sps:$4 sm:$0xff]  }
 0x8f8   :  { %2409 = vmatprep.subr.bf16.mxu0 %v15304_v62  ;;  %v15367_v62 = vld [vmem:[#allocation4 + $0x944] ss:$8 sps:$4 sm:$0xff]  }
 0x8fb   :  { %2410 = vmatpush1.bf16.msra.mxu0 %v15302_v63  ;;  %v15365_v63 = vld [vmem:[#allocation4 + $0x940] ss:$8 sps:$4 sm:$0xff]  }
 0x991   :  { %v1913_v47 = vpop.f32.mrb[12].mxu0 }
 0x992   :  { %v1914_v48 = vadd.f32 %v1913_v47, %v1712_v43  ;;  %v1915_v49 = vpop.f32.mrb[13].mxu0 }
 0x993   :  { %v1916_v44 = vadd.f32 %v1915_v49, %v1716_v45  ;;  %v1917_v50 = vpop.f32.mrb[14].mxu0  ;;  %v15352_v49 = vld [vmem:[#allocation4 + $0x8f4] ss:$8 sps:$4 sm:$0xff]  }
 0x994   :  { %v1920_v51 = vmax.f32 %v1914_v48, 0.0  ;;  %v1918_v55 = vpop.f32.mrb[15].mxu0  ;;  %v15353_v50 = vld [vmem:[#allocation4 + $0x900] ss:$8 sps:$4 sm:$0xff]  }
 0x995   :  { %v1921_v57 = vmax.f32 %v1916_v44, 0.0  ;;  %v15350_v44 = vld [vmem:[#allocation4 + $0x8f0] ss:$8 sps:$4 sm:$0xff]   ;;  %v15358_v55 = vld [vmem:[#allocation4 + $0x914] ss:$8 sps:$4 sm:$0xff]  }
 0x996   :  { %v1954_v59 = vpack.c.bf16 %v1920_v51, %v1920_v51  ;;  %v15355_v51 = vld [vmem:[#allocation4 + $0x904] ss:$8 sps:$4 sm:$0xff]  }
 0x997   :  { %v1955_v58 = vpack.c.bf16 %v1921_v57, %v1921_v57  ;;  %2780 = vmatprep.subr.bf16.mxu0 %v15355_v51  ;;  %v15356_v57 = vld [vmem:[#allocation4 + $0x910] ss:$8 sps:$4 sm:$0xff]   ;;  %v1309_v51 = vrot.slane %v17512_v12, %v17498_v54 }
 0x999   :  { %2161 = vmatprep.mubr.bf16.mxu1 %v1955_v58  ;;  %v15361_v58 = vld [vmem:[#allocation4 + $0x924] ss:$8 sps:$4 sm:$0xff]  }
 0x99a   :  { %2162 = vmatmul.mubr.bf16.vlgmr.msra.gmra.mrb[20].mxu1 %v1954_v59  ;;  %v15359_v59 = vld [vmem:[#allocation4 + $0x920] ss:$8 sps:$4 sm:$0xff]  }
 0x99b   :  { %2628 = vmatpush1.bf16.msra.mxu1 %v15305_v2  ;;  %v15370_v2 = vld [vmem:[#allocation4 + $0x954] ss:$8 sps:$4 sm:$0xff]  }
 0x99c   :  { %2629 = vmatprep.subr.bf16.mxu1 %v15310_v4  ;;  %v2207_v4 = vld [vmem:[#allocation6 + $0x10] ss:$8 sm:$0x3] }
 0x99f   :  { %2630 = vmatpush1.bf16.msra.mxu1 %v15308_v5  ;;  %v2212_v5 = vrot.slane %v2207_v4, %v17498_v54 }
 0x9a0   :  { %2631 = vmatprep.subr.bf16.mxu1 %v15313_v6  ;;  %v2216_v6 = vrot.slane %v2207_v4, %v17501_v56 }
 0x9a3   :  { %2632 = vmatpush1.bf16.msra.mxu1 %v15311_v7 }
 0x9a4   :  { %2633 = vmatprep.subr.bf16.mxu1 %v15316_v8 }
 0x9a7   :  { %2634 = vmatpush1.bf16.msra.mxu1 %v15314_v9 }
 0x9a8   :  { %2635 = vmatprep.subr.bf16.mxu1 %v15319_v10 }
 0x9ab   :  { %2636 = vmatpush1.bf16.msra.mxu1 %v15317_v11 }
 0x9ac   :  { %2637 = vmatprep.subr.bf16.mxu1 %v15322_v13 }
 0x9af   :  { %2638 = vmatpush1.bf16.msra.mxu1 %v15320_v15 }
 0x9b0   :  { %2639 = vmatprep.subr.bf16.mxu1 %v15325_v16 }
 0x9b3   :  { %2640 = vmatpush1.bf16.msra.mxu1 %v15323_v17  ;;  %v15373_v17 = vld [vmem:[#allocation4 + $0x964] ss:$8 sps:$4 sm:$0xff]  }
 0x9b4   :  { %2641 = vmatprep.subr.bf16.mxu1 %v15328_v18  ;;  %v15371_v18 = vld [vmem:[#allocation4 + $0x960] ss:$8 sps:$4 sm:$0xff]  }
 0x9b7   :  { %2642 = vmatpush1.bf16.msra.mxu1 %v15326_v20  ;;  %v15376_v20 = vld [vmem:[#allocation4 + $0x974] ss:$8 sps:$4 sm:$0xff]  }
 0x9b8   :  { %2643 = vmatprep.subr.bf16.mxu1 %v15331_v21  ;;  %v15374_v21 = vld [vmem:[#allocation4 + $0x970] ss:$8 sps:$4 sm:$0xff]  }
 0x9bb   :  { %2644 = vmatpush1.bf16.msra.mxu1 %v15329_v22  ;;  %v15377_v22 = vld [vmem:[#allocation4 + $0x980] ss:$8 sps:$4 sm:$0xff]  }
 0x9bc   :  { %2645 = vmatprep.subr.bf16.mxu1 %v15334_v23  ;;  %v15379_v23 = vld [vmem:[#allocation4 + $0x984] ss:$8 sps:$4 sm:$0xff]  }
 0x9bf   :  { %2646 = vmatpush1.bf16.msra.mxu1 %v15332_v24  ;;  %v15382_v24 = vld [vmem:[#allocation4 + $0x994] ss:$8 sps:$4 sm:$0xff]  }
 0x9c0   :  { %2647 = vmatprep.subr.bf16.mxu1 %v15337_v25  ;;  %v15380_v25 = vld [vmem:[#allocation4 + $0x990] ss:$8 sps:$4 sm:$0xff]  }
 0x9c3   :  { %2648 = vmatpush1.bf16.msra.mxu1 %v15335_v26  ;;  %v15385_v26 = vld [vmem:[#allocation4 + $0x9a4] ss:$8 sps:$4 sm:$0xff]  }
 0x9c4   :  { %2649 = vmatprep.subr.bf16.mxu1 %v15340_v27  ;;  %v15383_v27 = vld [vmem:[#allocation4 + $0x9a0] ss:$8 sps:$4 sm:$0xff]  }
 0x9c7   :  { %2650 = vmatpush1.bf16.msra.mxu1 %v15338_v28  ;;  %v15388_v28 = vld [vmem:[#allocation4 + $0x9b4] ss:$8 sps:$4 sm:$0xff]  }
 0x9c8   :  { %2651 = vmatprep.subr.bf16.mxu1 %v15343_v46  ;;  %v15386_v46 = vld [vmem:[#allocation4 + $0x9b0] ss:$8 sps:$4 sm:$0xff]  }
 0x9cb   :  { %2652 = vmatpush1.bf16.msra.mxu1 %v15341_v29  ;;  %v15391_v29 = vld [vmem:[#allocation4 + $0x9c4] ss:$8 sps:$4 sm:$0xff]  }
 0x9cc   :  { %2653 = vmatprep.subr.bf16.mxu1 %v15346_v30  ;;  %v15389_v30 = vld [vmem:[#allocation4 + $0x9c0] ss:$8 sps:$4 sm:$0xff]  }
 0x9cf   :  { %2654 = vmatpush1.bf16.msra.mxu1 %v15344_v31  ;;  %v15394_v31 = vld [vmem:[#allocation4 + $0x9d4] ss:$8 sps:$4 sm:$0xff]  }
 0x9d0   :  { %2655 = vmatprep.subr.bf16.mxu1 %v15349_v32  ;;  %v15392_v32 = vld [vmem:[#allocation4 + $0x9d0] ss:$8 sps:$4 sm:$0xff]  }
 0x9d3   :  { %2656 = vmatpush1.bf16.msra.mxu1 %v15347_v33  ;;  %v15397_v33 = vld [vmem:[#allocation4 + $0x9e4] ss:$8 sps:$4 sm:$0xff]  }
 0x9d4   :  { %2657 = vmatprep.subr.bf16.mxu1 %v15352_v49  ;;  %v15418_v49 = vld [vmem:[#allocation4 + $0xa54] ss:$8 sps:$4 sm:$0xff]  }
 0x9d7   :  { %2658 = vmatpush1.bf16.msra.mxu1 %v15350_v44  ;;  %v15416_v44 = vld [vmem:[#allocation4 + $0xa50] ss:$8 sps:$4 sm:$0xff]  }
 0x9d8   :  { %3030 = vmatprep.subr.bf16.mxu1 %v15379_v23  ;;  %v15443_v23 = vld [vmem:[#allocation4 + $0xae0] ss:$8 sps:$4 sm:$0xff]  }
 0xa6d   :  { %v2163_v37 = vpop.f32.mrb[20].mxu1 }
 0xa6e   :  { %v2164_v38 = vadd.f32 %v2163_v37, %v1962_v35  ;;  %v2165_v39 = vpop.f32.mrb[21].mxu1  ;;  %v15400_v35 = vld [vmem:[#allocation4 + $0x9f4] ss:$8 sps:$4 sm:$0xff]   ;;  %v15403_v37 = vld [vmem:[#allocation4 + $0xa04] ss:$8 sps:$4 sm:$0xff]  }
 0xa6f   :  { %v2166_v40 = vadd.f32 %v2165_v39, %v1966_v36  ;;  %v2167_v41 = vpop.f32.mrb[22].mxu1  ;;  %v15398_v36 = vld [vmem:[#allocation4 + $0x9f0] ss:$8 sps:$4 sm:$0xff]   ;;  %v15406_v39 = vld [vmem:[#allocation4 + $0xa14] ss:$8 sps:$4 sm:$0xff]  }
 0xa70   :  { %v2170_v42 = vmax.f32 %v2164_v38, 0.0  ;;  %v2168_v43 = vpop.f32.mrb[23].mxu1  ;;  %v15401_v38 = vld [vmem:[#allocation4 + $0xa00] ss:$8 sps:$4 sm:$0xff]   ;;  %v15409_v41 = vld [vmem:[#allocation4 + $0xa24] ss:$8 sps:$4 sm:$0xff]  }
 0xa71   :  { %v2171_v45 = vmax.f32 %v2166_v40, 0.0  ;;  %v15404_v40 = vld [vmem:[#allocation4 + $0xa10] ss:$8 sps:$4 sm:$0xff]   ;;  %v15412_v43 = vld [vmem:[#allocation4 + $0xa34] ss:$8 sps:$4 sm:$0xff]  }
 0xa72   :  { %v2204_v48 = vpack.c.bf16 %v2170_v42, %v2170_v42  ;;  %v15407_v42 = vld [vmem:[#allocation4 + $0xa20] ss:$8 sps:$4 sm:$0xff]  }
 0xa73   :  { %v2205_v47 = vpack.c.bf16 %v2171_v45, %v2171_v45  ;;  %v15410_v45 = vld [vmem:[#allocation4 + $0xa30] ss:$8 sps:$4 sm:$0xff]  }
 0xa75   :  { %2411 = vmatprep.mubr.bf16.mxu0 %v2205_v47  ;;  %v15415_v47 = vld [vmem:[#allocation4 + $0xa44] ss:$8 sps:$4 sm:$0xff]  }
 0xa76   :  { %2412 = vmatmul.mubr.bf16.vlgmr.msra.gmra.mrb[16].mxu0 %v2204_v48  ;;  %v15413_v48 = vld [vmem:[#allocation4 + $0xa40] ss:$8 sps:$4 sm:$0xff]  }
 0xa77   :  { %2812 = vmatprep.mubr.bf16.mxu0 %v17334_v1  ;;  %2781 = vmatpush1.bf16.msra.mxu0 %v15353_v50  ;;  %v2455_v50 = vld [vmem:[#allocation6 + $0x11] ss:$8 sm:$0x3] }
 0xa78   :  { %2782 = vmatprep.subr.bf16.mxu0 %v15358_v55  ;;  %v2460_v55 = vrot.slane %v2455_v50, %v17498_v54 }
 0xa7b   :  { %2783 = vmatpush1.bf16.msra.mxu0 %v15356_v57  ;;  %v2464_v57 = vrot.slane %v2455_v50, %v17501_v56 }
 0xa7c   :  { %2784 = vmatprep.subr.bf16.mxu0 %v15361_v58 }
 0xa7f   :  { %2785 = vmatpush1.bf16.msra.mxu0 %v15359_v59  ;;  %v1511_v59 = vadd.f32 %v17516_v14, %v1309_v51  ;;  %v15422_v14 = vld [vmem:[#allocation4 + $0xa70] ss:$8 sps:$4 sm:$0xff]   ;;  %v15469_v51 = vld [vmem:[#allocation4 + $0xb64] ss:$8 sps:$4 sm:$0xff]  }
 0xa80   :  { %2786 = vmatprep.subr.bf16.mxu0 %v15364_v60 }
 0xa83   :  { %2787 = vmatpush1.bf16.msra.mxu0 %v15362_v61 }
 0xa84   :  { %2788 = vmatprep.subr.bf16.mxu0 %v15367_v62 }
 0xa87   :  { %2789 = vmatpush1.bf16.msra.mxu0 %v15365_v63 }
 0xa88   :  { %2790 = vmatprep.subr.bf16.mxu0 %v15370_v2 }
 0xa8b   :  { %2791 = vmatpush1.bf16.msra.mxu0 %v15368_v3 }
 0xa8c   :  { %2792 = vmatprep.subr.bf16.mxu0 %v15373_v17  ;;  %v15439_v17 = vld [vmem:[#allocation4 + $0xac4] ss:$8 sps:$4 sm:$0xff]  }
 0xa8f   :  { %2793 = vmatpush1.bf16.msra.mxu0 %v15371_v18  ;;  %v15437_v18 = vld [vmem:[#allocation4 + $0xac0] ss:$8 sps:$4 sm:$0xff]  }
 0xa90   :  { %2794 = vmatprep.subr.bf16.mxu0 %v15376_v20  ;;  %v15442_v20 = vld [vmem:[#allocation4 + $0xad4] ss:$8 sps:$4 sm:$0xff]  }
 0xa93   :  { %2795 = vmatpush1.bf16.msra.mxu0 %v15374_v21  ;;  %v15440_v21 = vld [vmem:[#allocation4 + $0xad0] ss:$8 sps:$4 sm:$0xff]  }
 0xb49   :  { %v2413_v7 = vpop.f32.mrb[16].mxu0 }
 0xb4a   :  { %v2414_v8 = vadd.f32 %v2413_v7, %v2212_v5  ;;  %v2415_v9 = vpop.f32.mrb[17].mxu0  ;;  %v15421_v5 = vld [vmem:[#allocation4 + $0xa64] ss:$8 sps:$4 sm:$0xff]   ;;  %v15424_v7 = vld [vmem:[#allocation4 + $0xa74] ss:$8 sps:$4 sm:$0xff]  }
 0xb4b   :  { %v2416_v10 = vadd.f32 %v2415_v9, %v2216_v6  ;;  %v2417_v11 = vpop.f32.mrb[18].mxu0  ;;  %v15419_v6 = vld [vmem:[#allocation4 + $0xa60] ss:$8 sps:$4 sm:$0xff]   ;;  %v15427_v9 = vld [vmem:[#allocation4 + $0xa84] ss:$8 sps:$4 sm:$0xff]  }
 0xb4c   :  { %v2418_v13 = vpop.f32.mrb[19].mxu0  ;;  %v2452_v16 = vpack.c.bf16 %v2414_v8, %v2414_v8  ;;  %v15425_v8 = vld [vmem:[#allocation4 + $0xa80] ss:$8 sps:$4 sm:$0xff]   ;;  %3280 = vmatprep.subr.bf16.mxu0 %v15427_v9  ;;  %v15428_v11 = vld [vmem:[#allocation4 + $0xa90] ss:$8 sps:$4 sm:$0xff]  }
 0xb4d   :  { %v2453_v15 = vpack.c.bf16 %v2416_v10, %v2416_v10  ;;  %v15430_v10 = vld [vmem:[#allocation4 + $0xa94] ss:$8 sps:$4 sm:$0xff]   ;;  %v15431_v13 = vld [vmem:[#allocation4 + $0xaa0] ss:$8 sps:$4 sm:$0xff]   ;;  %v15493_v9 = vld [vmem:[#allocation4 + $0xbe4] ss:$8 sps:$4 sm:$0xff]  }
 0xb4f   :  { %2659 = vmatprep.mubr.bf16.mxu1 %v2453_v15  ;;  %v15436_v15 = vld [vmem:[#allocation4 + $0xab4] ss:$8 sps:$4 sm:$0xff]  }
 0xb50   :  { %2660 = vmatmul.mubr.bf16.vlgmr.msra.gmra.mrb[24].mxu1 %v2452_v16  ;;  %v15434_v16 = vld [vmem:[#allocation4 + $0xab0] ss:$8 sps:$4 sm:$0xff]  }
 0xb51   :  { %3031 = vmatpush1.bf16.msra.mxu1 %v15377_v22  ;;  %v15445_v22 = vld [vmem:[#allocation4 + $0xae4] ss:$8 sps:$4 sm:$0xff]  }
 0xb52   :  { %3032 = vmatprep.subr.bf16.mxu1 %v15382_v24  ;;  %v15448_v24 = vld [vmem:[#allocation4 + $0xaf4] ss:$8 sps:$4 sm:$0xff]  }
 0xb55   :  { %3033 = vmatpush1.bf16.msra.mxu1 %v15380_v25  ;;  %v15446_v25 = vld [vmem:[#allocation4 + $0xaf0] ss:$8 sps:$4 sm:$0xff]  }
 0xb56   :  { %3034 = vmatprep.subr.bf16.mxu1 %v15385_v26  ;;  %v15451_v26 = vld [vmem:[#allocation4 + $0xb04] ss:$8 sps:$4 sm:$0xff]  }
 0xb59   :  { %3035 = vmatpush1.bf16.msra.mxu1 %v15383_v27  ;;  %v15449_v27 = vld [vmem:[#allocation4 + $0xb00] ss:$8 sps:$4 sm:$0xff]  }
 0xb5a   :  { %3036 = vmatprep.subr.bf16.mxu1 %v15388_v28  ;;  %v15454_v28 = vld [vmem:[#allocation4 + $0xb14] ss:$8 sps:$4 sm:$0xff]  }
 0xb5d   :  { %3037 = vmatpush1.bf16.msra.mxu1 %v15386_v46  ;;  %v15452_v46 = vld [vmem:[#allocation4 + $0xb10] ss:$8 sps:$4 sm:$0xff]  }
 0xb5e   :  { %3038 = vmatprep.subr.bf16.mxu1 %v15391_v29  ;;  %v15457_v29 = vld [vmem:[#allocation4 + $0xb24] ss:$8 sps:$4 sm:$0xff]  }
 0xb61   :  { %3039 = vmatpush1.bf16.msra.mxu1 %v15389_v30  ;;  %v15455_v30 = vld [vmem:[#allocation4 + $0xb20] ss:$8 sps:$4 sm:$0xff]  }
 0xb62   :  { %3040 = vmatprep.subr.bf16.mxu1 %v15394_v31  ;;  %v15460_v31 = vld [vmem:[#allocation4 + $0xb34] ss:$8 sps:$4 sm:$0xff]  }
 0xb65   :  { %3041 = vmatpush1.bf16.msra.mxu1 %v15392_v32  ;;  %v15458_v32 = vld [vmem:[#allocation4 + $0xb30] ss:$8 sps:$4 sm:$0xff]  }
 0xb66   :  { %3042 = vmatprep.subr.bf16.mxu1 %v15397_v33  ;;  %v15463_v33 = vld [vmem:[#allocation4 + $0xb44] ss:$8 sps:$4 sm:$0xff]  }
 0xb69   :  { %3043 = vmatpush1.bf16.msra.mxu1 %v15395_v34  ;;  %v15461_v34 = vld [vmem:[#allocation4 + $0xb40] ss:$8 sps:$4 sm:$0xff]  }
 0xb6a   :  { %3044 = vmatprep.subr.bf16.mxu1 %v15400_v35  ;;  %v15466_v35 = vld [vmem:[#allocation4 + $0xb54] ss:$8 sps:$4 sm:$0xff]  }
 0xb6d   :  { %3045 = vmatpush1.bf16.msra.mxu1 %v15398_v36  ;;  %v15464_v36 = vld [vmem:[#allocation4 + $0xb50] ss:$8 sps:$4 sm:$0xff]  }
 0xb6e   :  { %3046 = vmatprep.subr.bf16.mxu1 %v15403_v37  ;;  %v2688_v37 = vld [vmem:[#allocation6 + $0x12] ss:$8 sm:$0x3] }
 0xb71   :  { %3047 = vmatpush1.bf16.msra.mxu1 %v15401_v38  ;;  %v2693_v38 = vrot.slane %v2688_v37, %v17498_v54 }
 0xb72   :  { %3048 = vmatprep.subr.bf16.mxu1 %v15406_v39  ;;  %v2697_v39 = vrot.slane %v2688_v37, %v17501_v56 }
 0xb75   :  { %3049 = vmatpush1.bf16.msra.mxu1 %v15404_v40 }
 0xb76   :  { %3050 = vmatprep.subr.bf16.mxu1 %v15409_v41 }
 0xb79   :  { %3051 = vmatpush1.bf16.msra.mxu1 %v15407_v42 }
 0xb7a   :  { %3052 = vmatprep.subr.bf16.mxu1 %v15412_v43 }
 0xb7d   :  { %3053 = vmatpush1.bf16.msra.mxu1 %v15410_v45 }
 0xb7e   :  { %3054 = vmatprep.subr.bf16.mxu1 %v15415_v47 }
 0xb81   :  { %3055 = vmatpush1.bf16.msra.mxu1 %v15413_v48 }
 0xb82   :  { %3056 = vmatprep.subr.bf16.mxu1 %v15418_v49 }
 0xb85   :  { %3057 = vmatpush1.bf16.msra.mxu1 %v15416_v44 }
 0xb86   :  { %3058 = vmatprep.subr.bf16.mxu1 %v15421_v5  ;;  %v15482_v5 = vld [vmem:[#allocation4 + $0xbb0] ss:$8 sps:$4 sm:$0xff]  }
 0xb89   :  { %3059 = vmatpush1.bf16.msra.mxu1 %v15419_v6  ;;  %v15487_v6 = vld [vmem:[#allocation4 + $0xbc4] ss:$8 sps:$4 sm:$0xff]  }
 0xb8a   :  { %3060 = vmatprep.subr.bf16.mxu1 %v15424_v7  ;;  %v15485_v7 = vld [vmem:[#allocation4 + $0xbc0] ss:$8 sps:$4 sm:$0xff]  }
 0xb8d   :  { %3061 = vmatpush1.bf16.msra.mxu1 %v15422_v14  ;;  %v15490_v14 = vld [vmem:[#allocation4 + $0xbd4] ss:$8 sps:$4 sm:$0xff]  }
 0xc23   :  { %v2661_v58 = vpop.f32.mrb[24].mxu1 }
 0xc24   :  { %v2662_v60 = vadd.f32 %v2661_v58, %v2460_v55  ;;  %v2663_v61 = vpop.f32.mrb[25].mxu1  ;;  %v15467_v55 = vld [vmem:[#allocation4 + $0xb60] ss:$8 sps:$4 sm:$0xff]   ;;  %v15470_v58 = vld [vmem:[#allocation4 + $0xb70] ss:$8 sps:$4 sm:$0xff]  }
 0xc25   :  { %v2664_v62 = vadd.f32 %v2663_v61, %v2464_v57  ;;  %v2665_v63 = vpop.f32.mrb[26].mxu1  ;;  %v15472_v57 = vld [vmem:[#allocation4 + $0xb74] ss:$8 sps:$4 sm:$0xff]  }
 0xc26   :  { %v17537_v2 = vadd.f32 %v2662_v60, %v1511_v59  ;;  %v2666_v3 = vpop.f32.mrb[27].mxu1  ;;  %v15473_v59 = vld [vmem:[#allocation4 + $0xb80] ss:$8 sps:$4 sm:$0xff]   ;;  %v15475_v60 = vld [vmem:[#allocation4 + $0xb84] ss:$8 sps:$4 sm:$0xff]  }
 0xc27   :  { %v17540_v4 = vsub.f32 %v17519_v19, %v2664_v62  ;;  %v15433_v19 = vld [vmem:[#allocation4 + $0xaa4] ss:$8 sps:$4 sm:$0xff]   ;;  %v15478_v61 = vld [vmem:[#allocation4 + $0xb94] ss:$8 sps:$4 sm:$0xff]   ;;  %3530 = vmatprep.subr.bf16.mxu1 %v15475_v60  ;;  %v15476_v62 = vld [vmem:[#allocation4 + $0xb90] ss:$8 sps:$4 sm:$0xff]  }
 0xc28   :  { %v15481_v63 = vld [vmem:[#allocation4 + $0xba4] ss:$8 sps:$4 sm:$0xff]   ;;  %v15479_v3 = vld [vmem:[#allocation4 + $0xba0] ss:$8 sps:$4 sm:$0xff]  }
 0xc29   :  { %v2686_v12 = vpack.c.bf16 %v17540_v4, %v17540_v4  ;;  %v15541_v60 = vld [vmem:[#allocation4 + $0xce4] ss:$8 sps:$4 sm:$0xff]  }
 0xc2b   :  { %2813 = vmatmul.mubr.bf16.vlgmr.msra.gmra.mrb[20].mxu0 %v2686_v12  ;;  %v15484_v12 = vld [vmem:[#allocation4 + $0xbb4] ss:$8 sps:$4 sm:$0xff]  }
 0xc2c   :  { %3281 = vmatpush1.bf16.msra.mxu0 %v15425_v8  ;;  %v15488_v8 = vld [vmem:[#allocation4 + $0xbd0] ss:$8 sps:$4 sm:$0xff]  }
 0xc2d   :  { %3282 = vmatprep.subr.bf16.mxu0 %v15430_v10  ;;  %v15491_v10 = vld [vmem:[#allocation4 + $0xbe0] ss:$8 sps:$4 sm:$0xff]  }
 0xc30   :  { %3283 = vmatpush1.bf16.msra.mxu0 %v15428_v11  ;;  %v15496_v11 = vld [vmem:[#allocation4 + $0xbf4] ss:$8 sps:$4 sm:$0xff]  }
 0xc31   :  { %3284 = vmatprep.subr.bf16.mxu0 %v15433_v19  ;;  %v15494_v19 = vld [vmem:[#allocation4 + $0xbf0] ss:$8 sps:$4 sm:$0xff]  }
 0xc34   :  { %3285 = vmatpush1.bf16.msra.mxu0 %v15431_v13  ;;  %v15499_v13 = vld [vmem:[#allocation4 + $0xc04] ss:$8 sps:$4 sm:$0xff]  }
 0xc35   :  { %3286 = vmatprep.subr.bf16.mxu0 %v15436_v15  ;;  %v15497_v15 = vld [vmem:[#allocation4 + $0xc00] ss:$8 sps:$4 sm:$0xff]  }
 0xc38   :  { %3287 = vmatpush1.bf16.msra.mxu0 %v15434_v16  ;;  %v15502_v16 = vld [vmem:[#allocation4 + $0xc14] ss:$8 sps:$4 sm:$0xff]  }
 0xc39   :  { %3288 = vmatprep.subr.bf16.mxu0 %v15439_v17  ;;  %v15500_v17 = vld [vmem:[#allocation4 + $0xc10] ss:$8 sps:$4 sm:$0xff]  }
 0xc3c   :  { %3289 = vmatpush1.bf16.msra.mxu0 %v15437_v18  ;;  %v15505_v18 = vld [vmem:[#allocation4 + $0xc24] ss:$8 sps:$4 sm:$0xff]  }
 0xc3d   :  { %3290 = vmatprep.subr.bf16.mxu0 %v15442_v20  ;;  %v15503_v20 = vld [vmem:[#allocation4 + $0xc20] ss:$8 sps:$4 sm:$0xff]  }
 0xc40   :  { %3291 = vmatpush1.bf16.msra.mxu0 %v15440_v21  ;;  %v15508_v21 = vld [vmem:[#allocation4 + $0xc34] ss:$8 sps:$4 sm:$0xff]  }
 0xc41   :  { %3292 = vmatprep.subr.bf16.mxu0 %v15445_v22  ;;  %v15506_v22 = vld [vmem:[#allocation4 + $0xc30] ss:$8 sps:$4 sm:$0xff]  }
 0xc44   :  { %3293 = vmatpush1.bf16.msra.mxu0 %v15443_v23  ;;  %v15511_v23 = vld [vmem:[#allocation4 + $0xc44] ss:$8 sps:$4 sm:$0xff]  }
 0xc45   :  { %3294 = vmatprep.subr.bf16.mxu0 %v15448_v24  ;;  %v15509_v24 = vld [vmem:[#allocation4 + $0xc40] ss:$8 sps:$4 sm:$0xff]  }
 0xc48   :  { %3295 = vmatpush1.bf16.msra.mxu0 %v15446_v25  ;;  %v15514_v25 = vld [vmem:[#allocation4 + $0xc54] ss:$8 sps:$4 sm:$0xff]  }
 0xc49   :  { %3296 = vmatprep.subr.bf16.mxu0 %v15451_v26  ;;  %v15512_v26 = vld [vmem:[#allocation4 + $0xc50] ss:$8 sps:$4 sm:$0xff]  }
 0xc4c   :  { %3297 = vmatpush1.bf16.msra.mxu0 %v15449_v27  ;;  %v2858_v27 = vld [vmem:[#allocation6 + $0x13] ss:$8 sm:$0x3] }
 0xc4d   :  { %3298 = vmatprep.subr.bf16.mxu0 %v15454_v28  ;;  %v2863_v28 = vrot.slane %v2858_v27, %v17498_v54 }
 0xc50   :  { %3299 = vmatpush1.bf16.msra.mxu0 %v15452_v46  ;;  %v2867_v46 = vrot.slane %v2858_v27, %v17501_v56 }
 0xc51   :  { %3300 = vmatprep.subr.bf16.mxu0 %v15457_v29 }
 0xc54   :  { %3301 = vmatpush1.bf16.msra.mxu0 %v15455_v30 }
 0xc55   :  { %3302 = vmatprep.subr.bf16.mxu0 %v15460_v31 }
 0xc58   :  { %3303 = vmatpush1.bf16.msra.mxu0 %v15458_v32 }
 0xc59   :  { %3304 = vmatprep.subr.bf16.mxu0 %v15463_v33 }
 0xc5c   :  { %3305 = vmatpush1.bf16.msra.mxu0 %v15461_v34 }
 0xc5d   :  { %3306 = vmatprep.subr.bf16.mxu0 %v15466_v35 }
 0xc60   :  { %3307 = vmatpush1.bf16.msra.mxu0 %v15464_v36 }
 0xc61   :  { %3308 = vmatprep.subr.bf16.mxu0 %v15469_v51  ;;  %v15530_v51 = vld [vmem:[#allocation4 + $0xcb0] ss:$8 sps:$4 sm:$0xff]  }
 0xc64   :  { %3309 = vmatpush1.bf16.msra.mxu0 %v15467_v55  ;;  %v15535_v55 = vld [vmem:[#allocation4 + $0xcc4] ss:$8 sps:$4 sm:$0xff]  }
 0xc65   :  { %3310 = vmatprep.subr.bf16.mxu0 %v15472_v57  ;;  %v15533_v57 = vld [vmem:[#allocation4 + $0xcc0] ss:$8 sps:$4 sm:$0xff]  }
 0xc68   :  { %3311 = vmatpush1.bf16.msra.mxu0 %v15470_v58  ;;  %v15538_v58 = vld [vmem:[#allocation4 + $0xcd4] ss:$8 sps:$4 sm:$0xff]  }
 0xcfe   :  { %v2814_v40 = vpop.f32.mrb[20].mxu0 }
 0xcff   :  { %v2815_v41 = vadd.f32 %v2814_v40, %v2693_v38  ;;  %v2816_v42 = vpop.f32.mrb[21].mxu0  ;;  %v15515_v40 = vld [vmem:[#allocation4 + $0xc60] ss:$8 sps:$4 sm:$0xff]  }
 0xd00   :  { %v2817_v43 = vadd.f32 %v2816_v42, %v2697_v39  ;;  %v2818_v45 = vpop.f32.mrb[22].mxu0  ;;  %v15517_v39 = vld [vmem:[#allocation4 + $0xc64] ss:$8 sps:$4 sm:$0xff]   ;;  %v15518_v42 = vld [vmem:[#allocation4 + $0xc70] ss:$8 sps:$4 sm:$0xff]  }
 0xd01   :  { %v2821_v47 = vmax.f32 %v2815_v41, 0.0  ;;  %v2819_v48 = vpop.f32.mrb[23].mxu0  ;;  %v15520_v41 = vld [vmem:[#allocation4 + $0xc74] ss:$8 sps:$4 sm:$0xff]   ;;  %v15523_v45 = vld [vmem:[#allocation4 + $0xc84] ss:$8 sps:$4 sm:$0xff]  }
 0xd02   :  { %v2822_v49 = vmax.f32 %v2817_v43, 0.0  ;;  %v15521_v43 = vld [vmem:[#allocation4 + $0xc80] ss:$8 sps:$4 sm:$0xff]   ;;  %3778 = vmatprep.subr.bf16.mxu0 %v15523_v45  ;;  %v15524_v48 = vld [vmem:[#allocation4 + $0xc90] ss:$8 sps:$4 sm:$0xff]  }
 0xd03   :  { %v2855_v50 = vpack.c.bf16 %v2821_v47, %v2821_v47  ;;  %v15526_v47 = vld [vmem:[#allocation4 + $0xc94] ss:$8 sps:$4 sm:$0xff]  }
 0xd04   :  { %v2856_v44 = vpack.c.bf16 %v2822_v49, %v2822_v49  ;;  %v15529_v49 = vld [vmem:[#allocation4 + $0xca4] ss:$8 sps:$4 sm:$0xff]   ;;  %v3358_v45 = vld [vmem:[#allocation6 + $0x15] ss:$8 sm:$0x3] }
 0xd06   :  { %3062 = vmatprep.mubr.bf16.mxu1 %v2856_v44  ;;  %v15527_v44 = vld [vmem:[#allocation4 + $0xca0] ss:$8 sps:$4 sm:$0xff]  }
 0xd07   :  { %3063 = vmatmul.mubr.bf16.vlgmr.msra.gmra.mrb[28].mxu1 %v2855_v50  ;;  %v15532_v50 = vld [vmem:[#allocation4 + $0xcb4] ss:$8 sps:$4 sm:$0xff]  }
 0xd08   :  { %3531 = vmatpush1.bf16.msra.mxu1 %v15473_v59  ;;  %v15536_v59 = vld [vmem:[#allocation4 + $0xcd0] ss:$8 sps:$4 sm:$0xff]  }
 0xd09   :  { %3532 = vmatprep.subr.bf16.mxu1 %v15478_v61  ;;  %v15539_v61 = vld [vmem:[#allocation4 + $0xce0] ss:$8 sps:$4 sm:$0xff]  }
 0xd0c   :  { %3533 = vmatpush1.bf16.msra.mxu1 %v15476_v62  ;;  %v15544_v62 = vld [vmem:[#allocation4 + $0xcf4] ss:$8 sps:$4 sm:$0xff]  }
 0xd0d   :  { %3534 = vmatprep.subr.bf16.mxu1 %v15481_v63  ;;  %v15542_v63 = vld [vmem:[#allocation4 + $0xcf0] ss:$8 sps:$4 sm:$0xff]  }
 0xd10   :  { %3535 = vmatpush1.bf16.msra.mxu1 %v15479_v3  ;;  %v15547_v3 = vld [vmem:[#allocation4 + $0xd04] ss:$8 sps:$4 sm:$0xff]  }
 0xd11   :  { %3536 = vmatprep.subr.bf16.mxu1 %v15484_v12  ;;  %v15545_v12 = vld [vmem:[#allocation4 + $0xd00] ss:$8 sps:$4 sm:$0xff]  }
 0xd14   :  { %3537 = vmatpush1.bf16.msra.mxu1 %v15482_v5  ;;  %v15550_v5 = vld [vmem:[#allocation4 + $0xd14] ss:$8 sps:$4 sm:$0xff]  }
 0xd15   :  { %3538 = vmatprep.subr.bf16.mxu1 %v15487_v6  ;;  %v15548_v6 = vld [vmem:[#allocation4 + $0xd10] ss:$8 sps:$4 sm:$0xff]  }
 0xd18   :  { %3539 = vmatpush1.bf16.msra.mxu1 %v15485_v7  ;;  %v15553_v7 = vld [vmem:[#allocation4 + $0xd24] ss:$8 sps:$4 sm:$0xff]  }
 0xd19   :  { %3540 = vmatprep.subr.bf16.mxu1 %v15490_v14  ;;  %v15551_v14 = vld [vmem:[#allocation4 + $0xd20] ss:$8 sps:$4 sm:$0xff]  }
 0xd1c   :  { %3541 = vmatpush1.bf16.msra.mxu1 %v15488_v8  ;;  %v15556_v8 = vld [vmem:[#allocation4 + $0xd34] ss:$8 sps:$4 sm:$0xff]  }
 0xd1d   :  { %3542 = vmatprep.subr.bf16.mxu1 %v15493_v9  ;;  %v15554_v9 = vld [vmem:[#allocation4 + $0xd30] ss:$8 sps:$4 sm:$0xff]  }
 0xd20   :  { %3543 = vmatpush1.bf16.msra.mxu1 %v15491_v10  ;;  %v15559_v10 = vld [vmem:[#allocation4 + $0xd44] ss:$8 sps:$4 sm:$0xff]  }
 0xd21   :  { %3544 = vmatprep.subr.bf16.mxu1 %v15496_v11  ;;  %v15557_v11 = vld [vmem:[#allocation4 + $0xd40] ss:$8 sps:$4 sm:$0xff]  }
 0xd24   :  { %3545 = vmatpush1.bf16.msra.mxu1 %v15494_v19  ;;  %v15562_v19 = vld [vmem:[#allocation4 + $0xd54] ss:$8 sps:$4 sm:$0xff]  }
 0xd25   :  { %3546 = vmatprep.subr.bf16.mxu1 %v15499_v13  ;;  %v15560_v13 = vld [vmem:[#allocation4 + $0xd50] ss:$8 sps:$4 sm:$0xff]  }
 0xd28   :  { %3547 = vmatpush1.bf16.msra.mxu1 %v15497_v15  ;;  %v15565_v15 = vld [vmem:[#allocation4 + $0xd64] ss:$8 sps:$4 sm:$0xff]  }
 0xd29   :  { %3548 = vmatprep.subr.bf16.mxu1 %v15502_v16  ;;  %v15563_v16 = vld [vmem:[#allocation4 + $0xd60] ss:$8 sps:$4 sm:$0xff]  }
 0xd2c   :  { %3549 = vmatpush1.bf16.msra.mxu1 %v15500_v17  ;;  %v3108_v17 = vld [vmem:[#allocation6 + $0x14] ss:$8 sm:$0x3] }
 0xd2d   :  { %3550 = vmatprep.subr.bf16.mxu1 %v15505_v18  ;;  %v3113_v18 = vrot.slane %v3108_v17, %v17498_v54 }
 0xd30   :  { %3551 = vmatpush1.bf16.msra.mxu1 %v15503_v20  ;;  %v3117_v20 = vrot.slane %v3108_v17, %v17501_v56  ;;  %v15616_v17 = vld [vmem:[#allocation4 + $0xe74] ss:$8 sps:$4 sm:$0xff]  }
 0xd31   :  { %3552 = vmatprep.subr.bf16.mxu1 %v15508_v21 }
 0xd34   :  { %3553 = vmatpush1.bf16.msra.mxu1 %v15506_v22 }
 0xd35   :  { %3554 = vmatprep.subr.bf16.mxu1 %v15511_v23 }
 0xd38   :  { %3555 = vmatpush1.bf16.msra.mxu1 %v15509_v24 }
 0xd39   :  { %3556 = vmatprep.subr.bf16.mxu1 %v15514_v25 }
 0xd3c   :  { %3557 = vmatpush1.bf16.msra.mxu1 %v15512_v26 }
 0xd3d   :  { %3558 = vmatprep.subr.bf16.mxu1 %v15517_v39  ;;  %v15578_v39 = vld [vmem:[#allocation4 + $0xdb0] ss:$8 sps:$4 sm:$0xff]  }
 0xd40   :  { %3559 = vmatpush1.bf16.msra.mxu1 %v15515_v40  ;;  %v15583_v40 = vld [vmem:[#allocation4 + $0xdc4] ss:$8 sps:$4 sm:$0xff]  }
 0xd41   :  { %3560 = vmatprep.subr.bf16.mxu1 %v15520_v41  ;;  %v15581_v41 = vld [vmem:[#allocation4 + $0xdc0] ss:$8 sps:$4 sm:$0xff]  }
 0xd44   :  { %3561 = vmatpush1.bf16.msra.mxu1 %v15518_v42  ;;  %v15586_v42 = vld [vmem:[#allocation4 + $0xdd4] ss:$8 sps:$4 sm:$0xff]  }
 0xdda   :  { %v3064_v29 = vpop.f32.mrb[28].mxu1 }
 0xddb   :  { %v3065_v30 = vadd.f32 %v3064_v29, %v2863_v28  ;;  %v3066_v31 = vpop.f32.mrb[29].mxu1 }
 0xddc   :  { %v3067_v32 = vadd.f32 %v3066_v31, %v2867_v46  ;;  %v3068_v33 = vpop.f32.mrb[30].mxu1  ;;  %v15566_v31 = vld [vmem:[#allocation4 + $0xd70] ss:$8 sps:$4 sm:$0xff]  }
 0xddd   :  { %v3071_v34 = vmax.f32 %v3065_v30, 0.0  ;;  %v3069_v35 = vpop.f32.mrb[31].mxu1  ;;  %v15568_v30 = vld [vmem:[#allocation4 + $0xd74] ss:$8 sps:$4 sm:$0xff]   ;;  %v15571_v33 = vld [vmem:[#allocation4 + $0xd84] ss:$8 sps:$4 sm:$0xff]  }
 0xdde   :  { %v3072_v36 = vmax.f32 %v3067_v32, 0.0  ;;  %v15569_v32 = vld [vmem:[#allocation4 + $0xd80] ss:$8 sps:$4 sm:$0xff]   ;;  %3931 = vmatprep.subr.bf16.mxu1 %v15571_v33  ;;  %v15572_v35 = vld [vmem:[#allocation4 + $0xd90] ss:$8 sps:$4 sm:$0xff]  }
 0xddf   :  { %v3105_v38 = vpack.c.bf16 %v3071_v34, %v3071_v34  ;;  %v15574_v34 = vld [vmem:[#allocation4 + $0xd94] ss:$8 sps:$4 sm:$0xff]  }
 0xde0   :  { %v3106_v37 = vpack.c.bf16 %v3072_v36, %v3072_v36  ;;  %v15577_v36 = vld [vmem:[#allocation4 + $0xda4] ss:$8 sps:$4 sm:$0xff]  }
 0xde2   :  { %3312 = vmatprep.mubr.bf16.mxu0 %v3106_v37  ;;  %v15575_v37 = vld [vmem:[#allocation4 + $0xda0] ss:$8 sps:$4 sm:$0xff]  }
 0xde3   :  { %3313 = vmatmul.mubr.bf16.vlgmr.msra.gmra.mrb[24].mxu0 %v3105_v38  ;;  %v15580_v38 = vld [vmem:[#allocation4 + $0xdb4] ss:$8 sps:$4 sm:$0xff]  }
 0xde4   :  { %3779 = vmatpush1.bf16.msra.mxu0 %v15521_v43  ;;  %v15584_v43 = vld [vmem:[#allocation4 + $0xdd0] ss:$8 sps:$4 sm:$0xff]  }
 0xde5   :  { %3780 = vmatprep.subr.bf16.mxu0 %v15526_v47  ;;  %v3363_v47 = vrot.slane %v3358_v45, %v17498_v54 }
 0xde8   :  { %3781 = vmatpush1.bf16.msra.mxu0 %v15524_v48  ;;  %v3367_v48 = vrot.slane %v3358_v45, %v17501_v56  ;;  %v15635_v45 = vld [vmem:[#allocation4 + $0xee0] ss:$8 sps:$4 sm:$0xff]  }
 0xde9   :  { %3782 = vmatprep.subr.bf16.mxu0 %v15529_v49 }
 0xdec   :  { %3783 = vmatpush1.bf16.msra.mxu0 %v15527_v44 }
 0xded   :  { %3784 = vmatprep.subr.bf16.mxu0 %v15532_v50 }
 0xdf0   :  { %3785 = vmatpush1.bf16.msra.mxu0 %v15530_v51 }
 0xdf1   :  { %3786 = vmatprep.subr.bf16.mxu0 %v15535_v55 }
 0xdf4   :  { %3787 = vmatpush1.bf16.msra.mxu0 %v15533_v57 }
 0xdf5   :  { %3788 = vmatprep.subr.bf16.mxu0 %v15538_v58 }
 0xdf8   :  { %3789 = vmatpush1.bf16.msra.mxu0 %v15536_v59 }
 0xdf9   :  { %3790 = vmatprep.subr.bf16.mxu0 %v15541_v60  ;;  %v15589_v60 = vld [vmem:[#allocation4 + $0xde4] ss:$8 sps:$4 sm:$0xff]  }
 0xdfc   :  { %3791 = vmatpush1.bf16.msra.mxu0 %v15539_v61  ;;  %v15587_v61 = vld [vmem:[#allocation4 + $0xde0] ss:$8 sps:$4 sm:$0xff]  }
 0xdfd   :  { %3792 = vmatprep.subr.bf16.mxu0 %v15544_v62  ;;  %v15592_v62 = vld [vmem:[#allocation4 + $0xdf4] ss:$8 sps:$4 sm:$0xff]  }
 0xe00   :  { %3793 = vmatpush1.bf16.msra.mxu0 %v15542_v63  ;;  %v15590_v63 = vld [vmem:[#allocation4 + $0xdf0] ss:$8 sps:$4 sm:$0xff]  }
 0xe01   :  { %3794 = vmatprep.subr.bf16.mxu0 %v15547_v3  ;;  %v15593_v3 = vld [vmem:[#allocation4 + $0xe00] ss:$8 sps:$4 sm:$0xff]  }
 0xe04   :  { %3795 = vmatpush1.bf16.msra.mxu0 %v15545_v12  ;;  %v15595_v12 = vld [vmem:[#allocation4 + $0xe04] ss:$8 sps:$4 sm:$0xff]  }
 0xe05   :  { %3796 = vmatprep.subr.bf16.mxu0 %v15550_v5  ;;  %v15598_v5 = vld [vmem:[#allocation4 + $0xe14] ss:$8 sps:$4 sm:$0xff]  }
 0xe08   :  { %3797 = vmatpush1.bf16.msra.mxu0 %v15548_v6  ;;  %v15596_v6 = vld [vmem:[#allocation4 + $0xe10] ss:$8 sps:$4 sm:$0xff]  }
 0xe09   :  { %3798 = vmatprep.subr.bf16.mxu0 %v15553_v7  ;;  %v15601_v7 = vld [vmem:[#allocation4 + $0xe24] ss:$8 sps:$4 sm:$0xff]  }
 0xe0c   :  { %3799 = vmatpush1.bf16.msra.mxu0 %v15551_v14  ;;  %v15599_v14 = vld [vmem:[#allocation4 + $0xe20] ss:$8 sps:$4 sm:$0xff]  }
 0xe0d   :  { %3800 = vmatprep.subr.bf16.mxu0 %v15556_v8  ;;  %v15604_v8 = vld [vmem:[#allocation4 + $0xe34] ss:$8 sps:$4 sm:$0xff]  }
 0xe10   :  { %3801 = vmatpush1.bf16.msra.mxu0 %v15554_v9  ;;  %v15602_v9 = vld [vmem:[#allocation4 + $0xe30] ss:$8 sps:$4 sm:$0xff]  }
 0xe11   :  { %3802 = vmatprep.subr.bf16.mxu0 %v15559_v10  ;;  %v15607_v10 = vld [vmem:[#allocation4 + $0xe44] ss:$8 sps:$4 sm:$0xff]  }
 0xe14   :  { %3803 = vmatpush1.bf16.msra.mxu0 %v15557_v11  ;;  %v15605_v11 = vld [vmem:[#allocation4 + $0xe40] ss:$8 sps:$4 sm:$0xff]  }
 0xe15   :  { %3804 = vmatprep.subr.bf16.mxu0 %v15562_v19  ;;  %v15610_v19 = vld [vmem:[#allocation4 + $0xe54] ss:$8 sps:$4 sm:$0xff]  }
 0xe18   :  { %3805 = vmatpush1.bf16.msra.mxu0 %v15560_v13  ;;  %v15608_v13 = vld [vmem:[#allocation4 + $0xe50] ss:$8 sps:$4 sm:$0xff]  }
 0xe19   :  { %3806 = vmatprep.subr.bf16.mxu0 %v15565_v15  ;;  %v15613_v15 = vld [vmem:[#allocation4 + $0xe64] ss:$8 sps:$4 sm:$0xff]  }
 0xe1c   :  { %3807 = vmatpush1.bf16.msra.mxu0 %v15563_v16  ;;  %v15611_v16 = vld [vmem:[#allocation4 + $0xe60] ss:$8 sps:$4 sm:$0xff]  }
 0xe1d   :  { %3808 = vmatprep.subr.bf16.mxu0 %v15568_v30  ;;  %v15632_v30 = vld [vmem:[#allocation4 + $0xed0] ss:$8 sps:$4 sm:$0xff]  }
 0xe20   :  { %3809 = vmatpush1.bf16.msra.mxu0 %v15566_v31  ;;  %v3606_v31 = vld [vmem:[#allocation6 + $0x16] ss:$8 sm:$0x3] }
 0xe21   :  { %4181 = vmatprep.subr.bf16.mxu0 %v15595_v12  ;;  %v3615_v33 = vrot.slane %v3606_v31, %v17501_v56  ;;  %v15662_v12 = vld [vmem:[#allocation4 + $0xf70] ss:$8 sps:$4 sm:$0xff]  }
 0xeb6   :  { %v3314_v21 = vpop.f32.mrb[24].mxu0 }
 0xeb7   :  { %v3315_v22 = vadd.f32 %v3314_v21, %v3113_v18  ;;  %v3316_v23 = vpop.f32.mrb[25].mxu0  ;;  %v15614_v18 = vld [vmem:[#allocation4 + $0xe70] ss:$8 sps:$4 sm:$0xff]   ;;  %v15617_v21 = vld [vmem:[#allocation4 + $0xe80] ss:$8 sps:$4 sm:$0xff]  }
 0xeb8   :  { %v3317_v24 = vadd.f32 %v3316_v23, %v3117_v20  ;;  %v3318_v25 = vpop.f32.mrb[26].mxu0  ;;  %v15619_v20 = vld [vmem:[#allocation4 + $0xe84] ss:$8 sps:$4 sm:$0xff]   ;;  %v15620_v23 = vld [vmem:[#allocation4 + $0xe90] ss:$8 sps:$4 sm:$0xff]  }
 0xeb9   :  { %v3321_v26 = vmax.f32 %v3315_v22, 0.0  ;;  %v3319_v27 = vpop.f32.mrb[27].mxu0  ;;  %v15622_v22 = vld [vmem:[#allocation4 + $0xe94] ss:$8 sps:$4 sm:$0xff]   ;;  %v15623_v25 = vld [vmem:[#allocation4 + $0xea0] ss:$8 sps:$4 sm:$0xff]  }
 0xeba   :  { %v3322_v28 = vmax.f32 %v3317_v24, 0.0  ;;  %v15625_v24 = vld [vmem:[#allocation4 + $0xea4] ss:$8 sps:$4 sm:$0xff]   ;;  %v15626_v27 = vld [vmem:[#allocation4 + $0xeb0] ss:$8 sps:$4 sm:$0xff]  }
 0xebb   :  { %v3355_v29 = vpack.c.bf16 %v3321_v26, %v3321_v26  ;;  %v15628_v26 = vld [vmem:[#allocation4 + $0xeb4] ss:$8 sps:$4 sm:$0xff]  }
 0xebc   :  { %v3356_v46 = vpack.c.bf16 %v3322_v28, %v3322_v28  ;;  %v15631_v28 = vld [vmem:[#allocation4 + $0xec4] ss:$8 sps:$4 sm:$0xff]  }
 0xebe   :  { %3562 = vmatprep.mubr.bf16.mxu1 %v3356_v46  ;;  %v15629_v46 = vld [vmem:[#allocation4 + $0xec0] ss:$8 sps:$4 sm:$0xff]  }
 0xebf   :  { %3563 = vmatmul.mubr.bf16.vlgmr.msra.gmra.mrb[32].mxu1 %v3355_v29  ;;  %v15634_v29 = vld [vmem:[#allocation4 + $0xed4] ss:$8 sps:$4 sm:$0xff]  }
 0xec0   :  { %3963 = vmatprep.mubr.bf16.mxu1 %v17334_v1  ;;  %3932 = vmatpush1.bf16.msra.mxu1 %v15569_v32  ;;  %v3611_v32 = vrot.slane %v3606_v31, %v17498_v54  ;;  %v15683_v31 = vld [vmem:[#allocation4 + $0xfe0] ss:$8 sps:$4 sm:$0xff]  }
 0xec1   :  { %3933 = vmatprep.subr.bf16.mxu1 %v15574_v34 }
 0xec4   :  { %3934 = vmatpush1.bf16.msra.mxu1 %v15572_v35 }
 0xec5   :  { %3935 = vmatprep.subr.bf16.mxu1 %v15577_v36 }
 0xec8   :  { %3936 = vmatpush1.bf16.msra.mxu1 %v15575_v37 }
 0xec9   :  { %3937 = vmatprep.subr.bf16.mxu1 %v15580_v38 }
 0xecc   :  { %3938 = vmatpush1.bf16.msra.mxu1 %v15578_v39 }
 0xecd   :  { %3939 = vmatprep.subr.bf16.mxu1 %v15583_v40 }
 0xed0   :  { %3940 = vmatpush1.bf16.msra.mxu1 %v15581_v41 }
 0xed1   :  { %3941 = vmatprep.subr.bf16.mxu1 %v15586_v42 }
 0xed4   :  { %3942 = vmatpush1.bf16.msra.mxu1 %v15584_v43  ;;  %v15637_v43 = vld [vmem:[#allocation4 + $0xee4] ss:$8 sps:$4 sm:$0xff]  }
 0xed5   :  { %3943 = vmatprep.subr.bf16.mxu1 %v15589_v60  ;;  %v15658_v60 = vld [vmem:[#allocation4 + $0xf54] ss:$8 sps:$4 sm:$0xff]  }
 0xed8   :  { %3944 = vmatpush1.bf16.msra.mxu1 %v15587_v61  ;;  %v15656_v61 = vld [vmem:[#allocation4 + $0xf50] ss:$8 sps:$4 sm:$0xff]  }
 0xed9   :  { %3945 = vmatprep.subr.bf16.mxu1 %v15592_v62  ;;  %v15661_v62 = vld [vmem:[#allocation4 + $0xf64] ss:$8 sps:$4 sm:$0xff]  }
 0xedc   :  { %3946 = vmatpush1.bf16.msra.mxu1 %v15590_v63  ;;  %v15659_v63 = vld [vmem:[#allocation4 + $0xf60] ss:$8 sps:$4 sm:$0xff]  }
 0xf92   :  { %v3564_v49 = vpop.f32.mrb[32].mxu1 }
 0xf93   :  { %v3565_v44 = vadd.f32 %v3564_v49, %v3363_v47  ;;  %v3566_v50 = vpop.f32.mrb[33].mxu1  ;;  %v15640_v47 = vld [vmem:[#allocation4 + $0xef4] ss:$8 sps:$4 sm:$0xff]  }
 0xf94   :  { %v3567_v51 = vadd.f32 %v3566_v50, %v3367_v48  ;;  %v3568_v55 = vpop.f32.mrb[34].mxu1  ;;  %v15641_v48 = vld [vmem:[#allocation4 + $0xf00] ss:$8 sps:$4 sm:$0xff]   ;;  %v15646_v49 = vld [vmem:[#allocation4 + $0xf14] ss:$8 sps:$4 sm:$0xff]  }
 0xf95   :  { %v3569_v57 = vpop.f32.mrb[35].mxu1  ;;  %v3603_v59 = vpack.c.bf16 %v3565_v44, %v3565_v44  ;;  %v15644_v44 = vld [vmem:[#allocation4 + $0xf10] ss:$8 sps:$4 sm:$0xff]   ;;  %v15649_v50 = vld [vmem:[#allocation4 + $0xf24] ss:$8 sps:$4 sm:$0xff]  }
 0xf96   :  { %v3604_v58 = vpack.c.bf16 %v3567_v51, %v3567_v51  ;;  %v15647_v51 = vld [vmem:[#allocation4 + $0xf20] ss:$8 sps:$4 sm:$0xff]   ;;  %v15652_v55 = vld [vmem:[#allocation4 + $0xf34] ss:$8 sps:$4 sm:$0xff]   ;;  %v15650_v57 = vld [vmem:[#allocation4 + $0xf30] ss:$8 sps:$4 sm:$0xff]  }
 0xf98   :  { %3810 = vmatprep.mubr.bf16.mxu0 %v3604_v58  ;;  %v15655_v58 = vld [vmem:[#allocation4 + $0xf44] ss:$8 sps:$4 sm:$0xff]  }
 0xf99   :  { %3811 = vmatmul.mubr.bf16.vlgmr.msra.gmra.mrb[28].mxu0 %v3603_v59  ;;  %v15653_v59 = vld [vmem:[#allocation4 + $0xf40] ss:$8 sps:$4 sm:$0xff]  }
 0xf9a   :  { %4182 = vmatpush1.bf16.msra.mxu0 %v15593_v3  ;;  %v15664_v3 = vld [vmem:[#allocation4 + $0xf74] ss:$8 sps:$4 sm:$0xff]  }
 0xf9b   :  { %4183 = vmatprep.subr.bf16.mxu0 %v15598_v5  ;;  %v15667_v5 = vld [vmem:[#allocation4 + $0xf84] ss:$8 sps:$4 sm:$0xff]  }
 0xf9e   :  { %4184 = vmatpush1.bf16.msra.mxu0 %v15596_v6  ;;  %v15665_v6 = vld [vmem:[#allocation4 + $0xf80] ss:$8 sps:$4 sm:$0xff]  }
 0xf9f   :  { %4185 = vmatprep.subr.bf16.mxu0 %v15601_v7  ;;  %v15670_v7 = vld [vmem:[#allocation4 + $0xf94] ss:$8 sps:$4 sm:$0xff]  }
 0xfa2   :  { %4186 = vmatpush1.bf16.msra.mxu0 %v15599_v14  ;;  %v15668_v14 = vld [vmem:[#allocation4 + $0xf90] ss:$8 sps:$4 sm:$0xff]  }
 0xfa3   :  { %4187 = vmatprep.subr.bf16.mxu0 %v15604_v8  ;;  %v15673_v8 = vld [vmem:[#allocation4 + $0xfa4] ss:$8 sps:$4 sm:$0xff]  }
 0xfa6   :  { %4188 = vmatpush1.bf16.msra.mxu0 %v15602_v9  ;;  %v15671_v9 = vld [vmem:[#allocation4 + $0xfa0] ss:$8 sps:$4 sm:$0xff]  }
 0xfa7   :  { %4189 = vmatprep.subr.bf16.mxu0 %v15607_v10  ;;  %v15676_v10 = vld [vmem:[#allocation4 + $0xfb4] ss:$8 sps:$4 sm:$0xff]  }
 0xfaa   :  { %4190 = vmatpush1.bf16.msra.mxu0 %v15605_v11  ;;  %v15674_v11 = vld [vmem:[#allocation4 + $0xfb0] ss:$8 sps:$4 sm:$0xff]  }
 0xfab   :  { %4191 = vmatprep.subr.bf16.mxu0 %v15610_v19  ;;  %v15679_v19 = vld [vmem:[#allocation4 + $0xfc4] ss:$8 sps:$4 sm:$0xff]  }
 0xfae   :  { %4192 = vmatpush1.bf16.msra.mxu0 %v15608_v13  ;;  %v15677_v13 = vld [vmem:[#allocation4 + $0xfc0] ss:$8 sps:$4 sm:$0xff]  }
 0xfaf   :  { %4193 = vmatprep.subr.bf16.mxu0 %v15613_v15  ;;  %v15682_v15 = vld [vmem:[#allocation4 + $0xfd4] ss:$8 sps:$4 sm:$0xff]  }
 0xfb2   :  { %4194 = vmatpush1.bf16.msra.mxu0 %v15611_v16  ;;  %v15680_v16 = vld [vmem:[#allocation4 + $0xfd0] ss:$8 sps:$4 sm:$0xff]  }
 0xfb3   :  { %4195 = vmatprep.subr.bf16.mxu0 %v15616_v17  ;;  %v3839_v17 = vld [vmem:[#allocation6 + $0x17] ss:$8 sm:$0x3] }
 0xfb6   :  { %4196 = vmatpush1.bf16.msra.mxu0 %v15614_v18  ;;  %v3844_v18 = vrot.slane %v3839_v17, %v17498_v54 }
 0xfb7   :  { %4197 = vmatprep.subr.bf16.mxu0 %v15619_v20  ;;  %v3848_v20 = vrot.slane %v3839_v17, %v17501_v56 }
 0xfba   :  { %4198 = vmatpush1.bf16.msra.mxu0 %v15617_v21 }
 0xfbb   :  { %4199 = vmatprep.subr.bf16.mxu0 %v15622_v22 }
 0xfbe   :  { %4200 = vmatpush1.bf16.msra.mxu0 %v15620_v23 }
 0xfbf   :  { %4201 = vmatprep.subr.bf16.mxu0 %v15625_v24 }
 0xfc2   :  { %4202 = vmatpush1.bf16.msra.mxu0 %v15623_v25 }
 0xfc3   :  { %4203 = vmatprep.subr.bf16.mxu0 %v15628_v26 }
 0xfc6   :  { %4204 = vmatpush1.bf16.msra.mxu0 %v15626_v27 }
 0xfc7   :  { %4205 = vmatprep.subr.bf16.mxu0 %v15631_v28 }
 0xfca   :  { %4206 = vmatpush1.bf16.msra.mxu0 %v15629_v46 }
 0xfcb   :  { %4207 = vmatprep.subr.bf16.mxu0 %v15634_v29 }
 0xfce   :  { %4208 = vmatpush1.bf16.msra.mxu0 %v15632_v30  ;;  %v15685_v30 = vld [vmem:[#allocation4 + $0xfe4] ss:$8 sps:$4 sm:$0xff]  }
 0xfcf   :  { %4209 = vmatprep.subr.bf16.mxu0 %v15637_v43  ;;  %v15698_v43 = vld [vmem:[#allocation4 + $0x1030] ss:$8 sps:$4 sm:$0xff]  }
 0xfd2   :  { %4210 = vmatpush1.bf16.msra.mxu0 %v15635_v45  ;;  %v15703_v45 = vld [vmem:[#allocation4 + $0x1044] ss:$8 sps:$4 sm:$0xff]  }
 0xfd3   :  { %4211 = vmatprep.subr.bf16.mxu0 %v15640_v47  ;;  %v15701_v47 = vld [vmem:[#allocation4 + $0x1040] ss:$8 sps:$4 sm:$0xff]  }
0x106c   :  { %v3812_v34 = vpop.f32.mrb[28].mxu0 }
0x106d   :  { %v3813_v35 = vadd.f32 %v3812_v34, %v3611_v32  ;;  %v3814_v36 = vpop.f32.mrb[29].mxu0  ;;  %v15688_v32 = vld [vmem:[#allocation4 + $0xff4] ss:$8 sps:$4 sm:$0xff]   ;;  %v15689_v34 = vld [vmem:[#allocation4 + $0x1000] ss:$8 sps:$4 sm:$0xff]  }
0x106e   :  { %v3815_v37 = vadd.f32 %v3814_v36, %v3615_v33  ;;  %v3816_v38 = vpop.f32.mrb[30].mxu0  ;;  %v15686_v33 = vld [vmem:[#allocation4 + $0xff0] ss:$8 sps:$4 sm:$0xff]   ;;  %v15694_v36 = vld [vmem:[#allocation4 + $0x1014] ss:$8 sps:$4 sm:$0xff]  }
0x106f   :  { %v17556_v39 = vadd.f32 %v3813_v35, %v17537_v2  ;;  %v3817_v40 = vpop.f32.mrb[31].mxu0  ;;  %v15638_v2 = vld [vmem:[#allocation4 + $0xef0] ss:$8 sps:$4 sm:$0xff]   ;;  %v15691_v35 = vld [vmem:[#allocation4 + $0x1004] ss:$8 sps:$4 sm:$0xff]  }
0x1070   :  { %v17559_v41 = vsub.f32 %v17540_v4, %v3815_v37  ;;  %4212 = vmatpush1.bf16.msra.mxu0 %v15638_v2  ;;  %v15643_v4 = vld [vmem:[#allocation4 + $0xf04] ss:$8 sps:$4 sm:$0xff]   ;;  %v15692_v37 = vld [vmem:[#allocation4 + $0x1010] ss:$8 sps:$4 sm:$0xff]   ;;  %v15695_v40 = vld [vmem:[#allocation4 + $0x1020] ss:$8 sps:$4 sm:$0xff]  }
0x1071   :  { %13114 = vst [vmem:[%s17797_s7 + $0x4] sm:$0xf] %v17556_v39  ;;  %4431 = vmatprep.subr.bf16.mxu1 %v15643_v4  ;;  %4681 = vmatprep.subr.bf16.mxu0 %v15691_v35  ;;  %v15697_v38 = vld [vmem:[#allocation4 + $0x1024] ss:$8 sps:$4 sm:$0xff]   ;;  %v15706_v2 = vld [vmem:[#allocation4 + $0x1054] ss:$8 sps:$4 sm:$0xff]  }
0x1072   :  { %v3837_v42 = vpack.c.bf16 %v17559_v41, %v17559_v41  ;;  %v15709_v4 = vld [vmem:[#allocation4 + $0x1064] ss:$8 sps:$4 sm:$0xff]  }
0x1073   :  { %v15757_v35 = vld [vmem:[#allocation4 + $0x1164] ss:$8 sps:$4 sm:$0xff]  }
0x1074   :  { %3964 = vmatmul.mubr.bf16.vlgmr.msra.gmra.mrb[36].mxu1 %v3837_v42  ;;  %v15700_v42 = vld [vmem:[#allocation4 + $0x1034] ss:$8 sps:$4 sm:$0xff]  }
0x1075   :  { %4432 = vmatpush1.bf16.msra.mxu1 %v15641_v48  ;;  %v15704_v48 = vld [vmem:[#allocation4 + $0x1050] ss:$8 sps:$4 sm:$0xff]  }
0x1076   :  { %4433 = vmatprep.subr.bf16.mxu1 %v15646_v49  ;;  %v15707_v49 = vld [vmem:[#allocation4 + $0x1060] ss:$8 sps:$4 sm:$0xff]  }
0x1079   :  { %4434 = vmatpush1.bf16.msra.mxu1 %v15644_v44  ;;  %v15712_v44 = vld [vmem:[#allocation4 + $0x1074] ss:$8 sps:$4 sm:$0xff]  }
0x107a   :  { %4435 = vmatprep.subr.bf16.mxu1 %v15649_v50  ;;  %v15710_v50 = vld [vmem:[#allocation4 + $0x1070] ss:$8 sps:$4 sm:$0xff]  }
0x107d   :  { %4436 = vmatpush1.bf16.msra.mxu1 %v15647_v51  ;;  %v15715_v51 = vld [vmem:[#allocation4 + $0x1084] ss:$8 sps:$4 sm:$0xff]  }
0x107e   :  { %4437 = vmatprep.subr.bf16.mxu1 %v15652_v55  ;;  %v15713_v55 = vld [vmem:[#allocation4 + $0x1080] ss:$8 sps:$4 sm:$0xff]  }
0x1081   :  { %4438 = vmatpush1.bf16.msra.mxu1 %v15650_v57  ;;  %v15718_v57 = vld [vmem:[#allocation4 + $0x1094] ss:$8 sps:$4 sm:$0xff]  }
0x1082   :  { %4439 = vmatprep.subr.bf16.mxu1 %v15655_v58  ;;  %v15716_v58 = vld [vmem:[#allocation4 + $0x1090] ss:$8 sps:$4 sm:$0xff]  }
0x1085   :  { %4440 = vmatpush1.bf16.msra.mxu1 %v15653_v59  ;;  %v15721_v59 = vld [vmem:[#allocation4 + $0x10a4] ss:$8 sps:$4 sm:$0xff]  }
0x1086   :  { %4441 = vmatprep.subr.bf16.mxu1 %v15658_v60  ;;  %v15719_v60 = vld [vmem:[#allocation4 + $0x10a0] ss:$8 sps:$4 sm:$0xff]  }
0x1089   :  { %4442 = vmatpush1.bf16.msra.mxu1 %v15656_v61  ;;  %v15724_v61 = vld [vmem:[#allocation4 + $0x10b4] ss:$8 sps:$4 sm:$0xff]  }
0x108a   :  { %4443 = vmatprep.subr.bf16.mxu1 %v15661_v62  ;;  %v15722_v62 = vld [vmem:[#allocation4 + $0x10b0] ss:$8 sps:$4 sm:$0xff]  }
0x108d   :  { %4444 = vmatpush1.bf16.msra.mxu1 %v15659_v63  ;;  %v15727_v63 = vld [vmem:[#allocation4 + $0x10c4] ss:$8 sps:$4 sm:$0xff]  }
0x108e   :  { %4445 = vmatprep.subr.bf16.mxu1 %v15664_v3  ;;  %v15725_v3 = vld [vmem:[#allocation4 + $0x10c0] ss:$8 sps:$4 sm:$0xff]  }
0x1091   :  { %4446 = vmatpush1.bf16.msra.mxu1 %v15662_v12  ;;  %v15730_v12 = vld [vmem:[#allocation4 + $0x10d4] ss:$8 sps:$4 sm:$0xff]  }
0x1092   :  { %4447 = vmatprep.subr.bf16.mxu1 %v15667_v5  ;;  %v15728_v5 = vld [vmem:[#allocation4 + $0x10d0] ss:$8 sps:$4 sm:$0xff]  }
0x1095   :  { %4448 = vmatpush1.bf16.msra.mxu1 %v15665_v6  ;;  %v4009_v6 = vld [vmem:[#allocation6 + $0x20] ss:$8 sm:$0x3] }
0x1096   :  { %4449 = vmatprep.subr.bf16.mxu1 %v15670_v7  ;;  %v4014_v7 = vrot.slane %v4009_v6, %v17498_v54 }
0x1099   :  { %4450 = vmatpush1.bf16.msra.mxu1 %v15668_v14  ;;  %v4018_v14 = vrot.slane %v4009_v6, %v17501_v56 }
0x109a   :  { %4451 = vmatprep.subr.bf16.mxu1 %v15673_v8 }
0x109d   :  { %4452 = vmatpush1.bf16.msra.mxu1 %v15671_v9 }
0x109e   :  { %4453 = vmatprep.subr.bf16.mxu1 %v15676_v10 }
0x10a1   :  { %4454 = vmatpush1.bf16.msra.mxu1 %v15674_v11 }
0x10a2   :  { %4455 = vmatprep.subr.bf16.mxu1 %v15679_v19 }
0x10a5   :  { %4456 = vmatpush1.bf16.msra.mxu1 %v15677_v13 }
0x10a6   :  { %4457 = vmatprep.subr.bf16.mxu1 %v15682_v15 }
0x10a9   :  { %4458 = vmatpush1.bf16.msra.mxu1 %v15680_v16 }
0x10aa   :  { %4459 = vmatprep.subr.bf16.mxu1 %v15685_v30  ;;  %v15746_v30 = vld [vmem:[#allocation4 + $0x1130] ss:$8 sps:$4 sm:$0xff]  }
0x10ad   :  { %4460 = vmatpush1.bf16.msra.mxu1 %v15683_v31  ;;  %v15751_v31 = vld [vmem:[#allocation4 + $0x1144] ss:$8 sps:$4 sm:$0xff]  }
0x10ae   :  { %4461 = vmatprep.subr.bf16.mxu1 %v15688_v32  ;;  %v15749_v32 = vld [vmem:[#allocation4 + $0x1140] ss:$8 sps:$4 sm:$0xff]  }
0x10b1   :  { %4462 = vmatpush1.bf16.msra.mxu1 %v15686_v33  ;;  %v15754_v33 = vld [vmem:[#allocation4 + $0x1154] ss:$8 sps:$4 sm:$0xff]  }
0x1147   :  { %v3965_v21 = vpop.f32.mrb[36].mxu1 }
0x1148   :  { %v3966_v22 = vadd.f32 %v3965_v21, %v3844_v18  ;;  %v3967_v23 = vpop.f32.mrb[37].mxu1  ;;  %v15731_v21 = vld [vmem:[#allocation4 + $0x10e0] ss:$8 sps:$4 sm:$0xff]  }
0x1149   :  { %v3968_v24 = vadd.f32 %v3967_v23, %v3848_v20  ;;  %v3969_v25 = vpop.f32.mrb[38].mxu1  ;;  %v15733_v20 = vld [vmem:[#allocation4 + $0x10e4] ss:$8 sps:$4 sm:$0xff]   ;;  %v15734_v23 = vld [vmem:[#allocation4 + $0x10f0] ss:$8 sps:$4 sm:$0xff]  }
0x114a   :  { %v3972_v26 = vmax.f32 %v3966_v22, 0.0  ;;  %v3970_v27 = vpop.f32.mrb[39].mxu1  ;;  %v15736_v22 = vld [vmem:[#allocation4 + $0x10f4] ss:$8 sps:$4 sm:$0xff]   ;;  %v15739_v25 = vld [vmem:[#allocation4 + $0x1104] ss:$8 sps:$4 sm:$0xff]  }
0x114b   :  { %v3973_v28 = vmax.f32 %v3968_v24, 0.0  ;;  %v15737_v24 = vld [vmem:[#allocation4 + $0x1100] ss:$8 sps:$4 sm:$0xff]   ;;  %4929 = vmatprep.subr.bf16.mxu1 %v15739_v25  ;;  %v15740_v27 = vld [vmem:[#allocation4 + $0x1110] ss:$8 sps:$4 sm:$0xff]  }
0x114c   :  { %v4006_v29 = vpack.c.bf16 %v3972_v26, %v3972_v26  ;;  %v15742_v26 = vld [vmem:[#allocation4 + $0x1114] ss:$8 sps:$4 sm:$0xff]   ;;  %v4509_v25 = vld [vmem:[#allocation6 + $0x22] ss:$8 sm:$0x3] }
0x114d   :  { %v4007_v46 = vpack.c.bf16 %v3973_v28, %v3973_v28  ;;  %v15745_v28 = vld [vmem:[#allocation4 + $0x1124] ss:$8 sps:$4 sm:$0xff]  }
0x114f   :  { %4213 = vmatprep.mubr.bf16.mxu0 %v4007_v46  ;;  %v15743_v46 = vld [vmem:[#allocation4 + $0x1120] ss:$8 sps:$4 sm:$0xff]  }
0x1150   :  { %4214 = vmatmul.mubr.bf16.vlgmr.msra.gmra.mrb[32].mxu0 %v4006_v29  ;;  %v15748_v29 = vld [vmem:[#allocation4 + $0x1134] ss:$8 sps:$4 sm:$0xff]  }
0x1151   :  { %4682 = vmatpush1.bf16.msra.mxu0 %v15689_v34  ;;  %v15752_v34 = vld [vmem:[#allocation4 + $0x1150] ss:$8 sps:$4 sm:$0xff]  }
0x1152   :  { %4683 = vmatprep.subr.bf16.mxu0 %v15694_v36  ;;  %v15755_v36 = vld [vmem:[#allocation4 + $0x1160] ss:$8 sps:$4 sm:$0xff]  }
0x1155   :  { %4684 = vmatpush1.bf16.msra.mxu0 %v15692_v37  ;;  %v15760_v37 = vld [vmem:[#allocation4 + $0x1174] ss:$8 sps:$4 sm:$0xff]  }
0x1156   :  { %4685 = vmatprep.subr.bf16.mxu0 %v15697_v38  ;;  %v15758_v38 = vld [vmem:[#allocation4 + $0x1170] ss:$8 sps:$4 sm:$0xff]  }
0x1159   :  { %4686 = vmatpush1.bf16.msra.mxu0 %v15695_v40  ;;  %v15763_v40 = vld [vmem:[#allocation4 + $0x1184] ss:$8 sps:$4 sm:$0xff]  }
0x115a   :  { %4687 = vmatprep.subr.bf16.mxu0 %v15700_v42  ;;  %v15761_v42 = vld [vmem:[#allocation4 + $0x1180] ss:$8 sps:$4 sm:$0xff]  }
0x115d   :  { %4688 = vmatpush1.bf16.msra.mxu0 %v15698_v43  ;;  %v15766_v43 = vld [vmem:[#allocation4 + $0x1194] ss:$8 sps:$4 sm:$0xff]  }
0x115e   :  { %4689 = vmatprep.subr.bf16.mxu0 %v15703_v45  ;;  %v15764_v45 = vld [vmem:[#allocation4 + $0x1190] ss:$8 sps:$4 sm:$0xff]  }
0x1161   :  { %4690 = vmatpush1.bf16.msra.mxu0 %v15701_v47  ;;  %v15769_v47 = vld [vmem:[#allocation4 + $0x11a4] ss:$8 sps:$4 sm:$0xff]  }
0x1162   :  { %4691 = vmatprep.subr.bf16.mxu0 %v15706_v2  ;;  %v15767_v2 = vld [vmem:[#allocation4 + $0x11a0] ss:$8 sps:$4 sm:$0xff]  }
0x1165   :  { %4692 = vmatpush1.bf16.msra.mxu0 %v15704_v48  ;;  %v15772_v48 = vld [vmem:[#allocation4 + $0x11b4] ss:$8 sps:$4 sm:$0xff]  }
0x1166   :  { %4693 = vmatprep.subr.bf16.mxu0 %v15709_v4  ;;  %v15770_v4 = vld [vmem:[#allocation4 + $0x11b0] ss:$8 sps:$4 sm:$0xff]  }
0x1169   :  { %4694 = vmatpush1.bf16.msra.mxu0 %v15707_v49  ;;  %v15775_v49 = vld [vmem:[#allocation4 + $0x11c4] ss:$8 sps:$4 sm:$0xff]  }
0x116a   :  { %4695 = vmatprep.subr.bf16.mxu0 %v15712_v44  ;;  %v15773_v44 = vld [vmem:[#allocation4 + $0x11c0] ss:$8 sps:$4 sm:$0xff]  }
0x116d   :  { %4696 = vmatpush1.bf16.msra.mxu0 %v15710_v50  ;;  %v15778_v50 = vld [vmem:[#allocation4 + $0x11d4] ss:$8 sps:$4 sm:$0xff]  }
0x116e   :  { %4697 = vmatprep.subr.bf16.mxu0 %v15715_v51  ;;  %v15776_v51 = vld [vmem:[#allocation4 + $0x11d0] ss:$8 sps:$4 sm:$0xff]  }
0x1171   :  { %4698 = vmatpush1.bf16.msra.mxu0 %v15713_v55  ;;  %v15781_v55 = vld [vmem:[#allocation4 + $0x11e4] ss:$8 sps:$4 sm:$0xff]  }
0x1172   :  { %4699 = vmatprep.subr.bf16.mxu0 %v15718_v57  ;;  %v15779_v57 = vld [vmem:[#allocation4 + $0x11e0] ss:$8 sps:$4 sm:$0xff]  }
0x1175   :  { %4700 = vmatpush1.bf16.msra.mxu0 %v15716_v58  ;;  %v4259_v58 = vld [vmem:[#allocation6 + $0x21] ss:$8 sm:$0x3] }
0x1176   :  { %4701 = vmatprep.subr.bf16.mxu0 %v15721_v59  ;;  %v4264_v59 = vrot.slane %v4259_v58, %v17498_v54 }
0x1179   :  { %4702 = vmatpush1.bf16.msra.mxu0 %v15719_v60  ;;  %v4268_v60 = vrot.slane %v4259_v58, %v17501_v56  ;;  %v15832_v58 = vld [vmem:[#allocation4 + $0x12f4] ss:$8 sps:$4 sm:$0xff]  }
0x117a   :  { %4703 = vmatprep.subr.bf16.mxu0 %v15724_v61 }
0x117d   :  { %4704 = vmatpush1.bf16.msra.mxu0 %v15722_v62 }
0x117e   :  { %4705 = vmatprep.subr.bf16.mxu0 %v15727_v63 }
0x1181   :  { %4706 = vmatpush1.bf16.msra.mxu0 %v15725_v3 }
0x1182   :  { %4707 = vmatprep.subr.bf16.mxu0 %v15730_v12 }
0x1185   :  { %4708 = vmatpush1.bf16.msra.mxu0 %v15728_v5 }
0x1186   :  { %4709 = vmatprep.subr.bf16.mxu0 %v15733_v20  ;;  %v15794_v20 = vld [vmem:[#allocation4 + $0x1230] ss:$8 sps:$4 sm:$0xff]  }
0x1189   :  { %4710 = vmatpush1.bf16.msra.mxu0 %v15731_v21  ;;  %v15799_v21 = vld [vmem:[#allocation4 + $0x1244] ss:$8 sps:$4 sm:$0xff]  }
0x118a   :  { %4711 = vmatprep.subr.bf16.mxu0 %v15736_v22  ;;  %v15797_v22 = vld [vmem:[#allocation4 + $0x1240] ss:$8 sps:$4 sm:$0xff]  }
0x118d   :  { %4712 = vmatpush1.bf16.msra.mxu0 %v15734_v23  ;;  %v15802_v23 = vld [vmem:[#allocation4 + $0x1254] ss:$8 sps:$4 sm:$0xff]  }
0x1223   :  { %v4215_v8 = vpop.f32.mrb[32].mxu0 }
0x1224   :  { %v4216_v9 = vadd.f32 %v4215_v8, %v4014_v7  ;;  %v4217_v10 = vpop.f32.mrb[33].mxu0 }
0x1225   :  { %v4218_v11 = vadd.f32 %v4217_v10, %v4018_v14  ;;  %v4219_v19 = vpop.f32.mrb[34].mxu0  ;;  %v15782_v10 = vld [vmem:[#allocation4 + $0x11f0] ss:$8 sps:$4 sm:$0xff]  }
0x1226   :  { %v4222_v13 = vmax.f32 %v4216_v9, 0.0  ;;  %v4220_v15 = vpop.f32.mrb[35].mxu0  ;;  %v15784_v9 = vld [vmem:[#allocation4 + $0x11f4] ss:$8 sps:$4 sm:$0xff]   ;;  %v15787_v19 = vld [vmem:[#allocation4 + $0x1204] ss:$8 sps:$4 sm:$0xff]  }
0x1227   :  { %v4223_v16 = vmax.f32 %v4218_v11, 0.0  ;;  %v15785_v11 = vld [vmem:[#allocation4 + $0x1200] ss:$8 sps:$4 sm:$0xff]   ;;  %5082 = vmatprep.subr.bf16.mxu0 %v15787_v19  ;;  %v15788_v15 = vld [vmem:[#allocation4 + $0x1210] ss:$8 sps:$4 sm:$0xff]  }
0x1228   :  { %v4256_v18 = vpack.c.bf16 %v4222_v13, %v4222_v13  ;;  %v15790_v13 = vld [vmem:[#allocation4 + $0x1214] ss:$8 sps:$4 sm:$0xff]  }
0x1229   :  { %v4257_v17 = vpack.c.bf16 %v4223_v16, %v4223_v16  ;;  %v15793_v16 = vld [vmem:[#allocation4 + $0x1224] ss:$8 sps:$4 sm:$0xff]  }
0x122b   :  { %4463 = vmatprep.mubr.bf16.mxu1 %v4257_v17  ;;  %v15791_v17 = vld [vmem:[#allocation4 + $0x1220] ss:$8 sps:$4 sm:$0xff]  }
0x122c   :  { %4464 = vmatmul.mubr.bf16.vlgmr.msra.gmra.mrb[40].mxu1 %v4256_v18  ;;  %v15796_v18 = vld [vmem:[#allocation4 + $0x1234] ss:$8 sps:$4 sm:$0xff]  }
0x122d   :  { %4930 = vmatpush1.bf16.msra.mxu1 %v15737_v24  ;;  %v15800_v24 = vld [vmem:[#allocation4 + $0x1250] ss:$8 sps:$4 sm:$0xff]  }
0x122e   :  { %4931 = vmatprep.subr.bf16.mxu1 %v15742_v26  ;;  %v4514_v26 = vrot.slane %v4509_v25, %v17498_v54 }
0x1231   :  { %4932 = vmatpush1.bf16.msra.mxu1 %v15740_v27  ;;  %v4518_v27 = vrot.slane %v4509_v25, %v17501_v56  ;;  %v15857_v25 = vld [vmem:[#allocation4 + $0x1380] ss:$8 sps:$4 sm:$0xff]  }
0x1232   :  { %4933 = vmatprep.subr.bf16.mxu1 %v15745_v28 }
0x1235   :  { %4934 = vmatpush1.bf16.msra.mxu1 %v15743_v46 }
0x1236   :  { %4935 = vmatprep.subr.bf16.mxu1 %v15748_v29 }
0x1239   :  { %4936 = vmatpush1.bf16.msra.mxu1 %v15746_v30 }
0x123a   :  { %4937 = vmatprep.subr.bf16.mxu1 %v15751_v31 }
0x123d   :  { %4938 = vmatpush1.bf16.msra.mxu1 %v15749_v32 }
0x123e   :  { %4939 = vmatprep.subr.bf16.mxu1 %v15754_v33 }
0x1241   :  { %4940 = vmatpush1.bf16.msra.mxu1 %v15752_v34 }
0x1242   :  { %4941 = vmatprep.subr.bf16.mxu1 %v15757_v35  ;;  %v15805_v35 = vld [vmem:[#allocation4 + $0x1264] ss:$8 sps:$4 sm:$0xff]  }
0x1245   :  { %4942 = vmatpush1.bf16.msra.mxu1 %v15755_v36  ;;  %v15803_v36 = vld [vmem:[#allocation4 + $0x1260] ss:$8 sps:$4 sm:$0xff]  }
0x1246   :  { %4943 = vmatprep.subr.bf16.mxu1 %v15760_v37  ;;  %v15808_v37 = vld [vmem:[#allocation4 + $0x1274] ss:$8 sps:$4 sm:$0xff]  }
0x1249   :  { %4944 = vmatpush1.bf16.msra.mxu1 %v15758_v38  ;;  %v15806_v38 = vld [vmem:[#allocation4 + $0x1270] ss:$8 sps:$4 sm:$0xff]  }
0x124a   :  { %4945 = vmatprep.subr.bf16.mxu1 %v15763_v40  ;;  %v15809_v40 = vld [vmem:[#allocation4 + $0x1280] ss:$8 sps:$4 sm:$0xff]  }
0x124d   :  { %4946 = vmatpush1.bf16.msra.mxu1 %v15761_v42  ;;  %v15811_v42 = vld [vmem:[#allocation4 + $0x1284] ss:$8 sps:$4 sm:$0xff]  }
0x124e   :  { %4947 = vmatprep.subr.bf16.mxu1 %v15766_v43  ;;  %v15814_v43 = vld [vmem:[#allocation4 + $0x1294] ss:$8 sps:$4 sm:$0xff]  }
0x1251   :  { %4948 = vmatpush1.bf16.msra.mxu1 %v15764_v45  ;;  %v15812_v45 = vld [vmem:[#allocation4 + $0x1290] ss:$8 sps:$4 sm:$0xff]  }
0x1252   :  { %4949 = vmatprep.subr.bf16.mxu1 %v15769_v47  ;;  %v15817_v47 = vld [vmem:[#allocation4 + $0x12a4] ss:$8 sps:$4 sm:$0xff]  }
0x1255   :  { %4950 = vmatpush1.bf16.msra.mxu1 %v15767_v2  ;;  %v15815_v2 = vld [vmem:[#allocation4 + $0x12a0] ss:$8 sps:$4 sm:$0xff]  }
0x1256   :  { %4951 = vmatprep.subr.bf16.mxu1 %v15772_v48  ;;  %v15820_v48 = vld [vmem:[#allocation4 + $0x12b4] ss:$8 sps:$4 sm:$0xff]  }
0x1259   :  { %4952 = vmatpush1.bf16.msra.mxu1 %v15770_v4  ;;  %v15818_v4 = vld [vmem:[#allocation4 + $0x12b0] ss:$8 sps:$4 sm:$0xff]  }
0x125a   :  { %4953 = vmatprep.subr.bf16.mxu1 %v15775_v49  ;;  %v15823_v49 = vld [vmem:[#allocation4 + $0x12c4] ss:$8 sps:$4 sm:$0xff]  }
0x125d   :  { %4954 = vmatpush1.bf16.msra.mxu1 %v15773_v44  ;;  %v15821_v44 = vld [vmem:[#allocation4 + $0x12c0] ss:$8 sps:$4 sm:$0xff]  }
0x125e   :  { %4955 = vmatprep.subr.bf16.mxu1 %v15778_v50  ;;  %v15826_v50 = vld [vmem:[#allocation4 + $0x12d4] ss:$8 sps:$4 sm:$0xff]  }
0x1261   :  { %4956 = vmatpush1.bf16.msra.mxu1 %v15776_v51  ;;  %v15824_v51 = vld [vmem:[#allocation4 + $0x12d0] ss:$8 sps:$4 sm:$0xff]  }
0x1262   :  { %4957 = vmatprep.subr.bf16.mxu1 %v15781_v55  ;;  %v15829_v55 = vld [vmem:[#allocation4 + $0x12e4] ss:$8 sps:$4 sm:$0xff]  }
0x1265   :  { %4958 = vmatpush1.bf16.msra.mxu1 %v15779_v57  ;;  %v15827_v57 = vld [vmem:[#allocation4 + $0x12e0] ss:$8 sps:$4 sm:$0xff]  }
0x1266   :  { %4959 = vmatprep.subr.bf16.mxu1 %v15784_v9  ;;  %v15848_v9 = vld [vmem:[#allocation4 + $0x1350] ss:$8 sps:$4 sm:$0xff]  }
0x1269   :  { %4960 = vmatpush1.bf16.msra.mxu1 %v15782_v10  ;;  %v17576_v10 = vld [vmem:[#allocation6 + $0x23] ss:$8 sm:$0x3] }
0x126a   :  { %5332 = vmatprep.subr.bf16.mxu1 %v15811_v42  ;;  %v15881_v42 = vld [vmem:[#allocation4 + $0x1400] ss:$8 sps:$4 sm:$0xff]  }
0x12ff   :  { %v4465_v61 = vpop.f32.mrb[40].mxu1 }
0x1300   :  { %v4466_v62 = vadd.f32 %v4465_v61, %v4264_v59  ;;  %v4467_v63 = vpop.f32.mrb[41].mxu1  ;;  %v15830_v59 = vld [vmem:[#allocation4 + $0x12f0] ss:$8 sps:$4 sm:$0xff]   ;;  %v15833_v61 = vld [vmem:[#allocation4 + $0x1300] ss:$8 sps:$4 sm:$0xff]  }
0x1301   :  { %v4468_v3 = vadd.f32 %v4467_v63, %v4268_v60  ;;  %v4469_v12 = vpop.f32.mrb[42].mxu1  ;;  %v15835_v60 = vld [vmem:[#allocation4 + $0x1304] ss:$8 sps:$4 sm:$0xff]   ;;  %v15836_v63 = vld [vmem:[#allocation4 + $0x1310] ss:$8 sps:$4 sm:$0xff]  }
0x1302   :  { %v4472_v5 = vmax.f32 %v4466_v62, 0.0  ;;  %v4470_v6 = vpop.f32.mrb[43].mxu1  ;;  %v15838_v62 = vld [vmem:[#allocation4 + $0x1314] ss:$8 sps:$4 sm:$0xff]   ;;  %v15839_v12 = vld [vmem:[#allocation4 + $0x1320] ss:$8 sps:$4 sm:$0xff]  }
0x1303   :  { %v4473_v7 = vmax.f32 %v4468_v3, 0.0  ;;  %v15841_v3 = vld [vmem:[#allocation4 + $0x1324] ss:$8 sps:$4 sm:$0xff]   ;;  %v15842_v6 = vld [vmem:[#allocation4 + $0x1330] ss:$8 sps:$4 sm:$0xff]  }
0x1304   :  { %v4506_v8 = vpack.c.bf16 %v4472_v5, %v4472_v5  ;;  %v15844_v5 = vld [vmem:[#allocation4 + $0x1334] ss:$8 sps:$4 sm:$0xff]  }
0x1305   :  { %v4507_v14 = vpack.c.bf16 %v4473_v7, %v4473_v7  ;;  %v15847_v7 = vld [vmem:[#allocation4 + $0x1344] ss:$8 sps:$4 sm:$0xff]  }
0x1307   :  { %4713 = vmatprep.mubr.bf16.mxu0 %v4507_v14  ;;  %v15845_v14 = vld [vmem:[#allocation4 + $0x1340] ss:$8 sps:$4 sm:$0xff]  }
0x1308   :  { %4714 = vmatmul.mubr.bf16.vlgmr.msra.gmra.mrb[36].mxu0 %v4506_v8  ;;  %v15850_v8 = vld [vmem:[#allocation4 + $0x1354] ss:$8 sps:$4 sm:$0xff]  }
0x1309   :  { %5114 = vmatprep.mubr.bf16.mxu0 %v17334_v1  ;;  %5083 = vmatpush1.bf16.msra.mxu0 %v15785_v11  ;;  %v4766_v11 = vrot.slane %v17576_v10, %v17501_v56 }
0x130a   :  { %5084 = vmatprep.subr.bf16.mxu0 %v15790_v13 }
0x130d   :  { %5085 = vmatpush1.bf16.msra.mxu0 %v15788_v15 }
0x130e   :  { %5086 = vmatprep.subr.bf16.mxu0 %v15793_v16 }
0x1311   :  { %5087 = vmatpush1.bf16.msra.mxu0 %v15791_v17 }
0x1312   :  { %5088 = vmatprep.subr.bf16.mxu0 %v15796_v18 }
0x1315   :  { %5089 = vmatpush1.bf16.msra.mxu0 %v15794_v20 }
0x1316   :  { %5090 = vmatprep.subr.bf16.mxu0 %v15799_v21  ;;  %v15853_v21 = vld [vmem:[#allocation4 + $0x1364] ss:$8 sps:$4 sm:$0xff]  }
0x1319   :  { %5091 = vmatpush1.bf16.msra.mxu0 %v15797_v22  ;;  %v15851_v22 = vld [vmem:[#allocation4 + $0x1360] ss:$8 sps:$4 sm:$0xff]  }
0x131a   :  { %5092 = vmatprep.subr.bf16.mxu0 %v15802_v23  ;;  %v15856_v23 = vld [vmem:[#allocation4 + $0x1374] ss:$8 sps:$4 sm:$0xff]  }
0x131d   :  { %5093 = vmatpush1.bf16.msra.mxu0 %v15800_v24  ;;  %v15854_v24 = vld [vmem:[#allocation4 + $0x1370] ss:$8 sps:$4 sm:$0xff]  }
0x131e   :  { %5094 = vmatprep.subr.bf16.mxu0 %v15805_v35  ;;  %v15877_v35 = vld [vmem:[#allocation4 + $0x13e4] ss:$8 sps:$4 sm:$0xff]  }
0x1321   :  { %5095 = vmatpush1.bf16.msra.mxu0 %v15803_v36  ;;  %v15875_v36 = vld [vmem:[#allocation4 + $0x13e0] ss:$8 sps:$4 sm:$0xff]  }
0x1322   :  { %5096 = vmatprep.subr.bf16.mxu0 %v15808_v37  ;;  %v15880_v37 = vld [vmem:[#allocation4 + $0x13f4] ss:$8 sps:$4 sm:$0xff]  }
0x1325   :  { %5097 = vmatpush1.bf16.msra.mxu0 %v15806_v38  ;;  %v15878_v38 = vld [vmem:[#allocation4 + $0x13f0] ss:$8 sps:$4 sm:$0xff]  }
0x13db   :  { %v4715_v28 = vpop.f32.mrb[36].mxu0 }
0x13dc   :  { %v4716_v46 = vadd.f32 %v4715_v28, %v4514_v26  ;;  %v4717_v29 = vpop.f32.mrb[37].mxu0  ;;  %v15859_v26 = vld [vmem:[#allocation4 + $0x1384] ss:$8 sps:$4 sm:$0xff]   ;;  %v15860_v28 = vld [vmem:[#allocation4 + $0x1390] ss:$8 sps:$4 sm:$0xff]  }
0x13dd   :  { %v4718_v30 = vadd.f32 %v4717_v29, %v4518_v27  ;;  %v4719_v31 = vpop.f32.mrb[38].mxu0  ;;  %v15862_v27 = vld [vmem:[#allocation4 + $0x1394] ss:$8 sps:$4 sm:$0xff]   ;;  %5582 = vmatprep.subr.bf16.mxu0 %v15859_v26 }
0x13de   :  { %v4720_v32 = vpop.f32.mrb[39].mxu0  ;;  %v4754_v34 = vpack.c.bf16 %v4716_v46, %v4716_v46  ;;  %v15863_v46 = vld [vmem:[#allocation4 + $0x13a0] ss:$8 sps:$4 sm:$0xff]   ;;  %v15868_v29 = vld [vmem:[#allocation4 + $0x13b4] ss:$8 sps:$4 sm:$0xff]  }
0x13df   :  { %v4755_v33 = vpack.c.bf16 %v4718_v30, %v4718_v30  ;;  %v15866_v30 = vld [vmem:[#allocation4 + $0x13b0] ss:$8 sps:$4 sm:$0xff]   ;;  %v15871_v31 = vld [vmem:[#allocation4 + $0x13c4] ss:$8 sps:$4 sm:$0xff]   ;;  %v15869_v32 = vld [vmem:[#allocation4 + $0x13c0] ss:$8 sps:$4 sm:$0xff]  }
0x13e0   :  { %v15922_v26 = vld [vmem:[#allocation4 + $0x14d4] ss:$8 sps:$4 sm:$0xff]  }
0x13e1   :  { %4961 = vmatprep.mubr.bf16.mxu1 %v4755_v33  ;;  %v15874_v33 = vld [vmem:[#allocation4 + $0x13d4] ss:$8 sps:$4 sm:$0xff]  }
0x13e2   :  { %4962 = vmatmul.mubr.bf16.vlgmr.msra.gmra.mrb[44].mxu1 %v4754_v34  ;;  %v15872_v34 = vld [vmem:[#allocation4 + $0x13d0] ss:$8 sps:$4 sm:$0xff]  }
0x13e3   :  { %5333 = vmatpush1.bf16.msra.mxu1 %v15809_v40  ;;  %v15883_v40 = vld [vmem:[#allocation4 + $0x1404] ss:$8 sps:$4 sm:$0xff]  }
0x13e4   :  { %5334 = vmatprep.subr.bf16.mxu1 %v15814_v43  ;;  %v15886_v43 = vld [vmem:[#allocation4 + $0x1414] ss:$8 sps:$4 sm:$0xff]  }
0x13e7   :  { %5335 = vmatpush1.bf16.msra.mxu1 %v15812_v45  ;;  %v15884_v45 = vld [vmem:[#allocation4 + $0x1410] ss:$8 sps:$4 sm:$0xff]  }
0x13e8   :  { %5336 = vmatprep.subr.bf16.mxu1 %v15817_v47  ;;  %v15889_v47 = vld [vmem:[#allocation4 + $0x1424] ss:$8 sps:$4 sm:$0xff]  }
0x13eb   :  { %5337 = vmatpush1.bf16.msra.mxu1 %v15815_v2  ;;  %v15887_v2 = vld [vmem:[#allocation4 + $0x1420] ss:$8 sps:$4 sm:$0xff]  }
0x13ec   :  { %5338 = vmatprep.subr.bf16.mxu1 %v15820_v48  ;;  %v15892_v48 = vld [vmem:[#allocation4 + $0x1434] ss:$8 sps:$4 sm:$0xff]  }
0x13ef   :  { %5339 = vmatpush1.bf16.msra.mxu1 %v15818_v4  ;;  %v15890_v4 = vld [vmem:[#allocation4 + $0x1430] ss:$8 sps:$4 sm:$0xff]  }
0x13f0   :  { %5340 = vmatprep.subr.bf16.mxu1 %v15823_v49  ;;  %v15895_v49 = vld [vmem:[#allocation4 + $0x1444] ss:$8 sps:$4 sm:$0xff]  }
0x13f3   :  { %5341 = vmatpush1.bf16.msra.mxu1 %v15821_v44  ;;  %v15893_v44 = vld [vmem:[#allocation4 + $0x1440] ss:$8 sps:$4 sm:$0xff]  }
0x13f4   :  { %5342 = vmatprep.subr.bf16.mxu1 %v15826_v50  ;;  %v15898_v50 = vld [vmem:[#allocation4 + $0x1454] ss:$8 sps:$4 sm:$0xff]  }
0x13f7   :  { %5343 = vmatpush1.bf16.msra.mxu1 %v15824_v51  ;;  %v15896_v51 = vld [vmem:[#allocation4 + $0x1450] ss:$8 sps:$4 sm:$0xff]  }
0x13f8   :  { %5344 = vmatprep.subr.bf16.mxu1 %v15829_v55  ;;  %v4990_v55 = vld [vmem:[#allocation6 + $0x24] ss:$8 sm:$0x3] }
0x13fb   :  { %5345 = vmatpush1.bf16.msra.mxu1 %v15827_v57  ;;  %v4995_v57 = vrot.slane %v4990_v55, %v17498_v54 }
0x13fc   :  { %5346 = vmatprep.subr.bf16.mxu1 %v15832_v58  ;;  %v4999_v58 = vrot.slane %v4990_v55, %v17501_v56 }
0x13ff   :  { %5347 = vmatpush1.bf16.msra.mxu1 %v15830_v59 }
0x1400   :  { %5348 = vmatprep.subr.bf16.mxu1 %v15835_v60 }
0x1403   :  { %5349 = vmatpush1.bf16.msra.mxu1 %v15833_v61 }
0x1404   :  { %5350 = vmatprep.subr.bf16.mxu1 %v15838_v62 }
0x1407   :  { %5351 = vmatpush1.bf16.msra.mxu1 %v15836_v63 }
0x1408   :  { %5352 = vmatprep.subr.bf16.mxu1 %v15841_v3 }
0x140b   :  { %5353 = vmatpush1.bf16.msra.mxu1 %v15839_v12 }
0x140c   :  { %5354 = vmatprep.subr.bf16.mxu1 %v15844_v5 }
0x140f   :  { %5355 = vmatpush1.bf16.msra.mxu1 %v15842_v6 }
0x1410   :  { %5356 = vmatprep.subr.bf16.mxu1 %v15847_v7 }
0x1413   :  { %5357 = vmatpush1.bf16.msra.mxu1 %v15845_v14  ;;  %v15901_v14 = vld [vmem:[#allocation4 + $0x1464] ss:$8 sps:$4 sm:$0xff]  }
0x1414   :  { %5358 = vmatprep.subr.bf16.mxu1 %v15850_v8  ;;  %v15899_v8 = vld [vmem:[#allocation4 + $0x1460] ss:$8 sps:$4 sm:$0xff]  }
0x1417   :  { %5359 = vmatpush1.bf16.msra.mxu1 %v15848_v9  ;;  %v15904_v9 = vld [vmem:[#allocation4 + $0x1474] ss:$8 sps:$4 sm:$0xff]  }
0x1418   :  { %5360 = vmatprep.subr.bf16.mxu1 %v15853_v21  ;;  %v15911_v21 = vld [vmem:[#allocation4 + $0x14a0] ss:$8 sps:$4 sm:$0xff]  }
0x141b   :  { %5361 = vmatpush1.bf16.msra.mxu1 %v15851_v22  ;;  %v15916_v22 = vld [vmem:[#allocation4 + $0x14b4] ss:$8 sps:$4 sm:$0xff]  }
0x141c   :  { %5362 = vmatprep.subr.bf16.mxu1 %v15856_v23  ;;  %v15914_v23 = vld [vmem:[#allocation4 + $0x14b0] ss:$8 sps:$4 sm:$0xff]  }
0x141f   :  { %5363 = vmatpush1.bf16.msra.mxu1 %v15854_v24  ;;  %v15919_v24 = vld [vmem:[#allocation4 + $0x14c4] ss:$8 sps:$4 sm:$0xff]  }
0x14b5   :  { %v17580_v19 = vpop.f32.mrb[44].mxu1 }
0x14b6   :  { %v4965_v13 = vpop.f32.mrb[45].mxu1 }
0x14b7   :  { %v4966_v15 = vadd.f32 %v4965_v13, %v4766_v11  ;;  %v4967_v16 = vpop.f32.mrb[46].mxu1  ;;  %v15902_v11 = vld [vmem:[#allocation4 + $0x1470] ss:$8 sps:$4 sm:$0xff]   ;;  %v15905_v13 = vld [vmem:[#allocation4 + $0x1480] ss:$8 sps:$4 sm:$0xff]  }
0x14b8   :  { %v4968_v17 = vpop.f32.mrb[47].mxu1  ;;  %v15910_v16 = vld [vmem:[#allocation4 + $0x1494] ss:$8 sps:$4 sm:$0xff]  }
0x14b9   :  { %v17583_v18 = vsub.f32 %v17559_v41, %v4966_v15  ;;  %v15865_v41 = vld [vmem:[#allocation4 + $0x13a4] ss:$8 sps:$4 sm:$0xff]   ;;  %v15908_v17 = vld [vmem:[#allocation4 + $0x1490] ss:$8 sps:$4 sm:$0xff]  }
0x14ba   :  { %v15907_v15 = vld [vmem:[#allocation4 + $0x1484] ss:$8 sps:$4 sm:$0xff]  }
0x14bb   :  { %v4988_v20 = vpack.c.bf16 %v17583_v18, %v17583_v18  ;;  %5832 = vmatprep.subr.bf16.mxu1 %v15907_v15  ;;  %v15970_v15 = vld [vmem:[#allocation4 + $0x15d4] ss:$8 sps:$4 sm:$0xff]  }
0x14bd   :  { %5115 = vmatmul.mubr.bf16.vlgmr.msra.gmra.mrb[40].mxu0 %v4988_v20  ;;  %v15913_v20 = vld [vmem:[#allocation4 + $0x14a4] ss:$8 sps:$4 sm:$0xff]  }
0x14be   :  { %5583 = vmatpush1.bf16.msra.mxu0 %v15857_v25  ;;  %v15917_v25 = vld [vmem:[#allocation4 + $0x14c0] ss:$8 sps:$4 sm:$0xff]  }
0x14bf   :  { %5584 = vmatprep.subr.bf16.mxu0 %v15862_v27  ;;  %v15920_v27 = vld [vmem:[#allocation4 + $0x14d0] ss:$8 sps:$4 sm:$0xff]  }
0x14c2   :  { %5585 = vmatpush1.bf16.msra.mxu0 %v15860_v28  ;;  %v15925_v28 = vld [vmem:[#allocation4 + $0x14e4] ss:$8 sps:$4 sm:$0xff]  }
0x14c3   :  { %5586 = vmatprep.subr.bf16.mxu0 %v15865_v41  ;;  %v15923_v41 = vld [vmem:[#allocation4 + $0x14e0] ss:$8 sps:$4 sm:$0xff]  }
0x14c6   :  { %5587 = vmatpush1.bf16.msra.mxu0 %v15863_v46  ;;  %v15928_v46 = vld [vmem:[#allocation4 + $0x14f4] ss:$8 sps:$4 sm:$0xff]  }
0x14c7   :  { %5588 = vmatprep.subr.bf16.mxu0 %v15868_v29  ;;  %v15926_v29 = vld [vmem:[#allocation4 + $0x14f0] ss:$8 sps:$4 sm:$0xff]  }
0x14ca   :  { %5589 = vmatpush1.bf16.msra.mxu0 %v15866_v30  ;;  %v15931_v30 = vld [vmem:[#allocation4 + $0x1504] ss:$8 sps:$4 sm:$0xff]  }
0x14cb   :  { %5590 = vmatprep.subr.bf16.mxu0 %v15871_v31  ;;  %v15929_v31 = vld [vmem:[#allocation4 + $0x1500] ss:$8 sps:$4 sm:$0xff]  }
0x14ce   :  { %5591 = vmatpush1.bf16.msra.mxu0 %v15869_v32  ;;  %v15934_v32 = vld [vmem:[#allocation4 + $0x1514] ss:$8 sps:$4 sm:$0xff]  }
0x14cf   :  { %5592 = vmatprep.subr.bf16.mxu0 %v15874_v33  ;;  %v15932_v33 = vld [vmem:[#allocation4 + $0x1510] ss:$8 sps:$4 sm:$0xff]  }
0x14d2   :  { %5593 = vmatpush1.bf16.msra.mxu0 %v15872_v34  ;;  %v15937_v34 = vld [vmem:[#allocation4 + $0x1524] ss:$8 sps:$4 sm:$0xff]  }
0x14d3   :  { %5594 = vmatprep.subr.bf16.mxu0 %v15877_v35  ;;  %v15935_v35 = vld [vmem:[#allocation4 + $0x1520] ss:$8 sps:$4 sm:$0xff]  }
0x14d6   :  { %5595 = vmatpush1.bf16.msra.mxu0 %v15875_v36  ;;  %v15940_v36 = vld [vmem:[#allocation4 + $0x1534] ss:$8 sps:$4 sm:$0xff]  }
0x14d7   :  { %5596 = vmatprep.subr.bf16.mxu0 %v15880_v37  ;;  %v15938_v37 = vld [vmem:[#allocation4 + $0x1530] ss:$8 sps:$4 sm:$0xff]  }
0x14da   :  { %5597 = vmatpush1.bf16.msra.mxu0 %v15878_v38  ;;  %v15943_v38 = vld [vmem:[#allocation4 + $0x1544] ss:$8 sps:$4 sm:$0xff]  }
0x14db   :  { %5598 = vmatprep.subr.bf16.mxu0 %v15883_v40  ;;  %v15941_v40 = vld [vmem:[#allocation4 + $0x1540] ss:$8 sps:$4 sm:$0xff]  }
0x14de   :  { %5599 = vmatpush1.bf16.msra.mxu0 %v15881_v42  ;;  %v15946_v42 = vld [vmem:[#allocation4 + $0x1554] ss:$8 sps:$4 sm:$0xff]  }
0x14df   :  { %5600 = vmatprep.subr.bf16.mxu0 %v15886_v43  ;;  %v15944_v43 = vld [vmem:[#allocation4 + $0x1550] ss:$8 sps:$4 sm:$0xff]  }
0x14e2   :  { %5601 = vmatpush1.bf16.msra.mxu0 %v15884_v45  ;;  %v5160_v45 = vld [vmem:[#allocation6 + $0x25] ss:$8 sm:$0x3] }
0x14e3   :  { %5602 = vmatprep.subr.bf16.mxu0 %v15889_v47  ;;  %v5165_v47 = vrot.slane %v5160_v45, %v17498_v54 }
0x14e6   :  { %5603 = vmatpush1.bf16.msra.mxu0 %v15887_v2  ;;  %v5169_v2 = vrot.slane %v5160_v45, %v17501_v56 }
0x14e7   :  { %5604 = vmatprep.subr.bf16.mxu0 %v15892_v48 }
0x14ea   :  { %5605 = vmatpush1.bf16.msra.mxu0 %v15890_v4 }
0x14eb   :  { %5606 = vmatprep.subr.bf16.mxu0 %v15895_v49 }
0x14ee   :  { %5607 = vmatpush1.bf16.msra.mxu0 %v15893_v44 }
0x14ef   :  { %5608 = vmatprep.subr.bf16.mxu0 %v15898_v50 }
0x14f2   :  { %5609 = vmatpush1.bf16.msra.mxu0 %v15896_v51 }
0x14f3   :  { %5610 = vmatprep.subr.bf16.mxu0 %v15901_v14  ;;  %v15959_v14 = vld [vmem:[#allocation4 + $0x15a0] ss:$8 sps:$4 sm:$0xff]  }
0x14f6   :  { %5611 = vmatpush1.bf16.msra.mxu0 %v15899_v8  ;;  %v15964_v8 = vld [vmem:[#allocation4 + $0x15b4] ss:$8 sps:$4 sm:$0xff]  }
0x14f7   :  { %5612 = vmatprep.subr.bf16.mxu0 %v15904_v9  ;;  %v15962_v9 = vld [vmem:[#allocation4 + $0x15b0] ss:$8 sps:$4 sm:$0xff]  }
0x14fa   :  { %5613 = vmatpush1.bf16.msra.mxu0 %v15902_v11  ;;  %v15967_v11 = vld [vmem:[#allocation4 + $0x15c4] ss:$8 sps:$4 sm:$0xff]  }
0x1590   :  { %v5116_v59 = vpop.f32.mrb[40].mxu0 }
0x1591   :  { %v5117_v60 = vadd.f32 %v5116_v59, %v4995_v57  ;;  %v5118_v61 = vpop.f32.mrb[41].mxu0 }
0x1592   :  { %v5119_v62 = vadd.f32 %v5118_v61, %v4999_v58  ;;  %v5120_v63 = vpop.f32.mrb[42].mxu0  ;;  %v15947_v61 = vld [vmem:[#allocation4 + $0x1560] ss:$8 sps:$4 sm:$0xff]  }
0x1593   :  { %v5123_v3 = vmax.f32 %v5117_v60, 0.0  ;;  %v5121_v12 = vpop.f32.mrb[43].mxu0  ;;  %v15949_v60 = vld [vmem:[#allocation4 + $0x1564] ss:$8 sps:$4 sm:$0xff]   ;;  %v15950_v63 = vld [vmem:[#allocation4 + $0x1570] ss:$8 sps:$4 sm:$0xff]  }
0x1594   :  { %v5124_v5 = vmax.f32 %v5119_v62, 0.0  ;;  %v15952_v62 = vld [vmem:[#allocation4 + $0x1574] ss:$8 sps:$4 sm:$0xff]   ;;  %v15955_v12 = vld [vmem:[#allocation4 + $0x1584] ss:$8 sps:$4 sm:$0xff]  }
0x1595   :  { %v5157_v7 = vpack.c.bf16 %v5123_v3, %v5123_v3  ;;  %v15953_v3 = vld [vmem:[#allocation4 + $0x1580] ss:$8 sps:$4 sm:$0xff]   ;;  %6080 = vmatprep.subr.bf16.mxu0 %v15955_v12  ;;  %v16018_v12 = vld [vmem:[#allocation4 + $0x16d4] ss:$8 sps:$4 sm:$0xff]  }
0x1596   :  { %v5158_v6 = vpack.c.bf16 %v5124_v5, %v5124_v5  ;;  %v15958_v5 = vld [vmem:[#allocation4 + $0x1594] ss:$8 sps:$4 sm:$0xff]  }
0x1598   :  { %5364 = vmatprep.mubr.bf16.mxu1 %v5158_v6  ;;  %v15956_v6 = vld [vmem:[#allocation4 + $0x1590] ss:$8 sps:$4 sm:$0xff]  }
0x1599   :  { %5365 = vmatmul.mubr.bf16.vlgmr.msra.gmra.mrb[48].mxu1 %v5157_v7  ;;  %v15961_v7 = vld [vmem:[#allocation4 + $0x15a4] ss:$8 sps:$4 sm:$0xff]  }
0x159a   :  { %5833 = vmatpush1.bf16.msra.mxu1 %v15905_v13  ;;  %v15965_v13 = vld [vmem:[#allocation4 + $0x15c0] ss:$8 sps:$4 sm:$0xff]  }
0x159b   :  { %5834 = vmatprep.subr.bf16.mxu1 %v15910_v16  ;;  %v15968_v16 = vld [vmem:[#allocation4 + $0x15d0] ss:$8 sps:$4 sm:$0xff]  }
0x159e   :  { %5835 = vmatpush1.bf16.msra.mxu1 %v15908_v17  ;;  %v15973_v17 = vld [vmem:[#allocation4 + $0x15e4] ss:$8 sps:$4 sm:$0xff]  }
0x159f   :  { %5836 = vmatprep.subr.bf16.mxu1 %v15913_v20  ;;  %v15971_v20 = vld [vmem:[#allocation4 + $0x15e0] ss:$8 sps:$4 sm:$0xff]  }
0x15a2   :  { %5837 = vmatpush1.bf16.msra.mxu1 %v15911_v21  ;;  %v15976_v21 = vld [vmem:[#allocation4 + $0x15f4] ss:$8 sps:$4 sm:$0xff]  }
0x15a3   :  { %5838 = vmatprep.subr.bf16.mxu1 %v15916_v22  ;;  %v15974_v22 = vld [vmem:[#allocation4 + $0x15f0] ss:$8 sps:$4 sm:$0xff]  }
0x15a6   :  { %5839 = vmatpush1.bf16.msra.mxu1 %v15914_v23  ;;  %v15979_v23 = vld [vmem:[#allocation4 + $0x1604] ss:$8 sps:$4 sm:$0xff]  }
0x15a7   :  { %5840 = vmatprep.subr.bf16.mxu1 %v15919_v24  ;;  %v15977_v24 = vld [vmem:[#allocation4 + $0x1600] ss:$8 sps:$4 sm:$0xff]  }
0x15aa   :  { %5841 = vmatpush1.bf16.msra.mxu1 %v15917_v25  ;;  %v15982_v25 = vld [vmem:[#allocation4 + $0x1614] ss:$8 sps:$4 sm:$0xff]  }
0x15ab   :  { %5842 = vmatprep.subr.bf16.mxu1 %v15922_v26  ;;  %v15980_v26 = vld [vmem:[#allocation4 + $0x1610] ss:$8 sps:$4 sm:$0xff]  }
0x15ae   :  { %5843 = vmatpush1.bf16.msra.mxu1 %v15920_v27  ;;  %v15985_v27 = vld [vmem:[#allocation4 + $0x1624] ss:$8 sps:$4 sm:$0xff]  }
0x15af   :  { %5844 = vmatprep.subr.bf16.mxu1 %v15925_v28  ;;  %v15983_v28 = vld [vmem:[#allocation4 + $0x1620] ss:$8 sps:$4 sm:$0xff]  }
0x15b2   :  { %5845 = vmatpush1.bf16.msra.mxu1 %v15923_v41  ;;  %v15988_v41 = vld [vmem:[#allocation4 + $0x1634] ss:$8 sps:$4 sm:$0xff]  }
0x15b3   :  { %5846 = vmatprep.subr.bf16.mxu1 %v15928_v46  ;;  %v15986_v46 = vld [vmem:[#allocation4 + $0x1630] ss:$8 sps:$4 sm:$0xff]  }
0x15b6   :  { %5847 = vmatpush1.bf16.msra.mxu1 %v15926_v29  ;;  %v15991_v29 = vld [vmem:[#allocation4 + $0x1644] ss:$8 sps:$4 sm:$0xff]  }
0x15b7   :  { %5848 = vmatprep.subr.bf16.mxu1 %v15931_v30  ;;  %v15989_v30 = vld [vmem:[#allocation4 + $0x1640] ss:$8 sps:$4 sm:$0xff]  }
0x15ba   :  { %5849 = vmatpush1.bf16.msra.mxu1 %v15929_v31  ;;  %v15994_v31 = vld [vmem:[#allocation4 + $0x1654] ss:$8 sps:$4 sm:$0xff]  }
0x15bb   :  { %5850 = vmatprep.subr.bf16.mxu1 %v15934_v32  ;;  %v15992_v32 = vld [vmem:[#allocation4 + $0x1650] ss:$8 sps:$4 sm:$0xff]  }
0x15be   :  { %5851 = vmatpush1.bf16.msra.mxu1 %v15932_v33  ;;  %v15997_v33 = vld [vmem:[#allocation4 + $0x1664] ss:$8 sps:$4 sm:$0xff]  }
0x15bf   :  { %5852 = vmatprep.subr.bf16.mxu1 %v15937_v34  ;;  %v15995_v34 = vld [vmem:[#allocation4 + $0x1660] ss:$8 sps:$4 sm:$0xff]  }
0x15c2   :  { %5853 = vmatpush1.bf16.msra.mxu1 %v15935_v35  ;;  %v5410_v35 = vld [vmem:[#allocation6 + $0x26] ss:$8 sm:$0x3] }
0x15c3   :  { %5854 = vmatprep.subr.bf16.mxu1 %v15940_v36  ;;  %v5415_v36 = vrot.slane %v5410_v35, %v17498_v54 }
0x15c6   :  { %5855 = vmatpush1.bf16.msra.mxu1 %v15938_v37  ;;  %v5419_v37 = vrot.slane %v5410_v35, %v17501_v56  ;;  %v16045_v35 = vld [vmem:[#allocation4 + $0x1764] ss:$8 sps:$4 sm:$0xff]  }
0x15c7   :  { %5856 = vmatprep.subr.bf16.mxu1 %v15943_v38 }
0x15ca   :  { %5857 = vmatpush1.bf16.msra.mxu1 %v15941_v40 }
0x15cb   :  { %5858 = vmatprep.subr.bf16.mxu1 %v15946_v42 }
0x15ce   :  { %5859 = vmatpush1.bf16.msra.mxu1 %v15944_v43 }
0x15cf   :  { %5860 = vmatprep.subr.bf16.mxu1 %v15949_v60  ;;  %v16007_v60 = vld [vmem:[#allocation4 + $0x16a0] ss:$8 sps:$4 sm:$0xff]  }
0x15d2   :  { %5861 = vmatpush1.bf16.msra.mxu1 %v15947_v61  ;;  %v16012_v61 = vld [vmem:[#allocation4 + $0x16b4] ss:$8 sps:$4 sm:$0xff]  }
0x15d3   :  { %5862 = vmatprep.subr.bf16.mxu1 %v15952_v62  ;;  %v16010_v62 = vld [vmem:[#allocation4 + $0x16b0] ss:$8 sps:$4 sm:$0xff]  }
0x15d6   :  { %5863 = vmatpush1.bf16.msra.mxu1 %v15950_v63  ;;  %v16015_v63 = vld [vmem:[#allocation4 + $0x16c4] ss:$8 sps:$4 sm:$0xff]  }
0x166c   :  { %v5366_v48 = vpop.f32.mrb[48].mxu1 }
0x166d   :  { %v5367_v4 = vadd.f32 %v5366_v48, %v5165_v47  ;;  %v5368_v49 = vpop.f32.mrb[49].mxu1 }
0x166e   :  { %v5369_v44 = vadd.f32 %v5368_v49, %v5169_v2  ;;  %v5370_v50 = vpop.f32.mrb[50].mxu1 }
0x166f   :  { %v5373_v51 = vmax.f32 %v5367_v4, 0.0  ;;  %v5371_v55 = vpop.f32.mrb[51].mxu1  ;;  %v15998_v50 = vld [vmem:[#allocation4 + $0x1670] ss:$8 sps:$4 sm:$0xff]  }
0x1670   :  { %v5374_v57 = vmax.f32 %v5369_v44, 0.0  ;;  %v16000_v44 = vld [vmem:[#allocation4 + $0x1674] ss:$8 sps:$4 sm:$0xff]   ;;  %v16003_v55 = vld [vmem:[#allocation4 + $0x1684] ss:$8 sps:$4 sm:$0xff]  }
0x1671   :  { %v5407_v59 = vpack.c.bf16 %v5373_v51, %v5373_v51  ;;  %v16001_v51 = vld [vmem:[#allocation4 + $0x1680] ss:$8 sps:$4 sm:$0xff]   ;;  %6233 = vmatprep.subr.bf16.mxu1 %v16003_v55  ;;  %v5908_v55 = vld [vmem:[#allocation6 + $0x30] ss:$8 sm:$0x3] }
0x1672   :  { %v5408_v58 = vpack.c.bf16 %v5374_v57, %v5374_v57  ;;  %v16006_v57 = vld [vmem:[#allocation4 + $0x1694] ss:$8 sps:$4 sm:$0xff]  }
0x1674   :  { %5614 = vmatprep.mubr.bf16.mxu0 %v5408_v58  ;;  %v16004_v58 = vld [vmem:[#allocation4 + $0x1690] ss:$8 sps:$4 sm:$0xff]  }
0x1675   :  { %5615 = vmatmul.mubr.bf16.vlgmr.msra.gmra.mrb[44].mxu0 %v5407_v59  ;;  %v16009_v59 = vld [vmem:[#allocation4 + $0x16a4] ss:$8 sps:$4 sm:$0xff]  }
0x1676   :  { %6081 = vmatpush1.bf16.msra.mxu0 %v15953_v3  ;;  %v16013_v3 = vld [vmem:[#allocation4 + $0x16c0] ss:$8 sps:$4 sm:$0xff]  }
0x1677   :  { %6082 = vmatprep.subr.bf16.mxu0 %v15958_v5  ;;  %v16016_v5 = vld [vmem:[#allocation4 + $0x16d0] ss:$8 sps:$4 sm:$0xff]  }
0x167a   :  { %6083 = vmatpush1.bf16.msra.mxu0 %v15956_v6  ;;  %v5660_v6 = vld [vmem:[#allocation6 + $0x27] ss:$8 sm:$0x3] }
0x167b   :  { %6084 = vmatprep.subr.bf16.mxu0 %v15961_v7  ;;  %v5665_v7 = vrot.slane %v5660_v6, %v17498_v54 }
0x167e   :  { %6085 = vmatpush1.bf16.msra.mxu0 %v15959_v14  ;;  %v5669_v14 = vrot.slane %v5660_v6, %v17501_v56 }
0x167f   :  { %6086 = vmatprep.subr.bf16.mxu0 %v15964_v8 }
0x1682   :  { %6087 = vmatpush1.bf16.msra.mxu0 %v15962_v9 }
0x1683   :  { %6088 = vmatprep.subr.bf16.mxu0 %v15967_v11 }
0x1686   :  { %6089 = vmatpush1.bf16.msra.mxu0 %v15965_v13 }
0x1687   :  { %6090 = vmatprep.subr.bf16.mxu0 %v15970_v15 }
0x168a   :  { %6091 = vmatpush1.bf16.msra.mxu0 %v15968_v16 }
0x168b   :  { %6092 = vmatprep.subr.bf16.mxu0 %v15973_v17 }
0x168e   :  { %6093 = vmatpush1.bf16.msra.mxu0 %v15971_v20 }
0x168f   :  { %6094 = vmatprep.subr.bf16.mxu0 %v15976_v21  ;;  %v16021_v21 = vld [vmem:[#allocation4 + $0x16e4] ss:$8 sps:$4 sm:$0xff]  }
0x1692   :  { %6095 = vmatpush1.bf16.msra.mxu0 %v15974_v22  ;;  %v16019_v22 = vld [vmem:[#allocation4 + $0x16e0] ss:$8 sps:$4 sm:$0xff]  }
0x1693   :  { %6096 = vmatprep.subr.bf16.mxu0 %v15979_v23  ;;  %v16024_v23 = vld [vmem:[#allocation4 + $0x16f4] ss:$8 sps:$4 sm:$0xff]  }
0x1696   :  { %6097 = vmatpush1.bf16.msra.mxu0 %v15977_v24  ;;  %v16022_v24 = vld [vmem:[#allocation4 + $0x16f0] ss:$8 sps:$4 sm:$0xff]  }
0x1697   :  { %6098 = vmatprep.subr.bf16.mxu0 %v15982_v25  ;;  %v16025_v25 = vld [vmem:[#allocation4 + $0x1700] ss:$8 sps:$4 sm:$0xff]  }
0x169a   :  { %6099 = vmatpush1.bf16.msra.mxu0 %v15980_v26  ;;  %v16027_v26 = vld [vmem:[#allocation4 + $0x1704] ss:$8 sps:$4 sm:$0xff]  }
0x169b   :  { %6100 = vmatprep.subr.bf16.mxu0 %v15985_v27  ;;  %v16030_v27 = vld [vmem:[#allocation4 + $0x1714] ss:$8 sps:$4 sm:$0xff]  }
0x169e   :  { %6101 = vmatpush1.bf16.msra.mxu0 %v15983_v28  ;;  %v16028_v28 = vld [vmem:[#allocation4 + $0x1710] ss:$8 sps:$4 sm:$0xff]  }
0x169f   :  { %6102 = vmatprep.subr.bf16.mxu0 %v15988_v41  ;;  %v16033_v41 = vld [vmem:[#allocation4 + $0x1724] ss:$8 sps:$4 sm:$0xff]  }
0x16a2   :  { %6103 = vmatpush1.bf16.msra.mxu0 %v15986_v46  ;;  %v16031_v46 = vld [vmem:[#allocation4 + $0x1720] ss:$8 sps:$4 sm:$0xff]  }
0x16a3   :  { %6104 = vmatprep.subr.bf16.mxu0 %v15991_v29  ;;  %v16036_v29 = vld [vmem:[#allocation4 + $0x1734] ss:$8 sps:$4 sm:$0xff]  }
0x16a6   :  { %6105 = vmatpush1.bf16.msra.mxu0 %v15989_v30  ;;  %v16034_v30 = vld [vmem:[#allocation4 + $0x1730] ss:$8 sps:$4 sm:$0xff]  }
0x16a7   :  { %6106 = vmatprep.subr.bf16.mxu0 %v15994_v31  ;;  %v16039_v31 = vld [vmem:[#allocation4 + $0x1744] ss:$8 sps:$4 sm:$0xff]  }
0x16aa   :  { %6107 = vmatpush1.bf16.msra.mxu0 %v15992_v32  ;;  %v16037_v32 = vld [vmem:[#allocation4 + $0x1740] ss:$8 sps:$4 sm:$0xff]  }
0x16ab   :  { %6108 = vmatprep.subr.bf16.mxu0 %v15997_v33  ;;  %v16042_v33 = vld [vmem:[#allocation4 + $0x1754] ss:$8 sps:$4 sm:$0xff]  }
0x16ae   :  { %6109 = vmatpush1.bf16.msra.mxu0 %v15995_v34  ;;  %v16040_v34 = vld [vmem:[#allocation4 + $0x1750] ss:$8 sps:$4 sm:$0xff]  }
0x16af   :  { %6110 = vmatprep.subr.bf16.mxu0 %v16000_v44  ;;  %v16061_v44 = vld [vmem:[#allocation4 + $0x17c0] ss:$8 sps:$4 sm:$0xff]  }
0x16b2   :  { %6111 = vmatpush1.bf16.msra.mxu0 %v15998_v50  ;;  %v16066_v50 = vld [vmem:[#allocation4 + $0x17d4] ss:$8 sps:$4 sm:$0xff]  }
0x16b3   :  { %6483 = vmatprep.subr.bf16.mxu0 %v16027_v26  ;;  %v16093_v26 = vld [vmem:[#allocation4 + $0x1864] ss:$8 sps:$4 sm:$0xff]  }
0x1748   :  { %v5616_v38 = vpop.f32.mrb[44].mxu0 }
0x1749   :  { %v5617_v40 = vadd.f32 %v5616_v38, %v5415_v36  ;;  %v5618_v42 = vpop.f32.mrb[45].mxu0  ;;  %v16043_v36 = vld [vmem:[#allocation4 + $0x1760] ss:$8 sps:$4 sm:$0xff]   ;;  %v16046_v38 = vld [vmem:[#allocation4 + $0x1770] ss:$8 sps:$4 sm:$0xff]  }
0x174a   :  { %v5619_v43 = vadd.f32 %v5618_v42, %v5419_v37  ;;  %v5620_v45 = vpop.f32.mrb[46].mxu0  ;;  %v16048_v37 = vld [vmem:[#allocation4 + $0x1774] ss:$8 sps:$4 sm:$0xff]   ;;  %v16049_v42 = vld [vmem:[#allocation4 + $0x1780] ss:$8 sps:$4 sm:$0xff]  }
0x174b   :  { %v5623_v47 = vmax.f32 %v5617_v40, 0.0  ;;  %v5621_v2 = vpop.f32.mrb[47].mxu0  ;;  %v16051_v40 = vld [vmem:[#allocation4 + $0x1784] ss:$8 sps:$4 sm:$0xff]   ;;  %v16052_v45 = vld [vmem:[#allocation4 + $0x1790] ss:$8 sps:$4 sm:$0xff]  }
0x174c   :  { %v5624_v48 = vmax.f32 %v5619_v43, 0.0  ;;  %v16054_v43 = vld [vmem:[#allocation4 + $0x1794] ss:$8 sps:$4 sm:$0xff]   ;;  %v16055_v2 = vld [vmem:[#allocation4 + $0x17a0] ss:$8 sps:$4 sm:$0xff]  }
0x174d   :  { %v5657_v49 = vpack.c.bf16 %v5623_v47, %v5623_v47  ;;  %v16057_v47 = vld [vmem:[#allocation4 + $0x17a4] ss:$8 sps:$4 sm:$0xff]  }
0x174e   :  { %v5658_v4 = vpack.c.bf16 %v5624_v48, %v5624_v48  ;;  %v16060_v48 = vld [vmem:[#allocation4 + $0x17b4] ss:$8 sps:$4 sm:$0xff]  }
0x1750   :  { %5864 = vmatprep.mubr.bf16.mxu1 %v5658_v4  ;;  %v16058_v4 = vld [vmem:[#allocation4 + $0x17b0] ss:$8 sps:$4 sm:$0xff]  }
0x1751   :  { %5865 = vmatmul.mubr.bf16.vlgmr.msra.gmra.mrb[52].mxu1 %v5657_v49  ;;  %v16063_v49 = vld [vmem:[#allocation4 + $0x17c4] ss:$8 sps:$4 sm:$0xff]  }
0x1752   :  { %6265 = vmatprep.mubr.bf16.mxu1 %v17334_v1  ;;  %6234 = vmatpush1.bf16.msra.mxu1 %v16001_v51  ;;  %v16064_v51 = vld [vmem:[#allocation4 + $0x17d0] ss:$8 sps:$4 sm:$0xff]  }
0x1753   :  { %6235 = vmatprep.subr.bf16.mxu1 %v16006_v57  ;;  %v4762_v57 = vrot.slane %v17576_v10, %v17498_v54 }
0x1756   :  { %6236 = vmatpush1.bf16.msra.mxu1 %v16004_v58  ;;  %v5913_v58 = vrot.slane %v5908_v55, %v17498_v54 }
0x1757   :  { %6237 = vmatprep.subr.bf16.mxu1 %v16009_v59  ;;  %v5917_v59 = vrot.slane %v5908_v55, %v17501_v56 }
0x175a   :  { %6238 = vmatpush1.bf16.msra.mxu1 %v16007_v60 }
0x175b   :  { %6239 = vmatprep.subr.bf16.mxu1 %v16012_v61  ;;  %v4964_v61 = vadd.f32 %v17580_v19, %v4762_v57  ;;  %v16070_v19 = vld [vmem:[#allocation4 + $0x17f0] ss:$8 sps:$4 sm:$0xff]  }
0x175e   :  { %6240 = vmatpush1.bf16.msra.mxu1 %v16010_v62 }
0x175f   :  { %6241 = vmatprep.subr.bf16.mxu1 %v16015_v63 }
0x1762   :  { %6242 = vmatpush1.bf16.msra.mxu1 %v16013_v3 }
0x1763   :  { %6243 = vmatprep.subr.bf16.mxu1 %v16018_v12 }
0x1766   :  { %6244 = vmatpush1.bf16.msra.mxu1 %v16016_v5 }
0x1767   :  { %6245 = vmatprep.subr.bf16.mxu1 %v16021_v21  ;;  %v16082_v21 = vld [vmem:[#allocation4 + $0x1830] ss:$8 sps:$4 sm:$0xff]  }
0x176a   :  { %6246 = vmatpush1.bf16.msra.mxu1 %v16019_v22  ;;  %v16087_v22 = vld [vmem:[#allocation4 + $0x1844] ss:$8 sps:$4 sm:$0xff]  }
0x176b   :  { %6247 = vmatprep.subr.bf16.mxu1 %v16024_v23  ;;  %v16085_v23 = vld [vmem:[#allocation4 + $0x1840] ss:$8 sps:$4 sm:$0xff]  }
0x176e   :  { %6248 = vmatpush1.bf16.msra.mxu1 %v16022_v24  ;;  %v16090_v24 = vld [vmem:[#allocation4 + $0x1854] ss:$8 sps:$4 sm:$0xff]  }
0x1824   :  { %v5866_v8 = vpop.f32.mrb[52].mxu1 }
0x1825   :  { %v5867_v9 = vadd.f32 %v5866_v8, %v5665_v7  ;;  %v5868_v11 = vpop.f32.mrb[53].mxu1  ;;  %v16067_v8 = vld [vmem:[#allocation4 + $0x17e0] ss:$8 sps:$4 sm:$0xff]  }
0x1826   :  { %v5869_v13 = vadd.f32 %v5868_v11, %v5669_v14  ;;  %v5870_v15 = vpop.f32.mrb[54].mxu1  ;;  %v16069_v14 = vld [vmem:[#allocation4 + $0x17e4] ss:$8 sps:$4 sm:$0xff]   ;;  %v16073_v11 = vld [vmem:[#allocation4 + $0x1800] ss:$8 sps:$4 sm:$0xff]  }
0x1827   :  { %v5871_v16 = vpop.f32.mrb[55].mxu1  ;;  %v5905_v20 = vpack.c.bf16 %v5867_v9, %v5867_v9  ;;  %v16072_v9 = vld [vmem:[#allocation4 + $0x17f4] ss:$8 sps:$4 sm:$0xff]  }
0x1828   :  { %v5906_v17 = vpack.c.bf16 %v5869_v13, %v5869_v13  ;;  %v16075_v13 = vld [vmem:[#allocation4 + $0x1804] ss:$8 sps:$4 sm:$0xff]   ;;  %v16078_v15 = vld [vmem:[#allocation4 + $0x1814] ss:$8 sps:$4 sm:$0xff]   ;;  %v16076_v16 = vld [vmem:[#allocation4 + $0x1810] ss:$8 sps:$4 sm:$0xff]  }
0x1829   :  { %6733 = vmatprep.subr.bf16.mxu1 %v16075_v13  ;;  %v16136_v13 = vld [vmem:[#allocation4 + $0x1950] ss:$8 sps:$4 sm:$0xff]  }
0x182a   :  { %6112 = vmatprep.mubr.bf16.mxu0 %v5906_v17  ;;  %v16079_v17 = vld [vmem:[#allocation4 + $0x1820] ss:$8 sps:$4 sm:$0xff]  }
0x182b   :  { %6113 = vmatmul.mubr.bf16.vlgmr.msra.gmra.mrb[48].mxu0 %v5905_v20  ;;  %v16084_v20 = vld [vmem:[#allocation4 + $0x1834] ss:$8 sps:$4 sm:$0xff]  }
0x182c   :  { %6484 = vmatpush1.bf16.msra.mxu0 %v16025_v25  ;;  %v16088_v25 = vld [vmem:[#allocation4 + $0x1850] ss:$8 sps:$4 sm:$0xff]  }
0x182d   :  { %6485 = vmatprep.subr.bf16.mxu0 %v16030_v27  ;;  %v16091_v27 = vld [vmem:[#allocation4 + $0x1860] ss:$8 sps:$4 sm:$0xff]  }
0x1830   :  { %6486 = vmatpush1.bf16.msra.mxu0 %v16028_v28  ;;  %v16096_v28 = vld [vmem:[#allocation4 + $0x1874] ss:$8 sps:$4 sm:$0xff]  }
0x1831   :  { %6487 = vmatprep.subr.bf16.mxu0 %v16033_v41  ;;  %v16094_v41 = vld [vmem:[#allocation4 + $0x1870] ss:$8 sps:$4 sm:$0xff]  }
0x1834   :  { %6488 = vmatpush1.bf16.msra.mxu0 %v16031_v46  ;;  %v16099_v46 = vld [vmem:[#allocation4 + $0x1884] ss:$8 sps:$4 sm:$0xff]  }
0x1835   :  { %6489 = vmatprep.subr.bf16.mxu0 %v16036_v29  ;;  %v16097_v29 = vld [vmem:[#allocation4 + $0x1880] ss:$8 sps:$4 sm:$0xff]  }
0x1838   :  { %6490 = vmatpush1.bf16.msra.mxu0 %v16034_v30  ;;  %v16102_v30 = vld [vmem:[#allocation4 + $0x1894] ss:$8 sps:$4 sm:$0xff]  }
0x1839   :  { %6491 = vmatprep.subr.bf16.mxu0 %v16039_v31  ;;  %v16100_v31 = vld [vmem:[#allocation4 + $0x1890] ss:$8 sps:$4 sm:$0xff]  }
0x183c   :  { %6492 = vmatpush1.bf16.msra.mxu0 %v16037_v32  ;;  %v16105_v32 = vld [vmem:[#allocation4 + $0x18a4] ss:$8 sps:$4 sm:$0xff]  }
0x183d   :  { %6493 = vmatprep.subr.bf16.mxu0 %v16042_v33  ;;  %v16103_v33 = vld [vmem:[#allocation4 + $0x18a0] ss:$8 sps:$4 sm:$0xff]  }
0x1840   :  { %6494 = vmatpush1.bf16.msra.mxu0 %v16040_v34  ;;  %v16108_v34 = vld [vmem:[#allocation4 + $0x18b4] ss:$8 sps:$4 sm:$0xff]  }
0x1841   :  { %6495 = vmatprep.subr.bf16.mxu0 %v16045_v35  ;;  %v16106_v35 = vld [vmem:[#allocation4 + $0x18b0] ss:$8 sps:$4 sm:$0xff]  }
0x1844   :  { %6496 = vmatpush1.bf16.msra.mxu0 %v16043_v36  ;;  %v16111_v36 = vld [vmem:[#allocation4 + $0x18c4] ss:$8 sps:$4 sm:$0xff]  }
0x1845   :  { %6497 = vmatprep.subr.bf16.mxu0 %v16048_v37  ;;  %v16109_v37 = vld [vmem:[#allocation4 + $0x18c0] ss:$8 sps:$4 sm:$0xff]  }
0x1848   :  { %6498 = vmatpush1.bf16.msra.mxu0 %v16046_v38  ;;  %v16114_v38 = vld [vmem:[#allocation4 + $0x18d4] ss:$8 sps:$4 sm:$0xff]  }
0x1849   :  { %6499 = vmatprep.subr.bf16.mxu0 %v16051_v40  ;;  %v16112_v40 = vld [vmem:[#allocation4 + $0x18d0] ss:$8 sps:$4 sm:$0xff]  }
0x184c   :  { %6500 = vmatpush1.bf16.msra.mxu0 %v16049_v42  ;;  %v6141_v42 = vld [vmem:[#allocation6 + $0x31] ss:$8 sm:$0x3] }
0x184d   :  { %6501 = vmatprep.subr.bf16.mxu0 %v16054_v43  ;;  %v6146_v43 = vrot.slane %v6141_v42, %v17498_v54 }
0x1850   :  { %6502 = vmatpush1.bf16.msra.mxu0 %v16052_v45  ;;  %v6150_v45 = vrot.slane %v6141_v42, %v17501_v56 }
0x1851   :  { %6503 = vmatprep.subr.bf16.mxu0 %v16057_v47 }
0x1854   :  { %6504 = vmatpush1.bf16.msra.mxu0 %v16055_v2 }
0x1855   :  { %6505 = vmatprep.subr.bf16.mxu0 %v16060_v48 }
0x1858   :  { %6506 = vmatpush1.bf16.msra.mxu0 %v16058_v4 }
0x1859   :  { %6507 = vmatprep.subr.bf16.mxu0 %v16063_v49 }
0x185c   :  { %6508 = vmatpush1.bf16.msra.mxu0 %v16061_v44 }
0x185d   :  { %6509 = vmatprep.subr.bf16.mxu0 %v16066_v50 }
0x1860   :  { %6510 = vmatpush1.bf16.msra.mxu0 %v16064_v51 }
0x1861   :  { %6511 = vmatprep.subr.bf16.mxu0 %v16069_v14  ;;  %v16132_v14 = vld [vmem:[#allocation4 + $0x1934] ss:$8 sps:$4 sm:$0xff]  }
0x1864   :  { %6512 = vmatpush1.bf16.msra.mxu0 %v16067_v8  ;;  %v16130_v8 = vld [vmem:[#allocation4 + $0x1930] ss:$8 sps:$4 sm:$0xff]  }
0x1865   :  { %6513 = vmatprep.subr.bf16.mxu0 %v16072_v9  ;;  %v16135_v9 = vld [vmem:[#allocation4 + $0x1944] ss:$8 sps:$4 sm:$0xff]  }
0x1868   :  { %6514 = vmatpush1.bf16.msra.mxu0 %v16070_v19  ;;  %v16133_v19 = vld [vmem:[#allocation4 + $0x1940] ss:$8 sps:$4 sm:$0xff]  }
0x18fe   :  { %v6114_v60 = vpop.f32.mrb[48].mxu0 }
0x18ff   :  { %v6115_v62 = vadd.f32 %v6114_v60, %v5913_v58  ;;  %v6116_v63 = vpop.f32.mrb[49].mxu0  ;;  %v16117_v58 = vld [vmem:[#allocation4 + $0x18e4] ss:$8 sps:$4 sm:$0xff]   ;;  %v16120_v60 = vld [vmem:[#allocation4 + $0x18f4] ss:$8 sps:$4 sm:$0xff]  }
0x1900   :  { %v6117_v3 = vadd.f32 %v6116_v63, %v5917_v59  ;;  %v6118_v12 = vpop.f32.mrb[50].mxu0  ;;  %v16115_v59 = vld [vmem:[#allocation4 + $0x18e0] ss:$8 sps:$4 sm:$0xff]   ;;  %v16123_v63 = vld [vmem:[#allocation4 + $0x1904] ss:$8 sps:$4 sm:$0xff]  }
0x1901   :  { %v17601_v5 = vadd.f32 %v6115_v62, %v4964_v61  ;;  %v6119_v6 = vpop.f32.mrb[51].mxu0  ;;  %v16118_v61 = vld [vmem:[#allocation4 + $0x18f0] ss:$8 sps:$4 sm:$0xff]   ;;  %v16121_v62 = vld [vmem:[#allocation4 + $0x1900] ss:$8 sps:$4 sm:$0xff]   ;;  %6983 = vmatprep.subr.bf16.mxu0 %v16123_v63 }
0x1902   :  { %v17604_v7 = vsub.f32 %v17583_v18, %v6117_v3  ;;  %v16081_v18 = vld [vmem:[#allocation4 + $0x1824] ss:$8 sps:$4 sm:$0xff]   ;;  %v16126_v3 = vld [vmem:[#allocation4 + $0x1914] ss:$8 sps:$4 sm:$0xff]   ;;  %v16124_v12 = vld [vmem:[#allocation4 + $0x1910] ss:$8 sps:$4 sm:$0xff]  }
0x1903   :  { %v16129_v6 = vld [vmem:[#allocation4 + $0x1924] ss:$8 sps:$4 sm:$0xff]   ;;  %v16184_v63 = vld [vmem:[#allocation4 + $0x1a50] ss:$8 sps:$4 sm:$0xff]  }
0x1904   :  { %v6139_v10 = vpack.c.bf16 %v17604_v7, %v17604_v7 }
0x1906   :  { %6266 = vmatmul.mubr.bf16.vlgmr.msra.gmra.mrb[56].mxu1 %v6139_v10  ;;  %v16127_v10 = vld [vmem:[#allocation4 + $0x1920] ss:$8 sps:$4 sm:$0xff]  }
0x1907   :  { %6734 = vmatpush1.bf16.msra.mxu1 %v16073_v11  ;;  %v16138_v11 = vld [vmem:[#allocation4 + $0x1954] ss:$8 sps:$4 sm:$0xff]  }
0x1908   :  { %6735 = vmatprep.subr.bf16.mxu1 %v16078_v15  ;;  %v16141_v15 = vld [vmem:[#allocation4 + $0x1964] ss:$8 sps:$4 sm:$0xff]  }
0x190b   :  { %6736 = vmatpush1.bf16.msra.mxu1 %v16076_v16  ;;  %v16139_v16 = vld [vmem:[#allocation4 + $0x1960] ss:$8 sps:$4 sm:$0xff]  }
0x190c   :  { %6737 = vmatprep.subr.bf16.mxu1 %v16081_v18  ;;  %v16144_v18 = vld [vmem:[#allocation4 + $0x1974] ss:$8 sps:$4 sm:$0xff]  }
0x190f   :  { %6738 = vmatpush1.bf16.msra.mxu1 %v16079_v17  ;;  %v16142_v17 = vld [vmem:[#allocation4 + $0x1970] ss:$8 sps:$4 sm:$0xff]  }
0x1910   :  { %6739 = vmatprep.subr.bf16.mxu1 %v16084_v20  ;;  %v16147_v20 = vld [vmem:[#allocation4 + $0x1984] ss:$8 sps:$4 sm:$0xff]  }
0x1913   :  { %6740 = vmatpush1.bf16.msra.mxu1 %v16082_v21  ;;  %v16145_v21 = vld [vmem:[#allocation4 + $0x1980] ss:$8 sps:$4 sm:$0xff]  }
0x1914   :  { %6741 = vmatprep.subr.bf16.mxu1 %v16087_v22  ;;  %v16150_v22 = vld [vmem:[#allocation4 + $0x1994] ss:$8 sps:$4 sm:$0xff]  }
0x1917   :  { %6742 = vmatpush1.bf16.msra.mxu1 %v16085_v23  ;;  %v16148_v23 = vld [vmem:[#allocation4 + $0x1990] ss:$8 sps:$4 sm:$0xff]  }
0x1918   :  { %6743 = vmatprep.subr.bf16.mxu1 %v16090_v24  ;;  %v16153_v24 = vld [vmem:[#allocation4 + $0x19a4] ss:$8 sps:$4 sm:$0xff]  }
0x191b   :  { %6744 = vmatpush1.bf16.msra.mxu1 %v16088_v25  ;;  %v16151_v25 = vld [vmem:[#allocation4 + $0x19a0] ss:$8 sps:$4 sm:$0xff]  }
0x191c   :  { %6745 = vmatprep.subr.bf16.mxu1 %v16093_v26  ;;  %v16156_v26 = vld [vmem:[#allocation4 + $0x19b4] ss:$8 sps:$4 sm:$0xff]  }
0x191f   :  { %6746 = vmatpush1.bf16.msra.mxu1 %v16091_v27  ;;  %v16154_v27 = vld [vmem:[#allocation4 + $0x19b0] ss:$8 sps:$4 sm:$0xff]  }
0x1920   :  { %6747 = vmatprep.subr.bf16.mxu1 %v16096_v28  ;;  %v16159_v28 = vld [vmem:[#allocation4 + $0x19c4] ss:$8 sps:$4 sm:$0xff]  }
0x1923   :  { %6748 = vmatpush1.bf16.msra.mxu1 %v16094_v41  ;;  %v16157_v41 = vld [vmem:[#allocation4 + $0x19c0] ss:$8 sps:$4 sm:$0xff]  }
0x1924   :  { %6749 = vmatprep.subr.bf16.mxu1 %v16099_v46  ;;  %v16162_v46 = vld [vmem:[#allocation4 + $0x19d4] ss:$8 sps:$4 sm:$0xff]  }
0x1927   :  { %6750 = vmatpush1.bf16.msra.mxu1 %v16097_v29  ;;  %v16160_v29 = vld [vmem:[#allocation4 + $0x19d0] ss:$8 sps:$4 sm:$0xff]  }
0x1928   :  { %6751 = vmatprep.subr.bf16.mxu1 %v16102_v30  ;;  %v6311_v30 = vld [vmem:[#allocation6 + $0x32] ss:$8 sm:$0x3] }
0x192b   :  { %6752 = vmatpush1.bf16.msra.mxu1 %v16100_v31  ;;  %v6316_v31 = vrot.slane %v6311_v30, %v17498_v54 }
0x192c   :  { %6753 = vmatprep.subr.bf16.mxu1 %v16105_v32  ;;  %v6320_v32 = vrot.slane %v6311_v30, %v17501_v56 }
0x192f   :  { %6754 = vmatpush1.bf16.msra.mxu1 %v16103_v33 }
0x1930   :  { %6755 = vmatprep.subr.bf16.mxu1 %v16108_v34 }
0x1933   :  { %6756 = vmatpush1.bf16.msra.mxu1 %v16106_v35 }
0x1934   :  { %6757 = vmatprep.subr.bf16.mxu1 %v16111_v36 }
0x1937   :  { %6758 = vmatpush1.bf16.msra.mxu1 %v16109_v37 }
0x1938   :  { %6759 = vmatprep.subr.bf16.mxu1 %v16114_v38 }
0x193b   :  { %6760 = vmatpush1.bf16.msra.mxu1 %v16112_v40 }
0x193c   :  { %6761 = vmatprep.subr.bf16.mxu1 %v16117_v58  ;;  %v16180_v58 = vld [vmem:[#allocation4 + $0x1a34] ss:$8 sps:$4 sm:$0xff]  }
0x193f   :  { %6762 = vmatpush1.bf16.msra.mxu1 %v16115_v59  ;;  %v16178_v59 = vld [vmem:[#allocation4 + $0x1a30] ss:$8 sps:$4 sm:$0xff]  }
0x1940   :  { %6763 = vmatprep.subr.bf16.mxu1 %v16120_v60  ;;  %v16183_v60 = vld [vmem:[#allocation4 + $0x1a44] ss:$8 sps:$4 sm:$0xff]  }
0x1943   :  { %6764 = vmatpush1.bf16.msra.mxu1 %v16118_v61  ;;  %v16181_v61 = vld [vmem:[#allocation4 + $0x1a40] ss:$8 sps:$4 sm:$0xff]  }
0x19d9   :  { %v6267_v47 = vpop.f32.mrb[56].mxu1 }
0x19da   :  { %v6268_v2 = vadd.f32 %v6267_v47, %v6146_v43  ;;  %v6269_v48 = vpop.f32.mrb[57].mxu1  ;;  %v16165_v47 = vld [vmem:[#allocation4 + $0x19e4] ss:$8 sps:$4 sm:$0xff]  }
0x19db   :  { %v6270_v4 = vadd.f32 %v6269_v48, %v6150_v45  ;;  %v6271_v49 = vpop.f32.mrb[58].mxu1  ;;  %v16168_v48 = vld [vmem:[#allocation4 + $0x19f4] ss:$8 sps:$4 sm:$0xff]  }
0x19dc   :  { %v6274_v44 = vmax.f32 %v6268_v2, 0.0  ;;  %v6272_v50 = vpop.f32.mrb[59].mxu1  ;;  %v16163_v2 = vld [vmem:[#allocation4 + $0x19e0] ss:$8 sps:$4 sm:$0xff]  }
0x19dd   :  { %v6275_v51 = vmax.f32 %v6270_v4, 0.0  ;;  %v16166_v4 = vld [vmem:[#allocation4 + $0x19f0] ss:$8 sps:$4 sm:$0xff]   ;;  %v16169_v49 = vld [vmem:[#allocation4 + $0x1a00] ss:$8 sps:$4 sm:$0xff]  }
0x19de   :  { %v6308_v57 = vpack.c.bf16 %v6274_v44, %v6274_v44  ;;  %v16171_v44 = vld [vmem:[#allocation4 + $0x1a04] ss:$8 sps:$4 sm:$0xff]   ;;  %v16174_v50 = vld [vmem:[#allocation4 + $0x1a14] ss:$8 sps:$4 sm:$0xff]  }
0x19df   :  { %v6309_v55 = vpack.c.bf16 %v6275_v51, %v6275_v51  ;;  %7231 = vmatprep.subr.bf16.mxu1 %v16171_v44  ;;  %v16172_v51 = vld [vmem:[#allocation4 + $0x1a10] ss:$8 sps:$4 sm:$0xff]  }
0x19e0   :  { %v16232_v44 = vld [vmem:[#allocation4 + $0x1b50] ss:$8 sps:$4 sm:$0xff]  }
0x19e1   :  { %6515 = vmatprep.mubr.bf16.mxu0 %v6309_v55  ;;  %v16177_v55 = vld [vmem:[#allocation4 + $0x1a24] ss:$8 sps:$4 sm:$0xff]  }
0x19e2   :  { %6516 = vmatmul.mubr.bf16.vlgmr.msra.gmra.mrb[52].mxu0 %v6308_v57  ;;  %v16175_v57 = vld [vmem:[#allocation4 + $0x1a20] ss:$8 sps:$4 sm:$0xff]  }
0x19e3   :  { %6984 = vmatpush1.bf16.msra.mxu0 %v16121_v62  ;;  %v16186_v62 = vld [vmem:[#allocation4 + $0x1a54] ss:$8 sps:$4 sm:$0xff]  }
0x19e4   :  { %6985 = vmatprep.subr.bf16.mxu0 %v16126_v3  ;;  %v16189_v3 = vld [vmem:[#allocation4 + $0x1a64] ss:$8 sps:$4 sm:$0xff]  }
0x19e7   :  { %6986 = vmatpush1.bf16.msra.mxu0 %v16124_v12  ;;  %v16187_v12 = vld [vmem:[#allocation4 + $0x1a60] ss:$8 sps:$4 sm:$0xff]  }
0x19e8   :  { %6987 = vmatprep.subr.bf16.mxu0 %v16129_v6  ;;  %v16192_v6 = vld [vmem:[#allocation4 + $0x1a74] ss:$8 sps:$4 sm:$0xff]  }
0x19eb   :  { %6988 = vmatpush1.bf16.msra.mxu0 %v16127_v10  ;;  %v16190_v10 = vld [vmem:[#allocation4 + $0x1a70] ss:$8 sps:$4 sm:$0xff]  }
0x19ec   :  { %6989 = vmatprep.subr.bf16.mxu0 %v16132_v14  ;;  %v16195_v14 = vld [vmem:[#allocation4 + $0x1a84] ss:$8 sps:$4 sm:$0xff]  }
0x19ef   :  { %6990 = vmatpush1.bf16.msra.mxu0 %v16130_v8  ;;  %v16193_v8 = vld [vmem:[#allocation4 + $0x1a80] ss:$8 sps:$4 sm:$0xff]  }
0x19f0   :  { %6991 = vmatprep.subr.bf16.mxu0 %v16135_v9  ;;  %v16198_v9 = vld [vmem:[#allocation4 + $0x1a94] ss:$8 sps:$4 sm:$0xff]  }
0x19f3   :  { %6992 = vmatpush1.bf16.msra.mxu0 %v16133_v19  ;;  %v16196_v19 = vld [vmem:[#allocation4 + $0x1a90] ss:$8 sps:$4 sm:$0xff]  }
0x19f4   :  { %6993 = vmatprep.subr.bf16.mxu0 %v16138_v11  ;;  %v16201_v11 = vld [vmem:[#allocation4 + $0x1aa4] ss:$8 sps:$4 sm:$0xff]  }
0x19f7   :  { %6994 = vmatpush1.bf16.msra.mxu0 %v16136_v13  ;;  %v16199_v13 = vld [vmem:[#allocation4 + $0x1aa0] ss:$8 sps:$4 sm:$0xff]  }
0x19f8   :  { %6995 = vmatprep.subr.bf16.mxu0 %v16141_v15  ;;  %v16204_v15 = vld [vmem:[#allocation4 + $0x1ab4] ss:$8 sps:$4 sm:$0xff]  }
0x19fb   :  { %6996 = vmatpush1.bf16.msra.mxu0 %v16139_v16  ;;  %v16202_v16 = vld [vmem:[#allocation4 + $0x1ab0] ss:$8 sps:$4 sm:$0xff]  }
0x19fc   :  { %6997 = vmatprep.subr.bf16.mxu0 %v16144_v18  ;;  %v16207_v18 = vld [vmem:[#allocation4 + $0x1ac4] ss:$8 sps:$4 sm:$0xff]  }
0x19ff   :  { %6998 = vmatpush1.bf16.msra.mxu0 %v16142_v17  ;;  %v16205_v17 = vld [vmem:[#allocation4 + $0x1ac0] ss:$8 sps:$4 sm:$0xff]  }
0x1a00   :  { %6999 = vmatprep.subr.bf16.mxu0 %v16147_v20  ;;  %v16210_v20 = vld [vmem:[#allocation4 + $0x1ad4] ss:$8 sps:$4 sm:$0xff]  }
0x1a03   :  { %7000 = vmatpush1.bf16.msra.mxu0 %v16145_v21  ;;  %v16208_v21 = vld [vmem:[#allocation4 + $0x1ad0] ss:$8 sps:$4 sm:$0xff]  }
0x1a04   :  { %7001 = vmatprep.subr.bf16.mxu0 %v16150_v22  ;;  %v16213_v22 = vld [vmem:[#allocation4 + $0x1ae4] ss:$8 sps:$4 sm:$0xff]  }
0x1a07   :  { %7002 = vmatpush1.bf16.msra.mxu0 %v16148_v23  ;;  %v16211_v23 = vld [vmem:[#allocation4 + $0x1ae0] ss:$8 sps:$4 sm:$0xff]  }
0x1a08   :  { %7003 = vmatprep.subr.bf16.mxu0 %v16153_v24  ;;  %v6561_v24 = vld [vmem:[#allocation6 + $0x33] ss:$8 sm:$0x3] }
0x1a0b   :  { %7004 = vmatpush1.bf16.msra.mxu0 %v16151_v25  ;;  %v6566_v25 = vrot.slane %v6561_v24, %v17498_v54 }
0x1a0c   :  { %7005 = vmatprep.subr.bf16.mxu0 %v16156_v26  ;;  %v6570_v26 = vrot.slane %v6561_v24, %v17501_v56  ;;  %v16259_v24 = vld [vmem:[#allocation4 + $0x1be0] ss:$8 sps:$4 sm:$0xff]  }
0x1a0f   :  { %7006 = vmatpush1.bf16.msra.mxu0 %v16154_v27 }
0x1a10   :  { %7007 = vmatprep.subr.bf16.mxu0 %v16159_v28 }
0x1a13   :  { %7008 = vmatpush1.bf16.msra.mxu0 %v16157_v41 }
0x1a14   :  { %7009 = vmatprep.subr.bf16.mxu0 %v16162_v46 }
0x1a17   :  { %7010 = vmatpush1.bf16.msra.mxu0 %v16160_v29 }
0x1a18   :  { %7011 = vmatprep.subr.bf16.mxu0 %v16165_v47  ;;  %v16228_v47 = vld [vmem:[#allocation4 + $0x1b34] ss:$8 sps:$4 sm:$0xff]  }
0x1a1b   :  { %7012 = vmatpush1.bf16.msra.mxu0 %v16163_v2  ;;  %v16226_v2 = vld [vmem:[#allocation4 + $0x1b30] ss:$8 sps:$4 sm:$0xff]  }
0x1a1c   :  { %7013 = vmatprep.subr.bf16.mxu0 %v16168_v48  ;;  %v16231_v48 = vld [vmem:[#allocation4 + $0x1b44] ss:$8 sps:$4 sm:$0xff]  }
0x1a1f   :  { %7014 = vmatpush1.bf16.msra.mxu0 %v16166_v4  ;;  %v16229_v4 = vld [vmem:[#allocation4 + $0x1b40] ss:$8 sps:$4 sm:$0xff]  }
0x1ab5   :  { %v6517_v33 = vpop.f32.mrb[52].mxu0 }
0x1ab6   :  { %v6518_v34 = vadd.f32 %v6517_v33, %v6316_v31  ;;  %v6519_v35 = vpop.f32.mrb[53].mxu0 }
0x1ab7   :  { %v6520_v36 = vadd.f32 %v6519_v35, %v6320_v32  ;;  %v6521_v37 = vpop.f32.mrb[54].mxu0  ;;  %v16216_v35 = vld [vmem:[#allocation4 + $0x1af4] ss:$8 sps:$4 sm:$0xff]  }
0x1ab8   :  { %v6524_v38 = vmax.f32 %v6518_v34, 0.0  ;;  %v6522_v40 = vpop.f32.mrb[55].mxu0  ;;  %v16217_v37 = vld [vmem:[#allocation4 + $0x1b00] ss:$8 sps:$4 sm:$0xff]  }
0x1ab9   :  { %v6525_v42 = vmax.f32 %v6520_v36, 0.0  ;;  %v16214_v36 = vld [vmem:[#allocation4 + $0x1af0] ss:$8 sps:$4 sm:$0xff]   ;;  %v16222_v40 = vld [vmem:[#allocation4 + $0x1b14] ss:$8 sps:$4 sm:$0xff]  }
0x1aba   :  { %v6558_v45 = vpack.c.bf16 %v6524_v38, %v6524_v38  ;;  %v16219_v38 = vld [vmem:[#allocation4 + $0x1b04] ss:$8 sps:$4 sm:$0xff]  }
0x1abb   :  { %v6559_v43 = vpack.c.bf16 %v6525_v42, %v6525_v42  ;;  %7384 = vmatprep.subr.bf16.mxu0 %v16219_v38  ;;  %v16220_v42 = vld [vmem:[#allocation4 + $0x1b10] ss:$8 sps:$4 sm:$0xff]  }
0x1abd   :  { %6765 = vmatprep.mubr.bf16.mxu1 %v6559_v43  ;;  %v16225_v43 = vld [vmem:[#allocation4 + $0x1b24] ss:$8 sps:$4 sm:$0xff]  }
0x1abe   :  { %6766 = vmatmul.mubr.bf16.vlgmr.msra.gmra.mrb[60].mxu1 %v6558_v45  ;;  %v16223_v45 = vld [vmem:[#allocation4 + $0x1b20] ss:$8 sps:$4 sm:$0xff]  }
0x1abf   :  { %7232 = vmatpush1.bf16.msra.mxu1 %v16169_v49  ;;  %v16234_v49 = vld [vmem:[#allocation4 + $0x1b54] ss:$8 sps:$4 sm:$0xff]  }
0x1ac0   :  { %7233 = vmatprep.subr.bf16.mxu1 %v16174_v50  ;;  %v6811_v50 = vld [vmem:[#allocation6 + $0x34] ss:$8 sm:$0x3] }
0x1ac3   :  { %7234 = vmatpush1.bf16.msra.mxu1 %v16172_v51  ;;  %v6816_v51 = vrot.slane %v6811_v50, %v17498_v54 }
0x1ac4   :  { %7235 = vmatprep.subr.bf16.mxu1 %v16177_v55  ;;  %v6820_v55 = vrot.slane %v6811_v50, %v17501_v56  ;;  %v16285_v50 = vld [vmem:[#allocation4 + $0x1c64] ss:$8 sps:$4 sm:$0xff]  }
0x1ac7   :  { %7236 = vmatpush1.bf16.msra.mxu1 %v16175_v57 }
0x1ac8   :  { %7237 = vmatprep.subr.bf16.mxu1 %v16180_v58 }
0x1acb   :  { %7238 = vmatpush1.bf16.msra.mxu1 %v16178_v59 }
0x1acc   :  { %7239 = vmatprep.subr.bf16.mxu1 %v16183_v60 }
0x1acf   :  { %7240 = vmatpush1.bf16.msra.mxu1 %v16181_v61 }
0x1ad0   :  { %7241 = vmatprep.subr.bf16.mxu1 %v16186_v62 }
0x1ad3   :  { %7242 = vmatpush1.bf16.msra.mxu1 %v16184_v63 }
0x1ad4   :  { %7243 = vmatprep.subr.bf16.mxu1 %v16189_v3 }
0x1ad7   :  { %7244 = vmatpush1.bf16.msra.mxu1 %v16187_v12  ;;  %v16237_v12 = vld [vmem:[#allocation4 + $0x1b64] ss:$8 sps:$4 sm:$0xff]  }
0x1ad8   :  { %7245 = vmatprep.subr.bf16.mxu1 %v16192_v6  ;;  %v16235_v6 = vld [vmem:[#allocation4 + $0x1b60] ss:$8 sps:$4 sm:$0xff]  }
0x1adb   :  { %7246 = vmatpush1.bf16.msra.mxu1 %v16190_v10  ;;  %v16240_v10 = vld [vmem:[#allocation4 + $0x1b74] ss:$8 sps:$4 sm:$0xff]  }
0x1adc   :  { %7247 = vmatprep.subr.bf16.mxu1 %v16195_v14  ;;  %v16238_v14 = vld [vmem:[#allocation4 + $0x1b70] ss:$8 sps:$4 sm:$0xff]  }
0x1adf   :  { %7248 = vmatpush1.bf16.msra.mxu1 %v16193_v8  ;;  %v16241_v8 = vld [vmem:[#allocation4 + $0x1b80] ss:$8 sps:$4 sm:$0xff]  }
0x1ae0   :  { %7249 = vmatprep.subr.bf16.mxu1 %v16198_v9  ;;  %v16243_v9 = vld [vmem:[#allocation4 + $0x1b84] ss:$8 sps:$4 sm:$0xff]  }
0x1ae3   :  { %7250 = vmatpush1.bf16.msra.mxu1 %v16196_v19  ;;  %v16246_v19 = vld [vmem:[#allocation4 + $0x1b94] ss:$8 sps:$4 sm:$0xff]  }
0x1ae4   :  { %7251 = vmatprep.subr.bf16.mxu1 %v16201_v11  ;;  %v16244_v11 = vld [vmem:[#allocation4 + $0x1b90] ss:$8 sps:$4 sm:$0xff]  }
0x1ae7   :  { %7252 = vmatpush1.bf16.msra.mxu1 %v16199_v13  ;;  %v16249_v13 = vld [vmem:[#allocation4 + $0x1ba4] ss:$8 sps:$4 sm:$0xff]  }
0x1ae8   :  { %7253 = vmatprep.subr.bf16.mxu1 %v16204_v15  ;;  %v16247_v15 = vld [vmem:[#allocation4 + $0x1ba0] ss:$8 sps:$4 sm:$0xff]  }
0x1aeb   :  { %7254 = vmatpush1.bf16.msra.mxu1 %v16202_v16  ;;  %v16252_v16 = vld [vmem:[#allocation4 + $0x1bb4] ss:$8 sps:$4 sm:$0xff]  }
0x1aec   :  { %7255 = vmatprep.subr.bf16.mxu1 %v16207_v18  ;;  %v16250_v18 = vld [vmem:[#allocation4 + $0x1bb0] ss:$8 sps:$4 sm:$0xff]  }
0x1aef   :  { %7256 = vmatpush1.bf16.msra.mxu1 %v16205_v17  ;;  %v16255_v17 = vld [vmem:[#allocation4 + $0x1bc4] ss:$8 sps:$4 sm:$0xff]  }
0x1af0   :  { %7257 = vmatprep.subr.bf16.mxu1 %v16210_v20  ;;  %v16253_v20 = vld [vmem:[#allocation4 + $0x1bc0] ss:$8 sps:$4 sm:$0xff]  }
0x1af3   :  { %7258 = vmatpush1.bf16.msra.mxu1 %v16208_v21  ;;  %v16258_v21 = vld [vmem:[#allocation4 + $0x1bd4] ss:$8 sps:$4 sm:$0xff]  }
0x1af4   :  { %7259 = vmatprep.subr.bf16.mxu1 %v16213_v22  ;;  %v16256_v22 = vld [vmem:[#allocation4 + $0x1bd0] ss:$8 sps:$4 sm:$0xff]  }
0x1af7   :  { %7260 = vmatpush1.bf16.msra.mxu1 %v16211_v23  ;;  %v16261_v23 = vld [vmem:[#allocation4 + $0x1be4] ss:$8 sps:$4 sm:$0xff]  }
0x1af8   :  { %7261 = vmatprep.subr.bf16.mxu1 %v16216_v35  ;;  %v16282_v35 = vld [vmem:[#allocation4 + $0x1c54] ss:$8 sps:$4 sm:$0xff]  }
0x1afb   :  { %7262 = vmatpush1.bf16.msra.mxu1 %v16214_v36  ;;  %v16280_v36 = vld [vmem:[#allocation4 + $0x1c50] ss:$8 sps:$4 sm:$0xff]  }
0x1afc   :  { %7634 = vmatprep.subr.bf16.mxu1 %v16243_v9  ;;  %v16312_v9 = vld [vmem:[#allocation4 + $0x1cf4] ss:$8 sps:$4 sm:$0xff]  }
0x1b91   :  { %v6767_v27 = vpop.f32.mrb[60].mxu1 }
0x1b92   :  { %v6768_v28 = vadd.f32 %v6767_v27, %v6566_v25  ;;  %v6769_v41 = vpop.f32.mrb[61].mxu1  ;;  %v16264_v25 = vld [vmem:[#allocation4 + $0x1bf4] ss:$8 sps:$4 sm:$0xff]   ;;  %v16267_v27 = vld [vmem:[#allocation4 + $0x1c04] ss:$8 sps:$4 sm:$0xff]  }
0x1b93   :  { %v6770_v46 = vadd.f32 %v6769_v41, %v6570_v26  ;;  %v6771_v29 = vpop.f32.mrb[62].mxu1  ;;  %v16262_v26 = vld [vmem:[#allocation4 + $0x1bf0] ss:$8 sps:$4 sm:$0xff]   ;;  %v16270_v41 = vld [vmem:[#allocation4 + $0x1c14] ss:$8 sps:$4 sm:$0xff]  }
0x1b94   :  { %v6774_v30 = vmax.f32 %v6768_v28, 0.0  ;;  %v6772_v31 = vpop.f32.mrb[63].mxu1  ;;  %v16265_v28 = vld [vmem:[#allocation4 + $0x1c00] ss:$8 sps:$4 sm:$0xff]   ;;  %v16273_v29 = vld [vmem:[#allocation4 + $0x1c24] ss:$8 sps:$4 sm:$0xff]  }
0x1b95   :  { %v6775_v32 = vmax.f32 %v6770_v46, 0.0  ;;  %v16268_v46 = vld [vmem:[#allocation4 + $0x1c10] ss:$8 sps:$4 sm:$0xff]   ;;  %v16276_v31 = vld [vmem:[#allocation4 + $0x1c34] ss:$8 sps:$4 sm:$0xff]  }
0x1b96   :  { %v6808_v34 = vpack.c.bf16 %v6774_v30, %v6774_v30  ;;  %v16271_v30 = vld [vmem:[#allocation4 + $0x1c20] ss:$8 sps:$4 sm:$0xff]  }
0x1b97   :  { %v6809_v33 = vpack.c.bf16 %v6775_v32, %v6775_v32  ;;  %v16274_v32 = vld [vmem:[#allocation4 + $0x1c30] ss:$8 sps:$4 sm:$0xff]  }
0x1b99   :  { %7015 = vmatprep.mubr.bf16.mxu0 %v6809_v33  ;;  %v16279_v33 = vld [vmem:[#allocation4 + $0x1c44] ss:$8 sps:$4 sm:$0xff]  }
0x1b9a   :  { %7016 = vmatmul.mubr.bf16.vlgmr.msra.gmra.mrb[56].mxu0 %v6808_v34  ;;  %v16277_v34 = vld [vmem:[#allocation4 + $0x1c40] ss:$8 sps:$4 sm:$0xff]  }
0x1b9b   :  { %7416 = vmatprep.mubr.bf16.mxu0 %v17334_v1  ;;  %7385 = vmatpush1.bf16.msra.mxu0 %v16217_v37  ;;  %v7059_v37 = vld [vmem:[#allocation6 + $0x35] ss:$8 sm:$0x3] }
0x1b9c   :  { %7386 = vmatprep.subr.bf16.mxu0 %v16222_v40  ;;  %v7064_v38 = vrot.slane %v7059_v37, %v17498_v54  ;;  %v7068_v40 = vrot.slane %v7059_v37, %v17501_v56  ;;  %v16333_v37 = vld [vmem:[#allocation4 + $0x1d64] ss:$8 sps:$4 sm:$0xff]  }
0x1b9f   :  { %7387 = vmatpush1.bf16.msra.mxu0 %v16220_v42 }
0x1ba0   :  { %7388 = vmatprep.subr.bf16.mxu0 %v16225_v43 }
0x1ba3   :  { %7389 = vmatpush1.bf16.msra.mxu0 %v16223_v45 }
0x1ba4   :  { %7390 = vmatprep.subr.bf16.mxu0 %v16228_v47 }
0x1ba7   :  { %7391 = vmatpush1.bf16.msra.mxu0 %v16226_v2 }
0x1ba8   :  { %7392 = vmatprep.subr.bf16.mxu0 %v16231_v48 }
0x1bab   :  { %7393 = vmatpush1.bf16.msra.mxu0 %v16229_v4 }
0x1bac   :  { %7394 = vmatprep.subr.bf16.mxu0 %v16234_v49 }
0x1baf   :  { %7395 = vmatpush1.bf16.msra.mxu0 %v16232_v44 }
0x1bb0   :  { %7396 = vmatprep.subr.bf16.mxu0 %v16237_v12  ;;  %v16301_v12 = vld [vmem:[#allocation4 + $0x1cc0] ss:$8 sps:$4 sm:$0xff]  }
0x1bb3   :  { %7397 = vmatpush1.bf16.msra.mxu0 %v16235_v6  ;;  %v16306_v6 = vld [vmem:[#allocation4 + $0x1cd4] ss:$8 sps:$4 sm:$0xff]  }
0x1bb4   :  { %7398 = vmatprep.subr.bf16.mxu0 %v16240_v10  ;;  %v16304_v10 = vld [vmem:[#allocation4 + $0x1cd0] ss:$8 sps:$4 sm:$0xff]  }
0x1bb7   :  { %7399 = vmatpush1.bf16.msra.mxu0 %v16238_v14  ;;  %v16309_v14 = vld [vmem:[#allocation4 + $0x1ce4] ss:$8 sps:$4 sm:$0xff]  }
0x1c6d   :  { %v7017_v57 = vpop.f32.mrb[56].mxu0 }
0x1c6e   :  { %v7018_v58 = vadd.f32 %v7017_v57, %v6816_v51  ;;  %v7019_v59 = vpop.f32.mrb[57].mxu0  ;;  %v16283_v51 = vld [vmem:[#allocation4 + $0x1c60] ss:$8 sps:$4 sm:$0xff]  }
0x1c6f   :  { %v7020_v60 = vadd.f32 %v7019_v59, %v6820_v55  ;;  %v7021_v61 = vpop.f32.mrb[58].mxu0  ;;  %v16288_v55 = vld [vmem:[#allocation4 + $0x1c74] ss:$8 sps:$4 sm:$0xff]   ;;  %v16289_v57 = vld [vmem:[#allocation4 + $0x1c80] ss:$8 sps:$4 sm:$0xff]  }
0x1c70   :  { %v7022_v62 = vpop.f32.mrb[59].mxu0  ;;  %v7056_v3 = vpack.c.bf16 %v7018_v58, %v7018_v58  ;;  %v16294_v58 = vld [vmem:[#allocation4 + $0x1c94] ss:$8 sps:$4 sm:$0xff]   ;;  %v16292_v59 = vld [vmem:[#allocation4 + $0x1c90] ss:$8 sps:$4 sm:$0xff]  }
0x1c71   :  { %v7057_v63 = vpack.c.bf16 %v7020_v60, %v7020_v60  ;;  %v16297_v60 = vld [vmem:[#allocation4 + $0x1ca4] ss:$8 sps:$4 sm:$0xff]   ;;  %v16295_v61 = vld [vmem:[#allocation4 + $0x1ca0] ss:$8 sps:$4 sm:$0xff]   ;;  %v16300_v62 = vld [vmem:[#allocation4 + $0x1cb4] ss:$8 sps:$4 sm:$0xff]  }
0x1c73   :  { %7263 = vmatprep.mubr.bf16.mxu1 %v7057_v63  ;;  %v16298_v63 = vld [vmem:[#allocation4 + $0x1cb0] ss:$8 sps:$4 sm:$0xff]  }
0x1c74   :  { %7264 = vmatmul.mubr.bf16.vlgmr.msra.gmra.mrb[64].mxu1 %v7056_v3  ;;  %v16303_v3 = vld [vmem:[#allocation4 + $0x1cc4] ss:$8 sps:$4 sm:$0xff]  }
0x1c75   :  { %7635 = vmatpush1.bf16.msra.mxu1 %v16241_v8  ;;  %v16307_v8 = vld [vmem:[#allocation4 + $0x1ce0] ss:$8 sps:$4 sm:$0xff]  }
0x1c76   :  { %7636 = vmatprep.subr.bf16.mxu1 %v16246_v19  ;;  %v16310_v19 = vld [vmem:[#allocation4 + $0x1cf0] ss:$8 sps:$4 sm:$0xff]  }
0x1c79   :  { %7637 = vmatpush1.bf16.msra.mxu1 %v16244_v11  ;;  %v16315_v11 = vld [vmem:[#allocation4 + $0x1d04] ss:$8 sps:$4 sm:$0xff]  }
0x1c7a   :  { %7638 = vmatprep.subr.bf16.mxu1 %v16249_v13  ;;  %v16313_v13 = vld [vmem:[#allocation4 + $0x1d00] ss:$8 sps:$4 sm:$0xff]  }
0x1c7d   :  { %7639 = vmatpush1.bf16.msra.mxu1 %v16247_v15  ;;  %v16318_v15 = vld [vmem:[#allocation4 + $0x1d14] ss:$8 sps:$4 sm:$0xff]  }
0x1c7e   :  { %7640 = vmatprep.subr.bf16.mxu1 %v16252_v16  ;;  %v16316_v16 = vld [vmem:[#allocation4 + $0x1d10] ss:$8 sps:$4 sm:$0xff]  }
0x1c81   :  { %7641 = vmatpush1.bf16.msra.mxu1 %v16250_v18  ;;  %v16321_v18 = vld [vmem:[#allocation4 + $0x1d24] ss:$8 sps:$4 sm:$0xff]  }
0x1c82   :  { %7642 = vmatprep.subr.bf16.mxu1 %v16255_v17  ;;  %v16319_v17 = vld [vmem:[#allocation4 + $0x1d20] ss:$8 sps:$4 sm:$0xff]  }
0x1c85   :  { %7643 = vmatpush1.bf16.msra.mxu1 %v16253_v20  ;;  %v16324_v20 = vld [vmem:[#allocation4 + $0x1d34] ss:$8 sps:$4 sm:$0xff]  }
0x1c86   :  { %7644 = vmatprep.subr.bf16.mxu1 %v16258_v21  ;;  %v16322_v21 = vld [vmem:[#allocation4 + $0x1d30] ss:$8 sps:$4 sm:$0xff]  }
0x1c89   :  { %7645 = vmatpush1.bf16.msra.mxu1 %v16256_v22  ;;  %v16327_v22 = vld [vmem:[#allocation4 + $0x1d44] ss:$8 sps:$4 sm:$0xff]  }
0x1c8a   :  { %7646 = vmatprep.subr.bf16.mxu1 %v16261_v23  ;;  %v16325_v23 = vld [vmem:[#allocation4 + $0x1d40] ss:$8 sps:$4 sm:$0xff]  }
0x1c8d   :  { %7647 = vmatpush1.bf16.msra.mxu1 %v16259_v24  ;;  %v16330_v24 = vld [vmem:[#allocation4 + $0x1d54] ss:$8 sps:$4 sm:$0xff]  }
0x1c8e   :  { %7648 = vmatprep.subr.bf16.mxu1 %v16264_v25  ;;  %v16328_v25 = vld [vmem:[#allocation4 + $0x1d50] ss:$8 sps:$4 sm:$0xff]  }
0x1c91   :  { %7649 = vmatpush1.bf16.msra.mxu1 %v16262_v26  ;;  %v7292_v26 = vld [vmem:[#allocation6 + $0x36] ss:$8 sm:$0x3] }
0x1c92   :  { %7650 = vmatprep.subr.bf16.mxu1 %v16267_v27  ;;  %v7297_v27 = vrot.slane %v7292_v26, %v17498_v54 }
0x1c95   :  { %7651 = vmatpush1.bf16.msra.mxu1 %v16265_v28  ;;  %v7301_v28 = vrot.slane %v7292_v26, %v17501_v56 }
0x1c96   :  { %7652 = vmatprep.subr.bf16.mxu1 %v16270_v41 }
0x1c99   :  { %7653 = vmatpush1.bf16.msra.mxu1 %v16268_v46 }
0x1c9a   :  { %7654 = vmatprep.subr.bf16.mxu1 %v16273_v29 }
0x1c9d   :  { %7655 = vmatpush1.bf16.msra.mxu1 %v16271_v30 }
0x1c9e   :  { %7656 = vmatprep.subr.bf16.mxu1 %v16276_v31 }
0x1ca1   :  { %7657 = vmatpush1.bf16.msra.mxu1 %v16274_v32 }
0x1ca2   :  { %7658 = vmatprep.subr.bf16.mxu1 %v16279_v33 }
0x1ca5   :  { %7659 = vmatpush1.bf16.msra.mxu1 %v16277_v34 }
0x1ca6   :  { %7660 = vmatprep.subr.bf16.mxu1 %v16282_v35 }
0x1ca9   :  { %7661 = vmatpush1.bf16.msra.mxu1 %v16280_v36 }
0x1caa   :  { %7662 = vmatprep.subr.bf16.mxu1 %v16285_v50  ;;  %v16348_v50 = vld [vmem:[#allocation4 + $0x1db4] ss:$8 sps:$4 sm:$0xff]  }
0x1cad   :  { %7663 = vmatpush1.bf16.msra.mxu1 %v16283_v51  ;;  %v16346_v51 = vld [vmem:[#allocation4 + $0x1db0] ss:$8 sps:$4 sm:$0xff]  }
0x1cae   :  { %7664 = vmatprep.subr.bf16.mxu1 %v16288_v55  ;;  %v16351_v55 = vld [vmem:[#allocation4 + $0x1dc4] ss:$8 sps:$4 sm:$0xff]  }
0x1d47   :  { %v7265_v42 = vpop.f32.mrb[64].mxu1 }
0x1d48   :  { %v7266_v43 = vadd.f32 %v7265_v42, %v7064_v38  ;;  %v7267_v45 = vpop.f32.mrb[65].mxu1  ;;  %v16331_v38 = vld [vmem:[#allocation4 + $0x1d60] ss:$8 sps:$4 sm:$0xff]   ;;  %v16334_v42 = vld [vmem:[#allocation4 + $0x1d70] ss:$8 sps:$4 sm:$0xff]  }
0x1d49   :  { %v7268_v47 = vadd.f32 %v7267_v45, %v7068_v40  ;;  %v7269_v2 = vpop.f32.mrb[66].mxu1  ;;  %v16336_v40 = vld [vmem:[#allocation4 + $0x1d74] ss:$8 sps:$4 sm:$0xff]   ;;  %v16339_v45 = vld [vmem:[#allocation4 + $0x1d84] ss:$8 sps:$4 sm:$0xff]  }
0x1d4a   :  { %v17620_v48 = vadd.f32 %v7266_v43, %v17601_v5  ;;  %v7270_v4 = vpop.f32.mrb[67].mxu1  ;;  %v16286_v5 = vld [vmem:[#allocation4 + $0x1c70] ss:$8 sps:$4 sm:$0xff]   ;;  %v16337_v43 = vld [vmem:[#allocation4 + $0x1d80] ss:$8 sps:$4 sm:$0xff]  }
0x1d4b   :  { %v17623_v49 = vsub.f32 %v17604_v7, %v7268_v47  ;;  %7665 = vmatpush1.bf16.msra.mxu1 %v16286_v5  ;;  %v16291_v7 = vld [vmem:[#allocation4 + $0x1c84] ss:$8 sps:$4 sm:$0xff]   ;;  %v16342_v47 = vld [vmem:[#allocation4 + $0x1d94] ss:$8 sps:$4 sm:$0xff]   ;;  %v16340_v2 = vld [vmem:[#allocation4 + $0x1d90] ss:$8 sps:$4 sm:$0xff]  }
0x1d4c   :  { %13115 = vst [vmem:[%s17797_s7 + $0x8] sm:$0xf] %v17620_v48  ;;  %7884 = vmatprep.subr.bf16.mxu0 %v16291_v7  ;;  %8134 = vmatprep.subr.bf16.mxu1 %v16339_v45  ;;  %v16345_v4 = vld [vmem:[#allocation4 + $0x1da4] ss:$8 sps:$4 sm:$0xff]   ;;  %v16349_v5 = vld [vmem:[#allocation4 + $0x1dc0] ss:$8 sps:$4 sm:$0xff]  }
0x1d4d   :  { %v7290_v44 = vpack.c.bf16 %v17623_v49, %v17623_v49  ;;  %v16352_v7 = vld [vmem:[#allocation4 + $0x1dd0] ss:$8 sps:$4 sm:$0xff]  }
0x1d4e   :  { %v16400_v45 = vld [vmem:[#allocation4 + $0x1ed0] ss:$8 sps:$4 sm:$0xff]  }
0x1d4f   :  { %7417 = vmatmul.mubr.bf16.vlgmr.msra.gmra.mrb[60].mxu0 %v7290_v44  ;;  %v16343_v44 = vld [vmem:[#allocation4 + $0x1da0] ss:$8 sps:$4 sm:$0xff]  }
0x1d50   :  { %7885 = vmatpush1.bf16.msra.mxu0 %v16289_v57  ;;  %v16354_v57 = vld [vmem:[#allocation4 + $0x1dd4] ss:$8 sps:$4 sm:$0xff]  }
0x1d51   :  { %7886 = vmatprep.subr.bf16.mxu0 %v16294_v58  ;;  %v16357_v58 = vld [vmem:[#allocation4 + $0x1de4] ss:$8 sps:$4 sm:$0xff]  }
0x1d54   :  { %7887 = vmatpush1.bf16.msra.mxu0 %v16292_v59  ;;  %v16355_v59 = vld [vmem:[#allocation4 + $0x1de0] ss:$8 sps:$4 sm:$0xff]  }
0x1d55   :  { %7888 = vmatprep.subr.bf16.mxu0 %v16297_v60  ;;  %v16360_v60 = vld [vmem:[#allocation4 + $0x1df4] ss:$8 sps:$4 sm:$0xff]  }
0x1d58   :  { %7889 = vmatpush1.bf16.msra.mxu0 %v16295_v61  ;;  %v16358_v61 = vld [vmem:[#allocation4 + $0x1df0] ss:$8 sps:$4 sm:$0xff]  }
0x1d59   :  { %7890 = vmatprep.subr.bf16.mxu0 %v16300_v62  ;;  %v16363_v62 = vld [vmem:[#allocation4 + $0x1e04] ss:$8 sps:$4 sm:$0xff]  }
0x1d5c   :  { %7891 = vmatpush1.bf16.msra.mxu0 %v16298_v63  ;;  %v16361_v63 = vld [vmem:[#allocation4 + $0x1e00] ss:$8 sps:$4 sm:$0xff]  }
0x1d5d   :  { %7892 = vmatprep.subr.bf16.mxu0 %v16303_v3  ;;  %v16366_v3 = vld [vmem:[#allocation4 + $0x1e14] ss:$8 sps:$4 sm:$0xff]  }
0x1d60   :  { %7893 = vmatpush1.bf16.msra.mxu0 %v16301_v12  ;;  %v16364_v12 = vld [vmem:[#allocation4 + $0x1e10] ss:$8 sps:$4 sm:$0xff]  }
0x1d61   :  { %7894 = vmatprep.subr.bf16.mxu0 %v16306_v6  ;;  %v16369_v6 = vld [vmem:[#allocation4 + $0x1e24] ss:$8 sps:$4 sm:$0xff]  }
0x1d64   :  { %7895 = vmatpush1.bf16.msra.mxu0 %v16304_v10  ;;  %v16367_v10 = vld [vmem:[#allocation4 + $0x1e20] ss:$8 sps:$4 sm:$0xff]  }
0x1d65   :  { %7896 = vmatprep.subr.bf16.mxu0 %v16309_v14  ;;  %v16372_v14 = vld [vmem:[#allocation4 + $0x1e34] ss:$8 sps:$4 sm:$0xff]  }
0x1d68   :  { %7897 = vmatpush1.bf16.msra.mxu0 %v16307_v8  ;;  %v16370_v8 = vld [vmem:[#allocation4 + $0x1e30] ss:$8 sps:$4 sm:$0xff]  }
0x1d69   :  { %7898 = vmatprep.subr.bf16.mxu0 %v16312_v9  ;;  %v16375_v9 = vld [vmem:[#allocation4 + $0x1e44] ss:$8 sps:$4 sm:$0xff]  }
0x1d6c   :  { %7899 = vmatpush1.bf16.msra.mxu0 %v16310_v19  ;;  %v16373_v19 = vld [vmem:[#allocation4 + $0x1e40] ss:$8 sps:$4 sm:$0xff]  }
0x1d6d   :  { %7900 = vmatprep.subr.bf16.mxu0 %v16315_v11  ;;  %v16378_v11 = vld [vmem:[#allocation4 + $0x1e54] ss:$8 sps:$4 sm:$0xff]  }
0x1d70   :  { %7901 = vmatpush1.bf16.msra.mxu0 %v16313_v13  ;;  %v16376_v13 = vld [vmem:[#allocation4 + $0x1e50] ss:$8 sps:$4 sm:$0xff]  }
0x1d71   :  { %7902 = vmatprep.subr.bf16.mxu0 %v16318_v15  ;;  %v7462_v15 = vld [vmem:[#allocation6 + $0x37] ss:$8 sm:$0x3] }
0x1d74   :  { %7903 = vmatpush1.bf16.msra.mxu0 %v16316_v16  ;;  %v7467_v16 = vrot.slane %v7462_v15, %v17498_v54 }
0x1d75   :  { %7904 = vmatprep.subr.bf16.mxu0 %v16321_v18  ;;  %v7471_v18 = vrot.slane %v7462_v15, %v17501_v56 }
0x1d78   :  { %7905 = vmatpush1.bf16.msra.mxu0 %v16319_v17 }
0x1d79   :  { %7906 = vmatprep.subr.bf16.mxu0 %v16324_v20 }
0x1d7c   :  { %7907 = vmatpush1.bf16.msra.mxu0 %v16322_v21 }
0x1d7d   :  { %7908 = vmatprep.subr.bf16.mxu0 %v16327_v22 }
0x1d80   :  { %7909 = vmatpush1.bf16.msra.mxu0 %v16325_v23 }
0x1d81   :  { %7910 = vmatprep.subr.bf16.mxu0 %v16330_v24 }
0x1d84   :  { %7911 = vmatpush1.bf16.msra.mxu0 %v16328_v25 }
0x1d85   :  { %7912 = vmatprep.subr.bf16.mxu0 %v16333_v37  ;;  %v16396_v37 = vld [vmem:[#allocation4 + $0x1eb4] ss:$8 sps:$4 sm:$0xff]  }
0x1d88   :  { %7913 = vmatpush1.bf16.msra.mxu0 %v16331_v38  ;;  %v16394_v38 = vld [vmem:[#allocation4 + $0x1eb0] ss:$8 sps:$4 sm:$0xff]  }
0x1d89   :  { %7914 = vmatprep.subr.bf16.mxu0 %v16336_v40  ;;  %v16399_v40 = vld [vmem:[#allocation4 + $0x1ec4] ss:$8 sps:$4 sm:$0xff]  }
0x1d8c   :  { %7915 = vmatpush1.bf16.msra.mxu0 %v16334_v42  ;;  %v16397_v42 = vld [vmem:[#allocation4 + $0x1ec0] ss:$8 sps:$4 sm:$0xff]  }
0x1e22   :  { %v7418_v41 = vpop.f32.mrb[60].mxu0 }
0x1e23   :  { %v7419_v46 = vadd.f32 %v7418_v41, %v7297_v27  ;;  %v7420_v29 = vpop.f32.mrb[61].mxu0  ;;  %v16381_v41 = vld [vmem:[#allocation4 + $0x1e64] ss:$8 sps:$4 sm:$0xff]  }
0x1e24   :  { %v7421_v30 = vadd.f32 %v7420_v29, %v7301_v28  ;;  %v7422_v31 = vpop.f32.mrb[62].mxu0  ;;  %v16384_v29 = vld [vmem:[#allocation4 + $0x1e74] ss:$8 sps:$4 sm:$0xff]  }
0x1e25   :  { %v7425_v32 = vmax.f32 %v7419_v46, 0.0  ;;  %v7423_v33 = vpop.f32.mrb[63].mxu0  ;;  %v16379_v46 = vld [vmem:[#allocation4 + $0x1e60] ss:$8 sps:$4 sm:$0xff]  }
0x1e26   :  { %v7426_v34 = vmax.f32 %v7421_v30, 0.0  ;;  %v16382_v30 = vld [vmem:[#allocation4 + $0x1e70] ss:$8 sps:$4 sm:$0xff]   ;;  %v16385_v31 = vld [vmem:[#allocation4 + $0x1e80] ss:$8 sps:$4 sm:$0xff]  }
0x1e27   :  { %v7459_v36 = vpack.c.bf16 %v7425_v32, %v7425_v32  ;;  %v16387_v32 = vld [vmem:[#allocation4 + $0x1e84] ss:$8 sps:$4 sm:$0xff]   ;;  %v16390_v33 = vld [vmem:[#allocation4 + $0x1e94] ss:$8 sps:$4 sm:$0xff]  }
0x1e28   :  { %v7460_v35 = vpack.c.bf16 %v7426_v34, %v7426_v34  ;;  %8382 = vmatprep.subr.bf16.mxu0 %v16387_v32  ;;  %v16388_v34 = vld [vmem:[#allocation4 + $0x1e90] ss:$8 sps:$4 sm:$0xff]  }
0x1e29   :  { %v16448_v32 = vld [vmem:[#allocation4 + $0x1fd0] ss:$8 sps:$4 sm:$0xff]  }
0x1e2a   :  { %7666 = vmatprep.mubr.bf16.mxu1 %v7460_v35  ;;  %v16393_v35 = vld [vmem:[#allocation4 + $0x1ea4] ss:$8 sps:$4 sm:$0xff]  }
0x1e2b   :  { %7667 = vmatmul.mubr.bf16.vlgmr.msra.gmra.mrb[68].mxu1 %v7459_v36  ;;  %v16391_v36 = vld [vmem:[#allocation4 + $0x1ea0] ss:$8 sps:$4 sm:$0xff]  }
0x1e2c   :  { %8135 = vmatpush1.bf16.msra.mxu1 %v16337_v43  ;;  %v16402_v43 = vld [vmem:[#allocation4 + $0x1ed4] ss:$8 sps:$4 sm:$0xff]  }
0x1e2d   :  { %8136 = vmatprep.subr.bf16.mxu1 %v16342_v47  ;;  %v16405_v47 = vld [vmem:[#allocation4 + $0x1ee4] ss:$8 sps:$4 sm:$0xff]  }
0x1e30   :  { %8137 = vmatpush1.bf16.msra.mxu1 %v16340_v2  ;;  %v16403_v2 = vld [vmem:[#allocation4 + $0x1ee0] ss:$8 sps:$4 sm:$0xff]  }
0x1e31   :  { %8138 = vmatprep.subr.bf16.mxu1 %v16345_v4  ;;  %v16408_v4 = vld [vmem:[#allocation4 + $0x1ef4] ss:$8 sps:$4 sm:$0xff]  }
0x1e34   :  { %8139 = vmatpush1.bf16.msra.mxu1 %v16343_v44  ;;  %v16406_v44 = vld [vmem:[#allocation4 + $0x1ef0] ss:$8 sps:$4 sm:$0xff]  }
0x1e35   :  { %8140 = vmatprep.subr.bf16.mxu1 %v16348_v50  ;;  %v16411_v50 = vld [vmem:[#allocation4 + $0x1f04] ss:$8 sps:$4 sm:$0xff]  }
0x1e38   :  { %8141 = vmatpush1.bf16.msra.mxu1 %v16346_v51  ;;  %v16409_v51 = vld [vmem:[#allocation4 + $0x1f00] ss:$8 sps:$4 sm:$0xff]  }
0x1e39   :  { %8142 = vmatprep.subr.bf16.mxu1 %v16351_v55  ;;  %v16414_v55 = vld [vmem:[#allocation4 + $0x1f14] ss:$8 sps:$4 sm:$0xff]  }
0x1e3c   :  { %8143 = vmatpush1.bf16.msra.mxu1 %v16349_v5  ;;  %v16412_v5 = vld [vmem:[#allocation4 + $0x1f10] ss:$8 sps:$4 sm:$0xff]  }
0x1e3d   :  { %8144 = vmatprep.subr.bf16.mxu1 %v16354_v57  ;;  %v16417_v57 = vld [vmem:[#allocation4 + $0x1f24] ss:$8 sps:$4 sm:$0xff]  }
0x1e40   :  { %8145 = vmatpush1.bf16.msra.mxu1 %v16352_v7  ;;  %v16415_v7 = vld [vmem:[#allocation4 + $0x1f20] ss:$8 sps:$4 sm:$0xff]  }
0x1e41   :  { %8146 = vmatprep.subr.bf16.mxu1 %v16357_v58  ;;  %v16420_v58 = vld [vmem:[#allocation4 + $0x1f34] ss:$8 sps:$4 sm:$0xff]  }
0x1e44   :  { %8147 = vmatpush1.bf16.msra.mxu1 %v16355_v59  ;;  %v16418_v59 = vld [vmem:[#allocation4 + $0x1f30] ss:$8 sps:$4 sm:$0xff]  }
0x1e45   :  { %8148 = vmatprep.subr.bf16.mxu1 %v16360_v60  ;;  %v16423_v60 = vld [vmem:[#allocation4 + $0x1f44] ss:$8 sps:$4 sm:$0xff]  }
0x1e48   :  { %8149 = vmatpush1.bf16.msra.mxu1 %v16358_v61  ;;  %v16421_v61 = vld [vmem:[#allocation4 + $0x1f40] ss:$8 sps:$4 sm:$0xff]  }
0x1e49   :  { %8150 = vmatprep.subr.bf16.mxu1 %v16363_v62  ;;  %v16426_v62 = vld [vmem:[#allocation4 + $0x1f54] ss:$8 sps:$4 sm:$0xff]  }
0x1e4c   :  { %8151 = vmatpush1.bf16.msra.mxu1 %v16361_v63  ;;  %v16424_v63 = vld [vmem:[#allocation4 + $0x1f50] ss:$8 sps:$4 sm:$0xff]  }
0x1e4d   :  { %8152 = vmatprep.subr.bf16.mxu1 %v16366_v3  ;;  %v16429_v3 = vld [vmem:[#allocation4 + $0x1f64] ss:$8 sps:$4 sm:$0xff]  }
0x1e50   :  { %8153 = vmatpush1.bf16.msra.mxu1 %v16364_v12  ;;  %v16427_v12 = vld [vmem:[#allocation4 + $0x1f60] ss:$8 sps:$4 sm:$0xff]  }
0x1e51   :  { %8154 = vmatprep.subr.bf16.mxu1 %v16369_v6  ;;  %v7712_v6 = vld [vmem:[#allocation6 + $0x40] ss:$8 sm:$0x3] }
0x1e54   :  { %8155 = vmatpush1.bf16.msra.mxu1 %v16367_v10  ;;  %v7717_v10 = vrot.slane %v7712_v6, %v17498_v54 }
0x1e55   :  { %8156 = vmatprep.subr.bf16.mxu1 %v16372_v14  ;;  %v7721_v14 = vrot.slane %v7712_v6, %v17501_v56  ;;  %v16475_v6 = vld [vmem:[#allocation4 + $0x2060] ss:$8 sps:$4 sm:$0xff]  }
0x1e58   :  { %8157 = vmatpush1.bf16.msra.mxu1 %v16370_v8 }
0x1e59   :  { %8158 = vmatprep.subr.bf16.mxu1 %v16375_v9 }
0x1e5c   :  { %8159 = vmatpush1.bf16.msra.mxu1 %v16373_v19 }
0x1e5d   :  { %8160 = vmatprep.subr.bf16.mxu1 %v16378_v11 }
0x1e60   :  { %8161 = vmatpush1.bf16.msra.mxu1 %v16376_v13 }
0x1e61   :  { %8162 = vmatprep.subr.bf16.mxu1 %v16381_v41  ;;  %v16444_v41 = vld [vmem:[#allocation4 + $0x1fb4] ss:$8 sps:$4 sm:$0xff]  }
0x1e64   :  { %8163 = vmatpush1.bf16.msra.mxu1 %v16379_v46  ;;  %v16442_v46 = vld [vmem:[#allocation4 + $0x1fb0] ss:$8 sps:$4 sm:$0xff]  }
0x1e65   :  { %8164 = vmatprep.subr.bf16.mxu1 %v16384_v29  ;;  %v16447_v29 = vld [vmem:[#allocation4 + $0x1fc4] ss:$8 sps:$4 sm:$0xff]  }
0x1e68   :  { %8165 = vmatpush1.bf16.msra.mxu1 %v16382_v30  ;;  %v16445_v30 = vld [vmem:[#allocation4 + $0x1fc0] ss:$8 sps:$4 sm:$0xff]  }
0x1efe   :  { %v7668_v17 = vpop.f32.mrb[68].mxu1 }
0x1eff   :  { %v7669_v20 = vadd.f32 %v7668_v17, %v7467_v16  ;;  %v7670_v21 = vpop.f32.mrb[69].mxu1 }
0x1f00   :  { %v7671_v22 = vadd.f32 %v7670_v21, %v7471_v18  ;;  %v7672_v23 = vpop.f32.mrb[70].mxu1  ;;  %v16432_v21 = vld [vmem:[#allocation4 + $0x1f74] ss:$8 sps:$4 sm:$0xff]  }
0x1f01   :  { %v7675_v24 = vmax.f32 %v7669_v20, 0.0  ;;  %v7673_v25 = vpop.f32.mrb[71].mxu1  ;;  %v16433_v23 = vld [vmem:[#allocation4 + $0x1f80] ss:$8 sps:$4 sm:$0xff]  }
0x1f02   :  { %v7676_v26 = vmax.f32 %v7671_v22, 0.0  ;;  %v16430_v22 = vld [vmem:[#allocation4 + $0x1f70] ss:$8 sps:$4 sm:$0xff]   ;;  %v16438_v25 = vld [vmem:[#allocation4 + $0x1f94] ss:$8 sps:$4 sm:$0xff]  }
0x1f03   :  { %v7709_v28 = vpack.c.bf16 %v7675_v24, %v7675_v24  ;;  %v16435_v24 = vld [vmem:[#allocation4 + $0x1f84] ss:$8 sps:$4 sm:$0xff]  }
0x1f04   :  { %v7710_v27 = vpack.c.bf16 %v7676_v26, %v7676_v26  ;;  %8535 = vmatprep.subr.bf16.mxu1 %v16435_v24  ;;  %v16436_v26 = vld [vmem:[#allocation4 + $0x1f90] ss:$8 sps:$4 sm:$0xff]  }
0x1f06   :  { %7916 = vmatprep.mubr.bf16.mxu0 %v7710_v27  ;;  %v16441_v27 = vld [vmem:[#allocation4 + $0x1fa4] ss:$8 sps:$4 sm:$0xff]  }
0x1f07   :  { %7917 = vmatmul.mubr.bf16.vlgmr.msra.gmra.mrb[64].mxu0 %v7709_v28  ;;  %v16439_v28 = vld [vmem:[#allocation4 + $0x1fa0] ss:$8 sps:$4 sm:$0xff]  }
0x1f08   :  { %8383 = vmatpush1.bf16.msra.mxu0 %v16385_v31  ;;  %v16450_v31 = vld [vmem:[#allocation4 + $0x1fd4] ss:$8 sps:$4 sm:$0xff]  }
0x1f09   :  { %8384 = vmatprep.subr.bf16.mxu0 %v16390_v33  ;;  %v7962_v33 = vld [vmem:[#allocation6 + $0x41] ss:$8 sm:$0x3] }
0x1f0c   :  { %8385 = vmatpush1.bf16.msra.mxu0 %v16388_v34  ;;  %v7967_v34 = vrot.slane %v7962_v33, %v17498_v54 }
0x1f0d   :  { %8386 = vmatprep.subr.bf16.mxu0 %v16393_v35  ;;  %v7971_v35 = vrot.slane %v7962_v33, %v17501_v56  ;;  %v16502_v33 = vld [vmem:[#allocation4 + $0x20f0] ss:$8 sps:$4 sm:$0xff]  }
0x1f10   :  { %8387 = vmatpush1.bf16.msra.mxu0 %v16391_v36 }
0x1f11   :  { %8388 = vmatprep.subr.bf16.mxu0 %v16396_v37 }
0x1f14   :  { %8389 = vmatpush1.bf16.msra.mxu0 %v16394_v38 }
0x1f15   :  { %8390 = vmatprep.subr.bf16.mxu0 %v16399_v40 }
0x1f18   :  { %8391 = vmatpush1.bf16.msra.mxu0 %v16397_v42 }
0x1f19   :  { %8392 = vmatprep.subr.bf16.mxu0 %v16402_v43 }
0x1f1c   :  { %8393 = vmatpush1.bf16.msra.mxu0 %v16400_v45 }
0x1f1d   :  { %8394 = vmatprep.subr.bf16.mxu0 %v16405_v47 }
0x1f20   :  { %8395 = vmatpush1.bf16.msra.mxu0 %v16403_v2  ;;  %v16453_v2 = vld [vmem:[#allocation4 + $0x1fe4] ss:$8 sps:$4 sm:$0xff]  }
0x1f21   :  { %8396 = vmatprep.subr.bf16.mxu0 %v16408_v4  ;;  %v16451_v4 = vld [vmem:[#allocation4 + $0x1fe0] ss:$8 sps:$4 sm:$0xff]  }
0x1f24   :  { %8397 = vmatpush1.bf16.msra.mxu0 %v16406_v44  ;;  %v16456_v44 = vld [vmem:[#allocation4 + $0x1ff4] ss:$8 sps:$4 sm:$0xff]  }
0x1f25   :  { %8398 = vmatprep.subr.bf16.mxu0 %v16411_v50  ;;  %v16454_v50 = vld [vmem:[#allocation4 + $0x1ff0] ss:$8 sps:$4 sm:$0xff]  }
0x1f28   :  { %8399 = vmatpush1.bf16.msra.mxu0 %v16409_v51  ;;  %v16457_v51 = vld [vmem:[#allocation4 + $0x2000] ss:$8 sps:$4 sm:$0xff]  }
0x1f29   :  { %8400 = vmatprep.subr.bf16.mxu0 %v16414_v55  ;;  %v16459_v55 = vld [vmem:[#allocation4 + $0x2004] ss:$8 sps:$4 sm:$0xff]  }
0x1f2c   :  { %8401 = vmatpush1.bf16.msra.mxu0 %v16412_v5  ;;  %v16462_v5 = vld [vmem:[#allocation4 + $0x2014] ss:$8 sps:$4 sm:$0xff]  }
0x1f2d   :  { %8402 = vmatprep.subr.bf16.mxu0 %v16417_v57  ;;  %v16460_v57 = vld [vmem:[#allocation4 + $0x2010] ss:$8 sps:$4 sm:$0xff]  }
0x1f30   :  { %8403 = vmatpush1.bf16.msra.mxu0 %v16415_v7  ;;  %v16465_v7 = vld [vmem:[#allocation4 + $0x2024] ss:$8 sps:$4 sm:$0xff]  }
0x1f31   :  { %8404 = vmatprep.subr.bf16.mxu0 %v16420_v58  ;;  %v16463_v58 = vld [vmem:[#allocation4 + $0x2020] ss:$8 sps:$4 sm:$0xff]  }
0x1f34   :  { %8405 = vmatpush1.bf16.msra.mxu0 %v16418_v59  ;;  %v16468_v59 = vld [vmem:[#allocation4 + $0x2034] ss:$8 sps:$4 sm:$0xff]  }
0x1f35   :  { %8406 = vmatprep.subr.bf16.mxu0 %v16423_v60  ;;  %v16466_v60 = vld [vmem:[#allocation4 + $0x2030] ss:$8 sps:$4 sm:$0xff]  }
0x1f38   :  { %8407 = vmatpush1.bf16.msra.mxu0 %v16421_v61  ;;  %v16471_v61 = vld [vmem:[#allocation4 + $0x2044] ss:$8 sps:$4 sm:$0xff]  }
0x1f39   :  { %8408 = vmatprep.subr.bf16.mxu0 %v16426_v62  ;;  %v16469_v62 = vld [vmem:[#allocation4 + $0x2040] ss:$8 sps:$4 sm:$0xff]  }
0x1f3c   :  { %8409 = vmatpush1.bf16.msra.mxu0 %v16424_v63  ;;  %v16474_v63 = vld [vmem:[#allocation4 + $0x2054] ss:$8 sps:$4 sm:$0xff]  }
0x1f3d   :  { %8410 = vmatprep.subr.bf16.mxu0 %v16429_v3  ;;  %v16472_v3 = vld [vmem:[#allocation4 + $0x2050] ss:$8 sps:$4 sm:$0xff]  }
0x1f40   :  { %8411 = vmatpush1.bf16.msra.mxu0 %v16427_v12  ;;  %v16477_v12 = vld [vmem:[#allocation4 + $0x2064] ss:$8 sps:$4 sm:$0xff]  }
0x1f41   :  { %8412 = vmatprep.subr.bf16.mxu0 %v16432_v21  ;;  %v16498_v21 = vld [vmem:[#allocation4 + $0x20d4] ss:$8 sps:$4 sm:$0xff]  }
0x1f44   :  { %8413 = vmatpush1.bf16.msra.mxu0 %v16430_v22  ;;  %v16496_v22 = vld [vmem:[#allocation4 + $0x20d0] ss:$8 sps:$4 sm:$0xff]  }
0x1f45   :  { %8785 = vmatprep.subr.bf16.mxu0 %v16459_v55  ;;  %v16531_v55 = vld [vmem:[#allocation4 + $0x2184] ss:$8 sps:$4 sm:$0xff]  }
0x1fda   :  { %v7918_v8 = vpop.f32.mrb[64].mxu0 }
0x1fdb   :  { %v7919_v9 = vadd.f32 %v7918_v8, %v7717_v10  ;;  %v7920_v19 = vpop.f32.mrb[65].mxu0  ;;  %v16480_v10 = vld [vmem:[#allocation4 + $0x2074] ss:$8 sps:$4 sm:$0xff]   ;;  %v16483_v8 = vld [vmem:[#allocation4 + $0x2084] ss:$8 sps:$4 sm:$0xff]  }
0x1fdc   :  { %v7921_v11 = vadd.f32 %v7920_v19, %v7721_v14  ;;  %v7922_v13 = vpop.f32.mrb[66].mxu0  ;;  %v16478_v14 = vld [vmem:[#allocation4 + $0x2070] ss:$8 sps:$4 sm:$0xff]   ;;  %v16486_v19 = vld [vmem:[#allocation4 + $0x2094] ss:$8 sps:$4 sm:$0xff]  }
0x1fdd   :  { %v7925_v15 = vmax.f32 %v7919_v9, 0.0  ;;  %v7923_v16 = vpop.f32.mrb[67].mxu0  ;;  %v16481_v9 = vld [vmem:[#allocation4 + $0x2080] ss:$8 sps:$4 sm:$0xff]   ;;  %v16489_v13 = vld [vmem:[#allocation4 + $0x20a4] ss:$8 sps:$4 sm:$0xff]  }
0x1fde   :  { %v7926_v18 = vmax.f32 %v7921_v11, 0.0  ;;  %v16484_v11 = vld [vmem:[#allocation4 + $0x2090] ss:$8 sps:$4 sm:$0xff]   ;;  %v16492_v16 = vld [vmem:[#allocation4 + $0x20b4] ss:$8 sps:$4 sm:$0xff]  }
0x1fdf   :  { %v7959_v20 = vpack.c.bf16 %v7925_v15, %v7925_v15  ;;  %v16487_v15 = vld [vmem:[#allocation4 + $0x20a0] ss:$8 sps:$4 sm:$0xff]  }
0x1fe0   :  { %v7960_v17 = vpack.c.bf16 %v7926_v18, %v7926_v18  ;;  %v16490_v18 = vld [vmem:[#allocation4 + $0x20b0] ss:$8 sps:$4 sm:$0xff]  }
0x1fe2   :  { %8166 = vmatprep.mubr.bf16.mxu1 %v7960_v17  ;;  %v16495_v17 = vld [vmem:[#allocation4 + $0x20c4] ss:$8 sps:$4 sm:$0xff]  }
0x1fe3   :  { %8167 = vmatmul.mubr.bf16.vlgmr.msra.gmra.mrb[72].mxu1 %v7959_v20  ;;  %v16493_v20 = vld [vmem:[#allocation4 + $0x20c0] ss:$8 sps:$4 sm:$0xff]  }
0x1fe4   :  { %8567 = vmatprep.mubr.bf16.mxu1 %v17334_v1  ;;  %8536 = vmatpush1.bf16.msra.mxu1 %v16433_v23  ;;  %v17640_v23 = vld [vmem:[#allocation6 + $0x42] ss:$8 sm:$0x3] }
0x1fe5   :  { %8537 = vmatprep.subr.bf16.mxu1 %v16438_v25  ;;  %v8219_v24 = vrot.slane %v17640_v23, %v17501_v56 }
0x1fe8   :  { %8538 = vmatpush1.bf16.msra.mxu1 %v16436_v26 }
0x1fe9   :  { %8539 = vmatprep.subr.bf16.mxu1 %v16441_v27 }
0x1fec   :  { %8540 = vmatpush1.bf16.msra.mxu1 %v16439_v28 }
0x1fed   :  { %8541 = vmatprep.subr.bf16.mxu1 %v16444_v41 }
0x1ff0   :  { %8542 = vmatpush1.bf16.msra.mxu1 %v16442_v46 }
0x1ff1   :  { %8543 = vmatprep.subr.bf16.mxu1 %v16447_v29 }
0x1ff4   :  { %8544 = vmatpush1.bf16.msra.mxu1 %v16445_v30  ;;  %v16501_v30 = vld [vmem:[#allocation4 + $0x20e4] ss:$8 sps:$4 sm:$0xff]  }
0x1ff5   :  { %8545 = vmatprep.subr.bf16.mxu1 %v16450_v31  ;;  %v16499_v31 = vld [vmem:[#allocation4 + $0x20e0] ss:$8 sps:$4 sm:$0xff]  }
0x1ff8   :  { %8546 = vmatpush1.bf16.msra.mxu1 %v16448_v32  ;;  %v16504_v32 = vld [vmem:[#allocation4 + $0x20f4] ss:$8 sps:$4 sm:$0xff]  }
0x1ff9   :  { %8547 = vmatprep.subr.bf16.mxu1 %v16453_v2  ;;  %v16520_v2 = vld [vmem:[#allocation4 + $0x2150] ss:$8 sps:$4 sm:$0xff]  }
0x1ffc   :  { %8548 = vmatpush1.bf16.msra.mxu1 %v16451_v4  ;;  %v16525_v4 = vld [vmem:[#allocation4 + $0x2164] ss:$8 sps:$4 sm:$0xff]  }
0x1ffd   :  { %8549 = vmatprep.subr.bf16.mxu1 %v16456_v44  ;;  %v16523_v44 = vld [vmem:[#allocation4 + $0x2160] ss:$8 sps:$4 sm:$0xff]  }
0x2000   :  { %8550 = vmatpush1.bf16.msra.mxu1 %v16454_v50  ;;  %v16528_v50 = vld [vmem:[#allocation4 + $0x2174] ss:$8 sps:$4 sm:$0xff]  }
0x20b6   :  { %v8168_v36 = vpop.f32.mrb[72].mxu1 }
0x20b7   :  { %v8169_v37 = vadd.f32 %v8168_v36, %v7967_v34  ;;  %v8170_v38 = vpop.f32.mrb[73].mxu1  ;;  %v16505_v34 = vld [vmem:[#allocation4 + $0x2100] ss:$8 sps:$4 sm:$0xff]   ;;  %v16510_v36 = vld [vmem:[#allocation4 + $0x2114] ss:$8 sps:$4 sm:$0xff]  }
0x20b8   :  { %v8171_v40 = vadd.f32 %v8170_v38, %v7971_v35  ;;  %v8172_v42 = vpop.f32.mrb[74].mxu1  ;;  %v16507_v35 = vld [vmem:[#allocation4 + $0x2104] ss:$8 sps:$4 sm:$0xff]   ;;  %v16511_v38 = vld [vmem:[#allocation4 + $0x2120] ss:$8 sps:$4 sm:$0xff]  }
0x20b9   :  { %v8173_v43 = vpop.f32.mrb[75].mxu1  ;;  %v8207_v47 = vpack.c.bf16 %v8169_v37, %v8169_v37  ;;  %9035 = vmatprep.subr.bf16.mxu1 %v16507_v35  ;;  %v16508_v37 = vld [vmem:[#allocation4 + $0x2110] ss:$8 sps:$4 sm:$0xff]   ;;  %v16565_v35 = vld [vmem:[#allocation4 + $0x2240] ss:$8 sps:$4 sm:$0xff]  }
0x20ba   :  { %v8208_v45 = vpack.c.bf16 %v8171_v40, %v8171_v40  ;;  %v16516_v40 = vld [vmem:[#allocation4 + $0x2134] ss:$8 sps:$4 sm:$0xff]   ;;  %v16514_v42 = vld [vmem:[#allocation4 + $0x2130] ss:$8 sps:$4 sm:$0xff]   ;;  %v16519_v43 = vld [vmem:[#allocation4 + $0x2144] ss:$8 sps:$4 sm:$0xff]  }
0x20bc   :  { %8414 = vmatprep.mubr.bf16.mxu0 %v8208_v45  ;;  %v16517_v45 = vld [vmem:[#allocation4 + $0x2140] ss:$8 sps:$4 sm:$0xff]  }
0x20bd   :  { %8415 = vmatmul.mubr.bf16.vlgmr.msra.gmra.mrb[68].mxu0 %v8207_v47  ;;  %v16522_v47 = vld [vmem:[#allocation4 + $0x2154] ss:$8 sps:$4 sm:$0xff]  }
0x20be   :  { %8786 = vmatpush1.bf16.msra.mxu0 %v16457_v51  ;;  %v16526_v51 = vld [vmem:[#allocation4 + $0x2170] ss:$8 sps:$4 sm:$0xff]  }
0x20bf   :  { %8787 = vmatprep.subr.bf16.mxu0 %v16462_v5  ;;  %v16529_v5 = vld [vmem:[#allocation4 + $0x2180] ss:$8 sps:$4 sm:$0xff]  }
0x20c2   :  { %8788 = vmatpush1.bf16.msra.mxu0 %v16460_v57  ;;  %v16534_v57 = vld [vmem:[#allocation4 + $0x2194] ss:$8 sps:$4 sm:$0xff]  }
0x20c3   :  { %8789 = vmatprep.subr.bf16.mxu0 %v16465_v7  ;;  %v16532_v7 = vld [vmem:[#allocation4 + $0x2190] ss:$8 sps:$4 sm:$0xff]  }
0x20c6   :  { %8790 = vmatpush1.bf16.msra.mxu0 %v16463_v58  ;;  %v16537_v58 = vld [vmem:[#allocation4 + $0x21a4] ss:$8 sps:$4 sm:$0xff]  }
0x20c7   :  { %8791 = vmatprep.subr.bf16.mxu0 %v16468_v59  ;;  %v16535_v59 = vld [vmem:[#allocation4 + $0x21a0] ss:$8 sps:$4 sm:$0xff]  }
0x20ca   :  { %8792 = vmatpush1.bf16.msra.mxu0 %v16466_v60  ;;  %v16540_v60 = vld [vmem:[#allocation4 + $0x21b4] ss:$8 sps:$4 sm:$0xff]  }
0x20cb   :  { %8793 = vmatprep.subr.bf16.mxu0 %v16471_v61  ;;  %v16538_v61 = vld [vmem:[#allocation4 + $0x21b0] ss:$8 sps:$4 sm:$0xff]  }
0x20ce   :  { %8794 = vmatpush1.bf16.msra.mxu0 %v16469_v62  ;;  %v16543_v62 = vld [vmem:[#allocation4 + $0x21c4] ss:$8 sps:$4 sm:$0xff]  }
0x20cf   :  { %8795 = vmatprep.subr.bf16.mxu0 %v16474_v63  ;;  %v16541_v63 = vld [vmem:[#allocation4 + $0x21c0] ss:$8 sps:$4 sm:$0xff]  }
0x20d2   :  { %8796 = vmatpush1.bf16.msra.mxu0 %v16472_v3  ;;  %v16546_v3 = vld [vmem:[#allocation4 + $0x21d4] ss:$8 sps:$4 sm:$0xff]  }
0x20d3   :  { %8797 = vmatprep.subr.bf16.mxu0 %v16477_v12  ;;  %v16544_v12 = vld [vmem:[#allocation4 + $0x21d0] ss:$8 sps:$4 sm:$0xff]  }
0x20d6   :  { %8798 = vmatpush1.bf16.msra.mxu0 %v16475_v6  ;;  %v8443_v6 = vld [vmem:[#allocation6 + $0x43] ss:$8 sm:$0x3] }
0x20d7   :  { %8799 = vmatprep.subr.bf16.mxu0 %v16480_v10  ;;  %v8448_v10 = vrot.slane %v8443_v6, %v17498_v54 }
0x20da   :  { %8800 = vmatpush1.bf16.msra.mxu0 %v16478_v14  ;;  %v8452_v14 = vrot.slane %v8443_v6, %v17501_v56 }
0x20db   :  { %8801 = vmatprep.subr.bf16.mxu0 %v16483_v8 }
0x20de   :  { %8802 = vmatpush1.bf16.msra.mxu0 %v16481_v9 }
0x20df   :  { %8803 = vmatprep.subr.bf16.mxu0 %v16486_v19 }
0x20e2   :  { %8804 = vmatpush1.bf16.msra.mxu0 %v16484_v11 }
0x20e3   :  { %8805 = vmatprep.subr.bf16.mxu0 %v16489_v13 }
0x20e6   :  { %8806 = vmatpush1.bf16.msra.mxu0 %v16487_v15 }
0x20e7   :  { %8807 = vmatprep.subr.bf16.mxu0 %v16492_v16 }
0x20ea   :  { %8808 = vmatpush1.bf16.msra.mxu0 %v16490_v18 }
0x20eb   :  { %8809 = vmatprep.subr.bf16.mxu0 %v16495_v17 }
0x20ee   :  { %8810 = vmatpush1.bf16.msra.mxu0 %v16493_v20 }
0x20ef   :  { %8811 = vmatprep.subr.bf16.mxu0 %v16498_v21  ;;  %v16549_v21 = vld [vmem:[#allocation4 + $0x21e4] ss:$8 sps:$4 sm:$0xff]  }
0x20f2   :  { %8812 = vmatpush1.bf16.msra.mxu0 %v16496_v22  ;;  %v16547_v22 = vld [vmem:[#allocation4 + $0x21e0] ss:$8 sps:$4 sm:$0xff]  }
0x20f3   :  { %8813 = vmatprep.subr.bf16.mxu0 %v16501_v30  ;;  %v16561_v30 = vld [vmem:[#allocation4 + $0x2224] ss:$8 sps:$4 sm:$0xff]  }
0x20f6   :  { %8814 = vmatpush1.bf16.msra.mxu0 %v16499_v31  ;;  %v16559_v31 = vld [vmem:[#allocation4 + $0x2220] ss:$8 sps:$4 sm:$0xff]  }
0x20f7   :  { %8815 = vmatprep.subr.bf16.mxu0 %v16504_v32  ;;  %v16564_v32 = vld [vmem:[#allocation4 + $0x2234] ss:$8 sps:$4 sm:$0xff]  }
0x20fa   :  { %8816 = vmatpush1.bf16.msra.mxu0 %v16502_v33  ;;  %v16562_v33 = vld [vmem:[#allocation4 + $0x2230] ss:$8 sps:$4 sm:$0xff]  }
0x2190   :  { %v17644_v25 = vpop.f32.mrb[68].mxu0 }
0x2191   :  { %v8418_v26 = vpop.f32.mrb[69].mxu0 }
0x2192   :  { %v8419_v27 = vadd.f32 %v8418_v26, %v8219_v24  ;;  %v8420_v28 = vpop.f32.mrb[70].mxu0  ;;  %v16552_v24 = vld [vmem:[#allocation4 + $0x21f4] ss:$8 sps:$4 sm:$0xff]   ;;  %v16550_v26 = vld [vmem:[#allocation4 + $0x21f0] ss:$8 sps:$4 sm:$0xff]  }
0x2193   :  { %v8421_v41 = vpop.f32.mrb[71].mxu0  ;;  %v16555_v28 = vld [vmem:[#allocation4 + $0x2204] ss:$8 sps:$4 sm:$0xff]  }
0x2194   :  { %v17647_v46 = vsub.f32 %v17623_v49, %v8419_v27  ;;  %v16513_v49 = vld [vmem:[#allocation4 + $0x2124] ss:$8 sps:$4 sm:$0xff]   ;;  %v16553_v27 = vld [vmem:[#allocation4 + $0x2200] ss:$8 sps:$4 sm:$0xff]   ;;  %v16558_v41 = vld [vmem:[#allocation4 + $0x2214] ss:$8 sps:$4 sm:$0xff]   ;;  %9285 = vmatprep.subr.bf16.mxu0 %v16555_v28 }
0x2195   :  { %v16613_v28 = vld [vmem:[#allocation4 + $0x2340] ss:$8 sps:$4 sm:$0xff]  }
0x2196   :  { %v8441_v29 = vpack.c.bf16 %v17647_v46, %v17647_v46 }
0x2198   :  { %8568 = vmatmul.mubr.bf16.vlgmr.msra.gmra.mrb[76].mxu1 %v8441_v29  ;;  %v16556_v29 = vld [vmem:[#allocation4 + $0x2210] ss:$8 sps:$4 sm:$0xff]  }
0x2199   :  { %9036 = vmatpush1.bf16.msra.mxu1 %v16505_v34  ;;  %v16567_v34 = vld [vmem:[#allocation4 + $0x2244] ss:$8 sps:$4 sm:$0xff]  }
0x219a   :  { %9037 = vmatprep.subr.bf16.mxu1 %v16510_v36  ;;  %v16570_v36 = vld [vmem:[#allocation4 + $0x2254] ss:$8 sps:$4 sm:$0xff]  }
0x219d   :  { %9038 = vmatpush1.bf16.msra.mxu1 %v16508_v37  ;;  %v16568_v37 = vld [vmem:[#allocation4 + $0x2250] ss:$8 sps:$4 sm:$0xff]  }
0x219e   :  { %9039 = vmatprep.subr.bf16.mxu1 %v16513_v49  ;;  %v16573_v49 = vld [vmem:[#allocation4 + $0x2264] ss:$8 sps:$4 sm:$0xff]  }
0x21a1   :  { %9040 = vmatpush1.bf16.msra.mxu1 %v16511_v38  ;;  %v16571_v38 = vld [vmem:[#allocation4 + $0x2260] ss:$8 sps:$4 sm:$0xff]  }
0x21a2   :  { %9041 = vmatprep.subr.bf16.mxu1 %v16516_v40  ;;  %v16576_v40 = vld [vmem:[#allocation4 + $0x2274] ss:$8 sps:$4 sm:$0xff]  }
0x21a5   :  { %9042 = vmatpush1.bf16.msra.mxu1 %v16514_v42  ;;  %v16574_v42 = vld [vmem:[#allocation4 + $0x2270] ss:$8 sps:$4 sm:$0xff]  }
0x21a6   :  { %9043 = vmatprep.subr.bf16.mxu1 %v16519_v43  ;;  %v16579_v43 = vld [vmem:[#allocation4 + $0x2284] ss:$8 sps:$4 sm:$0xff]  }
0x21a9   :  { %9044 = vmatpush1.bf16.msra.mxu1 %v16517_v45  ;;  %v16577_v45 = vld [vmem:[#allocation4 + $0x2280] ss:$8 sps:$4 sm:$0xff]  }
0x21aa   :  { %9045 = vmatprep.subr.bf16.mxu1 %v16522_v47  ;;  %v16582_v47 = vld [vmem:[#allocation4 + $0x2294] ss:$8 sps:$4 sm:$0xff]  }
0x21ad   :  { %9046 = vmatpush1.bf16.msra.mxu1 %v16520_v2  ;;  %v16580_v2 = vld [vmem:[#allocation4 + $0x2290] ss:$8 sps:$4 sm:$0xff]  }
0x21ae   :  { %9047 = vmatprep.subr.bf16.mxu1 %v16525_v4  ;;  %v16585_v4 = vld [vmem:[#allocation4 + $0x22a4] ss:$8 sps:$4 sm:$0xff]  }
0x21b1   :  { %9048 = vmatpush1.bf16.msra.mxu1 %v16523_v44  ;;  %v16583_v44 = vld [vmem:[#allocation4 + $0x22a0] ss:$8 sps:$4 sm:$0xff]  }
0x21b2   :  { %9049 = vmatprep.subr.bf16.mxu1 %v16528_v50  ;;  %v16588_v50 = vld [vmem:[#allocation4 + $0x22b4] ss:$8 sps:$4 sm:$0xff]  }
0x21b5   :  { %9050 = vmatpush1.bf16.msra.mxu1 %v16526_v51  ;;  %v16586_v51 = vld [vmem:[#allocation4 + $0x22b0] ss:$8 sps:$4 sm:$0xff]  }
0x21b6   :  { %9051 = vmatprep.subr.bf16.mxu1 %v16531_v55  ;;  %v16591_v55 = vld [vmem:[#allocation4 + $0x22c4] ss:$8 sps:$4 sm:$0xff]  }
0x21b9   :  { %9052 = vmatpush1.bf16.msra.mxu1 %v16529_v5  ;;  %v16589_v5 = vld [vmem:[#allocation4 + $0x22c0] ss:$8 sps:$4 sm:$0xff]  }
0x21ba   :  { %9053 = vmatprep.subr.bf16.mxu1 %v16534_v57  ;;  %v16594_v57 = vld [vmem:[#allocation4 + $0x22d4] ss:$8 sps:$4 sm:$0xff]  }
0x21bd   :  { %9054 = vmatpush1.bf16.msra.mxu1 %v16532_v7  ;;  %v16592_v7 = vld [vmem:[#allocation4 + $0x22d0] ss:$8 sps:$4 sm:$0xff]  }
0x21be   :  { %9055 = vmatprep.subr.bf16.mxu1 %v16537_v58  ;;  %v8613_v58 = vld [vmem:[#allocation6 + $0x44] ss:$8 sm:$0x3] }
0x21c1   :  { %9056 = vmatpush1.bf16.msra.mxu1 %v16535_v59  ;;  %v8618_v59 = vrot.slane %v8613_v58, %v17498_v54 }
0x21c2   :  { %9057 = vmatprep.subr.bf16.mxu1 %v16540_v60  ;;  %v8622_v60 = vrot.slane %v8613_v58, %v17501_v56 }
0x21c5   :  { %9058 = vmatpush1.bf16.msra.mxu1 %v16538_v61 }
0x21c6   :  { %9059 = vmatprep.subr.bf16.mxu1 %v16543_v62 }
0x21c9   :  { %9060 = vmatpush1.bf16.msra.mxu1 %v16541_v63 }
0x21ca   :  { %9061 = vmatprep.subr.bf16.mxu1 %v16546_v3 }
0x21cd   :  { %9062 = vmatpush1.bf16.msra.mxu1 %v16544_v12 }
0x21ce   :  { %9063 = vmatprep.subr.bf16.mxu1 %v16549_v21  ;;  %v16609_v21 = vld [vmem:[#allocation4 + $0x2324] ss:$8 sps:$4 sm:$0xff]  }
0x21d1   :  { %9064 = vmatpush1.bf16.msra.mxu1 %v16547_v22  ;;  %v16607_v22 = vld [vmem:[#allocation4 + $0x2320] ss:$8 sps:$4 sm:$0xff]  }
0x21d2   :  { %9065 = vmatprep.subr.bf16.mxu1 %v16552_v24  ;;  %v16612_v24 = vld [vmem:[#allocation4 + $0x2334] ss:$8 sps:$4 sm:$0xff]  }
0x21d5   :  { %9066 = vmatpush1.bf16.msra.mxu1 %v16550_v26  ;;  %v16610_v26 = vld [vmem:[#allocation4 + $0x2330] ss:$8 sps:$4 sm:$0xff]  }
0x226b   :  { %v8569_v8 = vpop.f32.mrb[76].mxu1 }
0x226c   :  { %v8570_v9 = vadd.f32 %v8569_v8, %v8448_v10  ;;  %v8571_v19 = vpop.f32.mrb[77].mxu1 }
0x226d   :  { %v8572_v11 = vadd.f32 %v8571_v19, %v8452_v14  ;;  %v8573_v13 = vpop.f32.mrb[78].mxu1  ;;  %v16597_v19 = vld [vmem:[#allocation4 + $0x22e4] ss:$8 sps:$4 sm:$0xff]  }
0x226e   :  { %v8576_v15 = vmax.f32 %v8570_v9, 0.0  ;;  %v8574_v16 = vpop.f32.mrb[79].mxu1  ;;  %v16600_v13 = vld [vmem:[#allocation4 + $0x22f4] ss:$8 sps:$4 sm:$0xff]  }
0x226f   :  { %v8577_v18 = vmax.f32 %v8572_v11, 0.0  ;;  %v16595_v11 = vld [vmem:[#allocation4 + $0x22e0] ss:$8 sps:$4 sm:$0xff]  }
0x2270   :  { %v8610_v20 = vpack.c.bf16 %v8576_v15, %v8576_v15  ;;  %v16598_v15 = vld [vmem:[#allocation4 + $0x22f0] ss:$8 sps:$4 sm:$0xff]   ;;  %v16601_v16 = vld [vmem:[#allocation4 + $0x2300] ss:$8 sps:$4 sm:$0xff]  }
0x2271   :  { %v8611_v17 = vpack.c.bf16 %v8577_v18, %v8577_v18  ;;  %v16603_v18 = vld [vmem:[#allocation4 + $0x2304] ss:$8 sps:$4 sm:$0xff]  }
0x2272   :  { %9533 = vmatprep.subr.bf16.mxu1 %v16603_v18  ;;  %v16661_v18 = vld [vmem:[#allocation4 + $0x2440] ss:$8 sps:$4 sm:$0xff]  }
0x2273   :  { %8817 = vmatprep.mubr.bf16.mxu0 %v8611_v17  ;;  %v16606_v17 = vld [vmem:[#allocation4 + $0x2314] ss:$8 sps:$4 sm:$0xff]  }
0x2274   :  { %8818 = vmatmul.mubr.bf16.vlgmr.msra.gmra.mrb[72].mxu0 %v8610_v20  ;;  %v16604_v20 = vld [vmem:[#allocation4 + $0x2310] ss:$8 sps:$4 sm:$0xff]  }
0x2275   :  { %9286 = vmatpush1.bf16.msra.mxu0 %v16553_v27  ;;  %v16615_v27 = vld [vmem:[#allocation4 + $0x2344] ss:$8 sps:$4 sm:$0xff]  }
0x2276   :  { %9287 = vmatprep.subr.bf16.mxu0 %v16558_v41  ;;  %v16618_v41 = vld [vmem:[#allocation4 + $0x2354] ss:$8 sps:$4 sm:$0xff]  }
0x2279   :  { %9288 = vmatpush1.bf16.msra.mxu0 %v16556_v29  ;;  %v16616_v29 = vld [vmem:[#allocation4 + $0x2350] ss:$8 sps:$4 sm:$0xff]  }
0x227a   :  { %9289 = vmatprep.subr.bf16.mxu0 %v16561_v30  ;;  %v16621_v30 = vld [vmem:[#allocation4 + $0x2364] ss:$8 sps:$4 sm:$0xff]  }
0x227d   :  { %9290 = vmatpush1.bf16.msra.mxu0 %v16559_v31  ;;  %v16619_v31 = vld [vmem:[#allocation4 + $0x2360] ss:$8 sps:$4 sm:$0xff]  }
0x227e   :  { %9291 = vmatprep.subr.bf16.mxu0 %v16564_v32  ;;  %v16624_v32 = vld [vmem:[#allocation4 + $0x2374] ss:$8 sps:$4 sm:$0xff]  }
0x2281   :  { %9292 = vmatpush1.bf16.msra.mxu0 %v16562_v33  ;;  %v16622_v33 = vld [vmem:[#allocation4 + $0x2370] ss:$8 sps:$4 sm:$0xff]  }
0x2282   :  { %9293 = vmatprep.subr.bf16.mxu0 %v16567_v34  ;;  %v16627_v34 = vld [vmem:[#allocation4 + $0x2384] ss:$8 sps:$4 sm:$0xff]  }
0x2285   :  { %9294 = vmatpush1.bf16.msra.mxu0 %v16565_v35  ;;  %v16625_v35 = vld [vmem:[#allocation4 + $0x2380] ss:$8 sps:$4 sm:$0xff]  }
0x2286   :  { %9295 = vmatprep.subr.bf16.mxu0 %v16570_v36  ;;  %v16630_v36 = vld [vmem:[#allocation4 + $0x2394] ss:$8 sps:$4 sm:$0xff]  }
0x2289   :  { %9296 = vmatpush1.bf16.msra.mxu0 %v16568_v37  ;;  %v16628_v37 = vld [vmem:[#allocation4 + $0x2390] ss:$8 sps:$4 sm:$0xff]  }
0x228a   :  { %9297 = vmatprep.subr.bf16.mxu0 %v16573_v49  ;;  %v16633_v49 = vld [vmem:[#allocation4 + $0x23a4] ss:$8 sps:$4 sm:$0xff]  }
0x228d   :  { %9298 = vmatpush1.bf16.msra.mxu0 %v16571_v38  ;;  %v16631_v38 = vld [vmem:[#allocation4 + $0x23a0] ss:$8 sps:$4 sm:$0xff]  }
0x228e   :  { %9299 = vmatprep.subr.bf16.mxu0 %v16576_v40  ;;  %v16636_v40 = vld [vmem:[#allocation4 + $0x23b4] ss:$8 sps:$4 sm:$0xff]  }
0x2291   :  { %9300 = vmatpush1.bf16.msra.mxu0 %v16574_v42  ;;  %v16634_v42 = vld [vmem:[#allocation4 + $0x23b0] ss:$8 sps:$4 sm:$0xff]  }
0x2292   :  { %9301 = vmatprep.subr.bf16.mxu0 %v16579_v43  ;;  %v16639_v43 = vld [vmem:[#allocation4 + $0x23c4] ss:$8 sps:$4 sm:$0xff]  }
0x2295   :  { %9302 = vmatpush1.bf16.msra.mxu0 %v16577_v45  ;;  %v16637_v45 = vld [vmem:[#allocation4 + $0x23c0] ss:$8 sps:$4 sm:$0xff]  }
0x2296   :  { %9303 = vmatprep.subr.bf16.mxu0 %v16582_v47  ;;  %v16642_v47 = vld [vmem:[#allocation4 + $0x23d4] ss:$8 sps:$4 sm:$0xff]  }
0x2299   :  { %9304 = vmatpush1.bf16.msra.mxu0 %v16580_v2  ;;  %v16640_v2 = vld [vmem:[#allocation4 + $0x23d0] ss:$8 sps:$4 sm:$0xff]  }
0x229a   :  { %9305 = vmatprep.subr.bf16.mxu0 %v16585_v4  ;;  %v16645_v4 = vld [vmem:[#allocation4 + $0x23e4] ss:$8 sps:$4 sm:$0xff]  }
0x229d   :  { %9306 = vmatpush1.bf16.msra.mxu0 %v16583_v44  ;;  %v16643_v44 = vld [vmem:[#allocation4 + $0x23e0] ss:$8 sps:$4 sm:$0xff]  }
0x229e   :  { %9307 = vmatprep.subr.bf16.mxu0 %v16588_v50  ;;  %v8863_v50 = vld [vmem:[#allocation6 + $0x45] ss:$8 sm:$0x3] }
0x22a1   :  { %9308 = vmatpush1.bf16.msra.mxu0 %v16586_v51  ;;  %v8868_v51 = vrot.slane %v8863_v50, %v17498_v54 }
0x22a2   :  { %9309 = vmatprep.subr.bf16.mxu0 %v16591_v55  ;;  %v8872_v55 = vrot.slane %v8863_v50, %v17501_v56  ;;  %v16688_v50 = vld [vmem:[#allocation4 + $0x24d0] ss:$8 sps:$4 sm:$0xff]  }
0x22a5   :  { %9310 = vmatpush1.bf16.msra.mxu0 %v16589_v5 }
0x22a6   :  { %9311 = vmatprep.subr.bf16.mxu0 %v16594_v57 }
0x22a9   :  { %9312 = vmatpush1.bf16.msra.mxu0 %v16592_v7 }
0x22aa   :  { %9313 = vmatprep.subr.bf16.mxu0 %v16597_v19  ;;  %v16657_v19 = vld [vmem:[#allocation4 + $0x2424] ss:$8 sps:$4 sm:$0xff]  }
0x22ad   :  { %9314 = vmatpush1.bf16.msra.mxu0 %v16595_v11  ;;  %v16655_v11 = vld [vmem:[#allocation4 + $0x2420] ss:$8 sps:$4 sm:$0xff]  }
0x22ae   :  { %9315 = vmatprep.subr.bf16.mxu0 %v16600_v13  ;;  %v16660_v13 = vld [vmem:[#allocation4 + $0x2434] ss:$8 sps:$4 sm:$0xff]  }
0x22b1   :  { %9316 = vmatpush1.bf16.msra.mxu0 %v16598_v15  ;;  %v16658_v15 = vld [vmem:[#allocation4 + $0x2430] ss:$8 sps:$4 sm:$0xff]  }
0x2347   :  { %v8819_v61 = vpop.f32.mrb[72].mxu0 }
0x2348   :  { %v8820_v62 = vadd.f32 %v8819_v61, %v8618_v59  ;;  %v8821_v63 = vpop.f32.mrb[73].mxu0 }
0x2349   :  { %v8822_v3 = vadd.f32 %v8821_v63, %v8622_v60  ;;  %v8823_v12 = vpop.f32.mrb[74].mxu0 }
0x234a   :  { %v8826_v6 = vmax.f32 %v8820_v62, 0.0  ;;  %v8824_v10 = vpop.f32.mrb[75].mxu0  ;;  %v16648_v12 = vld [vmem:[#allocation4 + $0x23f4] ss:$8 sps:$4 sm:$0xff]  }
0x234b   :  { %v8827_v14 = vmax.f32 %v8822_v3, 0.0  ;;  %v16649_v10 = vld [vmem:[#allocation4 + $0x2400] ss:$8 sps:$4 sm:$0xff]  }
0x234c   :  { %v8860_v9 = vpack.c.bf16 %v8826_v6, %v8826_v6  ;;  %v16646_v6 = vld [vmem:[#allocation4 + $0x23f0] ss:$8 sps:$4 sm:$0xff]  }
0x234d   :  { %v8861_v8 = vpack.c.bf16 %v8827_v14, %v8827_v14  ;;  %v16651_v14 = vld [vmem:[#allocation4 + $0x2404] ss:$8 sps:$4 sm:$0xff]  }
0x234e   :  { %9686 = vmatprep.subr.bf16.mxu0 %v16651_v14  ;;  %v16712_v14 = vld [vmem:[#allocation4 + $0x2550] ss:$8 sps:$4 sm:$0xff]  }
0x234f   :  { %9067 = vmatprep.mubr.bf16.mxu1 %v8861_v8  ;;  %v16654_v8 = vld [vmem:[#allocation4 + $0x2414] ss:$8 sps:$4 sm:$0xff]  }
0x2350   :  { %9068 = vmatmul.mubr.bf16.vlgmr.msra.gmra.mrb[80].mxu1 %v8860_v9  ;;  %v16652_v9 = vld [vmem:[#allocation4 + $0x2410] ss:$8 sps:$4 sm:$0xff]  }
0x2351   :  { %9534 = vmatpush1.bf16.msra.mxu1 %v16601_v16  ;;  %v16663_v16 = vld [vmem:[#allocation4 + $0x2444] ss:$8 sps:$4 sm:$0xff]  }
0x2352   :  { %9535 = vmatprep.subr.bf16.mxu1 %v16606_v17  ;;  %v16666_v17 = vld [vmem:[#allocation4 + $0x2454] ss:$8 sps:$4 sm:$0xff]  }
0x2355   :  { %9536 = vmatpush1.bf16.msra.mxu1 %v16604_v20  ;;  %v16664_v20 = vld [vmem:[#allocation4 + $0x2450] ss:$8 sps:$4 sm:$0xff]  }
0x2356   :  { %9537 = vmatprep.subr.bf16.mxu1 %v16609_v21  ;;  %v9113_v21 = vld [vmem:[#allocation6 + $0x46] ss:$8 sm:$0x3] }
0x2359   :  { %9538 = vmatpush1.bf16.msra.mxu1 %v16607_v22  ;;  %v9118_v22 = vrot.slane %v9113_v21, %v17498_v54 }
0x235a   :  { %9539 = vmatprep.subr.bf16.mxu1 %v16612_v24  ;;  %v9122_v24 = vrot.slane %v9113_v21, %v17501_v56 }
0x235d   :  { %9540 = vmatpush1.bf16.msra.mxu1 %v16610_v26 }
0x235e   :  { %9541 = vmatprep.subr.bf16.mxu1 %v16615_v27 }
0x2361   :  { %9542 = vmatpush1.bf16.msra.mxu1 %v16613_v28 }
0x2362   :  { %9543 = vmatprep.subr.bf16.mxu1 %v16618_v41 }
0x2365   :  { %9544 = vmatpush1.bf16.msra.mxu1 %v16616_v29 }
0x2366   :  { %9545 = vmatprep.subr.bf16.mxu1 %v16621_v30 }
0x2369   :  { %9546 = vmatpush1.bf16.msra.mxu1 %v16619_v31 }
0x236a   :  { %9547 = vmatprep.subr.bf16.mxu1 %v16624_v32 }
0x236d   :  { %9548 = vmatpush1.bf16.msra.mxu1 %v16622_v33  ;;  %v16669_v33 = vld [vmem:[#allocation4 + $0x2464] ss:$8 sps:$4 sm:$0xff]  }
0x236e   :  { %9549 = vmatprep.subr.bf16.mxu1 %v16627_v34  ;;  %v16667_v34 = vld [vmem:[#allocation4 + $0x2460] ss:$8 sps:$4 sm:$0xff]  }
0x2371   :  { %9550 = vmatpush1.bf16.msra.mxu1 %v16625_v35  ;;  %v16672_v35 = vld [vmem:[#allocation4 + $0x2474] ss:$8 sps:$4 sm:$0xff]  }
0x2372   :  { %9551 = vmatprep.subr.bf16.mxu1 %v16630_v36  ;;  %v16670_v36 = vld [vmem:[#allocation4 + $0x2470] ss:$8 sps:$4 sm:$0xff]  }
0x2375   :  { %9552 = vmatpush1.bf16.msra.mxu1 %v16628_v37  ;;  %v16673_v37 = vld [vmem:[#allocation4 + $0x2480] ss:$8 sps:$4 sm:$0xff]  }
0x2376   :  { %9553 = vmatprep.subr.bf16.mxu1 %v16633_v49  ;;  %v16675_v49 = vld [vmem:[#allocation4 + $0x2484] ss:$8 sps:$4 sm:$0xff]  }
0x2379   :  { %9554 = vmatpush1.bf16.msra.mxu1 %v16631_v38  ;;  %v16678_v38 = vld [vmem:[#allocation4 + $0x2494] ss:$8 sps:$4 sm:$0xff]  }
0x237a   :  { %9555 = vmatprep.subr.bf16.mxu1 %v16636_v40  ;;  %v16676_v40 = vld [vmem:[#allocation4 + $0x2490] ss:$8 sps:$4 sm:$0xff]  }
0x237d   :  { %9556 = vmatpush1.bf16.msra.mxu1 %v16634_v42  ;;  %v16681_v42 = vld [vmem:[#allocation4 + $0x24a4] ss:$8 sps:$4 sm:$0xff]  }
0x237e   :  { %9557 = vmatprep.subr.bf16.mxu1 %v16639_v43  ;;  %v16679_v43 = vld [vmem:[#allocation4 + $0x24a0] ss:$8 sps:$4 sm:$0xff]  }
0x2381   :  { %9558 = vmatpush1.bf16.msra.mxu1 %v16637_v45  ;;  %v16684_v45 = vld [vmem:[#allocation4 + $0x24b4] ss:$8 sps:$4 sm:$0xff]  }
0x2382   :  { %9559 = vmatprep.subr.bf16.mxu1 %v16642_v47  ;;  %v16682_v47 = vld [vmem:[#allocation4 + $0x24b0] ss:$8 sps:$4 sm:$0xff]  }
0x2385   :  { %9560 = vmatpush1.bf16.msra.mxu1 %v16640_v2  ;;  %v16687_v2 = vld [vmem:[#allocation4 + $0x24c4] ss:$8 sps:$4 sm:$0xff]  }
0x2386   :  { %9561 = vmatprep.subr.bf16.mxu1 %v16645_v4  ;;  %v16685_v4 = vld [vmem:[#allocation4 + $0x24c0] ss:$8 sps:$4 sm:$0xff]  }
0x2389   :  { %9562 = vmatpush1.bf16.msra.mxu1 %v16643_v44  ;;  %v16690_v44 = vld [vmem:[#allocation4 + $0x24d4] ss:$8 sps:$4 sm:$0xff]  }
0x238a   :  { %9563 = vmatprep.subr.bf16.mxu1 %v16648_v12  ;;  %v16711_v12 = vld [vmem:[#allocation4 + $0x2544] ss:$8 sps:$4 sm:$0xff]  }
0x238d   :  { %9564 = vmatpush1.bf16.msra.mxu1 %v16646_v6  ;;  %v16709_v6 = vld [vmem:[#allocation4 + $0x2540] ss:$8 sps:$4 sm:$0xff]  }
0x238e   :  { %9936 = vmatprep.subr.bf16.mxu1 %v16675_v49  ;;  %v16736_v49 = vld [vmem:[#allocation4 + $0x25d0] ss:$8 sps:$4 sm:$0xff]  }
0x2423   :  { %v9069_v5 = vpop.f32.mrb[80].mxu1 }
0x2424   :  { %v9070_v57 = vadd.f32 %v9069_v5, %v8868_v51  ;;  %v9071_v7 = vpop.f32.mrb[81].mxu1  ;;  %v16693_v51 = vld [vmem:[#allocation4 + $0x24e4] ss:$8 sps:$4 sm:$0xff]   ;;  %v16696_v5 = vld [vmem:[#allocation4 + $0x24f4] ss:$8 sps:$4 sm:$0xff]  }
0x2425   :  { %v9072_v58 = vadd.f32 %v9071_v7, %v8872_v55  ;;  %v9073_v59 = vpop.f32.mrb[82].mxu1  ;;  %v16691_v55 = vld [vmem:[#allocation4 + $0x24e0] ss:$8 sps:$4 sm:$0xff]   ;;  %v16699_v7 = vld [vmem:[#allocation4 + $0x2504] ss:$8 sps:$4 sm:$0xff]  }
0x2426   :  { %v9076_v60 = vmax.f32 %v9070_v57, 0.0  ;;  %v9074_v61 = vpop.f32.mrb[83].mxu1  ;;  %v16694_v57 = vld [vmem:[#allocation4 + $0x24f0] ss:$8 sps:$4 sm:$0xff]   ;;  %v16702_v59 = vld [vmem:[#allocation4 + $0x2514] ss:$8 sps:$4 sm:$0xff]  }
0x2427   :  { %v9077_v62 = vmax.f32 %v9072_v58, 0.0  ;;  %v16697_v58 = vld [vmem:[#allocation4 + $0x2500] ss:$8 sps:$4 sm:$0xff]   ;;  %v16705_v61 = vld [vmem:[#allocation4 + $0x2524] ss:$8 sps:$4 sm:$0xff]  }
0x2428   :  { %v9110_v3 = vpack.c.bf16 %v9076_v60, %v9076_v60  ;;  %v16700_v60 = vld [vmem:[#allocation4 + $0x2510] ss:$8 sps:$4 sm:$0xff]  }
0x2429   :  { %v9111_v63 = vpack.c.bf16 %v9077_v62, %v9077_v62  ;;  %v16703_v62 = vld [vmem:[#allocation4 + $0x2520] ss:$8 sps:$4 sm:$0xff]  }
0x242b   :  { %9317 = vmatprep.mubr.bf16.mxu0 %v9111_v63  ;;  %v16708_v63 = vld [vmem:[#allocation4 + $0x2534] ss:$8 sps:$4 sm:$0xff]  }
0x242c   :  { %9318 = vmatmul.mubr.bf16.vlgmr.msra.gmra.mrb[76].mxu0 %v9110_v3  ;;  %v16706_v3 = vld [vmem:[#allocation4 + $0x2530] ss:$8 sps:$4 sm:$0xff]  }
0x242d   :  { %9718 = vmatprep.mubr.bf16.mxu0 %v17334_v1  ;;  %9687 = vmatpush1.bf16.msra.mxu0 %v16649_v10  ;;  %v16714_v10 = vld [vmem:[#allocation4 + $0x2554] ss:$8 sps:$4 sm:$0xff]  }
0x242e   :  { %9688 = vmatprep.subr.bf16.mxu0 %v16654_v8  ;;  %v9361_v8 = vld [vmem:[#allocation6 + $0x47] ss:$8 sm:$0x3] }
0x2431   :  { %9689 = vmatpush1.bf16.msra.mxu0 %v16652_v9  ;;  %v8215_v9 = vrot.slane %v17640_v23, %v17498_v54  ;;  %v16715_v23 = vld [vmem:[#allocation4 + $0x2560] ss:$8 sps:$4 sm:$0xff]  }
0x2432   :  { %9690 = vmatprep.subr.bf16.mxu0 %v16657_v19  ;;  %v9366_v19 = vrot.slane %v9361_v8, %v17498_v54 }
0x2435   :  { %9691 = vmatpush1.bf16.msra.mxu0 %v16655_v11  ;;  %v9370_v11 = vrot.slane %v9361_v8, %v17501_v56 }
0x2436   :  { %9692 = vmatprep.subr.bf16.mxu0 %v16660_v13 }
0x2439   :  { %9693 = vmatpush1.bf16.msra.mxu0 %v16658_v15  ;;  %v8417_v15 = vadd.f32 %v17644_v25, %v8215_v9  ;;  %v16721_v25 = vld [vmem:[#allocation4 + $0x2580] ss:$8 sps:$4 sm:$0xff]  }
0x243a   :  { %9694 = vmatprep.subr.bf16.mxu0 %v16663_v16 }
0x243d   :  { %9695 = vmatpush1.bf16.msra.mxu0 %v16661_v18 }
0x243e   :  { %9696 = vmatprep.subr.bf16.mxu0 %v16666_v17 }
0x2441   :  { %9697 = vmatpush1.bf16.msra.mxu0 %v16664_v20 }
0x2442   :  { %9698 = vmatprep.subr.bf16.mxu0 %v16669_v33  ;;  %v16732_v33 = vld [vmem:[#allocation4 + $0x25b4] ss:$8 sps:$4 sm:$0xff]  }
0x2445   :  { %9699 = vmatpush1.bf16.msra.mxu0 %v16667_v34  ;;  %v16730_v34 = vld [vmem:[#allocation4 + $0x25b0] ss:$8 sps:$4 sm:$0xff]  }
0x2446   :  { %9700 = vmatprep.subr.bf16.mxu0 %v16672_v35  ;;  %v16735_v35 = vld [vmem:[#allocation4 + $0x25c4] ss:$8 sps:$4 sm:$0xff]  }
0x2449   :  { %9701 = vmatpush1.bf16.msra.mxu0 %v16670_v36  ;;  %v16733_v36 = vld [vmem:[#allocation4 + $0x25c0] ss:$8 sps:$4 sm:$0xff]  }
0x24ff   :  { %v9319_v26 = vpop.f32.mrb[76].mxu0 }
0x2500   :  { %v9320_v27 = vadd.f32 %v9319_v26, %v9118_v22  ;;  %v9321_v28 = vpop.f32.mrb[77].mxu0 }
0x2501   :  { %v9322_v41 = vadd.f32 %v9321_v28, %v9122_v24  ;;  %v9323_v29 = vpop.f32.mrb[78].mxu0  ;;  %v16720_v28 = vld [vmem:[#allocation4 + $0x2574] ss:$8 sps:$4 sm:$0xff]  }
0x2502   :  { %v9324_v30 = vpop.f32.mrb[79].mxu0  ;;  %v9358_v32 = vpack.c.bf16 %v9320_v27, %v9320_v27  ;;  %v16717_v27 = vld [vmem:[#allocation4 + $0x2564] ss:$8 sps:$4 sm:$0xff]  }
0x2503   :  { %v9359_v31 = vpack.c.bf16 %v9322_v41, %v9322_v41  ;;  %v16718_v41 = vld [vmem:[#allocation4 + $0x2570] ss:$8 sps:$4 sm:$0xff]   ;;  %v16723_v29 = vld [vmem:[#allocation4 + $0x2584] ss:$8 sps:$4 sm:$0xff]   ;;  %v16726_v30 = vld [vmem:[#allocation4 + $0x2594] ss:$8 sps:$4 sm:$0xff]  }
0x2504   :  { %10186 = vmatprep.subr.bf16.mxu0 %v16723_v29  ;;  %v16784_v29 = vld [vmem:[#allocation4 + $0x26d0] ss:$8 sps:$4 sm:$0xff]  }
0x2505   :  { %9565 = vmatprep.mubr.bf16.mxu1 %v9359_v31  ;;  %v16724_v31 = vld [vmem:[#allocation4 + $0x2590] ss:$8 sps:$4 sm:$0xff]  }
0x2506   :  { %9566 = vmatmul.mubr.bf16.vlgmr.msra.gmra.mrb[84].mxu1 %v9358_v32  ;;  %v16729_v32 = vld [vmem:[#allocation4 + $0x25a4] ss:$8 sps:$4 sm:$0xff]  }
0x2507   :  { %9937 = vmatpush1.bf16.msra.mxu1 %v16673_v37  ;;  %v16738_v37 = vld [vmem:[#allocation4 + $0x25d4] ss:$8 sps:$4 sm:$0xff]  }
0x2508   :  { %9938 = vmatprep.subr.bf16.mxu1 %v16678_v38  ;;  %v16741_v38 = vld [vmem:[#allocation4 + $0x25e4] ss:$8 sps:$4 sm:$0xff]  }
0x250b   :  { %9939 = vmatpush1.bf16.msra.mxu1 %v16676_v40  ;;  %v16739_v40 = vld [vmem:[#allocation4 + $0x25e0] ss:$8 sps:$4 sm:$0xff]  }
0x250c   :  { %9940 = vmatprep.subr.bf16.mxu1 %v16681_v42  ;;  %v16744_v42 = vld [vmem:[#allocation4 + $0x25f4] ss:$8 sps:$4 sm:$0xff]  }
0x250f   :  { %9941 = vmatpush1.bf16.msra.mxu1 %v16679_v43  ;;  %v16742_v43 = vld [vmem:[#allocation4 + $0x25f0] ss:$8 sps:$4 sm:$0xff]  }
0x2510   :  { %9942 = vmatprep.subr.bf16.mxu1 %v16684_v45  ;;  %v16747_v45 = vld [vmem:[#allocation4 + $0x2604] ss:$8 sps:$4 sm:$0xff]  }
0x2513   :  { %9943 = vmatpush1.bf16.msra.mxu1 %v16682_v47  ;;  %v16745_v47 = vld [vmem:[#allocation4 + $0x2600] ss:$8 sps:$4 sm:$0xff]  }
0x2514   :  { %9944 = vmatprep.subr.bf16.mxu1 %v16687_v2  ;;  %v16750_v2 = vld [vmem:[#allocation4 + $0x2614] ss:$8 sps:$4 sm:$0xff]  }
0x2517   :  { %9945 = vmatpush1.bf16.msra.mxu1 %v16685_v4  ;;  %v16748_v4 = vld [vmem:[#allocation4 + $0x2610] ss:$8 sps:$4 sm:$0xff]  }
0x2518   :  { %9946 = vmatprep.subr.bf16.mxu1 %v16690_v44  ;;  %v16753_v44 = vld [vmem:[#allocation4 + $0x2624] ss:$8 sps:$4 sm:$0xff]  }
0x251b   :  { %9947 = vmatpush1.bf16.msra.mxu1 %v16688_v50  ;;  %v16751_v50 = vld [vmem:[#allocation4 + $0x2620] ss:$8 sps:$4 sm:$0xff]  }
0x251c   :  { %9948 = vmatprep.subr.bf16.mxu1 %v16693_v51  ;;  %v16756_v51 = vld [vmem:[#allocation4 + $0x2634] ss:$8 sps:$4 sm:$0xff]  }
0x251f   :  { %9949 = vmatpush1.bf16.msra.mxu1 %v16691_v55  ;;  %v16754_v55 = vld [vmem:[#allocation4 + $0x2630] ss:$8 sps:$4 sm:$0xff]  }
0x2520   :  { %9950 = vmatprep.subr.bf16.mxu1 %v16696_v5  ;;  %v16759_v5 = vld [vmem:[#allocation4 + $0x2644] ss:$8 sps:$4 sm:$0xff]  }
0x2523   :  { %9951 = vmatpush1.bf16.msra.mxu1 %v16694_v57  ;;  %v16757_v57 = vld [vmem:[#allocation4 + $0x2640] ss:$8 sps:$4 sm:$0xff]  }
0x2524   :  { %9952 = vmatprep.subr.bf16.mxu1 %v16699_v7  ;;  %v16762_v7 = vld [vmem:[#allocation4 + $0x2654] ss:$8 sps:$4 sm:$0xff]  }
0x2527   :  { %9953 = vmatpush1.bf16.msra.mxu1 %v16697_v58  ;;  %v16760_v58 = vld [vmem:[#allocation4 + $0x2650] ss:$8 sps:$4 sm:$0xff]  }
0x2528   :  { %9954 = vmatprep.subr.bf16.mxu1 %v16702_v59  ;;  %v9594_v59 = vld [vmem:[#allocation6 + $0x50] ss:$8 sm:$0x3] }
0x252b   :  { %9955 = vmatpush1.bf16.msra.mxu1 %v16700_v60  ;;  %v9599_v60 = vrot.slane %v9594_v59, %v17498_v54 }
0x252c   :  { %9956 = vmatprep.subr.bf16.mxu1 %v16705_v61  ;;  %v9603_v61 = vrot.slane %v9594_v59, %v17501_v56 }
0x252f   :  { %9957 = vmatpush1.bf16.msra.mxu1 %v16703_v62 }
0x2530   :  { %9958 = vmatprep.subr.bf16.mxu1 %v16708_v63 }
0x2533   :  { %9959 = vmatpush1.bf16.msra.mxu1 %v16706_v3 }
0x2534   :  { %9960 = vmatprep.subr.bf16.mxu1 %v16711_v12 }
0x2537   :  { %9961 = vmatpush1.bf16.msra.mxu1 %v16709_v6 }
0x2538   :  { %9962 = vmatprep.subr.bf16.mxu1 %v16714_v10 }
0x253b   :  { %9963 = vmatpush1.bf16.msra.mxu1 %v16712_v14 }
0x253c   :  { %9964 = vmatprep.subr.bf16.mxu1 %v16717_v27  ;;  %v16780_v27 = vld [vmem:[#allocation4 + $0x26b4] ss:$8 sps:$4 sm:$0xff]  }
0x253f   :  { %9965 = vmatpush1.bf16.msra.mxu1 %v16715_v23  ;;  %v16778_v23 = vld [vmem:[#allocation4 + $0x26b0] ss:$8 sps:$4 sm:$0xff]  }
0x2540   :  { %9966 = vmatprep.subr.bf16.mxu1 %v16720_v28  ;;  %v16783_v28 = vld [vmem:[#allocation4 + $0x26c4] ss:$8 sps:$4 sm:$0xff]  }
0x2543   :  { %9967 = vmatpush1.bf16.msra.mxu1 %v16718_v41  ;;  %v16781_v41 = vld [vmem:[#allocation4 + $0x26c0] ss:$8 sps:$4 sm:$0xff]  }
0x25d9   :  { %v9567_v13 = vpop.f32.mrb[84].mxu1 }
0x25da   :  { %v9568_v16 = vadd.f32 %v9567_v13, %v9366_v19  ;;  %v9569_v18 = vpop.f32.mrb[85].mxu1  ;;  %v16763_v13 = vld [vmem:[#allocation4 + $0x2660] ss:$8 sps:$4 sm:$0xff]  }
0x25db   :  { %v9570_v17 = vadd.f32 %v9569_v18, %v9370_v11  ;;  %v9571_v20 = vpop.f32.mrb[86].mxu1  ;;  %v16765_v11 = vld [vmem:[#allocation4 + $0x2664] ss:$8 sps:$4 sm:$0xff]   ;;  %v16769_v18 = vld [vmem:[#allocation4 + $0x2680] ss:$8 sps:$4 sm:$0xff]  }
0x25dc   :  { %v17665_v21 = vadd.f32 %v9568_v16, %v8417_v15  ;;  %v9572_v22 = vpop.f32.mrb[87].mxu1  ;;  %v16768_v15 = vld [vmem:[#allocation4 + $0x2674] ss:$8 sps:$4 sm:$0xff]   ;;  %v16766_v16 = vld [vmem:[#allocation4 + $0x2670] ss:$8 sps:$4 sm:$0xff]  }
0x25dd   :  { %v9575_v24 = vsub.f32 %v17647_v46, %v9570_v17  ;;  %v16727_v46 = vld [vmem:[#allocation4 + $0x25a0] ss:$8 sps:$4 sm:$0xff]   ;;  %v16771_v17 = vld [vmem:[#allocation4 + $0x2684] ss:$8 sps:$4 sm:$0xff]   ;;  %v16774_v20 = vld [vmem:[#allocation4 + $0x2694] ss:$8 sps:$4 sm:$0xff]  }
0x25de   :  { %10436 = vmatprep.subr.bf16.mxu1 %v16771_v17  ;;  %v16772_v22 = vld [vmem:[#allocation4 + $0x2690] ss:$8 sps:$4 sm:$0xff]  }
0x25df   :  { %v9592_v26 = vpack.c.bf16 %v9575_v24, %v9575_v24  ;;  %v16777_v24 = vld [vmem:[#allocation4 + $0x26a4] ss:$8 sps:$4 sm:$0xff]   ;;  %v16832_v17 = vld [vmem:[#allocation4 + $0x27d0] ss:$8 sps:$4 sm:$0xff]  }
0x25e1   :  { %9719 = vmatmul.mubr.bf16.vlgmr.msra.gmra.mrb[80].mxu0 %v9592_v26  ;;  %v16775_v26 = vld [vmem:[#allocation4 + $0x26a0] ss:$8 sps:$4 sm:$0xff]  }
0x25e2   :  { %10187 = vmatpush1.bf16.msra.mxu0 %v16721_v25  ;;  %v16786_v25 = vld [vmem:[#allocation4 + $0x26d4] ss:$8 sps:$4 sm:$0xff]  }
0x25e3   :  { %10188 = vmatprep.subr.bf16.mxu0 %v16726_v30  ;;  %v16789_v30 = vld [vmem:[#allocation4 + $0x26e4] ss:$8 sps:$4 sm:$0xff]  }
0x25e6   :  { %10189 = vmatpush1.bf16.msra.mxu0 %v16724_v31  ;;  %v16787_v31 = vld [vmem:[#allocation4 + $0x26e0] ss:$8 sps:$4 sm:$0xff]  }
0x25e7   :  { %10190 = vmatprep.subr.bf16.mxu0 %v16729_v32  ;;  %v16792_v32 = vld [vmem:[#allocation4 + $0x26f4] ss:$8 sps:$4 sm:$0xff]  }
0x25ea   :  { %10191 = vmatpush1.bf16.msra.mxu0 %v16727_v46  ;;  %v16790_v46 = vld [vmem:[#allocation4 + $0x26f0] ss:$8 sps:$4 sm:$0xff]  }
0x25eb   :  { %10192 = vmatprep.subr.bf16.mxu0 %v16732_v33  ;;  %v16795_v33 = vld [vmem:[#allocation4 + $0x2704] ss:$8 sps:$4 sm:$0xff]  }
0x25ee   :  { %10193 = vmatpush1.bf16.msra.mxu0 %v16730_v34  ;;  %v16793_v34 = vld [vmem:[#allocation4 + $0x2700] ss:$8 sps:$4 sm:$0xff]  }
0x25ef   :  { %10194 = vmatprep.subr.bf16.mxu0 %v16735_v35  ;;  %v16798_v35 = vld [vmem:[#allocation4 + $0x2714] ss:$8 sps:$4 sm:$0xff]  }
0x25f2   :  { %10195 = vmatpush1.bf16.msra.mxu0 %v16733_v36  ;;  %v16796_v36 = vld [vmem:[#allocation4 + $0x2710] ss:$8 sps:$4 sm:$0xff]  }
0x25f3   :  { %10196 = vmatprep.subr.bf16.mxu0 %v16738_v37  ;;  %v16801_v37 = vld [vmem:[#allocation4 + $0x2724] ss:$8 sps:$4 sm:$0xff]  }
0x25f6   :  { %10197 = vmatpush1.bf16.msra.mxu0 %v16736_v49  ;;  %v16799_v49 = vld [vmem:[#allocation4 + $0x2720] ss:$8 sps:$4 sm:$0xff]  }
0x25f7   :  { %10198 = vmatprep.subr.bf16.mxu0 %v16741_v38  ;;  %v16804_v38 = vld [vmem:[#allocation4 + $0x2734] ss:$8 sps:$4 sm:$0xff]  }
0x25fa   :  { %10199 = vmatpush1.bf16.msra.mxu0 %v16739_v40  ;;  %v16802_v40 = vld [vmem:[#allocation4 + $0x2730] ss:$8 sps:$4 sm:$0xff]  }
0x25fb   :  { %10200 = vmatprep.subr.bf16.mxu0 %v16744_v42  ;;  %v16807_v42 = vld [vmem:[#allocation4 + $0x2744] ss:$8 sps:$4 sm:$0xff]  }
0x25fe   :  { %10201 = vmatpush1.bf16.msra.mxu0 %v16742_v43  ;;  %v16805_v43 = vld [vmem:[#allocation4 + $0x2740] ss:$8 sps:$4 sm:$0xff]  }
0x25ff   :  { %10202 = vmatprep.subr.bf16.mxu0 %v16747_v45  ;;  %v16810_v45 = vld [vmem:[#allocation4 + $0x2754] ss:$8 sps:$4 sm:$0xff]  }
0x2602   :  { %10203 = vmatpush1.bf16.msra.mxu0 %v16745_v47  ;;  %v16808_v47 = vld [vmem:[#allocation4 + $0x2750] ss:$8 sps:$4 sm:$0xff]  }
0x2603   :  { %10204 = vmatprep.subr.bf16.mxu0 %v16750_v2  ;;  %v9764_v2 = vld [vmem:[#allocation6 + $0x51] ss:$8 sm:$0x3] }
0x2606   :  { %10205 = vmatpush1.bf16.msra.mxu0 %v16748_v4  ;;  %v9769_v4 = vrot.slane %v9764_v2, %v17498_v54 }
0x2607   :  { %10206 = vmatprep.subr.bf16.mxu0 %v16753_v44  ;;  %v9773_v44 = vrot.slane %v9764_v2, %v17501_v56 }
0x260a   :  { %10207 = vmatpush1.bf16.msra.mxu0 %v16751_v50 }
0x260b   :  { %10208 = vmatprep.subr.bf16.mxu0 %v16756_v51 }
0x260e   :  { %10209 = vmatpush1.bf16.msra.mxu0 %v16754_v55 }
0x260f   :  { %10210 = vmatprep.subr.bf16.mxu0 %v16759_v5 }
0x2612   :  { %10211 = vmatpush1.bf16.msra.mxu0 %v16757_v57 }
0x2613   :  { %10212 = vmatprep.subr.bf16.mxu0 %v16762_v7 }
0x2616   :  { %10213 = vmatpush1.bf16.msra.mxu0 %v16760_v58 }
0x2617   :  { %10214 = vmatprep.subr.bf16.mxu0 %v16765_v11  ;;  %v16828_v11 = vld [vmem:[#allocation4 + $0x27b4] ss:$8 sps:$4 sm:$0xff]  }
0x261a   :  { %10215 = vmatpush1.bf16.msra.mxu0 %v16763_v13  ;;  %v16826_v13 = vld [vmem:[#allocation4 + $0x27b0] ss:$8 sps:$4 sm:$0xff]  }
0x261b   :  { %10216 = vmatprep.subr.bf16.mxu0 %v16768_v15  ;;  %v16831_v15 = vld [vmem:[#allocation4 + $0x27c4] ss:$8 sps:$4 sm:$0xff]  }
0x261e   :  { %10217 = vmatpush1.bf16.msra.mxu0 %v16766_v16  ;;  %v16829_v16 = vld [vmem:[#allocation4 + $0x27c0] ss:$8 sps:$4 sm:$0xff]  }
0x26b4   :  { %v9720_v62 = vpop.f32.mrb[80].mxu0 }
0x26b5   :  { %v9721_v63 = vadd.f32 %v9720_v62, %v9599_v60  ;;  %v9722_v3 = vpop.f32.mrb[81].mxu0  ;;  %v16813_v62 = vld [vmem:[#allocation4 + $0x2764] ss:$8 sps:$4 sm:$0xff]  }
0x26b6   :  { %v9723_v12 = vadd.f32 %v9722_v3, %v9603_v61  ;;  %v9724_v6 = vpop.f32.mrb[82].mxu0  ;;  %v16816_v3 = vld [vmem:[#allocation4 + $0x2774] ss:$8 sps:$4 sm:$0xff]  }
0x26b7   :  { %v9727_v10 = vmax.f32 %v9721_v63, 0.0  ;;  %v9725_v14 = vpop.f32.mrb[83].mxu0  ;;  %v16811_v63 = vld [vmem:[#allocation4 + $0x2760] ss:$8 sps:$4 sm:$0xff]  }
0x26b8   :  { %v9728_v8 = vmax.f32 %v9723_v12, 0.0  ;;  %v16814_v12 = vld [vmem:[#allocation4 + $0x2770] ss:$8 sps:$4 sm:$0xff]   ;;  %v16817_v6 = vld [vmem:[#allocation4 + $0x2780] ss:$8 sps:$4 sm:$0xff]  }
0x26b9   :  { %v9761_v19 = vpack.c.bf16 %v9727_v10, %v9727_v10  ;;  %v16819_v10 = vld [vmem:[#allocation4 + $0x2784] ss:$8 sps:$4 sm:$0xff]   ;;  %v16822_v14 = vld [vmem:[#allocation4 + $0x2794] ss:$8 sps:$4 sm:$0xff]  }
0x26ba   :  { %v9762_v9 = vpack.c.bf16 %v9728_v8, %v9728_v8  ;;  %10679 = vmatprep.subr.bf16.mxu0 %v16819_v10  ;;  %v16820_v8 = vld [vmem:[#allocation4 + $0x2790] ss:$8 sps:$4 sm:$0xff]  }
0x26bb   :  { %v10264_v10 = vld [vmem:[#allocation6 + $0x53] ss:$8 sm:$0x3] }
0x26bc   :  { %9968 = vmatprep.mubr.bf16.mxu1 %v9762_v9  ;;  %v16825_v9 = vld [vmem:[#allocation4 + $0x27a4] ss:$8 sps:$4 sm:$0xff]  }
0x26bd   :  { %9969 = vmatmul.mubr.bf16.vlgmr.msra.gmra.mrb[88].mxu1 %v9761_v19  ;;  %v16823_v19 = vld [vmem:[#allocation4 + $0x27a0] ss:$8 sps:$4 sm:$0xff]  }
0x26be   :  { %10437 = vmatpush1.bf16.msra.mxu1 %v16769_v18  ;;  %v16834_v18 = vld [vmem:[#allocation4 + $0x27d4] ss:$8 sps:$4 sm:$0xff]  }
0x26bf   :  { %10438 = vmatprep.subr.bf16.mxu1 %v16774_v20  ;;  %v16837_v20 = vld [vmem:[#allocation4 + $0x27e4] ss:$8 sps:$4 sm:$0xff]  }
0x26c2   :  { %10439 = vmatpush1.bf16.msra.mxu1 %v16772_v22  ;;  %v16835_v22 = vld [vmem:[#allocation4 + $0x27e0] ss:$8 sps:$4 sm:$0xff]  }
0x26c3   :  { %10440 = vmatprep.subr.bf16.mxu1 %v16777_v24  ;;  %v16840_v24 = vld [vmem:[#allocation4 + $0x27f4] ss:$8 sps:$4 sm:$0xff]  }
0x26c6   :  { %10441 = vmatpush1.bf16.msra.mxu1 %v16775_v26  ;;  %v16838_v26 = vld [vmem:[#allocation4 + $0x27f0] ss:$8 sps:$4 sm:$0xff]  }
0x26c7   :  { %10442 = vmatprep.subr.bf16.mxu1 %v16780_v27  ;;  %v16843_v27 = vld [vmem:[#allocation4 + $0x2804] ss:$8 sps:$4 sm:$0xff]  }
0x26ca   :  { %10443 = vmatpush1.bf16.msra.mxu1 %v16778_v23  ;;  %v16841_v23 = vld [vmem:[#allocation4 + $0x2800] ss:$8 sps:$4 sm:$0xff]  }
0x26cb   :  { %10444 = vmatprep.subr.bf16.mxu1 %v16783_v28  ;;  %v16846_v28 = vld [vmem:[#allocation4 + $0x2814] ss:$8 sps:$4 sm:$0xff]  }
0x26ce   :  { %10445 = vmatpush1.bf16.msra.mxu1 %v16781_v41  ;;  %v16844_v41 = vld [vmem:[#allocation4 + $0x2810] ss:$8 sps:$4 sm:$0xff]  }
0x26cf   :  { %10446 = vmatprep.subr.bf16.mxu1 %v16786_v25  ;;  %v16849_v25 = vld [vmem:[#allocation4 + $0x2824] ss:$8 sps:$4 sm:$0xff]  }
0x26d2   :  { %10447 = vmatpush1.bf16.msra.mxu1 %v16784_v29  ;;  %v16847_v29 = vld [vmem:[#allocation4 + $0x2820] ss:$8 sps:$4 sm:$0xff]  }
0x26d3   :  { %10448 = vmatprep.subr.bf16.mxu1 %v16789_v30  ;;  %v16852_v30 = vld [vmem:[#allocation4 + $0x2834] ss:$8 sps:$4 sm:$0xff]  }
0x26d6   :  { %10449 = vmatpush1.bf16.msra.mxu1 %v16787_v31  ;;  %v16850_v31 = vld [vmem:[#allocation4 + $0x2830] ss:$8 sps:$4 sm:$0xff]  }
0x26d7   :  { %10450 = vmatprep.subr.bf16.mxu1 %v16792_v32  ;;  %v16855_v32 = vld [vmem:[#allocation4 + $0x2844] ss:$8 sps:$4 sm:$0xff]  }
0x26da   :  { %10451 = vmatpush1.bf16.msra.mxu1 %v16790_v46  ;;  %v16853_v46 = vld [vmem:[#allocation4 + $0x2840] ss:$8 sps:$4 sm:$0xff]  }
0x26db   :  { %10452 = vmatprep.subr.bf16.mxu1 %v16795_v33  ;;  %v16858_v33 = vld [vmem:[#allocation4 + $0x2854] ss:$8 sps:$4 sm:$0xff]  }
0x26de   :  { %10453 = vmatpush1.bf16.msra.mxu1 %v16793_v34  ;;  %v16856_v34 = vld [vmem:[#allocation4 + $0x2850] ss:$8 sps:$4 sm:$0xff]  }
0x26df   :  { %10454 = vmatprep.subr.bf16.mxu1 %v16798_v35  ;;  %v16861_v35 = vld [vmem:[#allocation4 + $0x2864] ss:$8 sps:$4 sm:$0xff]  }
0x26e2   :  { %10455 = vmatpush1.bf16.msra.mxu1 %v16796_v36  ;;  %v16859_v36 = vld [vmem:[#allocation4 + $0x2860] ss:$8 sps:$4 sm:$0xff]  }
0x26e3   :  { %10456 = vmatprep.subr.bf16.mxu1 %v16801_v37  ;;  %v10014_v37 = vld [vmem:[#allocation6 + $0x52] ss:$8 sm:$0x3] }
0x26e6   :  { %10457 = vmatpush1.bf16.msra.mxu1 %v16799_v49  ;;  %v10019_v49 = vrot.slane %v10014_v37, %v17498_v54 }
0x26e7   :  { %10458 = vmatprep.subr.bf16.mxu1 %v16804_v38  ;;  %v10023_v38 = vrot.slane %v10014_v37, %v17501_v56 }
0x26ea   :  { %10459 = vmatpush1.bf16.msra.mxu1 %v16802_v40 }
0x26eb   :  { %10460 = vmatprep.subr.bf16.mxu1 %v16807_v42 }
0x26ee   :  { %10461 = vmatpush1.bf16.msra.mxu1 %v16805_v43 }
0x26ef   :  { %10462 = vmatprep.subr.bf16.mxu1 %v16810_v45 }
0x26f2   :  { %10463 = vmatpush1.bf16.msra.mxu1 %v16808_v47 }
0x26f3   :  { %10464 = vmatprep.subr.bf16.mxu1 %v16813_v62  ;;  %v16867_v62 = vld [vmem:[#allocation7 + $0x70] sm:$0xff]  }
0x26f6   :  { %10465 = vmatpush1.bf16.msra.mxu1 %v16811_v63  ;;  %v16868_v63 = vld [vmem:[#allocation7 + $0x78] sm:$0xff]  }
0x26f7   :  { %10466 = vmatprep.subr.bf16.mxu1 %v16816_v3  ;;  %v16869_v3 = vld [vmem:[#allocation7 + $0x80] sm:$0xff]  }
0x26fa   :  { %10467 = vmatpush1.bf16.msra.mxu1 %v16814_v12  ;;  %v16870_v12 = vld [vmem:[#allocation7 + $0x88] sm:$0xff]  }
0x26fb   :  { %14855 = vmatprep.subr.bf16.mxu1 %v17332_v0 }
0x2790   :  { %v9970_v50 = vpop.f32.mrb[88].mxu1 }
0x2791   :  { %v9971_v51 = vadd.f32 %v9970_v50, %v9769_v4  ;;  %v9972_v55 = vpop.f32.mrb[89].mxu1 }
0x2792   :  { %v9973_v5 = vadd.f32 %v9972_v55, %v9773_v44  ;;  %v9974_v57 = vpop.f32.mrb[90].mxu1  ;;  %v16864_v55 = vld [vmem:[#allocation4 + $0x2874] ss:$8 sps:$4 sm:$0xff]  }
0x2793   :  { %v9977_v7 = vmax.f32 %v9971_v51, 0.0  ;;  %v9975_v58 = vpop.f32.mrb[91].mxu1  ;;  %v16865_v57 = vld [vmem:[#allocation7 + $0x60] sm:$0xff]  }
0x2794   :  { %v9978_v59 = vmax.f32 %v9973_v5, 0.0  ;;  %v16862_v5 = vld [vmem:[#allocation4 + $0x2870] ss:$8 sps:$4 sm:$0xff]   ;;  %v10831_v58 = vld [vmem:[#allocation9 + $0x20] sm:$0xff] }
0x2795   :  { %v10011_v61 = vpack.c.bf16 %v9977_v7, %v9977_v7  ;;  %v10827_v7 = vld [vmem:[#allocation9] sm:$0xff] }
0x2796   :  { %v10012_v60 = vpack.c.bf16 %v9978_v59, %v9978_v59  ;;  %v14456_v59 = vcombine.low %v10827_v7, %v10831_v58 }
0x2798   :  { %10218 = vmatprep.mubr.bf16.mxu0 %v10012_v60  ;;  %v14457_v60 = vcombine.high %v10827_v7, %v10831_v58 }
0x2799   :  { %10219 = vmatmul.mubr.bf16.vlgmr.msra.gmra.mrb[84].mxu0 %v10011_v61  ;;  %v16866_v61 = vld [vmem:[#allocation7 + $0x68] sm:$0xff]  }
0x279a   :  { %10680 = vmatpush1.bf16.msra.mxu0 %v16817_v6  ;;  %v16871_v6 = vld [vmem:[#allocation7 + $0x90] sm:$0xff]  }
0x279b   :  { %10681 = vmatprep.subr.bf16.mxu0 %v16822_v14  ;;  %v10269_v14 = vrot.slane %v10264_v10, %v17498_v54 }
0x279e   :  { %10682 = vmatpush1.bf16.msra.mxu0 %v16820_v8  ;;  %v10273_v8 = vrot.slane %v10264_v10, %v17501_v56  ;;  %v10720_v10 = vadd.f32 %v17620_v48, %v17556_v39 }
0x279f   :  { %10683 = vmatprep.subr.bf16.mxu0 %v16825_v9 }
0x27a2   :  { %10684 = vmatpush1.bf16.msra.mxu0 %v16823_v19 }
0x27a3   :  { %10685 = vmatprep.subr.bf16.mxu0 %v16828_v11 }
0x27a6   :  { %10686 = vmatpush1.bf16.msra.mxu0 %v16826_v13 }
0x27a7   :  { %10687 = vmatprep.subr.bf16.mxu0 %v16831_v15 }
0x27aa   :  { %10688 = vmatpush1.bf16.msra.mxu0 %v16829_v16  ;;  %v10835_v16 = vld [vmem:[#allocation9 + $0x40] sm:$0xff] }
0x27ab   :  { %10689 = vmatprep.subr.bf16.mxu0 %v16834_v18  ;;  %v10839_v18 = vld [vmem:[#allocation9 + $0x60] sm:$0xff] }
0x27ae   :  { %10690 = vmatpush1.bf16.msra.mxu0 %v16832_v17 }
0x27af   :  { %10691 = vmatprep.subr.bf16.mxu0 %v16837_v20 }
0x27b2   :  { %10692 = vmatpush1.bf16.msra.mxu0 %v16835_v22 }
0x27b3   :  { %10693 = vmatprep.subr.bf16.mxu0 %v16840_v24  ;;  %v14465_v24 = vcombine.high %v10835_v16, %v10839_v18 }
0x27b6   :  { %10694 = vmatpush1.bf16.msra.mxu0 %v16838_v26  ;;  %v10843_v26 = vld [vmem:[#allocation9 + $0x80] sm:$0xff] }
0x27b7   :  { %10695 = vmatprep.subr.bf16.mxu0 %v16843_v27  ;;  %v10847_v27 = vld [vmem:[#allocation9 + $0xa0] sm:$0xff] }
0x27ba   :  { %10696 = vmatpush1.bf16.msra.mxu0 %v16841_v23  ;;  %v14473_v23 = vcombine.high %v10843_v26, %v10847_v27 }
0x27bb   :  { %10697 = vmatprep.subr.bf16.mxu0 %v16846_v28  ;;  %v10851_v28 = vld [vmem:[#allocation9 + $0xc0] sm:$0xff] }
0x27be   :  { %10698 = vmatpush1.bf16.msra.mxu0 %v16844_v41  ;;  %v10855_v41 = vld [vmem:[#allocation9 + $0xe0] sm:$0xff] }
0x27bf   :  { %10699 = vmatprep.subr.bf16.mxu0 %v16849_v25  ;;  %v14472_v25 = vcombine.low %v10843_v26, %v10847_v27  ;;  %v10852_v26 = vld [vmem:[#allocation9 + $0xc8] sm:$0xff] }
0x27c0   :  { %v10856_v27 = vld [vmem:[#allocation9 + $0xe8] sm:$0xff] }
0x27c2   :  { %10700 = vmatpush1.bf16.msra.mxu0 %v16847_v29  ;;  %v14481_v29 = vcombine.high %v10851_v28, %v10855_v41 }
0x27c3   :  { %10701 = vmatprep.subr.bf16.mxu0 %v16852_v30  ;;  %v10859_v30 = vld [vmem:[#allocation9 + $0x100] sm:$0xff] }
0x27c6   :  { %10702 = vmatpush1.bf16.msra.mxu0 %v16850_v31  ;;  %v10863_v31 = vld [vmem:[#allocation9 + $0x120] sm:$0xff] }
0x27c7   :  { %10703 = vmatprep.subr.bf16.mxu0 %v16855_v32  ;;  %v14480_v32 = vcombine.low %v10851_v28, %v10855_v41  ;;  %v10853_v28 = vld [vmem:[#allocation9 + $0xd0] sm:$0xff] }
0x27c8   :  { %v10857_v41 = vld [vmem:[#allocation9 + $0xf0] sm:$0xff] }
0x27ca   :  { %10704 = vmatpush1.bf16.msra.mxu0 %v16853_v46  ;;  %v14489_v46 = vcombine.high %v10859_v30, %v10863_v31 }
0x27cb   :  { %10705 = vmatprep.subr.bf16.mxu0 %v16858_v33  ;;  %v10867_v33 = vld [vmem:[#allocation9 + $0x140] sm:$0xff] }
0x27ce   :  { %10706 = vmatpush1.bf16.msra.mxu0 %v16856_v34  ;;  %v10871_v34 = vld [vmem:[#allocation9 + $0x160] sm:$0xff] }
0x27cf   :  { %10707 = vmatprep.subr.bf16.mxu0 %v16861_v35  ;;  %v14488_v35 = vcombine.low %v10859_v30, %v10863_v31  ;;  %v14496_v37 = vcombine.low %v10867_v33, %v10871_v34  ;;  %v10860_v30 = vld [vmem:[#allocation9 + $0x108] sm:$0xff] }
0x27d0   :  { %v10864_v31 = vld [vmem:[#allocation9 + $0x128] sm:$0xff] }
0x27d2   :  { %10708 = vmatpush1.bf16.msra.mxu0 %v16859_v36  ;;  %v14497_v36 = vcombine.high %v10867_v33, %v10871_v34  ;;  %v10861_v33 = vld [vmem:[#allocation9 + $0x110] sm:$0xff] }
0x27d3   :  { %10709 = vmatprep.subr.bf16.mxu0 %v16864_v55  ;;  %v10865_v34 = vld [vmem:[#allocation9 + $0x130] sm:$0xff] }
0x27d6   :  { %10710 = vmatpush1.bf16.msra.mxu0 %v16862_v5  ;;  %v10829_v5 = vld [vmem:[#allocation9 + $0x10] sm:$0xff] }
0x27d7   :  { %11255 = vmatprep.subr.bf16.mxu0 %v14457_v60 }
0x286c   :  { %v10220_v40 = vpop.f32.mrb[84].mxu0 }
0x286d   :  { %v10221_v42 = vadd.f32 %v10220_v40, %v10019_v49  ;;  %v10222_v43 = vpop.f32.mrb[85].mxu0  ;;  %v10875_v49 = vld [vmem:[#allocation9 + $0x180] sm:$0xff] }
0x286e   :  { %v10223_v45 = vadd.f32 %v10222_v43, %v10023_v38  ;;  %v10224_v47 = vpop.f32.mrb[86].mxu0  ;;  %v10879_v38 = vld [vmem:[#allocation9 + $0x1a0] sm:$0xff]  ;;  %v16872_v43 = vld [vmem:[#allocation7 + $0x98] sm:$0xff]  }
0x286f   :  { %v10227_v2 = vmax.f32 %v10221_v42, 0.0  ;;  %v10225_v4 = vpop.f32.mrb[87].mxu0  ;;  %v14505_v40 = vcombine.high %v10875_v49, %v10879_v38  ;;  %v14504_v42 = vcombine.low %v10875_v49, %v10879_v38  ;;  %v10887_v47 = vld [vmem:[#allocation9 + $0x1e0] sm:$0xff]  ;;  %v10872_v49 = vld [vmem:[#allocation9 + $0x168] sm:$0xff]  ;;  %v14493_v38 = vcombine.high %v10861_v33, %v10865_v34 }
0x2870   :  { %v10228_v44 = vmax.f32 %v10223_v45, 0.0  ;;  %v10883_v45 = vld [vmem:[#allocation9 + $0x1c0] sm:$0xff] }
0x2871   :  { %v10261_v51 = vpack.c.bf16 %v10227_v2, %v10227_v2  ;;  %v14513_v2 = vcombine.high %v10883_v45, %v10887_v47  ;;  %v14512_v4 = vcombine.low %v10883_v45, %v10887_v47  ;;  %v14492_v47 = vcombine.low %v10861_v33, %v10865_v34  ;;  %v16882_v33 = vld [vmem:[#allocation10 + $0x48] ss:$12 sps:$4 sm:$0xff]   ;;  %v16887_v34 = vld [vmem:[#allocation10 + $0x64] ss:$12 sps:$4 sm:$0xff]  }
0x2872   :  { %v10262_v50 = vpack.c.bf16 %v10228_v44, %v10228_v44  ;;  %v10828_v44 = vld [vmem:[#allocation9 + $0x8] sm:$0xff] }
0x2874   :  { %10468 = vmatprep.mubr.bf16.mxu1 %v10262_v50  ;;  %v10832_v50 = vld [vmem:[#allocation9 + $0x28] sm:$0xff] }
0x2875   :  { %10469 = vmatmul.mubr.bf16.vlgmr.msra.gmra.mrb[92].mxu1 %v10261_v51  ;;  %v14459_v51 = vcombine.high %v10828_v44, %v10832_v50  ;;  %v14458_v55 = vcombine.low %v10828_v44, %v10832_v50 }
0x2876   :  { %14871 = vmatprep.mubr.msk.bf16.mxu1 %vm17333_vm0, %v17332_v0  ;;  %14856 = vmatpush3.bf16.msra.mxu1 %v16865_v57  ;;  %v10833_v57 = vld [vmem:[#allocation9 + $0x30] sm:$0xff] }
0x2877   :  { %14857 = vmatprep.subr.bf16.mxu1 %v17332_v0  ;;  %v14461_v7 = vcombine.high %v10829_v5, %v10833_v57  ;;  %v14460_v58 = vcombine.low %v10829_v5, %v10833_v57 }
0x287a   :  { %14858 = vmatpush3.bf16.msra.mxu1 %v16866_v61 }
0x287b   :  { %14859 = vmatprep.subr.bf16.mxu1 %v17332_v0 }
0x287e   :  { %14860 = vmatpush3.bf16.msra.mxu1 %v16867_v62 }
0x287f   :  { %14861 = vmatprep.subr.bf16.mxu1 %v17332_v0 }
0x2882   :  { %14862 = vmatpush3.bf16.msra.mxu1 %v16868_v63 }
0x2883   :  { %14863 = vmatprep.subr.bf16.mxu1 %v17332_v0 }
0x2886   :  { %14864 = vmatpush3.bf16.msra.mxu1 %v16869_v3 }
0x2887   :  { %14865 = vmatprep.subr.bf16.mxu1 %v17332_v0 }
0x288a   :  { %14866 = vmatpush3.bf16.msra.mxu1 %v16870_v12  ;;  %v10836_v12 = vld [vmem:[#allocation9 + $0x48] sm:$0xff] }
0x288b   :  { %14867 = vmatprep.subr.bf16.mxu1 %v17332_v0 }
0x288e   :  { %14868 = vmatpush3.bf16.msra.mxu1 %v16871_v6  ;;  %v10840_v6 = vld [vmem:[#allocation9 + $0x68] sm:$0xff] }
0x288f   :  { %14869 = vmatprep.subr.bf16.mxu1 %v17332_v0  ;;  %v14464_v0 = vcombine.low %v10835_v16, %v10839_v18  ;;  %v10844_v16 = vld [vmem:[#allocation9 + $0x88] sm:$0xff] }
0x2890   :  { %v10848_v18 = vld [vmem:[#allocation9 + $0xa8] sm:$0xff] }
0x2892   :  { %14870 = vmatpush3.bf16.msra.mxu1 %v16872_v43  ;;  %v10873_v43 = vld [vmem:[#allocation9 + $0x170] sm:$0xff] }
0x2893   :  { %11296 = vmatprep.subr.bf16.mxu1 %v14459_v51  ;;  %v10877_v51 = vld [vmem:[#allocation9 + $0x190] sm:$0xff] }
0x2948   :  { %v10470_v9 = vpop.f32.mrb[92].mxu1 }
0x2949   :  { %v10471_v19 = vadd.f32 %v10470_v9, %v10269_v14  ;;  %v10472_v11 = vpop.f32.mrb[93].mxu1  ;;  %v10837_v9 = vld [vmem:[#allocation9 + $0x50] sm:$0xff] }
0x294a   :  { %v10473_v13 = vadd.f32 %v10472_v11, %v10273_v8  ;;  %v10474_v15 = vpop.f32.mrb[94].mxu1 }
0x294b   :  { %v10475_v17 = vpop.f32.mrb[95].mxu1  ;;  %v10509_v22 = vpack.c.bf16 %v10471_v19, %v10471_v19  ;;  %v10841_v19 = vld [vmem:[#allocation9 + $0x70] sm:$0xff]  ;;  %v14467_v15 = vcombine.high %v10836_v12, %v10840_v6 }
0x294c   :  { %v10510_v20 = vpack.c.bf16 %v10473_v13, %v10473_v13  ;;  %v14469_v48 = vcombine.high %v10837_v9, %v10841_v19  ;;  %v10845_v17 = vld [vmem:[#allocation9 + $0x90] sm:$0xff] }
0x294e   :  { %10711 = vmatprep.mubr.bf16.mxu0 %v10510_v20  ;;  %v10849_v20 = vld [vmem:[#allocation9 + $0xb0] sm:$0xff] }
0x294f   :  { %10712 = vmatmul.mubr.bf16.vlgmr.msra.gmra.mrb[88].mxu0 %v10509_v22  ;;  %v14475_v22 = vcombine.high %v10844_v16, %v10848_v18 }
0x2950   :  { %11256 = vmatpush1.bf16.msra.mxu0 %v14456_v59  ;;  %11287 = vmatprep.mubr.bf16.mxu0 %v17334_v1  ;;  %v10512_v59 = vld [vmem:[#allocation6 + $0x54] ss:$8 sm:$0x3] }
0x2951   :  { %11257 = vmatprep.subr.bf16.mxu0 %v14465_v24  ;;  %v10517_v60 = vrot.slane %v10512_v59, %v17498_v54  ;;  %v14468_v24 = vcombine.low %v10837_v9, %v10841_v19  ;;  %v10838_v19 = vld [vmem:[#allocation9 + $0x58] sm:$0xff] }
0x2954   :  { %11258 = vmatpush1.bf16.msra.mxu0 %v14464_v0  ;;  %v14477_v0 = vcombine.high %v10845_v17, %v10849_v20 }
0x2955   :  { %11259 = vmatprep.subr.bf16.mxu0 %v14473_v23  ;;  %v14474_v23 = vcombine.low %v10844_v16, %v10848_v18  ;;  %v10846_v18 = vld [vmem:[#allocation9 + $0x98] sm:$0xff] }
0x2958   :  { %11260 = vmatpush1.bf16.msra.mxu0 %v14472_v25  ;;  %v14483_v25 = vcombine.high %v10852_v26, %v10856_v27 }
0x2959   :  { %11261 = vmatprep.subr.bf16.mxu0 %v14481_v29  ;;  %v14476_v29 = vcombine.low %v10845_v17, %v10849_v20  ;;  %v16878_v17 = vld [vmem:[#allocation10 + $0x1c] ss:$12 sps:$4 sm:$0xff]  }
0x295c   :  { %11262 = vmatpush1.bf16.msra.mxu0 %v14480_v32  ;;  %v14485_v32 = vcombine.high %v10853_v28, %v10857_v41 }
0x295d   :  { %11263 = vmatprep.subr.bf16.mxu0 %v14489_v46  ;;  %v14482_v46 = vcombine.low %v10852_v26, %v10856_v27  ;;  %v10858_v26 = vld [vmem:[#allocation9 + $0xf8] sm:$0xff] }
0x295e   :  { %v16876_v27 = vld [vmem:[#allocation10 + $0x18] ss:$12 sps:$4 sm:$0xff]  }
0x2960   :  { %11264 = vmatpush1.bf16.msra.mxu0 %v14488_v35  ;;  %v14491_v35 = vcombine.high %v10860_v30, %v10864_v31 }
0x2961   :  { %11265 = vmatprep.subr.bf16.mxu0 %v14497_v36  ;;  %v14484_v36 = vcombine.low %v10853_v28, %v10857_v41  ;;  %v10862_v41 = vld [vmem:[#allocation9 + $0x118] sm:$0xff] }
0x2964   :  { %11266 = vmatpush1.bf16.msra.mxu0 %v14496_v37  ;;  %v10868_v37 = vld [vmem:[#allocation9 + $0x148] sm:$0xff] }
0x2965   :  { %11267 = vmatprep.subr.bf16.mxu0 %v14505_v40  ;;  %v14490_v40 = vcombine.low %v10860_v30, %v10864_v31  ;;  %v14499_v45 = vcombine.high %v10868_v37, %v10872_v49  ;;  %v14498_v50 = vcombine.low %v10868_v37, %v10872_v49  ;;  %v10878_v37 = vld [vmem:[#allocation9 + $0x198] sm:$0xff] }
0x2966   :  { %v10882_v49 = vld [vmem:[#allocation9 + $0x1b8] sm:$0xff] }
0x2968   :  { %11268 = vmatpush1.bf16.msra.mxu0 %v14504_v42  ;;  %v10869_v42 = vld [vmem:[#allocation9 + $0x150] sm:$0xff] }
0x2969   :  { %11269 = vmatprep.subr.bf16.mxu0 %v14513_v2  ;;  %v10876_v2 = vld [vmem:[#allocation9 + $0x188] sm:$0xff]  ;;  %v14501_v44 = vcombine.high %v10869_v42, %v10873_v43  ;;  %v14500_v57 = vcombine.low %v10869_v42, %v10873_v43  ;;  %v14511_v43 = vcombine.high %v10878_v37, %v10882_v49 }
0x296c   :  { %11270 = vmatpush1.bf16.msra.mxu0 %v14512_v4  ;;  %v10880_v4 = vld [vmem:[#allocation9 + $0x1a8] sm:$0xff] }
0x296d   :  { %11337 = vmatprep.subr.bf16.mxu0 %v14461_v7  ;;  %v14507_v5 = vcombine.high %v10876_v2, %v10880_v4  ;;  %v10884_v7 = vld [vmem:[#allocation9 + $0x1c8] sm:$0xff] }
0x2a22   :  { %v10713_v61 = vpop.f32.mrb[88].mxu0 }
0x2a23   :  { %v10714_v62 = vadd.f32 %v10713_v61, %v10517_v60  ;;  %v10715_v63 = vpop.f32.mrb[89].mxu0  ;;  %v14506_v60 = vcombine.low %v10876_v2, %v10880_v4  ;;  %v10885_v61 = vld [vmem:[#allocation9 + $0x1d0] sm:$0xff]  ;;  %v16888_v2 = vld [vmem:[#allocation10 + $0x78] ss:$12 sps:$4 sm:$0xff]  }
0x2a24   :  { %v10716_v3 = vpop.f32.mrb[90].mxu0  ;;  %v16893_v4 = vld [vmem:[#allocation10 + $0x94] ss:$12 sps:$4 sm:$0xff]  }
0x2a25   :  { %v10719_v14 = vadd.f32 %v10714_v62, %v17665_v21  ;;  %v10717_v8 = vpop.f32.mrb[91].mxu0  ;;  %v14466_v21 = vcombine.low %v10836_v12, %v10840_v6  ;;  %v10889_v62 = vld [vmem:[#allocation9 + $0x1f0] sm:$0xff]  ;;  %v10830_v12 = vld [vmem:[#allocation9 + $0x18] sm:$0xff] }
0x2a26   :  { %v10834_v6 = vld [vmem:[#allocation9 + $0x38] sm:$0xff]  ;;  %v14516_v9 = vcombine.low %v10885_v61, %v10889_v62 }
0x2a27   :  { %v10721_v11 = vadd.f32 %v10720_v10, %v10719_v14  ;;  %v10738_v13 = vpack.c.bf16 %v10719_v14, %v10719_v14  ;;  %13116 = vst [vmem:[%s17797_s7 + $0xc] sm:$0xf] %v10719_v14  ;;  %v14517_v10 = vcombine.high %v10885_v61, %v10889_v62  ;;  %v14463_v8 = vcombine.high %v10830_v12, %v10834_v6  ;;  %v16897_v61 = vld [vmem:[#allocation10 + $0xc0] ss:$12 sps:$4 sm:$0xff]   ;;  %v16904_v62 = vld [vmem:[#allocation10 + $0xdc] ss:$12 sps:$4 sm:$0xff]  }
0x2a29   :  { %13117 = vst [vmem:[%s17797_s7 + $0x10] sm:$0xf] %v10721_v11  ;;  %14872 = vmatmul.mubr.bf16.vlgmr.msra.gmra.mrb[96].mxu1 %v10738_v13  ;;  %v17697_v39 = vpack.c.bf16 %v10721_v11, %v10721_v11  ;;  %v10842_v11 = vld [vmem:[#allocation9 + $0x78] sm:$0xff]  ;;  %v16875_v13 = vld [vmem:[#allocation10 + $0x4] ss:$12 sps:$4 sm:$0xff]  }
0x2a2a   :  { %11297 = vmatpush1.bf16.msra.mxu1 %v14458_v55  ;;  %11328 = vmatprep.mubr.bf16.mxu1 %v17334_v1  ;;  %v10881_v55 = vld [vmem:[#allocation9 + $0x1b0] sm:$0xff]  ;;  %v14471_v16 = vcombine.high %v10838_v19, %v10842_v11  ;;  %v14470_v20 = vcombine.low %v10838_v19, %v10842_v11 }
0x2a2b   :  { %11288 = vmatmul.mubr.bf16.vlgmr.msra.gmra.mrb[92].mxu0 %v17697_v39  ;;  %11298 = vmatprep.subr.bf16.mxu1 %v14467_v15  ;;  %v14509_v59 = vcombine.high %v10877_v51, %v10881_v55  ;;  %v14508_v3 = vcombine.low %v10877_v51, %v10881_v55  ;;  %v14462_v15 = vcombine.low %v10830_v12, %v10834_v6  ;;  %v16891_v51 = vld [vmem:[#allocation10 + $0x90] ss:$12 sps:$4 sm:$0xff]   ;;  %v16896_v55 = vld [vmem:[#allocation10 + $0xac] ss:$12 sps:$4 sm:$0xff]   ;;  %v16909_v6 = vld [vmem:[#allocation10 + $0xf4] ss:$12 sps:$4 sm:$0xff]  }
0x2a2c   :  { %11338 = vmatpush1.bf16.msra.mxu0 %v14460_v58  ;;  %11369 = vmatprep.mubr.bf16.mxu0 %v17334_v1  ;;  %v10888_v58 = vld [vmem:[#allocation9 + $0x1e8] sm:$0xff]  ;;  %v16902_v12 = vld [vmem:[#allocation10 + $0xd8] ss:$12 sps:$4 sm:$0xff]  }
0x2a2d   :  { %11339 = vmatprep.subr.bf16.mxu0 %v14469_v48  ;;  %v14515_v63 = vcombine.high %v10884_v7, %v10888_v58  ;;  %v14514_v14 = vcombine.low %v10884_v7, %v10888_v58  ;;  %v10850_v48 = vld [vmem:[#allocation9 + $0xb8] sm:$0xff]  ;;  %v16894_v7 = vld [vmem:[#allocation10 + $0xa8] ss:$12 sps:$4 sm:$0xff]   ;;  %v16899_v58 = vld [vmem:[#allocation10 + $0xc4] ss:$12 sps:$4 sm:$0xff]  }
0x2a2e   :  { %11299 = vmatpush1.bf16.msra.mxu1 %v14466_v21  ;;  %v16873_v21 = vld [vmem:[#allocation10] ss:$12 sps:$4 sm:$0xff]   ;;  %v16920_v19 = vld [vmem:[#allocation10 + $0x128] ss:$12 sps:$4 sm:$0xff]  }
0x2a2f   :  { %11300 = vmatprep.subr.bf16.mxu1 %v14475_v22  ;;  %v14479_v22 = vcombine.high %v10846_v18, %v10850_v48  ;;  %v16912_v11 = vld [vmem:[#allocation10 + $0x108] ss:$12 sps:$4 sm:$0xff]  }
0x2a30   :  { %11340 = vmatpush1.bf16.msra.mxu0 %v14468_v24  ;;  %v10854_v24 = vld [vmem:[#allocation9 + $0xd8] sm:$0xff] }
0x2a31   :  { %11341 = vmatprep.subr.bf16.mxu0 %v14477_v0  ;;  %v16881_v0 = vld [vmem:[#allocation10 + $0x34] ss:$12 sps:$4 sm:$0xff]   ;;  %v14487_v28 = vcombine.high %v10854_v24, %v10858_v26  ;;  %v14486_v30 = vcombine.low %v10854_v24, %v10858_v26  ;;  %v16931_v24 = vld [vmem:[#allocation10 + $0x98] ss:$12 sps:$4 sm:$0xff]   ;;  %v16927_v26 = vld [vmem:[#allocation10 + $0x150] ss:$12 sps:$4 sm:$0xff]  }
0x2a32   :  { %11301 = vmatpush1.bf16.msra.mxu1 %v14474_v23  ;;  %v14478_v23 = vcombine.low %v10846_v18, %v10850_v48  ;;  %v16917_v18 = vld [vmem:[#allocation10 + $0x120] ss:$12 sps:$4 sm:$0xff]   ;;  %v16924_v48 = vld [vmem:[#allocation10 + $0x13c] ss:$12 sps:$4 sm:$0xff]  }
0x2a33   :  { %11302 = vmatprep.subr.bf16.mxu1 %v14483_v25  ;;  %v10866_v25 = vld [vmem:[#allocation9 + $0x138] sm:$0xff] }
0x2a34   :  { %11342 = vmatpush1.bf16.msra.mxu0 %v14476_v29  ;;  %v16879_v29 = vld [vmem:[#allocation10 + $0x30] ss:$12 sps:$4 sm:$0xff]   ;;  %v14495_v31 = vcombine.high %v10862_v41, %v10866_v25 }
0x2a35   :  { %11343 = vmatprep.subr.bf16.mxu0 %v14485_v32  ;;  %v10870_v32 = vld [vmem:[#allocation9 + $0x158] sm:$0xff] }
0x2a36   :  { %11303 = vmatpush1.bf16.msra.mxu1 %v14482_v46  ;;  %v10874_v46 = vld [vmem:[#allocation9 + $0x178] sm:$0xff] }
0x2a37   :  { %11304 = vmatprep.subr.bf16.mxu1 %v14491_v35  ;;  %v14494_v35 = vcombine.low %v10862_v41, %v10866_v25  ;;  %v14502_v42 = vcombine.low %v10870_v32, %v10874_v46  ;;  %v16939_v41 = vld [vmem:[#allocation10 + $0x184] ss:$12 sps:$4 sm:$0xff]   ;;  %v16940_v25 = vld [vmem:[#allocation10 + $0x248] ss:$12 sps:$4 sm:$0xff]  }
0x2a38   :  { %11344 = vmatpush1.bf16.msra.mxu0 %v14484_v36  ;;  %v14503_v36 = vcombine.high %v10870_v32, %v10874_v46 }
0x2a39   :  { %11345 = vmatprep.subr.bf16.mxu0 %v14493_v38  ;;  %v16885_v38 = vld [vmem:[#allocation10 + $0x60] ss:$12 sps:$4 sm:$0xff]  }
0x2a3a   :  { %11305 = vmatpush1.bf16.msra.mxu1 %v14490_v40  ;;  %v16890_v40 = vld [vmem:[#allocation10 + $0x7c] ss:$12 sps:$4 sm:$0xff]  }
0x2a3b   :  { %11306 = vmatprep.subr.bf16.mxu1 %v14499_v45  ;;  %v10886_v45 = vld [vmem:[#allocation9 + $0x1d8] sm:$0xff] }
0x2a3c   :  { %11346 = vmatpush1.bf16.msra.mxu0 %v14492_v47  ;;  %v10890_v47 = vld [vmem:[#allocation9 + $0x1f8] sm:$0xff] }
0x2a3d   :  { %11347 = vmatprep.subr.bf16.mxu0 %v14501_v44  ;;  %v14510_v44 = vcombine.low %v10878_v37, %v10882_v49 }
0x2a3e   :  { %11307 = vmatpush1.bf16.msra.mxu1 %v14498_v50  ;;  %v14519_v50 = vcombine.high %v10886_v45, %v10890_v47 }
0x2a3f   :  { %11308 = vmatprep.subr.bf16.mxu1 %v14507_v5  ;;  %v14518_v5 = vcombine.low %v10886_v45, %v10890_v47  ;;  %v16937_v45 = vld [vmem:[#allocation10 + $0x180] ss:$12 sps:$4 sm:$0xff]   ;;  %v16941_v47 = vld [vmem:[#allocation10 + $0x188] ss:$12 sps:$4 sm:$0xff]  }
0x2a40   :  { %11348 = vmatpush1.bf16.msra.mxu0 %v14500_v57  ;;  %v16900_v57 = vld [vmem:[#allocation10 + $0xc8] ss:$12 sps:$4 sm:$0xff]  }
0x2a41   :  { %11349 = vmatprep.subr.bf16.mxu0 %v14509_v59  ;;  %v16901_v59 = vld [vmem:[#allocation10 + $0x8] ss:$12 sps:$4 sm:$0xff]  }
0x2a42   :  { %11309 = vmatpush1.bf16.msra.mxu1 %v14506_v60  ;;  %v16905_v60 = vld [vmem:[#allocation10 + $0xe0] ss:$12 sps:$4 sm:$0xff]  }
0x2a43   :  { %11310 = vmatprep.subr.bf16.mxu1 %v14515_v63  ;;  %v16906_v63 = vld [vmem:[#allocation10 + $0x20] ss:$12 sps:$4 sm:$0xff]  }
0x2a44   :  { %11350 = vmatpush1.bf16.msra.mxu0 %v14508_v3  ;;  %v16910_v3 = vld [vmem:[#allocation10 + $0xf8] ss:$12 sps:$4 sm:$0xff]  }
0x2a45   :  { %11351 = vmatprep.subr.bf16.mxu0 %v14517_v10  ;;  %v16911_v10 = vld [vmem:[#allocation10 + $0x38] ss:$12 sps:$4 sm:$0xff]  }
0x2a46   :  { %11311 = vmatpush1.bf16.msra.mxu1 %v14514_v14  ;;  %v16915_v14 = vld [vmem:[#allocation10 + $0x110] ss:$12 sps:$4 sm:$0xff]  }
0x2a47   :  { %11378 = vmatprep.subr.bf16.mxu1 %v14463_v8  ;;  %v16907_v8 = vld [vmem:[#allocation10 + $0xf0] ss:$12 sps:$4 sm:$0xff]  }
0x2a48   :  { %11352 = vmatpush1.bf16.msra.mxu0 %v14516_v9  ;;  %v16914_v9 = vld [vmem:[#allocation10 + $0x10c] ss:$12 sps:$4 sm:$0xff]  }
0x2a49   :  { %11329 = vmatmul.mubr.bf16.vlgmr.msra.gmra.mrb[100].mxu1 %v17697_v39  ;;  %12733 = vmatprep.subr.bf16.mxu0 %v16875_v13  ;;  %v16919_v13 = vld [vmem:[#allocation10 + $0x124] ss:$12 sps:$4 sm:$0xff]  }
0x2a4a   :  { %11379 = vmatpush1.bf16.msra.mxu1 %v14462_v15  ;;  %11410 = vmatprep.mubr.bf16.mxu1 %v17334_v1  ;;  %v16884_v1 = vld [vmem:[#allocation10 + $0x4c] ss:$12 sps:$4 sm:$0xff]   ;;  %v16921_v15 = vld [vmem:[#allocation10 + $0x68] ss:$12 sps:$4 sm:$0xff]  }
0x2a4b   :  { %11370 = vmatmul.mubr.bf16.vlgmr.msra.gmra.mrb[96].mxu0 %v17697_v39  ;;  %11380 = vmatprep.subr.bf16.mxu1 %v14471_v16  ;;  %v16925_v16 = vld [vmem:[#allocation10 + $0x140] ss:$12 sps:$4 sm:$0xff]  }
0x2a4c   :  { %12734 = vmatpush1.bf16.msra.mxu0 %v16873_v21  ;;  %v16926_v21 = vld [vmem:[#allocation10 + $0x80] ss:$12 sps:$4 sm:$0xff]  }
0x2a4d   :  { %12735 = vmatprep.subr.bf16.mxu0 %v16878_v17  ;;  %v16922_v17 = vld [vmem:[#allocation10 + $0x138] ss:$12 sps:$4 sm:$0xff]  }
0x2a4e   :  { %11381 = vmatpush1.bf16.msra.mxu1 %v14470_v20  ;;  %v16929_v20 = vld [vmem:[#allocation10 + $0x154] ss:$12 sps:$4 sm:$0xff]  }
0x2a4f   :  { %11382 = vmatprep.subr.bf16.mxu1 %v14479_v22  ;;  %v16930_v22 = vld [vmem:[#allocation10 + $0x158] ss:$12 sps:$4 sm:$0xff]  }
0x2a50   :  { %12736 = vmatpush1.bf16.msra.mxu0 %v16876_v27  ;;  %v16934_v27 = vld [vmem:[#allocation10 + $0x16c] ss:$12 sps:$4 sm:$0xff]  }
0x2a51   :  { %12737 = vmatprep.subr.bf16.mxu0 %v16881_v0  ;;  %v16935_v0 = vld [vmem:[#allocation10 + $0x170] ss:$12 sps:$4 sm:$0xff]  }
0x2a52   :  { %11383 = vmatpush1.bf16.msra.mxu1 %v14478_v23  ;;  %v16936_v23 = vld [vmem:[#allocation10 + $0xb0] ss:$12 sps:$4 sm:$0xff]  }
0x2a53   :  { %11384 = vmatprep.subr.bf16.mxu1 %v14487_v28  ;;  %v16932_v28 = vld [vmem:[#allocation10 + $0x168] ss:$12 sps:$4 sm:$0xff]  }
0x2a54   :  { %12738 = vmatpush1.bf16.msra.mxu0 %v16879_v29  ;;  %v17706_v29 = vld [vmem:[#allocation12 + $0x1] ss:$4 sm:$0xff] }
0x2a55   :  { %12739 = vmatprep.subr.bf16.mxu0 %v16884_v1  ;;  %v10898_v1 = vrot.slane %v17706_v29, %v17498_v54 }
0x2a56   :  { %11385 = vmatpush1.bf16.msra.mxu1 %v14486_v30 }
0x2a57   :  { %11386 = vmatprep.subr.bf16.mxu1 %v14495_v31  ;;  %v10902_v31 = vrot.slane %v17706_v29, %v17501_v56 }
0x2a58   :  { %12740 = vmatpush1.bf16.msra.mxu0 %v16882_v33 }
0x2a59   :  { %12741 = vmatprep.subr.bf16.mxu0 %v16887_v34 }
0x2a5a   :  { %11387 = vmatpush1.bf16.msra.mxu1 %v14494_v35 }
0x2a5b   :  { %11388 = vmatprep.subr.bf16.mxu1 %v14503_v36 }
0x2a5c   :  { %12742 = vmatpush1.bf16.msra.mxu0 %v16885_v38 }
0x2a5d   :  { %12743 = vmatprep.subr.bf16.mxu0 %v16890_v40 }
0x2a5e   :  { %11389 = vmatpush1.bf16.msra.mxu1 %v14502_v42 }
0x2a5f   :  { %11390 = vmatprep.subr.bf16.mxu1 %v14511_v43 }
0x2a60   :  { %12744 = vmatpush1.bf16.msra.mxu0 %v16888_v2 }
0x2a61   :  { %12745 = vmatprep.subr.bf16.mxu0 %v16893_v4  ;;  %v16944_v4 = vld [vmem:[#allocation10 + $0x19c] ss:$12 sps:$4 sm:$0xff]  }
0x2a62   :  { %11391 = vmatpush1.bf16.msra.mxu1 %v14510_v44  ;;  %v16945_v44 = vld [vmem:[#allocation10 + $0x260] ss:$12 sps:$4 sm:$0xff]  }
0x2a63   :  { %11392 = vmatprep.subr.bf16.mxu1 %v14519_v50  ;;  %v16942_v50 = vld [vmem:[#allocation10 + $0x198] ss:$12 sps:$4 sm:$0xff]  }
0x2a64   :  { %12746 = vmatpush1.bf16.msra.mxu0 %v16891_v51  ;;  %v16946_v51 = vld [vmem:[#allocation10 + $0x1a0] ss:$12 sps:$4 sm:$0xff]  }
0x2a65   :  { %12747 = vmatprep.subr.bf16.mxu0 %v16896_v55  ;;  %v16949_v55 = vld [vmem:[#allocation10 + $0x1b4] ss:$12 sps:$4 sm:$0xff]  }
0x2a66   :  { %11393 = vmatpush1.bf16.msra.mxu1 %v14518_v5  ;;  %v16950_v5 = vld [vmem:[#allocation10 + $0x278] ss:$12 sps:$4 sm:$0xff]  }
0x2a67   :  { %14735 = vmatprep.subr.bf16.mxu1 %v16900_v57  ;;  %v16947_v57 = vld [vmem:[#allocation10 + $0x1b0] ss:$12 sps:$4 sm:$0xff]  }
0x2a68   :  { %12748 = vmatpush1.bf16.msra.mxu0 %v16894_v7  ;;  %v16951_v7 = vld [vmem:[#allocation10 + $0x1b8] ss:$12 sps:$4 sm:$0xff]  }
0x2a69   :  { %11411 = vmatmul.mubr.bf16.vlgmr.msra.gmra.mrb[104].mxu1 %v17697_v39  ;;  %12749 = vmatprep.subr.bf16.mxu0 %v16899_v58  ;;  %v16916_v39 = vld [vmem:[#allocation10 + $0x50] ss:$12 sps:$4 sm:$0xff]   ;;  %v16954_v58 = vld [vmem:[#allocation10 + $0x1cc] ss:$12 sps:$4 sm:$0xff]  }
0x2a6a   :  { %14736 = vmatpush3.bf16.msra.mxu1 %v16901_v59  ;;  %v16955_v59 = vld [vmem:[#allocation10 + $0x290] ss:$12 sps:$4 sm:$0xff]  }
0x2a6b   :  { %14737 = vmatprep.subr.bf16.mxu1 %v16905_v60  ;;  %v16952_v60 = vld [vmem:[#allocation10 + $0x1c8] ss:$12 sps:$4 sm:$0xff]  }
0x2a6c   :  { %12750 = vmatpush1.bf16.msra.mxu0 %v16897_v61  ;;  %v16956_v61 = vld [vmem:[#allocation10 + $0x1d0] ss:$12 sps:$4 sm:$0xff]  }
0x2a6d   :  { %12751 = vmatprep.subr.bf16.mxu0 %v16904_v62  ;;  %v16959_v62 = vld [vmem:[#allocation10 + $0x1e4] ss:$12 sps:$4 sm:$0xff]  }
0x2a6e   :  { %14738 = vmatpush3.bf16.msra.mxu1 %v16906_v63  ;;  %v16960_v63 = vld [vmem:[#allocation10 + $0x2a8] ss:$12 sps:$4 sm:$0xff]  }
0x2a6f   :  { %14739 = vmatprep.subr.bf16.mxu1 %v16910_v3  ;;  %v16957_v3 = vld [vmem:[#allocation10 + $0x1e0] ss:$12 sps:$4 sm:$0xff]  }
0x2a70   :  { %12752 = vmatpush1.bf16.msra.mxu0 %v16902_v12  ;;  %v16961_v12 = vld [vmem:[#allocation10 + $0x1e8] ss:$12 sps:$4 sm:$0xff]  }
0x2a71   :  { %12753 = vmatprep.subr.bf16.mxu0 %v16909_v6  ;;  %v16964_v6 = vld [vmem:[#allocation10 + $0x1fc] ss:$12 sps:$4 sm:$0xff]  }
0x2a72   :  { %14740 = vmatpush3.bf16.msra.mxu1 %v16911_v10  ;;  %v16965_v10 = vld [vmem:[#allocation10 + $0x2c0] ss:$12 sps:$4 sm:$0xff]  }
0x2a73   :  { %14741 = vmatprep.subr.bf16.mxu1 %v16915_v14  ;;  %v10905_v14 = vsub.s32 2, %v17495_v53 }
0x2a74   :  { %12754 = vmatpush1.bf16.msra.mxu0 %v16907_v8  ;;  %v10909_v8 = vsub.s32 3, %v17495_v53 }
0x2a75   :  { %12755 = vmatprep.subr.bf16.mxu0 %v16914_v9  ;;  %v10913_v9 = vsub.s32 4, %v17495_v53 }
0x2a76   :  { %14742 = vmatpush3.bf16.msra.mxu1 %v16916_v39  ;;  %v16962_v39 = vld [vmem:[#allocation10 + $0x1f8] ss:$12 sps:$4 sm:$0xff]  }
0x2a77   :  { %14743 = vmatprep.subr.bf16.mxu1 %v16920_v19  ;;  %v16966_v19 = vld [vmem:[#allocation10 + $0x200] ss:$12 sps:$4 sm:$0xff]  }
0x2a78   :  { %12756 = vmatpush1.bf16.msra.mxu0 %v16912_v11  ;;  %v10917_v11 = vsub.s32 5, %v17495_v53 }
0x2a79   :  { %12757 = vmatprep.subr.bf16.mxu0 %v16919_v13  ;;  %v16969_v13 = vld [vmem:[#allocation10 + $0x214] ss:$12 sps:$4 sm:$0xff]  }
0x2a7a   :  { %14744 = vmatpush3.bf16.msra.mxu1 %v16921_v15  ;;  %v16970_v15 = vld [vmem:[#allocation10 + $0x2d8] ss:$12 sps:$4 sm:$0xff]  }
0x2a7b   :  { %14745 = vmatprep.subr.bf16.mxu1 %v16925_v16  ;;  %v10906_v16 = vrot.slane %v17706_v29, %v10905_v14 }
0x2a7c   :  { %12758 = vmatpush1.bf16.msra.mxu0 %v16917_v18  ;;  %v10910_v18 = vrot.slane %v17706_v29, %v10909_v8  ;;  %v10925_v8 = vsub.s32 7, %v17495_v53 }
0x2a7d   :  { %12759 = vmatprep.subr.bf16.mxu0 %v16924_v48  ;;  %v10914_v48 = vrot.slane %v17706_v29, %v10913_v9  ;;  %v17002_v9 = vld [vmem:[#allocation10 + $0x2b8] ss:$12 sps:$4 sm:$0xff]  }
0x2a7e   :  { %14746 = vmatpush3.bf16.msra.mxu1 %v16926_v21 }
0x2a7f   :  { %14747 = vmatprep.subr.bf16.mxu1 %v16930_v22  ;;  %v16971_v22 = vld [vmem:[#allocation10 + $0x218] ss:$12 sps:$4 sm:$0xff]  }
0x2a80   :  { %12760 = vmatpush1.bf16.msra.mxu0 %v16922_v17  ;;  %v10918_v17 = vrot.slane %v17706_v29, %v10917_v11  ;;  %v17009_v11 = vld [vmem:[#allocation10 + $0x2d4] ss:$12 sps:$4 sm:$0xff]  }
0x2a81   :  { %12761 = vmatprep.subr.bf16.mxu0 %v16929_v20  ;;  %v16967_v20 = vld [vmem:[#allocation10 + $0x210] ss:$12 sps:$4 sm:$0xff]  }
0x2a82   :  { %14748 = vmatpush3.bf16.msra.mxu1 %v16931_v24 }
0x2a83   :  { %14749 = vmatprep.subr.bf16.mxu1 %v16935_v0 }
0x2a84   :  { %12762 = vmatpush1.bf16.msra.mxu0 %v16927_v26  ;;  %v16974_v26 = vld [vmem:[#allocation10 + $0x22c] ss:$12 sps:$4 sm:$0xff]  }
0x2a85   :  { %12763 = vmatprep.subr.bf16.mxu0 %v16934_v27  ;;  %v16975_v27 = vld [vmem:[#allocation10 + $0x2f0] ss:$12 sps:$4 sm:$0xff]  }
0x2a86   :  { %14750 = vmatpush3.bf16.msra.mxu1 %v16936_v23 }
0x2a87   :  { %14757 = vmatprep.subr.bf16.mxu1 %v16940_v25 }
0x2a88   :  { %12764 = vmatpush1.bf16.msra.mxu0 %v16932_v28 }
0x2a89   :  { %12774 = vmatprep.subr.bf16.mxu0 %v16939_v41 }
0x2afc   :  { %v10821_v30 = vpop.f32.mrb[96].mxu1 }
0x2afd   :  { %13118 = vst [vmem:[%s17797_s7 + $0x14] sm:$0xf] %v10821_v30  ;;  %v14873_v32 = vpop.f32.mrb[97].mxu1 }
0x2afe   :  { %v10824_v46 = vpop.f32.mrb[98].mxu1  ;;  %v11289_v33 = vpop.f32.mrb[92].mxu0 }
0x2aff   :  { %v11290_v34 = vadd.f32 %v11289_v33, %v10898_v1  ;;  %v14874_v35 = vpop.f32.mrb[99].mxu1  ;;  %v11291_v36 = vpop.f32.mrb[93].mxu0  ;;  %v16972_v33 = vld [vmem:[#allocation10 + $0x228] ss:$12 sps:$4 sm:$0xff]  }
0x2b00   :  { %v11292_v37 = vadd.f32 %v11291_v36, %v10902_v31  ;;  %v11293_v49 = vpop.f32.mrb[94].mxu0  ;;  %v16976_v35 = vld [vmem:[#allocation10 + $0x230] ss:$12 sps:$4 sm:$0xff]  }
0x2b01   :  { %v11419_v38 = vmax.f32 %v11290_v34, 0.0  ;;  %v11294_v40 = vpop.f32.mrb[95].mxu0  ;;  %v16979_v49 = vld [vmem:[#allocation10 + $0x244] ss:$12 sps:$4 sm:$0xff]  }
0x2b02   :  { %v11420_v42 = vmax.f32 %v11292_v37, 0.0 }
0x2b03   :  { %v11683_v2 = vpack.c.bf16 %v11419_v38, %v11419_v38  ;;  %v16980_v38 = vld [vmem:[#allocation10 + $0x3c8] ss:$12 sps:$4 sm:$0xff]  }
0x2b04   :  { %v11684_v43 = vpack.c.bf16 %v11420_v42, %v11420_v42  ;;  %v16977_v42 = vld [vmem:[#allocation10 + $0x240] ss:$12 sps:$4 sm:$0xff]  }
0x2b06   :  { %12765 = vmatprep.mubr.bf16.mxu0 %v11684_v43  ;;  %12929 = vmatprep.mubr.bf16.mxu1 %v11684_v43  ;;  %v16981_v43 = vld [vmem:[#allocation10 + $0x308] ss:$12 sps:$4 sm:$0xff]  }
0x2b07   :  { %12766 = vmatmul.mubr.bf16.vlgmr.msra.gmra.mrb[100].mxu0 %v11683_v2  ;;  %12930 = vmatmul.mubr.bf16.vlgmr.msra.gmra.mrb[108].mxu1 %v11683_v2  ;;  %v16985_v2 = vld [vmem:[#allocation10 + $0x3e0] ss:$12 sps:$4 sm:$0xff]  }
0x2b08   :  { %12775 = vmatpush1.bf16.msra.mxu0 %v16937_v45  ;;  %14758 = vmatpush3.bf16.msra.mxu1 %v16941_v47  ;;  %v16984_v47 = vld [vmem:[#allocation10 + $0x25c] ss:$12 sps:$4 sm:$0xff]  }
0x2b09   :  { %12776 = vmatprep.subr.bf16.mxu0 %v16944_v4  ;;  %14759 = vmatprep.subr.bf16.mxu1 %v16945_v44  ;;  %v16982_v44 = vld [vmem:[#allocation10 + $0x258] ss:$12 sps:$4 sm:$0xff]  }
0x2b0c   :  { %12777 = vmatpush1.bf16.msra.mxu0 %v16942_v50  ;;  %14760 = vmatpush3.bf16.msra.mxu1 %v16946_v51  ;;  %v16986_v50 = vld [vmem:[#allocation10 + $0x320] ss:$12 sps:$4 sm:$0xff]  }
0x2b0d   :  { %12778 = vmatprep.subr.bf16.mxu0 %v16949_v55  ;;  %14761 = vmatprep.subr.bf16.mxu1 %v16950_v5  ;;  %v16989_v51 = vld [vmem:[#allocation10 + $0x274] ss:$12 sps:$4 sm:$0xff]   ;;  %v16990_v55 = vld [vmem:[#allocation10 + $0x3f8] ss:$12 sps:$4 sm:$0xff]   ;;  %v16987_v5 = vld [vmem:[#allocation10 + $0x270] ss:$12 sps:$4 sm:$0xff]  }
0x2b10   :  { %12779 = vmatpush1.bf16.msra.mxu0 %v16947_v57  ;;  %14762 = vmatpush3.bf16.msra.mxu1 %v16951_v7  ;;  %v16991_v57 = vld [vmem:[#allocation10 + $0x338] ss:$12 sps:$4 sm:$0xff]  }
0x2b11   :  { %12780 = vmatprep.subr.bf16.mxu0 %v16954_v58  ;;  %14763 = vmatprep.subr.bf16.mxu1 %v16955_v59  ;;  %v16994_v7 = vld [vmem:[#allocation10 + $0x28c] ss:$12 sps:$4 sm:$0xff]   ;;  %v16995_v58 = vld [vmem:[#allocation10 + $0x410] ss:$12 sps:$4 sm:$0xff]   ;;  %v16992_v59 = vld [vmem:[#allocation10 + $0x288] ss:$12 sps:$4 sm:$0xff]  }
0x2b14   :  { %12781 = vmatpush1.bf16.msra.mxu0 %v16952_v60  ;;  %14764 = vmatpush3.bf16.msra.mxu1 %v16956_v61  ;;  %v16996_v60 = vld [vmem:[#allocation10 + $0x350] ss:$12 sps:$4 sm:$0xff]  }
0x2b15   :  { %12782 = vmatprep.subr.bf16.mxu0 %v16959_v62  ;;  %14765 = vmatprep.subr.bf16.mxu1 %v16960_v63  ;;  %v16999_v61 = vld [vmem:[#allocation10 + $0x2a4] ss:$12 sps:$4 sm:$0xff]   ;;  %v17000_v62 = vld [vmem:[#allocation10 + $0x428] ss:$12 sps:$4 sm:$0xff]   ;;  %v16997_v63 = vld [vmem:[#allocation10 + $0x2a0] ss:$12 sps:$4 sm:$0xff]  }
0x2b18   :  { %12783 = vmatpush1.bf16.msra.mxu0 %v16957_v3  ;;  %14766 = vmatpush3.bf16.msra.mxu1 %v16961_v12  ;;  %v17001_v3 = vld [vmem:[#allocation10 + $0x368] ss:$12 sps:$4 sm:$0xff]  }
0x2b19   :  { %12784 = vmatprep.subr.bf16.mxu0 %v16964_v6  ;;  %14767 = vmatprep.subr.bf16.mxu1 %v16965_v10  ;;  %v17004_v12 = vld [vmem:[#allocation10 + $0x2bc] ss:$12 sps:$4 sm:$0xff]   ;;  %v10921_v6 = vsub.s32 6, %v17495_v53  ;;  %v17005_v10 = vld [vmem:[#allocation10 + $0x440] ss:$12 sps:$4 sm:$0xff]  }
0x2b1c   :  { %v11330_v21 = vpop.f32.mrb[100].mxu1  ;;  %12785 = vmatpush1.bf16.msra.mxu0 %v16962_v39  ;;  %14768 = vmatpush3.bf16.msra.mxu1 %v16966_v19  ;;  %v10922_v39 = vrot.slane %v17706_v29, %v10921_v6  ;;  %v17006_v19 = vld [vmem:[#allocation10 + $0x380] ss:$12 sps:$4 sm:$0xff]  }
0x2b1d   :  { %v11332_v24 = vpop.f32.mrb[101].mxu1  ;;  %12786 = vmatprep.subr.bf16.mxu0 %v16969_v13  ;;  %14769 = vmatprep.subr.bf16.mxu1 %v16970_v15  ;;  %v11331_v0 = vadd.f32 %v11330_v21, %v10906_v16  ;;  %v10926_v13 = vrot.slane %v17706_v29, %v10925_v8  ;;  %v17010_v15 = vld [vmem:[#allocation10 + $0x458] ss:$12 sps:$4 sm:$0xff]   ;;  %v17016_v29 = vld [vmem:[#allocation10 + $0x3b0] ss:$12 sps:$4 sm:$0xff]  }
0x2b1e   :  { %v11333_v23 = vadd.f32 %v11332_v24, %v10910_v18  ;;  %v11334_v28 = vpop.f32.mrb[102].mxu1  ;;  %v11371_v41 = vpop.f32.mrb[96].mxu0  ;;  %v17007_v18 = vld [vmem:[#allocation10 + $0x2d0] ss:$12 sps:$4 sm:$0xff]   ;;  %v17057_v6 = vld [vmem:[#allocation10 + $0x3c0] ss:$12 sps:$4 sm:$0xff]  }
0x2b1f   :  { %v17725_v25 = vadd.f32 %v11371_v41, %v10914_v48  ;;  %v11335_v1 = vpop.f32.mrb[103].mxu1  ;;  %v11373_v30 = vpop.f32.mrb[97].mxu0  ;;  %v11421_v36 = vmax.f32 %v11331_v0, 0.0  ;;  %v17012_v0 = vld [vmem:[#allocation10 + $0x2e8] ss:$12 sps:$4 sm:$0xff]  }
0x2b20   :  { %v11422_v31 = vmax.f32 %v11333_v23, 0.0  ;;  %v11374_v32 = vadd.f32 %v11373_v30, %v10918_v17  ;;  %v11375_v46 = vpop.f32.mrb[98].mxu0  ;;  %12787 = vmatpush1.bf16.msra.mxu0 %v16967_v20  ;;  %14770 = vmatpush3.bf16.msra.mxu1 %v16971_v22  ;;  %v17011_v17 = vld [vmem:[#allocation10 + $0x398] ss:$12 sps:$4 sm:$0xff]   ;;  %v17020_v41 = vld [vmem:[#allocation10 + $0x548] ss:$12 sps:$4 sm:$0xff]  }
0x2b21   :  { %v11376_v34 = vpop.f32.mrb[99].mxu0  ;;  %12788 = vmatprep.subr.bf16.mxu0 %v16974_v26  ;;  %14771 = vmatprep.subr.bf16.mxu1 %v16975_v27  ;;  %v17727_v45 = vpack.c.bf16 %v11421_v36, %v11421_v36  ;;  %v17014_v20 = vld [vmem:[#allocation10 + $0x2ec] ss:$12 sps:$4 sm:$0xff]   ;;  %v17015_v26 = vld [vmem:[#allocation10 + $0x470] ss:$12 sps:$4 sm:$0xff]   ;;  %v11423_v28 = vmax.f32 %v17725_v25, 0.0 }
0x2b22   :  { %v11686_v37 = vpack.c.bf16 %v11422_v31, %v11422_v31  ;;  %v11424_v40 = vmax.f32 %v11374_v32, 0.0  ;;  %v17019_v23 = vld [vmem:[#allocation10 + $0x304] ss:$12 sps:$4 sm:$0xff]   ;;  %v17017_v30 = vld [vmem:[#allocation10 + $0x300] ss:$12 sps:$4 sm:$0xff]  }
0x2b23   :  { %v17021_v31 = vld [vmem:[#allocation10 + $0x488] ss:$12 sps:$4 sm:$0xff]   ;;  %v17740_v32 = vpack.c.bf16 %v11423_v28, %v11423_v28  ;;  %v17022_v25 = vld [vmem:[#allocation10 + $0x318] ss:$12 sps:$4 sm:$0xff]  }
0x2b24   :  { %12789 = vmatpush1.bf16.msra.mxu0 %v16972_v33  ;;  %12806 = vmatprep.mubr.bf16.mxu0 %v11686_v37  ;;  %v17729_v4 = vpack.c.bf16 %v11424_v40, %v11424_v40  ;;  %v17024_v46 = vld [vmem:[#allocation10 + $0x31c] ss:$12 sps:$4 sm:$0xff]   ;;  %v17025_v33 = vld [vmem:[#allocation10 + $0x560] ss:$12 sps:$4 sm:$0xff]  }
0x2b25   :  { %14772 = vmatpush3.bf16.msra.mxu1 %v16976_v35  ;;  %12969 = vmatprep.mubr.bf16.mxu1 %v11686_v37  ;;  %v17026_v35 = vld [vmem:[#allocation10 + $0x4a0] ss:$12 sps:$4 sm:$0xff]   ;;  %v17030_v37 = vld [vmem:[#allocation10 + $0x578] ss:$12 sps:$4 sm:$0xff]  }
0x2b26   :  { %12790 = vmatprep.subr.bf16.mxu0 %v16979_v49  ;;  %14779 = vmatprep.subr.bf16.mxu1 %v16980_v38  ;;  %v17029_v36 = vld [vmem:[#allocation10 + $0x334] ss:$12 sps:$4 sm:$0xff]   ;;  %v17027_v49 = vld [vmem:[#allocation10 + $0x330] ss:$12 sps:$4 sm:$0xff]   ;;  %v17031_v38 = vld [vmem:[#allocation10 + $0x4b8] ss:$12 sps:$4 sm:$0xff]  }
0x2b27   :  { %v17034_v40 = vld [vmem:[#allocation10 + $0x34c] ss:$12 sps:$4 sm:$0xff]  }
0x2b28   :  { %12970 = vmatmul.mubr.bf16.vlgmr.msra.gmra.mrb[112].mxu1 %v17727_v45  ;;  %12791 = vmatpush1.bf16.msra.mxu0 %v16977_v42  ;;  %v17035_v42 = vld [vmem:[#allocation10 + $0x590] ss:$12 sps:$4 sm:$0xff]   ;;  %v17092_v28 = vld [vmem:[#allocation10 + $0x4cc] ss:$12 sps:$4 sm:$0xff]  }
0x2b29   :  { %14780 = vmatpush3.bf16.msra.mxu1 %v16981_v43  ;;  %13009 = vmatprep.mubr.bf16.mxu1 %v17729_v4  ;;  %v17032_v43 = vld [vmem:[#allocation10 + $0x348] ss:$12 sps:$4 sm:$0xff]  }
0x2b2a   :  { %12792 = vmatprep.subr.bf16.mxu0 %v16984_v47  ;;  %14781 = vmatprep.subr.bf16.mxu1 %v16985_v2  ;;  %v17039_v47 = vld [vmem:[#allocation10 + $0x364] ss:$12 sps:$4 sm:$0xff]   ;;  %v17040_v2 = vld [vmem:[#allocation10 + $0x5a8] ss:$12 sps:$4 sm:$0xff]  }
0x2b2c   :  { %12793 = vmatpush1.bf16.msra.mxu0 %v16982_v44  ;;  %v17041_v44 = vld [vmem:[#allocation10 + $0x4e8] ss:$12 sps:$4 sm:$0xff]  }
0x2b2d   :  { %14782 = vmatpush3.bf16.msra.mxu1 %v16986_v50  ;;  %12794 = vmatprep.subr.bf16.mxu0 %v16989_v51  ;;  %v17044_v50 = vld [vmem:[#allocation10 + $0x37c] ss:$12 sps:$4 sm:$0xff]   ;;  %v17045_v51 = vld [vmem:[#allocation10 + $0x5c0] ss:$12 sps:$4 sm:$0xff]  }
0x2b2e   :  { %14783 = vmatprep.subr.bf16.mxu1 %v16990_v55  ;;  %v17042_v55 = vld [vmem:[#allocation10 + $0x378] ss:$12 sps:$4 sm:$0xff]  }
0x2b30   :  { %12795 = vmatpush1.bf16.msra.mxu0 %v16987_v5  ;;  %v17046_v5 = vld [vmem:[#allocation10 + $0x500] ss:$12 sps:$4 sm:$0xff]  }
0x2b31   :  { %14784 = vmatpush3.bf16.msra.mxu1 %v16991_v57  ;;  %12796 = vmatprep.subr.bf16.mxu0 %v16994_v7  ;;  %v17049_v57 = vld [vmem:[#allocation10 + $0x394] ss:$12 sps:$4 sm:$0xff]   ;;  %v17050_v7 = vld [vmem:[#allocation10 + $0x5d8] ss:$12 sps:$4 sm:$0xff]  }
0x2b32   :  { %14785 = vmatprep.subr.bf16.mxu1 %v16995_v58  ;;  %v17047_v58 = vld [vmem:[#allocation10 + $0x390] ss:$12 sps:$4 sm:$0xff]  }
0x2b34   :  { %12797 = vmatpush1.bf16.msra.mxu0 %v16992_v59  ;;  %v17051_v59 = vld [vmem:[#allocation10 + $0x518] ss:$12 sps:$4 sm:$0xff]  }
0x2b35   :  { %14786 = vmatpush3.bf16.msra.mxu1 %v16996_v60  ;;  %12798 = vmatprep.subr.bf16.mxu0 %v16999_v61  ;;  %v17054_v60 = vld [vmem:[#allocation10 + $0x3ac] ss:$12 sps:$4 sm:$0xff]   ;;  %v17055_v61 = vld [vmem:[#allocation10 + $0x5f0] ss:$12 sps:$4 sm:$0xff]  }
0x2b36   :  { %14787 = vmatprep.subr.bf16.mxu1 %v17000_v62  ;;  %v17052_v62 = vld [vmem:[#allocation10 + $0x3a8] ss:$12 sps:$4 sm:$0xff]  }
0x2b38   :  { %12799 = vmatpush1.bf16.msra.mxu0 %v16997_v63  ;;  %v17056_v63 = vld [vmem:[#allocation10 + $0x530] ss:$12 sps:$4 sm:$0xff]  }
0x2b39   :  { %14788 = vmatpush3.bf16.msra.mxu1 %v17001_v3  ;;  %12800 = vmatprep.subr.bf16.mxu0 %v17004_v12  ;;  %v17059_v3 = vld [vmem:[#allocation10 + $0x3c4] ss:$12 sps:$4 sm:$0xff]  }
0x2b3a   :  { %14789 = vmatprep.subr.bf16.mxu1 %v17005_v10  ;;  %v17062_v10 = vld [vmem:[#allocation10 + $0x3dc] ss:$12 sps:$4 sm:$0xff]  }
0x2b3c   :  { %v11412_v16 = vpop.f32.mrb[104].mxu1  ;;  %12801 = vmatpush1.bf16.msra.mxu0 %v17002_v9  ;;  %v17060_v9 = vld [vmem:[#allocation10 + $0x3d8] ss:$12 sps:$4 sm:$0xff]  }
0x2b3d   :  { %v17737_v48 = vadd.f32 %v11412_v16, %v10922_v39  ;;  %14790 = vmatpush3.bf16.msra.mxu1 %v17006_v19  ;;  %v11414_v21 = vpop.f32.mrb[105].mxu1  ;;  %12802 = vmatprep.subr.bf16.mxu0 %v17009_v11  ;;  %v17065_v39 = vld [vmem:[#allocation10 + $0x3f4] ss:$12 sps:$4 sm:$0xff]   ;;  %v17063_v19 = vld [vmem:[#allocation10 + $0x3f0] ss:$12 sps:$4 sm:$0xff]  }
0x2b3e   :  { %v11415_v22 = vadd.f32 %v11414_v21, %v10926_v13  ;;  %v11416_v24 = vpop.f32.mrb[106].mxu1  ;;  %14791 = vmatprep.subr.bf16.mxu1 %v17010_v15  ;;  %v17068_v11 = vld [vmem:[#allocation10 + $0x40c] ss:$12 sps:$4 sm:$0xff]   ;;  %v17066_v13 = vld [vmem:[#allocation10 + $0x408] ss:$12 sps:$4 sm:$0xff]  }
0x2b3f   :  { %v11417_v27 = vpop.f32.mrb[107].mxu1  ;;  %v11425_v12 = vmax.f32 %v17737_v48, 0.0  ;;  %v17071_v15 = vld [vmem:[#allocation10 + $0x424] ss:$12 sps:$4 sm:$0xff]   ;;  %v17069_v16 = vld [vmem:[#allocation10 + $0x420] ss:$12 sps:$4 sm:$0xff]  }
0x2b40   :  { %12803 = vmatpush1.bf16.msra.mxu0 %v17007_v18  ;;  %v11426_v1 = vmax.f32 %v11415_v22, 0.0  ;;  %v17074_v18 = vld [vmem:[#allocation10 + $0x43c] ss:$12 sps:$4 sm:$0xff]   ;;  %v17072_v48 = vld [vmem:[#allocation10 + $0x438] ss:$12 sps:$4 sm:$0xff]  }
0x2b41   :  { %14792 = vmatpush3.bf16.msra.mxu1 %v17011_v17  ;;  %12804 = vmatprep.subr.bf16.mxu0 %v17014_v20  ;;  %v17749_v8 = vpack.c.bf16 %v11425_v12, %v11425_v12  ;;  %v17077_v21 = vld [vmem:[#allocation10 + $0x454] ss:$12 sps:$4 sm:$0xff]   ;;  %v17075_v17 = vld [vmem:[#allocation10 + $0x450] ss:$12 sps:$4 sm:$0xff]   ;;  %v17080_v20 = vld [vmem:[#allocation10 + $0x46c] ss:$12 sps:$4 sm:$0xff]  }
0x2b42   :  { %14793 = vmatprep.subr.bf16.mxu1 %v17015_v26  ;;  %v17743_v34 = vpack.c.bf16 %v11426_v1, %v11426_v1  ;;  %v17078_v22 = vld [vmem:[#allocation10 + $0x468] ss:$12 sps:$4 sm:$0xff]   ;;  %v17083_v24 = vld [vmem:[#allocation10 + $0x484] ss:$12 sps:$4 sm:$0xff]   ;;  %v17081_v26 = vld [vmem:[#allocation10 + $0x480] ss:$12 sps:$4 sm:$0xff]  }
0x2b43   :  { %v17086_v27 = vld [vmem:[#allocation10 + $0x49c] ss:$12 sps:$4 sm:$0xff]   ;;  %v17095_v1 = vld [vmem:[#allocation10 + $0x4e4] ss:$12 sps:$4 sm:$0xff]  }
0x2b44   :  { %12805 = vmatpush1.bf16.msra.mxu0 %v17012_v0  ;;  %v17084_v0 = vld [vmem:[#allocation10 + $0x498] ss:$12 sps:$4 sm:$0xff]  }
0x2b45   :  { %14794 = vmatpush3.bf16.msra.mxu1 %v17016_v29  ;;  %12815 = vmatprep.subr.bf16.mxu0 %v17019_v23  ;;  %v17089_v29 = vld [vmem:[#allocation10 + $0x4b4] ss:$12 sps:$4 sm:$0xff]   ;;  %v17087_v23 = vld [vmem:[#allocation10 + $0x4b0] ss:$12 sps:$4 sm:$0xff]  }
0x2b46   :  { %14801 = vmatprep.subr.bf16.mxu1 %v17020_v41  ;;  %v17090_v41 = vld [vmem:[#allocation10 + $0x4c8] ss:$12 sps:$4 sm:$0xff]  }
0x2b47   :  { %12807 = vmatmul.mubr.bf16.vlgmr.msra.gmra.mrb[100].mxu0 %v17727_v45  ;;  %v17036_v45 = vld [vmem:[#allocation10 + $0x4d0] ss:$12 sps:$4 sm:$0xff]  }
0x2b48   :  { %13010 = vmatmul.mubr.bf16.vlgmr.msra.gmra.mrb[116].mxu1 %v17740_v32  ;;  %12816 = vmatpush1.bf16.msra.mxu0 %v17017_v30  ;;  %v17093_v30 = vld [vmem:[#allocation10 + $0x4e0] ss:$12 sps:$4 sm:$0xff]  }
0x2b49   :  { %12847 = vmatprep.mubr.bf16.mxu0 %v17729_v4  ;;  %14802 = vmatpush3.bf16.msra.mxu1 %v17021_v31  ;;  %v17037_v4 = vld [vmem:[#allocation10 + $0x360] ss:$12 sps:$4 sm:$0xff]   ;;  %v17098_v31 = vld [vmem:[#allocation10 + $0x4fc] ss:$12 sps:$4 sm:$0xff]  }
0x2b4a   :  { %13049 = vmatprep.mubr.bf16.mxu1 %v17743_v34  ;;  %12817 = vmatprep.subr.bf16.mxu0 %v17024_v46  ;;  %v17101_v46 = vld [vmem:[#allocation10 + $0x514] ss:$12 sps:$4 sm:$0xff]  }
0x2b4b   :  { %14803 = vmatprep.subr.bf16.mxu1 %v17025_v33  ;;  %v17099_v33 = vld [vmem:[#allocation10 + $0x510] ss:$12 sps:$4 sm:$0xff]  }
0x2b4c   :  { %12818 = vmatpush1.bf16.msra.mxu0 %v17022_v25  ;;  %v17102_v25 = vld [vmem:[#allocation10 + $0x528] ss:$12 sps:$4 sm:$0xff]  }
0x2b4d   :  { %14804 = vmatpush3.bf16.msra.mxu1 %v17026_v35  ;;  %12819 = vmatprep.subr.bf16.mxu0 %v17029_v36  ;;  %v17107_v35 = vld [vmem:[#allocation10 + $0x544] ss:$12 sps:$4 sm:$0xff]   ;;  %v17105_v36 = vld [vmem:[#allocation10 + $0x540] ss:$12 sps:$4 sm:$0xff]  }
0x2b4e   :  { %14805 = vmatprep.subr.bf16.mxu1 %v17030_v37  ;;  %v17110_v37 = vld [vmem:[#allocation10 + $0x55c] ss:$12 sps:$4 sm:$0xff]  }
0x2b50   :  { %12820 = vmatpush1.bf16.msra.mxu0 %v17027_v49  ;;  %v17108_v49 = vld [vmem:[#allocation10 + $0x558] ss:$12 sps:$4 sm:$0xff]  }
0x2b51   :  { %14806 = vmatpush3.bf16.msra.mxu1 %v17031_v38  ;;  %12821 = vmatprep.subr.bf16.mxu0 %v17034_v40  ;;  %v17113_v38 = vld [vmem:[#allocation10 + $0x574] ss:$12 sps:$4 sm:$0xff]   ;;  %v17111_v40 = vld [vmem:[#allocation10 + $0x570] ss:$12 sps:$4 sm:$0xff]  }
0x2b52   :  { %14807 = vmatprep.subr.bf16.mxu1 %v17035_v42  ;;  %v17116_v42 = vld [vmem:[#allocation10 + $0x58c] ss:$12 sps:$4 sm:$0xff]  }
0x2b54   :  { %12822 = vmatpush1.bf16.msra.mxu0 %v17032_v43  ;;  %v17114_v43 = vld [vmem:[#allocation10 + $0x588] ss:$12 sps:$4 sm:$0xff]  }
0x2b55   :  { %14808 = vmatpush3.bf16.msra.mxu1 %v17036_v45  ;;  %12823 = vmatprep.subr.bf16.mxu0 %v17039_v47  ;;  %v17119_v45 = vld [vmem:[#allocation10 + $0x5a4] ss:$12 sps:$4 sm:$0xff]   ;;  %v17117_v47 = vld [vmem:[#allocation10 + $0x5a0] ss:$12 sps:$4 sm:$0xff]  }
0x2b56   :  { %14809 = vmatprep.subr.bf16.mxu1 %v17040_v2  ;;  %v17122_v2 = vld [vmem:[#allocation10 + $0x5bc] ss:$12 sps:$4 sm:$0xff]  }
0x2b58   :  { %12824 = vmatpush1.bf16.msra.mxu0 %v17037_v4  ;;  %v17120_v4 = vld [vmem:[#allocation10 + $0x5b8] ss:$12 sps:$4 sm:$0xff]  }
0x2b59   :  { %14810 = vmatpush3.bf16.msra.mxu1 %v17041_v44  ;;  %12825 = vmatprep.subr.bf16.mxu0 %v17044_v50  ;;  %v17125_v44 = vld [vmem:[#allocation10 + $0x5d4] ss:$12 sps:$4 sm:$0xff]   ;;  %v17123_v50 = vld [vmem:[#allocation10 + $0x5d0] ss:$12 sps:$4 sm:$0xff]  }
0x2b5a   :  { %14811 = vmatprep.subr.bf16.mxu1 %v17045_v51  ;;  %v17128_v51 = vld [vmem:[#allocation10 + $0x5ec] ss:$12 sps:$4 sm:$0xff]  }
0x2b5c   :  { %12826 = vmatpush1.bf16.msra.mxu0 %v17042_v55  ;;  %v17126_v55 = vld [vmem:[#allocation10 + $0x5e8] ss:$12 sps:$4 sm:$0xff]  }
0x2b5d   :  { %14812 = vmatpush3.bf16.msra.mxu1 %v17046_v5  ;;  %12827 = vmatprep.subr.bf16.mxu0 %v17049_v57 }
0x2b5e   :  { %14813 = vmatprep.subr.bf16.mxu1 %v17050_v7 }
0x2b60   :  { %12828 = vmatpush1.bf16.msra.mxu0 %v17047_v58 }
0x2b61   :  { %14814 = vmatpush3.bf16.msra.mxu1 %v17051_v59  ;;  %12829 = vmatprep.subr.bf16.mxu0 %v17054_v60  ;;  %v11692_v60 = vld [vmem:[#allocation12 + $0x2] ss:$4 sm:$0x7] }
0x2b62   :  { %14815 = vmatprep.subr.bf16.mxu1 %v17055_v61  ;;  %v11705_v61 = vrot.slane %v11692_v60, %v10905_v14 }
0x2b64   :  { %12830 = vmatpush1.bf16.msra.mxu0 %v17052_v62 }
0x2b65   :  { %14816 = vmatpush3.bf16.msra.mxu1 %v17056_v63  ;;  %12831 = vmatprep.subr.bf16.mxu0 %v17059_v3 }
0x2b68   :  { %13050 = vmatmul.mubr.bf16.vlgmr.msra.gmra.mrb[120].mxu1 %v17749_v8  ;;  %12832 = vmatpush1.bf16.msra.mxu0 %v17057_v6 }
0x2b69   :  { %12833 = vmatprep.subr.bf16.mxu0 %v17062_v10 }
0x2b6c   :  { %12834 = vmatpush1.bf16.msra.mxu0 %v17060_v9 }
0x2b6d   :  { %12835 = vmatprep.subr.bf16.mxu0 %v17065_v39 }
0x2b70   :  { %12836 = vmatpush1.bf16.msra.mxu0 %v17063_v19 }
0x2b71   :  { %12837 = vmatprep.subr.bf16.mxu0 %v17068_v11 }
0x2b74   :  { %12838 = vmatpush1.bf16.msra.mxu0 %v17066_v13 }
0x2b75   :  { %12839 = vmatprep.subr.bf16.mxu0 %v17071_v15 }
0x2b78   :  { %12840 = vmatpush1.bf16.msra.mxu0 %v17069_v16  ;;  %v13068_v16 = vand.u32 127, %v388_v52 }
0x2b79   :  { %12841 = vmatprep.subr.bf16.mxu0 %v17074_v18 }
0x2b7a   :  { %vm13075_vm3 = vcmp.ge.s32.totalorder %v13068_v16, 40  ;;  %vm13076_vm4 = vcmp.lt.s32.totalorder %v13068_v16, 48  ;;  %vm13072_vm5 = vcmp.ge.s32.totalorder %v13068_v16, 36  ;;  %vm13073_vm6 = vcmp.lt.s32.totalorder %v13068_v16, 40 }
0x2b7b   :  { %vm17758_vm7 = vmand %vm13075_vm3, %vm13076_vm4  ;;  %vm13069_vm9 = vcmp.ge.s32.totalorder %v13068_v16, 16  ;;  %vm13070_vm10 = vcmp.lt.s32.totalorder %v13068_v16, 32 }
0x2b7c   :  { %12842 = vmatpush1.bf16.msra.mxu0 %v17072_v48  ;;  %vm17762_vm8 = vmand %vm13072_vm5, %vm13073_vm6 }
0x2b7d   :  { %12843 = vmatprep.subr.bf16.mxu0 %v17077_v21  ;;  %vm13071_vm11 = vmand %vm13069_vm9, %vm13070_vm10 }
0x2b80   :  { %12844 = vmatpush1.bf16.msra.mxu0 %v17075_v17 }
0x2b81   :  { %12845 = vmatprep.subr.bf16.mxu0 %v17080_v20 }
0x2b84   :  { %12846 = vmatpush1.bf16.msra.mxu0 %v17078_v22 }
0x2b85   :  { %12856 = vmatprep.subr.bf16.mxu0 %v17083_v24 }
0x2b87   :  { %12848 = vmatmul.mubr.bf16.vlgmr.msra.gmra.mrb[100].mxu0 %v17740_v32  ;;  %v17096_v32 = vld [vmem:[#allocation10 + $0x4f8] ss:$12 sps:$4 sm:$0xff]  }
0x2b88   :  { %12857 = vmatpush1.bf16.msra.mxu0 %v17081_v26  ;;  %12888 = vmatprep.mubr.bf16.mxu0 %v17743_v34  ;;  %v17104_v34 = vld [vmem:[#allocation10 + $0x52c] ss:$12 sps:$4 sm:$0xff]  }
0x2b89   :  { %12858 = vmatprep.subr.bf16.mxu0 %v17086_v27 }
0x2b8c   :  { %12859 = vmatpush1.bf16.msra.mxu0 %v17084_v0 }
0x2b8d   :  { %12860 = vmatprep.subr.bf16.mxu0 %v17089_v29 }
0x2b90   :  { %12861 = vmatpush1.bf16.msra.mxu0 %v17087_v23 }
0x2b91   :  { %12862 = vmatprep.subr.bf16.mxu0 %v17092_v28 }
0x2b94   :  { %12863 = vmatpush1.bf16.msra.mxu0 %v17090_v41 }
0x2b95   :  { %12864 = vmatprep.subr.bf16.mxu0 %v17095_v1 }
0x2b98   :  { %12865 = vmatpush1.bf16.msra.mxu0 %v17093_v30 }
0x2b99   :  { %12866 = vmatprep.subr.bf16.mxu0 %v17098_v31  ;;  %v11697_v31 = vrot.slane %v11692_v60, %v17498_v54 }
0x2b9c   :  { %12867 = vmatpush1.bf16.msra.mxu0 %v17096_v32  ;;  %v11701_v32 = vrot.slane %v11692_v60, %v17501_v56 }
0x2b9d   :  { %12868 = vmatprep.subr.bf16.mxu0 %v17101_v46 }
0x2ba0   :  { %12869 = vmatpush1.bf16.msra.mxu0 %v17099_v33 }
0x2ba1   :  { %12870 = vmatprep.subr.bf16.mxu0 %v17104_v34 }
0x2ba4   :  { %12871 = vmatpush1.bf16.msra.mxu0 %v17102_v25 }
0x2ba5   :  { %12872 = vmatprep.subr.bf16.mxu0 %v17107_v35 }
0x2ba8   :  { %12873 = vmatpush1.bf16.msra.mxu0 %v17105_v36 }
0x2ba9   :  { %12874 = vmatprep.subr.bf16.mxu0 %v17110_v37 }
0x2bac   :  { %12875 = vmatpush1.bf16.msra.mxu0 %v17108_v49 }
0x2bad   :  { %12876 = vmatprep.subr.bf16.mxu0 %v17113_v38 }
0x2bb0   :  { %12877 = vmatpush1.bf16.msra.mxu0 %v17111_v40 }
0x2bb1   :  { %12878 = vmatprep.subr.bf16.mxu0 %v17116_v42 }
0x2bb4   :  { %12879 = vmatpush1.bf16.msra.mxu0 %v17114_v43 }
0x2bb5   :  { %12880 = vmatprep.subr.bf16.mxu0 %v17119_v45 }
0x2bb8   :  { %12881 = vmatpush1.bf16.msra.mxu0 %v17117_v47 }
0x2bb9   :  { %12882 = vmatprep.subr.bf16.mxu0 %v17122_v2 }
0x2bbc   :  { %12883 = vmatpush1.bf16.msra.mxu0 %v17120_v4 }
0x2bbd   :  { %12884 = vmatprep.subr.bf16.mxu0 %v17125_v44 }
0x2bc0   :  { %12885 = vmatpush1.bf16.msra.mxu0 %v17123_v50 }
0x2bc1   :  { %12886 = vmatprep.subr.bf16.mxu0 %v17128_v51 }
0x2bc4   :  { %12887 = vmatpush1.bf16.msra.mxu0 %v17126_v55 }
0x2bc7   :  { %12889 = vmatmul.mubr.bf16.vlgmr.msra.gmra.mrb[100].mxu0 %v17749_v8 }
0x2bda   :  { %v14751_v5 = vpop.f32.mrb[108].mxu1 }
0x2bdb   :  { %v14752_v57 = vpop.f32.mrb[109].mxu1 }
0x2bdc   :  { %v14753_v7 = vadd.f32 %v14752_v57, %v14751_v5  ;;  %v14754_v58 = vpop.f32.mrb[110].mxu1 }
0x2bdd   :  { %v14755_v59 = vpop.f32.mrb[111].mxu1 }
0x2bde   :  { %v12932_v3 = vadd.f32 %v14753_v7, %v11705_v61 }
0x2bfb   :  { %v14773_v62 = vpop.f32.mrb[112].mxu1 }
0x2bfc   :  { %v14774_v63 = vpop.f32.mrb[113].mxu1 }
0x2bfd   :  { %v14775_v12 = vadd.f32 %v14774_v63, %v14773_v62  ;;  %v14776_v6 = vpop.f32.mrb[114].mxu1 }
0x2bfe   :  { %v14777_v10 = vpop.f32.mrb[115].mxu1 }
0x2bff   :  { %v12972_v9 = vadd.f32 %v14775_v12, %v12932_v3 }
0x2c1b   :  { %v14795_v39 = vpop.f32.mrb[116].mxu1 }
0x2c1c   :  { %v14796_v19 = vpop.f32.mrb[117].mxu1 }
0x2c1d   :  { %v14797_v11 = vadd.f32 %v14796_v19, %v14795_v39  ;;  %v14798_v8 = vpop.f32.mrb[118].mxu1 }
0x2c1e   :  { %v14799_v13 = vpop.f32.mrb[119].mxu1 }
0x2c1f   :  { %v13012_v15 = vadd.f32 %v14797_v11, %v12972_v9 }
0x2c3b   :  { %v14817_v18 = vpop.f32.mrb[120].mxu1 }
0x2c3c   :  { %v14818_v53 = vpop.f32.mrb[121].mxu1 }
0x2c3d   :  { %v14819_v14 = vadd.f32 %v14818_v53, %v14817_v18  ;;  %v14820_v48 = vpop.f32.mrb[122].mxu1 }
0x2c3e   :  { %v14821_v17 = vpop.f32.mrb[123].mxu1 }
0x2c3f   :  { %v13052_v22 = vadd.f32 %v14819_v14, %v13012_v15 }
0x2c41   :  { %v13079_v24 = vsub.f32 0.0, %v13052_v22  ;;  %v13098_v52 = vsel %vm17758_vm7, %v13052_v22, -1e+30  ;;  %v13085_v26 = vsel %vm17762_vm8, %v13052_v22, -1e+30  ;;  %v13078_v41 = vmax.f32 %v13052_v22, 0.0 }
0x2c42   :  { %v13099_v27 = vsel %vm203_vm2, %v13098_v52, -inf  ;;  %v13086_v0 = vsel %vm203_vm2, %v13085_v26, -inf }
0x2c43   :  { %v13080_v29 = vmul.f32 1.442695, %v13079_v24  ;;  %13100 = vmax.xlane.f32.xlu0 %v13099_v27  ;;  %13087 = vmax.xlane.f32.xlu1 %v13086_v0 }
0x2c45   :  { %17133 = vpow2.f32 %v13080_v29 }
0x2c4f   :  { %v17134_v23 = vpop.eup %17133 }
0x2c50   :  { %v13082_v28 = vadd.f32 1.0, %v17134_v23 }
0x2c52   :  { %17135 = vrcp.f32 %v13082_v28 }
0x2c5c   :  { %v17136_v1 = vpop.eup %17135 }
0x2c5d   :  { %v13084_v30 = vsel %vm13071_vm11, %v13078_v41, %v17136_v1 }
0x2c9a   :  { %v12890_v46 = vpop.f32.mrb[100].mxu0 }
0x2c9b   :  { %v14875_v33 = vadd.f32 %v12890_v46, %v11697_v31  ;;  %v12892_v34 = vpop.f32.mrb[101].mxu0 }
0x2c9c   :  { %v14876_v25 = vadd.f32 %v12892_v34, %v11701_v32  ;;  %v12894_v35 = vpop.f32.mrb[102].mxu0 }
0x2c9d   :  { %v13057_v36 = vsub.f32 0.0, %v14875_v33  ;;  %v12895_v37 = vpop.f32.mrb[103].mxu0 }
0x2c9e   :  { %v13058_v49 = vsub.f32 0.0, %v14876_v25 }
0x2c9f   :  { %v13059_v38 = vmul.f32 1.442695, %v13057_v36 }
0x2ca0   :  { %v13061_v40 = vmul.f32 1.442695, %v13058_v49 }
0x2ca1   :  { %17137 = vpow2.f32 %v13059_v38 }
0x2ca2   :  { %17139 = vpow2.f32 %v13061_v40 }
0x2cab   :  { %v17138_v42 = vpop.eup %17137 }
0x2cac   :  { %v17140_v43 = vpop.eup %17139  ;;  %v13063_v45 = vadd.f32 1.0, %v17138_v42 }
0x2cad   :  { %v13064_v47 = vadd.f32 1.0, %v17140_v43 }
0x2cae   :  { %17141 = vrcp.f32 %v13063_v45 }
0x2caf   :  { %17143 = vrcp.f32 %v13064_v47 }
0x2cb8   :  { %v17142_v54 = vpop.eup %17141 }
0x2cb9   :  { %v17144_v56 = vpop.eup %17143 }
0x2cba   :  { %v13121_v2 = vcombine.low %v17142_v54, %v17144_v56 }
0x2cbc   :  { %13123 = vst [vmem:[%s17797_s7 + $0x18] sm:$0xff] %v13121_v2 }
0x2cd0   :  { %v13101_v4 = vpop.xlane.xlu0 %13100  ;;  %v13088_v44 = vpop.xlane.xlu1 %13087 }
0x2cd1   :  { %v13102_v50 = vsub.f32 %v13098_v52, %v13101_v4  ;;  %v13089_v51 = vsub.f32 %v13085_v26, %v13088_v44 }
0x2cd3   :  { %v13103_v55 = vmul.f32 1.442695, %v13102_v50  ;;  %v13090_v5 = vmul.f32 1.442695, %v13089_v51 }
0x2cd5   :  { %17145 = vpow2.f32 %v13103_v55 }
0x2cd6   :  { %17147 = vpow2.f32 %v13090_v5 }
0x2cdf   :  { %v17146_v57 = vpop.eup %17145 }
0x2ce0   :  { %v17148_v7 = vpop.eup %17147  ;;  %v13105_v58 = vsel %vm17758_vm7, %v17146_v57, 0.0 }
0x2ce1   :  { %v13106_v59 = vsel %vm203_vm2, %v13105_v58, 0.0  ;;  %v13092_v60 = vsel %vm17762_vm8, %v17148_v7, 0.0 }
0x2ce2   :  { %13107 = vadd.xlane.f32.xlu0 %v13106_v59  ;;  %v13093_v61 = vsel %vm203_vm2, %v13092_v60, 0.0 }
0x2ce3   :  { %13094 = vadd.xlane.f32.xlu1 %v13093_v61 }
0x2d6f   :  { %v13108_v62 = vpop.xlane.xlu0 %13107 }
0x2d70   :  { %17149 = vrcp.f32 %v13108_v62  ;;  %v13095_v63 = vpop.xlane.xlu1 %13094 }
0x2d71   :  { %17151 = vrcp.f32 %v13095_v63 }
0x2d7a   :  { %v17150_v3 = vpop.eup %17149 }
0x2d7b   :  { %v17152_v12 = vpop.eup %17151  ;;  %v13110_v6 = vmul.f32 %v17150_v3, %v13105_v58 }
0x2d7c   :  { %v13097_v10 = vmul.f32 %v17152_v12, %v13092_v60 }
0x2d7d   :  { %v13111_v9 = vsel %vm17758_vm7, %v13110_v6, %v13084_v30 }
0x2d7e   :  { %v13112_v39 = vsel %vm17762_vm8, %v13097_v10, %v13111_v9 }
0x2d7f   :  { %13124 = vst [vmem:[%s17797_s7 + $0x20] sm:$0xf] %v13112_v39 }
0x2d80   :  { %13129 = vsyncpa [#allocation3], 1 }
0x2d81   :  { %13130 = vsyncpa [#allocation5], 1 }
0x2d82   :  { %13131 = vsyncpa [#allocation8], 1 }
0x2d83   :  { %13132 = vsyncpa [#allocation11], 1 }

</bundles_post_ra>
